<compile_context>
chip_gen: v5e
topology: v5e:2x2
jax: 0.10.0
libtpu: 0.0.40
codegen_flags: <defaults>
</compile_context>

<pallas_src>
import jax
import jax.numpy as jnp
from jax.experimental import pallas as pl
from jax.experimental.pallas import tpu as pltpu


# ----------------------------------------------------------------------------
# Fused kernel
# ----------------------------------------------------------------------------
def _build_text_encoder_kernel(T, B, E, F, H, L, vocab):
    TB = T * B
    Dh = E // H
    eps = 1e-5  # PyTorch nn.LayerNorm default

    def kernel(ids_ref, emb_ref, pos_ref, wqkv_ref, wo_ref, w3_ref,
               wf1_ref, wf2_ref, vec_ref, o_ref):

        def layernorm(v, g, b):
            mu = jnp.mean(v, axis=-1, keepdims=True)
            var = jnp.mean(jnp.square(v - mu), axis=-1, keepdims=True)
            return (v - mu) * jax.lax.rsqrt(var + eps) * g + b

        # ---- embedding lookup (one-hot matmul) + scale + positional add ----
        ids = ids_ref[...]                                          # (TB, 1) int32
        onehot = (ids == jax.lax.broadcasted_iota(jnp.int32, (TB, vocab), 1)
                  ).astype(jnp.float32)                             # (TB, V)
        x = jnp.dot(onehot, emb_ref[...],
                    preferred_element_type=jnp.float32) * (float(E) ** 0.5)
        pos = pos_ref[...][:T, :]                                   # (T, E)
        x = (x.reshape(T, B, E) + pos[:, None, :]).reshape(TB, E)
        # TextEncoder.dropout -> identity (inference)

        for l in range(L):                                          # static unroll
            vecs = vec_ref[l]                                       # (9, Wpad)
            ln1g, ln1b = vecs[0:1, :E], vecs[1:2, :E]
            bqkv = vecs[2:3, :3 * E]
            bo, b3 = vecs[3:4, :E], vecs[4:5, :E]
            ln2g, ln2b = vecs[5:6, :E], vecs[6:7, :E]
            bf1, bf2 = vecs[7:8, :F], vecs[8:9, :E]

            # norm1
            h = layernorm(x, ln1g, ln1b)

            # fused (linears[0..2] o MHA in_proj) QKV projection,
            # 1/sqrt(Dh) query scale already folded into the weights/bias.
            qkv = (jnp.dot(h, wqkv_ref[l], preferred_element_type=jnp.float32)
                   + bqkv).reshape(T, B, 3 * E)

            # multi-head attention: batched over T (axis 0), attends over B.
            heads = []
            for hh in range(H):                                     # static unroll
                q = qkv[:, :, hh * Dh:(hh + 1) * Dh]
                k = qkv[:, :, E + hh * Dh:E + (hh + 1) * Dh]
                v = qkv[:, :, 2 * E + hh * Dh:2 * E + (hh + 1) * Dh]
                s = jnp.einsum('tbd,tcd->tbc', q, k,
                               preferred_element_type=jnp.float32)  # (T, B, B)
                p = jax.nn.softmax(s, axis=-1)
                oh = jnp.einsum('tbc,tcd->tbd', p, v,
                                preferred_element_type=jnp.float32) # (T, B, Dh)
                heads.append(oh.reshape(TB, Dh))
            ctx = jnp.concatenate(heads, axis=1)                    # (TB, E)

            # MHA out_proj (single matmul over all heads)
            a = jnp.dot(ctx, wo_ref[l], preferred_element_type=jnp.float32) + bo
            # attn dropout + EncoderLayer.dropout -> identity

            # x = a + linears[3](a)   (residual uses the attention output only)
            x = a + (jnp.dot(a, w3_ref[l], preferred_element_type=jnp.float32) + b3)
            # norm2
            x = layernorm(x, ln2g, ln2b)
            # x = x + feed_forward(x)
            ff = jnp.maximum(
                jnp.dot(x, wf1_ref[l], preferred_element_type=jnp.float32) + bf1,
                0.0)
            ff = jnp.dot(ff, wf2_ref[l], preferred_element_type=jnp.float32) + bf2
            x = x + ff

        # mean over the sequence axis (dim=1 of the original (B, T, E) layout)
        o_ref[...] = jnp.mean(x.reshape(T, B, E), axis=0).astype(o_ref.dtype)

    return kernel


def _full_spec(shape):
    nd = len(shape)
    return pl.BlockSpec(shape, lambda i, _nd=nd: (0,) * _nd)


# ----------------------------------------------------------------------------
# Wrapper: one pallas_call for the whole forward
# ----------------------------------------------------------------------------
def text_encoder_forward(token_ids, packed, num_heads):
    B, T = token_ids.shape
    emb = packed['embedding']
    vocab, E = emb.shape
    L = packed['wqkv'].shape[0]
    F = packed['wf1'].shape[2]

    # (b, t) -> kernel row index t*B + b  (matches batch_first=False semantics)
    ids_tb = jnp.transpose(token_ids).reshape(T * B, 1).astype(jnp.int32)

    args = (ids_tb, emb, packed['pos_embedding'], packed['wqkv'], packed['wo'],
            packed['w3'], packed['wf1'], packed['wf2'], packed['vecs'])

    kernel = _build_text_encoder_kernel(T, B, E, F, num_heads, L, vocab)
    return pl.pallas_call(
        kernel,
        grid=(1,),
        in_specs=[_full_spec(a.shape) for a in args],
        out_specs=_full_spec((B, E)),
        out_shape=jax.ShapeDtypeStruct((B, E), jnp.float32),
        compiler_params=pltpu.CompilerParams(
            dimension_semantics=("arbitrary",)),
    )(*args)


# ----------------------------------------------------------------------------
# Parameters: raw (PyTorch-like, stored (in, out)) + packing / pre-composition
# ----------------------------------------------------------------------------
def init_params(key, num_layers, vocab_size, max_len, E, F):
    # NOTE: weights are stored (in, out); loading a real PyTorch checkpoint
    # would require transposing nn.Linear / in_proj weights.
    keys = jax.random.split(key, 2 + num_layers)
    params = {
        'embedding': jax.random.normal(keys[0], (vocab_size, E), jnp.float32) * 0.02,
        'pos_embedding': jax.random.normal(keys[1], (max_len, E), jnp.float32) * 0.02,
        'layers': [],
    }
    for li in range(num_layers):
        k = jax.random.split(keys[2 + li], 20)

        def w(kk, shape, scale=0.05):
            return jax.random.normal(kk, shape, jnp.float32) * scale

        layer = dict(
            ln1_g=jnp.ones((E,)), ln1_b=jnp.zeros((E,)),
            w0=w(k[0], (E, E)), b0=w(k[10], (E,), 0.01),
            w1=w(k[1], (E, E)), b1=w(k[11], (E,), 0.01),
            w2=w(k[2], (E, E)), b2=w(k[12], (E,), 0.01),
            w3=w(k[3], (E, E)), b3=w(k[13], (E,), 0.01),
            wiq=w(k[4], (E, E)), biq=w(k[14], (E,), 0.01),
            wik=w(k[5], (E, E)), bik=w(k[15], (E,), 0.01),
            wiv=w(k[6], (E, E)), biv=w(k[16], (E,), 0.01),
            wo=w(k[7], (E, E)), bo=w(k[17], (E,), 0.01),
            ln2_g=jnp.ones((E,)), ln2_b=jnp.zeros((E,)),
            wf1=w(k[8], (E, F)), bf1=w(k[18], (F,), 0.01),
            wf2=w(k[9], (F, E)), bf2=w(k[19], (E,), 0.01),
        )
        params['layers'].append(layer)
    return params


def pack_params(params, num_heads):
    """Pre-compose linears[0..2] with the MHA in_proj (folding the q scale) and
    pack all per-layer parameters into a handful of stacked tensors."""
    E = params['embedding'].shape[1]
    layers = params['layers']
    F = layers[0]['wf1'].shape[1]
    Dh = E // num_heads
    scale = 1.0 / float(Dh) ** 0.5
    wpad = max(3 * E, F, E)

    def pad(v):
        return jnp.pad(v, (0, wpad - v.shape[0]))

    wqkv_l, wo_l, w3_l, wf1_l, wf2_l, vec_l = [], [], [], [], [], []
    for lp in layers:
        wq = (lp['w0'] @ lp['wiq']) * scale
        bq = (lp['b0'] @ lp['wiq'] + lp['biq']) * scale
        wk = lp['w1'] @ lp['wik']
        bk = lp['b1'] @ lp['wik'] + lp['bik']
        wv = lp['w2'] @ lp['wiv']
        bv = lp['b2'] @ lp['wiv'] + lp['biv']
        wqkv_l.append(jnp.concatenate([wq, wk, wv], axis=1))     # (E, 3E)
        bqkv = jnp.concatenate([bq, bk, bv], axis=0)             # (3E,)
        wo_l.append(lp['wo'])
        w3_l.append(lp['w3'])
        wf1_l.append(lp['wf1'])
        wf2_l.append(lp['wf2'])
        vec_l.append(jnp.stack([
            pad(lp['ln1_g']), pad(lp['ln1_b']), pad(bqkv),
            pad(lp['bo']), pad(lp['b3']),
            pad(lp['ln2_g']), pad(lp['ln2_b']),
            pad(lp['bf1']), pad(lp['bf2']),
        ], axis=0))                                              # (9, wpad)

    return {
        'embedding': params['embedding'],
        'pos_embedding': params['pos_embedding'],
        'wqkv': jnp.stack(wqkv_l),   # (L, E, 3E)
        'wo': jnp.stack(wo_l),       # (L, E, E)
        'w3': jnp.stack(w3_l),       # (L, E, E)
        'wf1': jnp.stack(wf1_l),     # (L, E, F)
        'wf2': jnp.stack(wf2_l),     # (L, F, E)
        'vecs': jnp.stack(vec_l),    # (L, 9, wpad)
    }


# ----------------------------------------------------------------------------
# Pure-JAX reference (mirrors the PyTorch module exactly) for validation
# ----------------------------------------------------------------------------
def _layernorm_ref(v, g, b, eps=1e-5):
    mu = jnp.mean(v, axis=-1, keepdims=True)
    var = jnp.mean(jnp.square(v - mu), axis=-1, keepdims=True)
    return (v - mu) * jax.lax.rsqrt(var + eps) * g + b


def text_encoder_reference(token_ids, params, num_heads):
    emb, pos = params['embedding'], params['pos_embedding']
    B, T = token_ids.shape
    E = emb.shape[1]
    H, Dh = num_heads, emb.shape[1] // num_heads
    scale = 1.0 / float(Dh) ** 0.5
    x = emb[token_ids] * (float(E) ** 0.5) + pos[:T][None, :, :]   # (B, T, E)
    for lp in params['layers']:
        h = _layernorm_ref(x, lp['ln1_g'], lp['ln1_b'])
        q = (h @ lp['w0'] + lp['b0']) @ lp['wiq'] + lp['biq']
        k = (h @ lp['w1'] + lp['b1']) @ lp['wik'] + lp['bik']
        v = (h @ lp['w2'] + lp['b2']) @ lp['wiv'] + lp['biv']
        heads = []
        for hh in range(H):
            sl = slice(hh * Dh, (hh + 1) * Dh)
            s = jnp.einsum('btd,ctd->tbc', q[..., sl] * scale, k[..., sl])
            p = jax.nn.softmax(s, axis=-1)
            heads.append(jnp.einsum('tbc,ctd->btd', p, v[..., sl]))
        a = jnp.concatenate(heads, axis=-1) @ lp['wo'] + lp['bo']
        x = a + (a @ lp['w3'] + lp['b3'])
        x = _layernorm_ref(x, lp['ln2_g'], lp['ln2_b'])
        ff = jnp.maximum(x @ lp['wf1'] + lp['bf1'], 0.0) @ lp['wf2'] + lp['bf2']
        x = x + ff
    return jnp.mean(x, axis=1)


# ----------------------------------------------------------------------------
if __name__ == "__main__":
    # TextEncoder(num_heads=4, num_layers=2, max_len=16, vocab_size=100,
    #             embedding_dim=32, feed_forward_dim=64, dropout=0.0)
    NUM_HEADS = 4
    NUM_LAYERS = 2
    MAX_LEN = 16
    VOCAB = 100
    E = 32
    F = 64
    B, T = 2, 8

    key = jax.random.PRNGKey(0)
    pkey, dkey = jax.random.split(key)
    params = init_params(pkey, NUM_LAYERS, VOCAB, MAX_LEN, E, F)
    tokens = jax.random.randint(dkey, (B, T), 0, VOCAB, dtype=jnp.int32)

    packed = pack_params(params, NUM_HEADS)
    out = text_encoder_forward(tokens, packed, NUM_HEADS)
    out = jax.block_until_ready(out)

    assert out.shape == (B, E), out.shape
    assert bool(jnp.all(jnp.isfinite(out)))

    ref = text_encoder_reference(tokens, params, NUM_HEADS)
    assert jnp.allclose(out, ref, rtol=3e-2, atol=3e-2), jnp.max(jnp.abs(out - ref))

    print("KERNEL_OK")
</pallas_src>

<mosaic_0001>
module attributes {stable_mosaic.version = 11 : i64} {
  func.func @kernel(%arg0: i32, %arg1: memref<16x1xi32, #tpu.memory_space<vmem>>, %arg2: memref<100x32xf32, #tpu.memory_space<vmem>>, %arg3: memref<16x32xf32, #tpu.memory_space<vmem>>, %arg4: memref<2x32x96xf32, #tpu.memory_space<vmem>>, %arg5: memref<2x32x32xf32, #tpu.memory_space<vmem>>, %arg6: memref<2x32x32xf32, #tpu.memory_space<vmem>>, %arg7: memref<2x32x64xf32, #tpu.memory_space<vmem>>, %arg8: memref<2x64x32xf32, #tpu.memory_space<vmem>>, %arg9: memref<2x9x96xf32, #tpu.memory_space<vmem>>, %arg10: memref<2x32xf32, #tpu.memory_space<vmem>>) attributes {dimension_semantics = [#tpu.dimension_semantics<arbitrary>], iteration_bounds = array<i64: 1>, scalar_prefetch = 0 : i64, scratch_operands = 0 : i64, tpu.core_type = #tpu.core_type<tc>, window_params = [{pipeline_mode = #tpu.pipeline_mode<synchronous>, transform_indices = @transform_0, window_bounds = array<i64: 16, 1>}, {pipeline_mode = #tpu.pipeline_mode<synchronous>, transform_indices = @transform_1, window_bounds = array<i64: 100, 32>}, {pipeline_mode = #tpu.pipeline_mode<synchronous>, transform_indices = @transform_2, window_bounds = array<i64: 16, 32>}, {pipeline_mode = #tpu.pipeline_mode<synchronous>, transform_indices = @transform_3, window_bounds = array<i64: 2, 32, 96>}, {pipeline_mode = #tpu.pipeline_mode<synchronous>, transform_indices = @transform_4, window_bounds = array<i64: 2, 32, 32>}, {pipeline_mode = #tpu.pipeline_mode<synchronous>, transform_indices = @transform_5, window_bounds = array<i64: 2, 32, 32>}, {pipeline_mode = #tpu.pipeline_mode<synchronous>, transform_indices = @transform_6, window_bounds = array<i64: 2, 32, 64>}, {pipeline_mode = #tpu.pipeline_mode<synchronous>, transform_indices = @transform_7, window_bounds = array<i64: 2, 64, 32>}, {pipeline_mode = #tpu.pipeline_mode<synchronous>, transform_indices = @transform_8, window_bounds = array<i64: 2, 9, 96>}, {pipeline_mode = #tpu.pipeline_mode<synchronous>, transform_indices = @transform_9, window_bounds = array<i64: 2, 32>}]} {
    %c0 = arith.constant 0 : index
    %c0_0 = arith.constant 0 : index
    %0 = vector.load %arg1[%c0, %c0_0] : memref<16x1xi32, #tpu.memory_space<vmem>>, vector<16x1xi32>
    %1 = tpu.iota {dimensions = array<i32: 1>} : vector<16x100xi32>
    %2 = vector.broadcast %0 : vector<16x1xi32> to vector<16x100xi32>
    %3 = arith.cmpi eq, %2, %1 : vector<16x100xi32>
    %4 = arith.extui %3 : vector<16x100xi1> to vector<16x100xi32>
    %5 = arith.sitofp %4 : vector<16x100xi32> to vector<16x100xf32>
    %c0_1 = arith.constant 0 : index
    %c0_2 = arith.constant 0 : index
    %6 = vector.load %arg2[%c0_1, %c0_2] : memref<100x32xf32, #tpu.memory_space<vmem>>, vector<100x32xf32>
    %cst = arith.constant dense<0.000000e+00> : vector<16x32xf32>
    %7 = tpu.matmul %5, %6, %cst {dimension_numbers = #tpu.dot_dimension_numbers<[1], [0], [0], [1], [0, 0, 1, 1], [], []>} : vector<16x100xf32>, vector<100x32xf32>, vector<16x32xf32> -> vector<16x32xf32>
    %cst_3 = arith.constant 5.65685415 : f32
    %8 = vector.broadcast %cst_3 : f32 to vector<16x32xf32>
    %9 = arith.mulf %7, %8 : vector<16x32xf32>
    %c0_4 = arith.constant 0 : index
    %c0_5 = arith.constant 0 : index
    %10 = vector.load %arg3[%c0_4, %c0_5] : memref<16x32xf32, #tpu.memory_space<vmem>>, vector<16x32xf32>
    %11 = vector.extract_strided_slice %10 {offsets = [0, 0], sizes = [8, 32], strides = [1, 1]} : vector<16x32xf32> to vector<8x32xf32>
    %12 = vector.shape_cast %9 : vector<16x32xf32> to vector<8x2x32xf32>
    %13 = vector.shape_cast %11 : vector<8x32xf32> to vector<8x1x32xf32>
    %14 = vector.broadcast %13 : vector<8x1x32xf32> to vector<8x2x32xf32>
    %15 = arith.addf %12, %14 : vector<8x2x32xf32>
    %16 = vector.shape_cast %15 : vector<8x2x32xf32> to vector<16x32xf32>
    %c0_6 = arith.constant 0 : index
    %c0_7 = arith.constant 0 : index
    %c0_8 = arith.constant 0 : index
    %17 = vector.load %arg9[%c0_6, %c0_7, %c0_8] : memref<2x9x96xf32, #tpu.memory_space<vmem>>, vector<1x9x96xf32>
    %18 = vector.shape_cast %17 : vector<1x9x96xf32> to vector<9x96xf32>
    %19 = vector.extract_strided_slice %18 {offsets = [0, 0], sizes = [1, 32], strides = [1, 1]} : vector<9x96xf32> to vector<1x32xf32>
    %20 = vector.extract_strided_slice %18 {offsets = [1, 0], sizes = [1, 32], strides = [1, 1]} : vector<9x96xf32> to vector<1x32xf32>
    %21 = vector.extract_strided_slice %18 {offsets = [2, 0], sizes = [1, 96], strides = [1, 1]} : vector<9x96xf32> to vector<1x96xf32>
    %22 = vector.extract_strided_slice %18 {offsets = [3, 0], sizes = [1, 32], strides = [1, 1]} : vector<9x96xf32> to vector<1x32xf32>
    %23 = vector.extract_strided_slice %18 {offsets = [4, 0], sizes = [1, 32], strides = [1, 1]} : vector<9x96xf32> to vector<1x32xf32>
    %24 = vector.extract_strided_slice %18 {offsets = [5, 0], sizes = [1, 32], strides = [1, 1]} : vector<9x96xf32> to vector<1x32xf32>
    %25 = vector.extract_strided_slice %18 {offsets = [6, 0], sizes = [1, 32], strides = [1, 1]} : vector<9x96xf32> to vector<1x32xf32>
    %26 = vector.extract_strided_slice %18 {offsets = [7, 0], sizes = [1, 64], strides = [1, 1]} : vector<9x96xf32> to vector<1x64xf32>
    %27 = vector.extract_strided_slice %18 {offsets = [8, 0], sizes = [1, 32], strides = [1, 1]} : vector<9x96xf32> to vector<1x32xf32>
    %cst_9 = arith.constant dense<0.000000e+00> : vector<16xf32>
    %28 = vector.multi_reduction <add>, %16, %cst_9 [1] : vector<16x32xf32> to vector<16xf32>
    %29 = vector.shape_cast %28 : vector<16xf32> to vector<16x1xf32>
    %cst_10 = arith.constant 3.200000e+01 : f32
    %30 = vector.broadcast %cst_10 : f32 to vector<16x1xf32>
    %31 = arith.divf %29, %30 : vector<16x1xf32>
    %32 = vector.broadcast %31 : vector<16x1xf32> to vector<16x32xf32>
    %33 = arith.subf %16, %32 : vector<16x32xf32>
    %34 = arith.mulf %33, %33 : vector<16x32xf32>
    %cst_11 = arith.constant dense<0.000000e+00> : vector<16xf32>
    %35 = vector.multi_reduction <add>, %34, %cst_11 [1] : vector<16x32xf32> to vector<16xf32>
    %36 = vector.shape_cast %35 : vector<16xf32> to vector<16x1xf32>
    %cst_12 = arith.constant 3.200000e+01 : f32
    %37 = vector.broadcast %cst_12 : f32 to vector<16x1xf32>
    %38 = arith.divf %36, %37 : vector<16x1xf32>
    %39 = vector.broadcast %31 : vector<16x1xf32> to vector<16x32xf32>
    %40 = arith.subf %16, %39 : vector<16x32xf32>
    %cst_13 = arith.constant 9.99999974E-6 : f32
    %41 = vector.broadcast %cst_13 : f32 to vector<16x1xf32>
    %42 = arith.addf %38, %41 : vector<16x1xf32>
    %43 = math.rsqrt %42 : vector<16x1xf32>
    %44 = vector.broadcast %43 : vector<16x1xf32> to vector<16x32xf32>
    %45 = arith.mulf %40, %44 : vector<16x32xf32>
    %46 = vector.broadcast %19 : vector<1x32xf32> to vector<16x32xf32>
    %47 = arith.mulf %45, %46 : vector<16x32xf32>
    %48 = vector.broadcast %20 : vector<1x32xf32> to vector<16x32xf32>
    %49 = arith.addf %47, %48 : vector<16x32xf32>
    %c0_14 = arith.constant 0 : index
    %c0_15 = arith.constant 0 : index
    %c0_16 = arith.constant 0 : index
    %50 = vector.load %arg4[%c0_14, %c0_15, %c0_16] : memref<2x32x96xf32, #tpu.memory_space<vmem>>, vector<1x32x96xf32>
    %51 = vector.shape_cast %50 : vector<1x32x96xf32> to vector<32x96xf32>
    %cst_17 = arith.constant dense<0.000000e+00> : vector<16x96xf32>
    %52 = tpu.matmul %49, %51, %cst_17 {dimension_numbers = #tpu.dot_dimension_numbers<[1], [0], [0], [1], [0, 0, 1, 1], [], []>} : vector<16x32xf32>, vector<32x96xf32>, vector<16x96xf32> -> vector<16x96xf32>
    %53 = vector.broadcast %21 : vector<1x96xf32> to vector<16x96xf32>
    %54 = arith.addf %52, %53 : vector<16x96xf32>
    %55 = vector.shape_cast %54 : vector<16x96xf32> to vector<8x2x96xf32>
    %56 = vector.extract_strided_slice %55 {offsets = [0, 0, 0], sizes = [8, 2, 8], strides = [1, 1, 1]} : vector<8x2x96xf32> to vector<8x2x8xf32>
    %57 = vector.extract_strided_slice %55 {offsets = [0, 0, 32], sizes = [8, 2, 8], strides = [1, 1, 1]} : vector<8x2x96xf32> to vector<8x2x8xf32>
    %58 = vector.extract_strided_slice %55 {offsets = [0, 0, 64], sizes = [8, 2, 8], strides = [1, 1, 1]} : vector<8x2x96xf32> to vector<8x2x8xf32>
    "tpu.trace_start"() <{level = 10 : i32, message = "tbd,tcd->tbc"}> : () -> ()
    %cst_18 = arith.constant dense<0.000000e+00> : vector<8x2x2xf32>
    %59 = tpu.matmul %56, %57, %cst_18 {dimension_numbers = #tpu.dot_dimension_numbers<[2], [2], [1], [1], [0, 0, 0, 1, 1, 1], [0], [0]>} : vector<8x2x8xf32>, vector<8x2x8xf32>, vector<8x2x2xf32> -> vector<8x2x2xf32>
    "tpu.trace_stop"() : () -> ()
    %cst_19 = arith.constant dense<0xFF800000> : vector<8x2xf32>
    %60 = vector.multi_reduction <maximumf>, %59, %cst_19 [2] : vector<8x2x2xf32> to vector<8x2xf32>
    %cst_20 = arith.constant 0xFF800000 : f32
    %61 = vector.broadcast %cst_20 : f32 to vector<8x2xf32>
    %62 = arith.maximumf %61, %60 : vector<8x2xf32>
    %63 = vector.shape_cast %62 : vector<8x2xf32> to vector<8x2x1xf32>
    %64 = vector.broadcast %63 : vector<8x2x1xf32> to vector<8x2x2xf32>
    %65 = arith.subf %59, %64 : vector<8x2x2xf32>
    %66 = math.exp %65 : vector<8x2x2xf32>
    %cst_21 = arith.constant dense<0.000000e+00> : vector<8x2xf32>
    %67 = vector.multi_reduction <add>, %66, %cst_21 [2] : vector<8x2x2xf32> to vector<8x2xf32>
    %68 = vector.shape_cast %67 : vector<8x2xf32> to vector<8x2x1xf32>
    %69 = vector.broadcast %68 : vector<8x2x1xf32> to vector<8x2x2xf32>
    %70 = arith.divf %66, %69 : vector<8x2x2xf32>
    "tpu.trace_start"() <{level = 10 : i32, message = "tbc,tcd->tbd"}> : () -> ()
    %cst_22 = arith.constant dense<0.000000e+00> : vector<8x2x8xf32>
    %71 = tpu.matmul %70, %58, %cst_22 {dimension_numbers = #tpu.dot_dimension_numbers<[2], [1], [1], [2], [0, 0, 0, 1, 1, 2], [0], [0]>} : vector<8x2x2xf32>, vector<8x2x8xf32>, vector<8x2x8xf32> -> vector<8x2x8xf32>
    "tpu.trace_stop"() : () -> ()
    %72 = vector.shape_cast %71 : vector<8x2x8xf32> to vector<16x8xf32>
    %73 = vector.extract_strided_slice %55 {offsets = [0, 0, 8], sizes = [8, 2, 8], strides = [1, 1, 1]} : vector<8x2x96xf32> to vector<8x2x8xf32>
    %74 = vector.extract_strided_slice %55 {offsets = [0, 0, 40], sizes = [8, 2, 8], strides = [1, 1, 1]} : vector<8x2x96xf32> to vector<8x2x8xf32>
    %75 = vector.extract_strided_slice %55 {offsets = [0, 0, 72], sizes = [8, 2, 8], strides = [1, 1, 1]} : vector<8x2x96xf32> to vector<8x2x8xf32>
    "tpu.trace_start"() <{level = 10 : i32, message = "tbd,tcd->tbc"}> : () -> ()
    %cst_23 = arith.constant dense<0.000000e+00> : vector<8x2x2xf32>
    %76 = tpu.matmul %73, %74, %cst_23 {dimension_numbers = #tpu.dot_dimension_numbers<[2], [2], [1], [1], [0, 0, 0, 1, 1, 1], [0], [0]>} : vector<8x2x8xf32>, vector<8x2x8xf32>, vector<8x2x2xf32> -> vector<8x2x2xf32>
    "tpu.trace_stop"() : () -> ()
    %cst_24 = arith.constant dense<0xFF800000> : vector<8x2xf32>
    %77 = vector.multi_reduction <maximumf>, %76, %cst_24 [2] : vector<8x2x2xf32> to vector<8x2xf32>
    %cst_25 = arith.constant 0xFF800000 : f32
    %78 = vector.broadcast %cst_25 : f32 to vector<8x2xf32>
    %79 = arith.maximumf %78, %77 : vector<8x2xf32>
    %80 = vector.shape_cast %79 : vector<8x2xf32> to vector<8x2x1xf32>
    %81 = vector.broadcast %80 : vector<8x2x1xf32> to vector<8x2x2xf32>
    %82 = arith.subf %76, %81 : vector<8x2x2xf32>
    %83 = math.exp %82 : vector<8x2x2xf32>
    %cst_26 = arith.constant dense<0.000000e+00> : vector<8x2xf32>
    %84 = vector.multi_reduction <add>, %83, %cst_26 [2] : vector<8x2x2xf32> to vector<8x2xf32>
    %85 = vector.shape_cast %84 : vector<8x2xf32> to vector<8x2x1xf32>
    %86 = vector.broadcast %85 : vector<8x2x1xf32> to vector<8x2x2xf32>
    %87 = arith.divf %83, %86 : vector<8x2x2xf32>
    "tpu.trace_start"() <{level = 10 : i32, message = "tbc,tcd->tbd"}> : () -> ()
    %cst_27 = arith.constant dense<0.000000e+00> : vector<8x2x8xf32>
    %88 = tpu.matmul %87, %75, %cst_27 {dimension_numbers = #tpu.dot_dimension_numbers<[2], [1], [1], [2], [0, 0, 0, 1, 1, 2], [0], [0]>} : vector<8x2x2xf32>, vector<8x2x8xf32>, vector<8x2x8xf32> -> vector<8x2x8xf32>
    "tpu.trace_stop"() : () -> ()
    %89 = vector.shape_cast %88 : vector<8x2x8xf32> to vector<16x8xf32>
    %90 = vector.extract_strided_slice %55 {offsets = [0, 0, 16], sizes = [8, 2, 8], strides = [1, 1, 1]} : vector<8x2x96xf32> to vector<8x2x8xf32>
    %91 = vector.extract_strided_slice %55 {offsets = [0, 0, 48], sizes = [8, 2, 8], strides = [1, 1, 1]} : vector<8x2x96xf32> to vector<8x2x8xf32>
    %92 = vector.extract_strided_slice %55 {offsets = [0, 0, 80], sizes = [8, 2, 8], strides = [1, 1, 1]} : vector<8x2x96xf32> to vector<8x2x8xf32>
    "tpu.trace_start"() <{level = 10 : i32, message = "tbd,tcd->tbc"}> : () -> ()
    %cst_28 = arith.constant dense<0.000000e+00> : vector<8x2x2xf32>
    %93 = tpu.matmul %90, %91, %cst_28 {dimension_numbers = #tpu.dot_dimension_numbers<[2], [2], [1], [1], [0, 0, 0, 1, 1, 1], [0], [0]>} : vector<8x2x8xf32>, vector<8x2x8xf32>, vector<8x2x2xf32> -> vector<8x2x2xf32>
    "tpu.trace_stop"() : () -> ()
    %cst_29 = arith.constant dense<0xFF800000> : vector<8x2xf32>
    %94 = vector.multi_reduction <maximumf>, %93, %cst_29 [2] : vector<8x2x2xf32> to vector<8x2xf32>
    %cst_30 = arith.constant 0xFF800000 : f32
    %95 = vector.broadcast %cst_30 : f32 to vector<8x2xf32>
    %96 = arith.maximumf %95, %94 : vector<8x2xf32>
    %97 = vector.shape_cast %96 : vector<8x2xf32> to vector<8x2x1xf32>
    %98 = vector.broadcast %97 : vector<8x2x1xf32> to vector<8x2x2xf32>
    %99 = arith.subf %93, %98 : vector<8x2x2xf32>
    %100 = math.exp %99 : vector<8x2x2xf32>
    %cst_31 = arith.constant dense<0.000000e+00> : vector<8x2xf32>
    %101 = vector.multi_reduction <add>, %100, %cst_31 [2] : vector<8x2x2xf32> to vector<8x2xf32>
    %102 = vector.shape_cast %101 : vector<8x2xf32> to vector<8x2x1xf32>
    %103 = vector.broadcast %102 : vector<8x2x1xf32> to vector<8x2x2xf32>
    %104 = arith.divf %100, %103 : vector<8x2x2xf32>
    "tpu.trace_start"() <{level = 10 : i32, message = "tbc,tcd->tbd"}> : () -> ()
    %cst_32 = arith.constant dense<0.000000e+00> : vector<8x2x8xf32>
    %105 = tpu.matmul %104, %92, %cst_32 {dimension_numbers = #tpu.dot_dimension_numbers<[2], [1], [1], [2], [0, 0, 0, 1, 1, 2], [0], [0]>} : vector<8x2x2xf32>, vector<8x2x8xf32>, vector<8x2x8xf32> -> vector<8x2x8xf32>
    "tpu.trace_stop"() : () -> ()
    %106 = vector.shape_cast %105 : vector<8x2x8xf32> to vector<16x8xf32>
    %107 = vector.extract_strided_slice %55 {offsets = [0, 0, 24], sizes = [8, 2, 8], strides = [1, 1, 1]} : vector<8x2x96xf32> to vector<8x2x8xf32>
    %108 = vector.extract_strided_slice %55 {offsets = [0, 0, 56], sizes = [8, 2, 8], strides = [1, 1, 1]} : vector<8x2x96xf32> to vector<8x2x8xf32>
    %109 = vector.extract_strided_slice %55 {offsets = [0, 0, 88], sizes = [8, 2, 8], strides = [1, 1, 1]} : vector<8x2x96xf32> to vector<8x2x8xf32>
    "tpu.trace_start"() <{level = 10 : i32, message = "tbd,tcd->tbc"}> : () -> ()
    %cst_33 = arith.constant dense<0.000000e+00> : vector<8x2x2xf32>
    %110 = tpu.matmul %107, %108, %cst_33 {dimension_numbers = #tpu.dot_dimension_numbers<[2], [2], [1], [1], [0, 0, 0, 1, 1, 1], [0], [0]>} : vector<8x2x8xf32>, vector<8x2x8xf32>, vector<8x2x2xf32> -> vector<8x2x2xf32>
    "tpu.trace_stop"() : () -> ()
    %cst_34 = arith.constant dense<0xFF800000> : vector<8x2xf32>
    %111 = vector.multi_reduction <maximumf>, %110, %cst_34 [2] : vector<8x2x2xf32> to vector<8x2xf32>
    %cst_35 = arith.constant 0xFF800000 : f32
    %112 = vector.broadcast %cst_35 : f32 to vector<8x2xf32>
    %113 = arith.maximumf %112, %111 : vector<8x2xf32>
    %114 = vector.shape_cast %113 : vector<8x2xf32> to vector<8x2x1xf32>
    %115 = vector.broadcast %114 : vector<8x2x1xf32> to vector<8x2x2xf32>
    %116 = arith.subf %110, %115 : vector<8x2x2xf32>
    %117 = math.exp %116 : vector<8x2x2xf32>
    %cst_36 = arith.constant dense<0.000000e+00> : vector<8x2xf32>
    %118 = vector.multi_reduction <add>, %117, %cst_36 [2] : vector<8x2x2xf32> to vector<8x2xf32>
    %119 = vector.shape_cast %118 : vector<8x2xf32> to vector<8x2x1xf32>
    %120 = vector.broadcast %119 : vector<8x2x1xf32> to vector<8x2x2xf32>
    %121 = arith.divf %117, %120 : vector<8x2x2xf32>
    "tpu.trace_start"() <{level = 10 : i32, message = "tbc,tcd->tbd"}> : () -> ()
    %cst_37 = arith.constant dense<0.000000e+00> : vector<8x2x8xf32>
    %122 = tpu.matmul %121, %109, %cst_37 {dimension_numbers = #tpu.dot_dimension_numbers<[2], [1], [1], [2], [0, 0, 0, 1, 1, 2], [0], [0]>} : vector<8x2x2xf32>, vector<8x2x8xf32>, vector<8x2x8xf32> -> vector<8x2x8xf32>
    "tpu.trace_stop"() : () -> ()
    %123 = vector.shape_cast %122 : vector<8x2x8xf32> to vector<16x8xf32>
    %124 = tpu.concatenate %72, %89, %106, %123 in 1 : vector<16x8xf32>, vector<16x8xf32>, vector<16x8xf32>, vector<16x8xf32> -> vector<16x32xf32>
    %c0_38 = arith.constant 0 : index
    %c0_39 = arith.constant 0 : index
    %c0_40 = arith.constant 0 : index
    %125 = vector.load %arg5[%c0_38, %c0_39, %c0_40] : memref<2x32x32xf32, #tpu.memory_space<vmem>>, vector<1x32x32xf32>
    %126 = vector.shape_cast %125 : vector<1x32x32xf32> to vector<32x32xf32>
    %cst_41 = arith.constant dense<0.000000e+00> : vector<16x32xf32>
    %127 = tpu.matmul %124, %126, %cst_41 {dimension_numbers = #tpu.dot_dimension_numbers<[1], [0], [0], [1], [0, 0, 1, 1], [], []>} : vector<16x32xf32>, vector<32x32xf32>, vector<16x32xf32> -> vector<16x32xf32>
    %128 = vector.broadcast %22 : vector<1x32xf32> to vector<16x32xf32>
    %129 = arith.addf %127, %128 : vector<16x32xf32>
    %c0_42 = arith.constant 0 : index
    %c0_43 = arith.constant 0 : index
    %c0_44 = arith.constant 0 : index
    %130 = vector.load %arg6[%c0_42, %c0_43, %c0_44] : memref<2x32x32xf32, #tpu.memory_space<vmem>>, vector<1x32x32xf32>
    %131 = vector.shape_cast %130 : vector<1x32x32xf32> to vector<32x32xf32>
    %cst_45 = arith.constant dense<0.000000e+00> : vector<16x32xf32>
    %132 = tpu.matmul %129, %131, %cst_45 {dimension_numbers = #tpu.dot_dimension_numbers<[1], [0], [0], [1], [0, 0, 1, 1], [], []>} : vector<16x32xf32>, vector<32x32xf32>, vector<16x32xf32> -> vector<16x32xf32>
    %133 = vector.broadcast %23 : vector<1x32xf32> to vector<16x32xf32>
    %134 = arith.addf %132, %133 : vector<16x32xf32>
    %135 = arith.addf %129, %134 : vector<16x32xf32>
    %cst_46 = arith.constant dense<0.000000e+00> : vector<16xf32>
    %136 = vector.multi_reduction <add>, %135, %cst_46 [1] : vector<16x32xf32> to vector<16xf32>
    %137 = vector.shape_cast %136 : vector<16xf32> to vector<16x1xf32>
    %cst_47 = arith.constant 3.200000e+01 : f32
    %138 = vector.broadcast %cst_47 : f32 to vector<16x1xf32>
    %139 = arith.divf %137, %138 : vector<16x1xf32>
    %140 = vector.broadcast %139 : vector<16x1xf32> to vector<16x32xf32>
    %141 = arith.subf %135, %140 : vector<16x32xf32>
    %142 = arith.mulf %141, %141 : vector<16x32xf32>
    %cst_48 = arith.constant dense<0.000000e+00> : vector<16xf32>
    %143 = vector.multi_reduction <add>, %142, %cst_48 [1] : vector<16x32xf32> to vector<16xf32>
    %144 = vector.shape_cast %143 : vector<16xf32> to vector<16x1xf32>
    %cst_49 = arith.constant 3.200000e+01 : f32
    %145 = vector.broadcast %cst_49 : f32 to vector<16x1xf32>
    %146 = arith.divf %144, %145 : vector<16x1xf32>
    %147 = vector.broadcast %139 : vector<16x1xf32> to vector<16x32xf32>
    %148 = arith.subf %135, %147 : vector<16x32xf32>
    %cst_50 = arith.constant 9.99999974E-6 : f32
    %149 = vector.broadcast %cst_50 : f32 to vector<16x1xf32>
    %150 = arith.addf %146, %149 : vector<16x1xf32>
    %151 = math.rsqrt %150 : vector<16x1xf32>
    %152 = vector.broadcast %151 : vector<16x1xf32> to vector<16x32xf32>
    %153 = arith.mulf %148, %152 : vector<16x32xf32>
    %154 = vector.broadcast %24 : vector<1x32xf32> to vector<16x32xf32>
    %155 = arith.mulf %153, %154 : vector<16x32xf32>
    %156 = vector.broadcast %25 : vector<1x32xf32> to vector<16x32xf32>
    %157 = arith.addf %155, %156 : vector<16x32xf32>
    %c0_51 = arith.constant 0 : index
    %c0_52 = arith.constant 0 : index
    %c0_53 = arith.constant 0 : index
    %158 = vector.load %arg7[%c0_51, %c0_52, %c0_53] : memref<2x32x64xf32, #tpu.memory_space<vmem>>, vector<1x32x64xf32>
    %159 = vector.shape_cast %158 : vector<1x32x64xf32> to vector<32x64xf32>
    %cst_54 = arith.constant dense<0.000000e+00> : vector<16x64xf32>
    %160 = tpu.matmul %157, %159, %cst_54 {dimension_numbers = #tpu.dot_dimension_numbers<[1], [0], [0], [1], [0, 0, 1, 1], [], []>} : vector<16x32xf32>, vector<32x64xf32>, vector<16x64xf32> -> vector<16x64xf32>
    %161 = vector.broadcast %26 : vector<1x64xf32> to vector<16x64xf32>
    %162 = arith.addf %160, %161 : vector<16x64xf32>
    %cst_55 = arith.constant 0.000000e+00 : f32
    %163 = vector.broadcast %cst_55 : f32 to vector<16x64xf32>
    %164 = arith.maximumf %162, %163 : vector<16x64xf32>
    %c0_56 = arith.constant 0 : index
    %c0_57 = arith.constant 0 : index
    %c0_58 = arith.constant 0 : index
    %165 = vector.load %arg8[%c0_56, %c0_57, %c0_58] : memref<2x64x32xf32, #tpu.memory_space<vmem>>, vector<1x64x32xf32>
    %166 = vector.shape_cast %165 : vector<1x64x32xf32> to vector<64x32xf32>
    %cst_59 = arith.constant dense<0.000000e+00> : vector<16x32xf32>
    %167 = tpu.matmul %164, %166, %cst_59 {dimension_numbers = #tpu.dot_dimension_numbers<[1], [0], [0], [1], [0, 0, 1, 1], [], []>} : vector<16x64xf32>, vector<64x32xf32>, vector<16x32xf32> -> vector<16x32xf32>
    %168 = vector.broadcast %27 : vector<1x32xf32> to vector<16x32xf32>
    %169 = arith.addf %167, %168 : vector<16x32xf32>
    %170 = arith.addf %157, %169 : vector<16x32xf32>
    %c1 = arith.constant 1 : index
    %c0_60 = arith.constant 0 : index
    %c0_61 = arith.constant 0 : index
    %171 = vector.load %arg9[%c1, %c0_60, %c0_61] : memref<2x9x96xf32, #tpu.memory_space<vmem>>, vector<1x9x96xf32>
    %172 = vector.shape_cast %171 : vector<1x9x96xf32> to vector<9x96xf32>
    %173 = vector.extract_strided_slice %172 {offsets = [0, 0], sizes = [1, 32], strides = [1, 1]} : vector<9x96xf32> to vector<1x32xf32>
    %174 = vector.extract_strided_slice %172 {offsets = [1, 0], sizes = [1, 32], strides = [1, 1]} : vector<9x96xf32> to vector<1x32xf32>
    %175 = vector.extract_strided_slice %172 {offsets = [2, 0], sizes = [1, 96], strides = [1, 1]} : vector<9x96xf32> to vector<1x96xf32>
    %176 = vector.extract_strided_slice %172 {offsets = [3, 0], sizes = [1, 32], strides = [1, 1]} : vector<9x96xf32> to vector<1x32xf32>
    %177 = vector.extract_strided_slice %172 {offsets = [4, 0], sizes = [1, 32], strides = [1, 1]} : vector<9x96xf32> to vector<1x32xf32>
    %178 = vector.extract_strided_slice %172 {offsets = [5, 0], sizes = [1, 32], strides = [1, 1]} : vector<9x96xf32> to vector<1x32xf32>
    %179 = vector.extract_strided_slice %172 {offsets = [6, 0], sizes = [1, 32], strides = [1, 1]} : vector<9x96xf32> to vector<1x32xf32>
    %180 = vector.extract_strided_slice %172 {offsets = [7, 0], sizes = [1, 64], strides = [1, 1]} : vector<9x96xf32> to vector<1x64xf32>
    %181 = vector.extract_strided_slice %172 {offsets = [8, 0], sizes = [1, 32], strides = [1, 1]} : vector<9x96xf32> to vector<1x32xf32>
    %cst_62 = arith.constant dense<0.000000e+00> : vector<16xf32>
    %182 = vector.multi_reduction <add>, %170, %cst_62 [1] : vector<16x32xf32> to vector<16xf32>
    %183 = vector.shape_cast %182 : vector<16xf32> to vector<16x1xf32>
    %cst_63 = arith.constant 3.200000e+01 : f32
    %184 = vector.broadcast %cst_63 : f32 to vector<16x1xf32>
    %185 = arith.divf %183, %184 : vector<16x1xf32>
    %186 = vector.broadcast %185 : vector<16x1xf32> to vector<16x32xf32>
    %187 = arith.subf %170, %186 : vector<16x32xf32>
    %188 = arith.mulf %187, %187 : vector<16x32xf32>
    %cst_64 = arith.constant dense<0.000000e+00> : vector<16xf32>
    %189 = vector.multi_reduction <add>, %188, %cst_64 [1] : vector<16x32xf32> to vector<16xf32>
    %190 = vector.shape_cast %189 : vector<16xf32> to vector<16x1xf32>
    %cst_65 = arith.constant 3.200000e+01 : f32
    %191 = vector.broadcast %cst_65 : f32 to vector<16x1xf32>
    %192 = arith.divf %190, %191 : vector<16x1xf32>
    %193 = vector.broadcast %185 : vector<16x1xf32> to vector<16x32xf32>
    %194 = arith.subf %170, %193 : vector<16x32xf32>
    %cst_66 = arith.constant 9.99999974E-6 : f32
    %195 = vector.broadcast %cst_66 : f32 to vector<16x1xf32>
    %196 = arith.addf %192, %195 : vector<16x1xf32>
    %197 = math.rsqrt %196 : vector<16x1xf32>
    %198 = vector.broadcast %197 : vector<16x1xf32> to vector<16x32xf32>
    %199 = arith.mulf %194, %198 : vector<16x32xf32>
    %200 = vector.broadcast %173 : vector<1x32xf32> to vector<16x32xf32>
    %201 = arith.mulf %199, %200 : vector<16x32xf32>
    %202 = vector.broadcast %174 : vector<1x32xf32> to vector<16x32xf32>
    %203 = arith.addf %201, %202 : vector<16x32xf32>
    %c1_67 = arith.constant 1 : index
    %c0_68 = arith.constant 0 : index
    %c0_69 = arith.constant 0 : index
    %204 = vector.load %arg4[%c1_67, %c0_68, %c0_69] : memref<2x32x96xf32, #tpu.memory_space<vmem>>, vector<1x32x96xf32>
    %205 = vector.shape_cast %204 : vector<1x32x96xf32> to vector<32x96xf32>
    %cst_70 = arith.constant dense<0.000000e+00> : vector<16x96xf32>
    %206 = tpu.matmul %203, %205, %cst_70 {dimension_numbers = #tpu.dot_dimension_numbers<[1], [0], [0], [1], [0, 0, 1, 1], [], []>} : vector<16x32xf32>, vector<32x96xf32>, vector<16x96xf32> -> vector<16x96xf32>
    %207 = vector.broadcast %175 : vector<1x96xf32> to vector<16x96xf32>
    %208 = arith.addf %206, %207 : vector<16x96xf32>
    %209 = vector.shape_cast %208 : vector<16x96xf32> to vector<8x2x96xf32>
    %210 = vector.extract_strided_slice %209 {offsets = [0, 0, 0], sizes = [8, 2, 8], strides = [1, 1, 1]} : vector<8x2x96xf32> to vector<8x2x8xf32>
    %211 = vector.extract_strided_slice %209 {offsets = [0, 0, 32], sizes = [8, 2, 8], strides = [1, 1, 1]} : vector<8x2x96xf32> to vector<8x2x8xf32>
    %212 = vector.extract_strided_slice %209 {offsets = [0, 0, 64], sizes = [8, 2, 8], strides = [1, 1, 1]} : vector<8x2x96xf32> to vector<8x2x8xf32>
    "tpu.trace_start"() <{level = 10 : i32, message = "tbd,tcd->tbc"}> : () -> ()
    %cst_71 = arith.constant dense<0.000000e+00> : vector<8x2x2xf32>
    %213 = tpu.matmul %210, %211, %cst_71 {dimension_numbers = #tpu.dot_dimension_numbers<[2], [2], [1], [1], [0, 0, 0, 1, 1, 1], [0], [0]>} : vector<8x2x8xf32>, vector<8x2x8xf32>, vector<8x2x2xf32> -> vector<8x2x2xf32>
    "tpu.trace_stop"() : () -> ()
    %cst_72 = arith.constant dense<0xFF800000> : vector<8x2xf32>
    %214 = vector.multi_reduction <maximumf>, %213, %cst_72 [2] : vector<8x2x2xf32> to vector<8x2xf32>
    %cst_73 = arith.constant 0xFF800000 : f32
    %215 = vector.broadcast %cst_73 : f32 to vector<8x2xf32>
    %216 = arith.maximumf %215, %214 : vector<8x2xf32>
    %217 = vector.shape_cast %216 : vector<8x2xf32> to vector<8x2x1xf32>
    %218 = vector.broadcast %217 : vector<8x2x1xf32> to vector<8x2x2xf32>
    %219 = arith.subf %213, %218 : vector<8x2x2xf32>
    %220 = math.exp %219 : vector<8x2x2xf32>
    %cst_74 = arith.constant dense<0.000000e+00> : vector<8x2xf32>
    %221 = vector.multi_reduction <add>, %220, %cst_74 [2] : vector<8x2x2xf32> to vector<8x2xf32>
    %222 = vector.shape_cast %221 : vector<8x2xf32> to vector<8x2x1xf32>
    %223 = vector.broadcast %222 : vector<8x2x1xf32> to vector<8x2x2xf32>
    %224 = arith.divf %220, %223 : vector<8x2x2xf32>
    "tpu.trace_start"() <{level = 10 : i32, message = "tbc,tcd->tbd"}> : () -> ()
    %cst_75 = arith.constant dense<0.000000e+00> : vector<8x2x8xf32>
    %225 = tpu.matmul %224, %212, %cst_75 {dimension_numbers = #tpu.dot_dimension_numbers<[2], [1], [1], [2], [0, 0, 0, 1, 1, 2], [0], [0]>} : vector<8x2x2xf32>, vector<8x2x8xf32>, vector<8x2x8xf32> -> vector<8x2x8xf32>
    "tpu.trace_stop"() : () -> ()
    %226 = vector.shape_cast %225 : vector<8x2x8xf32> to vector<16x8xf32>
    %227 = vector.extract_strided_slice %209 {offsets = [0, 0, 8], sizes = [8, 2, 8], strides = [1, 1, 1]} : vector<8x2x96xf32> to vector<8x2x8xf32>
    %228 = vector.extract_strided_slice %209 {offsets = [0, 0, 40], sizes = [8, 2, 8], strides = [1, 1, 1]} : vector<8x2x96xf32> to vector<8x2x8xf32>
    %229 = vector.extract_strided_slice %209 {offsets = [0, 0, 72], sizes = [8, 2, 8], strides = [1, 1, 1]} : vector<8x2x96xf32> to vector<8x2x8xf32>
    "tpu.trace_start"() <{level = 10 : i32, message = "tbd,tcd->tbc"}> : () -> ()
    %cst_76 = arith.constant dense<0.000000e+00> : vector<8x2x2xf32>
    %230 = tpu.matmul %227, %228, %cst_76 {dimension_numbers = #tpu.dot_dimension_numbers<[2], [2], [1], [1], [0, 0, 0, 1, 1, 1], [0], [0]>} : vector<8x2x8xf32>, vector<8x2x8xf32>, vector<8x2x2xf32> -> vector<8x2x2xf32>
    "tpu.trace_stop"() : () -> ()
    %cst_77 = arith.constant dense<0xFF800000> : vector<8x2xf32>
    %231 = vector.multi_reduction <maximumf>, %230, %cst_77 [2] : vector<8x2x2xf32> to vector<8x2xf32>
    %cst_78 = arith.constant 0xFF800000 : f32
    %232 = vector.broadcast %cst_78 : f32 to vector<8x2xf32>
    %233 = arith.maximumf %232, %231 : vector<8x2xf32>
    %234 = vector.shape_cast %233 : vector<8x2xf32> to vector<8x2x1xf32>
    %235 = vector.broadcast %234 : vector<8x2x1xf32> to vector<8x2x2xf32>
    %236 = arith.subf %230, %235 : vector<8x2x2xf32>
    %237 = math.exp %236 : vector<8x2x2xf32>
    %cst_79 = arith.constant dense<0.000000e+00> : vector<8x2xf32>
    %238 = vector.multi_reduction <add>, %237, %cst_79 [2] : vector<8x2x2xf32> to vector<8x2xf32>
    %239 = vector.shape_cast %238 : vector<8x2xf32> to vector<8x2x1xf32>
    %240 = vector.broadcast %239 : vector<8x2x1xf32> to vector<8x2x2xf32>
    %241 = arith.divf %237, %240 : vector<8x2x2xf32>
    "tpu.trace_start"() <{level = 10 : i32, message = "tbc,tcd->tbd"}> : () -> ()
    %cst_80 = arith.constant dense<0.000000e+00> : vector<8x2x8xf32>
    %242 = tpu.matmul %241, %229, %cst_80 {dimension_numbers = #tpu.dot_dimension_numbers<[2], [1], [1], [2], [0, 0, 0, 1, 1, 2], [0], [0]>} : vector<8x2x2xf32>, vector<8x2x8xf32>, vector<8x2x8xf32> -> vector<8x2x8xf32>
    "tpu.trace_stop"() : () -> ()
    %243 = vector.shape_cast %242 : vector<8x2x8xf32> to vector<16x8xf32>
    %244 = vector.extract_strided_slice %209 {offsets = [0, 0, 16], sizes = [8, 2, 8], strides = [1, 1, 1]} : vector<8x2x96xf32> to vector<8x2x8xf32>
    %245 = vector.extract_strided_slice %209 {offsets = [0, 0, 48], sizes = [8, 2, 8], strides = [1, 1, 1]} : vector<8x2x96xf32> to vector<8x2x8xf32>
    %246 = vector.extract_strided_slice %209 {offsets = [0, 0, 80], sizes = [8, 2, 8], strides = [1, 1, 1]} : vector<8x2x96xf32> to vector<8x2x8xf32>
    "tpu.trace_start"() <{level = 10 : i32, message = "tbd,tcd->tbc"}> : () -> ()
    %cst_81 = arith.constant dense<0.000000e+00> : vector<8x2x2xf32>
    %247 = tpu.matmul %244, %245, %cst_81 {dimension_numbers = #tpu.dot_dimension_numbers<[2], [2], [1], [1], [0, 0, 0, 1, 1, 1], [0], [0]>} : vector<8x2x8xf32>, vector<8x2x8xf32>, vector<8x2x2xf32> -> vector<8x2x2xf32>
    "tpu.trace_stop"() : () -> ()
    %cst_82 = arith.constant dense<0xFF800000> : vector<8x2xf32>
    %248 = vector.multi_reduction <maximumf>, %247, %cst_82 [2] : vector<8x2x2xf32> to vector<8x2xf32>
    %cst_83 = arith.constant 0xFF800000 : f32
    %249 = vector.broadcast %cst_83 : f32 to vector<8x2xf32>
    %250 = arith.maximumf %249, %248 : vector<8x2xf32>
    %251 = vector.shape_cast %250 : vector<8x2xf32> to vector<8x2x1xf32>
    %252 = vector.broadcast %251 : vector<8x2x1xf32> to vector<8x2x2xf32>
    %253 = arith.subf %247, %252 : vector<8x2x2xf32>
    %254 = math.exp %253 : vector<8x2x2xf32>
    %cst_84 = arith.constant dense<0.000000e+00> : vector<8x2xf32>
    %255 = vector.multi_reduction <add>, %254, %cst_84 [2] : vector<8x2x2xf32> to vector<8x2xf32>
    %256 = vector.shape_cast %255 : vector<8x2xf32> to vector<8x2x1xf32>
    %257 = vector.broadcast %256 : vector<8x2x1xf32> to vector<8x2x2xf32>
    %258 = arith.divf %254, %257 : vector<8x2x2xf32>
    "tpu.trace_start"() <{level = 10 : i32, message = "tbc,tcd->tbd"}> : () -> ()
    %cst_85 = arith.constant dense<0.000000e+00> : vector<8x2x8xf32>
    %259 = tpu.matmul %258, %246, %cst_85 {dimension_numbers = #tpu.dot_dimension_numbers<[2], [1], [1], [2], [0, 0, 0, 1, 1, 2], [0], [0]>} : vector<8x2x2xf32>, vector<8x2x8xf32>, vector<8x2x8xf32> -> vector<8x2x8xf32>
    "tpu.trace_stop"() : () -> ()
    %260 = vector.shape_cast %259 : vector<8x2x8xf32> to vector<16x8xf32>
    %261 = vector.extract_strided_slice %209 {offsets = [0, 0, 24], sizes = [8, 2, 8], strides = [1, 1, 1]} : vector<8x2x96xf32> to vector<8x2x8xf32>
    %262 = vector.extract_strided_slice %209 {offsets = [0, 0, 56], sizes = [8, 2, 8], strides = [1, 1, 1]} : vector<8x2x96xf32> to vector<8x2x8xf32>
    %263 = vector.extract_strided_slice %209 {offsets = [0, 0, 88], sizes = [8, 2, 8], strides = [1, 1, 1]} : vector<8x2x96xf32> to vector<8x2x8xf32>
    "tpu.trace_start"() <{level = 10 : i32, message = "tbd,tcd->tbc"}> : () -> ()
    %cst_86 = arith.constant dense<0.000000e+00> : vector<8x2x2xf32>
    %264 = tpu.matmul %261, %262, %cst_86 {dimension_numbers = #tpu.dot_dimension_numbers<[2], [2], [1], [1], [0, 0, 0, 1, 1, 1], [0], [0]>} : vector<8x2x8xf32>, vector<8x2x8xf32>, vector<8x2x2xf32> -> vector<8x2x2xf32>
    "tpu.trace_stop"() : () -> ()
    %cst_87 = arith.constant dense<0xFF800000> : vector<8x2xf32>
    %265 = vector.multi_reduction <maximumf>, %264, %cst_87 [2] : vector<8x2x2xf32> to vector<8x2xf32>
    %cst_88 = arith.constant 0xFF800000 : f32
    %266 = vector.broadcast %cst_88 : f32 to vector<8x2xf32>
    %267 = arith.maximumf %266, %265 : vector<8x2xf32>
    %268 = vector.shape_cast %267 : vector<8x2xf32> to vector<8x2x1xf32>
    %269 = vector.broadcast %268 : vector<8x2x1xf32> to vector<8x2x2xf32>
    %270 = arith.subf %264, %269 : vector<8x2x2xf32>
    %271 = math.exp %270 : vector<8x2x2xf32>
    %cst_89 = arith.constant dense<0.000000e+00> : vector<8x2xf32>
    %272 = vector.multi_reduction <add>, %271, %cst_89 [2] : vector<8x2x2xf32> to vector<8x2xf32>
    %273 = vector.shape_cast %272 : vector<8x2xf32> to vector<8x2x1xf32>
    %274 = vector.broadcast %273 : vector<8x2x1xf32> to vector<8x2x2xf32>
    %275 = arith.divf %271, %274 : vector<8x2x2xf32>
    "tpu.trace_start"() <{level = 10 : i32, message = "tbc,tcd->tbd"}> : () -> ()
    %cst_90 = arith.constant dense<0.000000e+00> : vector<8x2x8xf32>
    %276 = tpu.matmul %275, %263, %cst_90 {dimension_numbers = #tpu.dot_dimension_numbers<[2], [1], [1], [2], [0, 0, 0, 1, 1, 2], [0], [0]>} : vector<8x2x2xf32>, vector<8x2x8xf32>, vector<8x2x8xf32> -> vector<8x2x8xf32>
    "tpu.trace_stop"() : () -> ()
    %277 = vector.shape_cast %276 : vector<8x2x8xf32> to vector<16x8xf32>
    %278 = tpu.concatenate %226, %243, %260, %277 in 1 : vector<16x8xf32>, vector<16x8xf32>, vector<16x8xf32>, vector<16x8xf32> -> vector<16x32xf32>
    %c1_91 = arith.constant 1 : index
    %c0_92 = arith.constant 0 : index
    %c0_93 = arith.constant 0 : index
    %279 = vector.load %arg5[%c1_91, %c0_92, %c0_93] : memref<2x32x32xf32, #tpu.memory_space<vmem>>, vector<1x32x32xf32>
    %280 = vector.shape_cast %279 : vector<1x32x32xf32> to vector<32x32xf32>
    %cst_94 = arith.constant dense<0.000000e+00> : vector<16x32xf32>
    %281 = tpu.matmul %278, %280, %cst_94 {dimension_numbers = #tpu.dot_dimension_numbers<[1], [0], [0], [1], [0, 0, 1, 1], [], []>} : vector<16x32xf32>, vector<32x32xf32>, vector<16x32xf32> -> vector<16x32xf32>
    %282 = vector.broadcast %176 : vector<1x32xf32> to vector<16x32xf32>
    %283 = arith.addf %281, %282 : vector<16x32xf32>
    %c1_95 = arith.constant 1 : index
    %c0_96 = arith.constant 0 : index
    %c0_97 = arith.constant 0 : index
    %284 = vector.load %arg6[%c1_95, %c0_96, %c0_97] : memref<2x32x32xf32, #tpu.memory_space<vmem>>, vector<1x32x32xf32>
    %285 = vector.shape_cast %284 : vector<1x32x32xf32> to vector<32x32xf32>
    %cst_98 = arith.constant dense<0.000000e+00> : vector<16x32xf32>
    %286 = tpu.matmul %283, %285, %cst_98 {dimension_numbers = #tpu.dot_dimension_numbers<[1], [0], [0], [1], [0, 0, 1, 1], [], []>} : vector<16x32xf32>, vector<32x32xf32>, vector<16x32xf32> -> vector<16x32xf32>
    %287 = vector.broadcast %177 : vector<1x32xf32> to vector<16x32xf32>
    %288 = arith.addf %286, %287 : vector<16x32xf32>
    %289 = arith.addf %283, %288 : vector<16x32xf32>
    %cst_99 = arith.constant dense<0.000000e+00> : vector<16xf32>
    %290 = vector.multi_reduction <add>, %289, %cst_99 [1] : vector<16x32xf32> to vector<16xf32>
    %291 = vector.shape_cast %290 : vector<16xf32> to vector<16x1xf32>
    %cst_100 = arith.constant 3.200000e+01 : f32
    %292 = vector.broadcast %cst_100 : f32 to vector<16x1xf32>
    %293 = arith.divf %291, %292 : vector<16x1xf32>
    %294 = vector.broadcast %293 : vector<16x1xf32> to vector<16x32xf32>
    %295 = arith.subf %289, %294 : vector<16x32xf32>
    %296 = arith.mulf %295, %295 : vector<16x32xf32>
    %cst_101 = arith.constant dense<0.000000e+00> : vector<16xf32>
    %297 = vector.multi_reduction <add>, %296, %cst_101 [1] : vector<16x32xf32> to vector<16xf32>
    %298 = vector.shape_cast %297 : vector<16xf32> to vector<16x1xf32>
    %cst_102 = arith.constant 3.200000e+01 : f32
    %299 = vector.broadcast %cst_102 : f32 to vector<16x1xf32>
    %300 = arith.divf %298, %299 : vector<16x1xf32>
    %301 = vector.broadcast %293 : vector<16x1xf32> to vector<16x32xf32>
    %302 = arith.subf %289, %301 : vector<16x32xf32>
    %cst_103 = arith.constant 9.99999974E-6 : f32
    %303 = vector.broadcast %cst_103 : f32 to vector<16x1xf32>
    %304 = arith.addf %300, %303 : vector<16x1xf32>
    %305 = math.rsqrt %304 : vector<16x1xf32>
    %306 = vector.broadcast %305 : vector<16x1xf32> to vector<16x32xf32>
    %307 = arith.mulf %302, %306 : vector<16x32xf32>
    %308 = vector.broadcast %178 : vector<1x32xf32> to vector<16x32xf32>
    %309 = arith.mulf %307, %308 : vector<16x32xf32>
    %310 = vector.broadcast %179 : vector<1x32xf32> to vector<16x32xf32>
    %311 = arith.addf %309, %310 : vector<16x32xf32>
    %c1_104 = arith.constant 1 : index
    %c0_105 = arith.constant 0 : index
    %c0_106 = arith.constant 0 : index
    %312 = vector.load %arg7[%c1_104, %c0_105, %c0_106] : memref<2x32x64xf32, #tpu.memory_space<vmem>>, vector<1x32x64xf32>
    %313 = vector.shape_cast %312 : vector<1x32x64xf32> to vector<32x64xf32>
    %cst_107 = arith.constant dense<0.000000e+00> : vector<16x64xf32>
    %314 = tpu.matmul %311, %313, %cst_107 {dimension_numbers = #tpu.dot_dimension_numbers<[1], [0], [0], [1], [0, 0, 1, 1], [], []>} : vector<16x32xf32>, vector<32x64xf32>, vector<16x64xf32> -> vector<16x64xf32>
    %315 = vector.broadcast %180 : vector<1x64xf32> to vector<16x64xf32>
    %316 = arith.addf %314, %315 : vector<16x64xf32>
    %cst_108 = arith.constant 0.000000e+00 : f32
    %317 = vector.broadcast %cst_108 : f32 to vector<16x64xf32>
    %318 = arith.maximumf %316, %317 : vector<16x64xf32>
    %c1_109 = arith.constant 1 : index
    %c0_110 = arith.constant 0 : index
    %c0_111 = arith.constant 0 : index
    %319 = vector.load %arg8[%c1_109, %c0_110, %c0_111] : memref<2x64x32xf32, #tpu.memory_space<vmem>>, vector<1x64x32xf32>
    %320 = vector.shape_cast %319 : vector<1x64x32xf32> to vector<64x32xf32>
    %cst_112 = arith.constant dense<0.000000e+00> : vector<16x32xf32>
    %321 = tpu.matmul %318, %320, %cst_112 {dimension_numbers = #tpu.dot_dimension_numbers<[1], [0], [0], [1], [0, 0, 1, 1], [], []>} : vector<16x64xf32>, vector<64x32xf32>, vector<16x32xf32> -> vector<16x32xf32>
    %322 = vector.broadcast %181 : vector<1x32xf32> to vector<16x32xf32>
    %323 = arith.addf %321, %322 : vector<16x32xf32>
    %324 = arith.addf %311, %323 : vector<16x32xf32>
    %325 = vector.shape_cast %324 : vector<16x32xf32> to vector<8x2x32xf32>
    %cst_113 = arith.constant dense<0.000000e+00> : vector<2x32xf32>
    %326 = vector.multi_reduction <add>, %325, %cst_113 [0] : vector<8x2x32xf32> to vector<2x32xf32>
    %cst_114 = arith.constant 8.000000e+00 : f32
    %327 = vector.broadcast %cst_114 : f32 to vector<2x32xf32>
    %328 = arith.divf %326, %327 : vector<2x32xf32>
    %c0_115 = arith.constant 0 : index
    %c0_116 = arith.constant 0 : index
    %329 = vector.load %arg10[%c0_115, %c0_116] : memref<2x32xf32, #tpu.memory_space<vmem>>, vector<2x32xf32>
    tpu.vector_store %arg10[%c0_115, %c0_116], %328 {strides = array<i32>} : memref<2x32xf32, #tpu.memory_space<vmem>>, vector<2x32xf32>,
    return
  }
  func.func @transform_0(%arg0: i32) -> (i32, i32) {
    %c0_i32 = arith.constant 0 : i32
    %c0_i32_0 = arith.constant 0 : i32
    %c0_i32_1 = arith.constant 0 : i32
    return %c0_i32, %c0_i32_0 : i32, i32
  }
  func.func @transform_1(%arg0: i32) -> (i32, i32) {
    %c0_i32 = arith.constant 0 : i32
    %c0_i32_0 = arith.constant 0 : i32
    %c0_i32_1 = arith.constant 0 : i32
    return %c0_i32, %c0_i32_0 : i32, i32
  }
  func.func @transform_2(%arg0: i32) -> (i32, i32) {
    %c0_i32 = arith.constant 0 : i32
    %c0_i32_0 = arith.constant 0 : i32
    %c0_i32_1 = arith.constant 0 : i32
    return %c0_i32, %c0_i32_0 : i32, i32
  }
  func.func @transform_3(%arg0: i32) -> (i32, i32, i32) {
    %c0_i32 = arith.constant 0 : i32
    %c0_i32_0 = arith.constant 0 : i32
    %c0_i32_1 = arith.constant 0 : i32
    %c0_i32_2 = arith.constant 0 : i32
    return %c0_i32, %c0_i32_0, %c0_i32_1 : i32, i32, i32
  }
  func.func @transform_4(%arg0: i32) -> (i32, i32, i32) {
    %c0_i32 = arith.constant 0 : i32
    %c0_i32_0 = arith.constant 0 : i32
    %c0_i32_1 = arith.constant 0 : i32
    %c0_i32_2 = arith.constant 0 : i32
    return %c0_i32, %c0_i32_0, %c0_i32_1 : i32, i32, i32
  }
  func.func @transform_5(%arg0: i32) -> (i32, i32, i32) {
    %c0_i32 = arith.constant 0 : i32
    %c0_i32_0 = arith.constant 0 : i32
    %c0_i32_1 = arith.constant 0 : i32
    %c0_i32_2 = arith.constant 0 : i32
    return %c0_i32, %c0_i32_0, %c0_i32_1 : i32, i32, i32
  }
  func.func @transform_6(%arg0: i32) -> (i32, i32, i32) {
    %c0_i32 = arith.constant 0 : i32
    %c0_i32_0 = arith.constant 0 : i32
    %c0_i32_1 = arith.constant 0 : i32
    %c0_i32_2 = arith.constant 0 : i32
    return %c0_i32, %c0_i32_0, %c0_i32_1 : i32, i32, i32
  }
  func.func @transform_7(%arg0: i32) -> (i32, i32, i32) {
    %c0_i32 = arith.constant 0 : i32
    %c0_i32_0 = arith.constant 0 : i32
    %c0_i32_1 = arith.constant 0 : i32
    %c0_i32_2 = arith.constant 0 : i32
    return %c0_i32, %c0_i32_0, %c0_i32_1 : i32, i32, i32
  }
  func.func @transform_8(%arg0: i32) -> (i32, i32, i32) {
    %c0_i32 = arith.constant 0 : i32
    %c0_i32_0 = arith.constant 0 : i32
    %c0_i32_1 = arith.constant 0 : i32
    %c0_i32_2 = arith.constant 0 : i32
    return %c0_i32, %c0_i32_0, %c0_i32_1 : i32, i32, i32
  }
  func.func @transform_9(%arg0: i32) -> (i32, i32) {
    %c0_i32 = arith.constant 0 : i32
    %c0_i32_0 = arith.constant 0 : i32
    %c0_i32_1 = arith.constant 0 : i32
    return %c0_i32, %c0_i32_0 : i32, i32
  }
}

</mosaic_0001>

<bundles_post_ra>
// kernel: tpu_custom_call.1
= control target key start
LH: loop header
LB: loop body
LE: loop exit
PB: predicated region body
PF: predicated region fallthrough
CT: control target
= control target key end

     0   :  { %vm69_vm0 = vcmask 1043456   ;;  %v7271_v2 = vmov 0   ;;  %s9652_s0 = inlined_call_operand.vmem [shape: s32[16,1], index: 0, kind: input, shape index: {}]   ;;  %s9653_s1 = inlined_call_operand.vmem [shape: f32[100,32], index: 1, kind: input, shape index: {}]   ;;  %s9654_s2 = inlined_call_operand.vmem [shape: f32[16,32], index: 2, kind: input, shape index: {}]   ;;  %s9655_s3 = inlined_call_operand.vmem [shape: f32[2,32,96], index: 3, kind: input, shape index: {}]   ;;  %s9656_s4 = inlined_call_operand.vmem [shape: f32[2,32,32], index: 4, kind: input, shape index: {}]   ;;  %s9657_s5 = inlined_call_operand.vmem [shape: f32[2,32,32], index: 5, kind: input, shape index: {}]   ;;  %s9658_s6 = inlined_call_operand.vmem [shape: f32[2,32,64], index: 6, kind: input, shape index: {}]   ;;  %s9659_s7 = inlined_call_operand.vmem [shape: f32[2,64,32], index: 7, kind: input, shape index: {}]   ;;  %s9660_s8 = inlined_call_operand.vmem [shape: f32[2,9,96], index: 8, kind: input, shape index: {}]   ;;  %s9661_s9 = inlined_call_operand.hbm [shape: f32[2,32], index: 9, kind: output, shape index: {}]  }
   0x1   :  { %v33_v0 = vld [vmem:[%s9652_s0] sm:$0xff]  ;;  %6964 = vset.pattern.permute.xlu0 %v7271_v2  ;;  %v60_v3 = vld [vmem:[%s9653_s1 + $0x58] sm:$0xff]  ;;  %v59_v4 = vld [vmem:[%s9653_s1 + $0x50] sm:$0xff] }
   0x2   :  { %v61_v1 = vld [vmem:[%s9653_s1 + $0x60] sm:$0xf]  ;;  %38 = vperm.xlu0 %6964, %v33_v0   ;;  %v58_v5 = vld [vmem:[%s9653_s1 + $0x48] sm:$0xff] }
   0x3   :  { %6636 = vmatpush.msk.msra.mxu0 %vm69_vm0, %v61_v1 }
   0x5   :  { %77 = vmatpush.msra.mxu0 %v60_v3 }
   0x7   :  { %78 = vmatpush.msra.mxu0 %v59_v4 }
   0x8   :  { %14 = vsyncpa [#allocation3], 0  ;;  %v57_v6 = vld [vmem:[%s9653_s1 + $0x40] sm:$0xff]  ;;  %v34_v7 = vld [vmem:[%s9652_s0 + $0x8] sm:$0xff]  ;;  %v35_v16 = vlaneseq  ;;  %vm62_vm1 = vcmask 818176   ;;  %v7272_v19 = vmov 0.0  }
   0x9   :  { %79 = vmatpush.msra.mxu0 %v58_v5  ;;  %v56_v8 = vld [vmem:[%s9653_s1 + $0x38] sm:$0xff]  ;;  %v55_v9 = vld [vmem:[%s9653_s1 + $0x30] sm:$0xff]  ;;  %v54_v10 = vld [vmem:[%s9653_s1 + $0x28] sm:$0xff]  ;;  %vm9666_vm4 = vcmask 261120   ;;  %v7273_v61 = vmov 32.0   ;;  %s7278_s27 = smov 96  }
   0xa   :  { %41 = vperm.xlu0 %6964, %v34_v7   ;;  %v53_v11 = vld [vmem:[%s9653_s1 + $0x20] sm:$0xff]  ;;  %v52_v12 = vld [vmem:[%s9653_s1 + $0x18] sm:$0xff]  ;;  %v51_v13 = vld [vmem:[%s9653_s1 + $0x10] sm:$0xff]  ;;  %v36_v17 = vand.u32 127, %v35_v16  ;;  %6967 = vrcp.f32 %v7273_v61  ;;  %v7274_v3 = vmov 269488144  }
   0xb   :  { %80 = vmatpush.msra.mxu0 %v57_v6  ;;  %v50_v14 = vld [vmem:[%s9653_s1 + $0x8] sm:$0xff]  ;;  %v49_v15 = vld [vmem:[%s9653_s1] sm:$0xff]  ;;  %v193_v4 = vunpack.c.l.s4 %v7274_v3  ;;  %v7275_v5 = vmov 842150450   ;;  %v7276_v7 = vmov 1414812756  }
   0xc   :  { %v98_v23 = vld [vmem:[%s9654_s2] sm:$0xff]  ;;  %v197_v6 = vunpack.c.l.s4 %v7275_v5  ;;  %s7279_s28 = smov 64   ;;  %vm456_vm12 = vcmask 64512   ;;  %s7280_s29 = smov 120   ;;  %vm878_vm13 = vcmask 1041408   ;;  %vm677_vm14 = vcmask 9216  }
   0xd   :  { %81 = vmatpush.msra.mxu0 %v56_v8  ;;  %v114_v24 = vrot.slane %v98_v23, 1  ;;  %v115_v25 = vrot.slane %v98_v23, 2  ;;  %v116_v26 = vrot.slane %v98_v23, 3  ;;  %v121_v27 = vperm.slane %v98_v23, 0  ;;  %s7281_s30 = smov 88   ;;  %s7282_s0 = smov 56  }
   0xe   :  { %v117_v33 = vrot.slane %v98_v23, 4  ;;  %v118_v38 = vrot.slane %v98_v23, 5  ;;  %v119_v39 = vrot.slane %v98_v23, 6  ;;  %v120_v43 = vrot.slane %v98_v23, 7  ;;  %s7283_s10 = smov 112   ;;  %s7284_s11 = smov 80  }
   0xf   :  { %82 = vmatpush.msra.mxu0 %v55_v9  ;;  %v122_v30 = vperm.slane %v114_v24, 0  ;;  %v123_v31 = vperm.slane %v115_v25, 0  ;;  %v124_v32 = vperm.slane %v116_v26, 0  ;;  %v201_v8 = vunpack.c.l.s4 %v7276_v7  ;;  %s7285_s12 = smov 48   ;;  %s7286_s13 = smov 72  }
  0x10   :  { %v125_v44 = vperm.slane %v117_v33, 0  ;;  %v126_v46 = vperm.slane %v118_v38, 0  ;;  %v127_v48 = vperm.slane %v119_v39, 0  ;;  %v128_v49 = vperm.slane %v120_v43, 0  ;;  %v6968_v62 = vpop.eup %6967  ;;  %s7287_s14 = smov 104   ;;  %s7288_s15 = smov 40  }
  0x11   :  { %83 = vmatpush.msra.mxu0 %v54_v10  ;;  %v182_v63 = vmul.f32 32.0, %v6968_v62  ;;  %vm186_vm5 = vweird.f32 %v6968_v62  ;;  %v7277_v9 = vmov 1987475062   ;;  %s7289_s16 = smov 8   ;;  %s7290_s17 = smov 16  }
  0x12   :  { %v205_v10 = vunpack.c.l.s4 %v7277_v9  ;;  %s7291_s18 = smov 24  }
  0x13   :  { %84 = vmatpush.msra.mxu0 %v53_v11  ;;  %v183_v0 = vsub.f32 1.0, %v182_v63 }
  0x15   :  { %85 = vmatpush.msra.mxu0 %v52_v12  ;;  %v184_v1 = vmul.f32 %v6968_v62, %v183_v0  ;;  %v7396_v12 = vunpack.c.0.s8 %v193_v4 }
  0x17   :  { %86 = vmatpush.msra.mxu0 %v51_v13  ;;  %v185_v2 = vadd.f32 %v6968_v62, %v184_v1  ;;  %v7398_v13 = vunpack.c.0.s8 %v197_v6 }
  0x19   :  { %87 = vmatpush.msra.mxu0 %v50_v14  ;;  %v7394_v11 = vsel %vm186_vm5, %v6968_v62, %v185_v2  ;;  %v7400_v14 = vunpack.c.0.s8 %v201_v8 }
  0x1a   :  { %9668 = vst [vmem:[#allocation5_spill] sm:$0xff] %v7394_v11 }
  0x1b   :  { %88 = vmatpush.msra.mxu0 %v49_v15  ;;  %v7402_v15 = vunpack.c.0.s8 %v205_v10 }
  0x74   :  { %v39_v18 = vpop.permute.xlu0 %38 }
  0x75   :  { %vm43_vm2 = vcmp.eq.s32.totalorder %v39_v18, %v36_v17 }
  0x76   :  { %v6634_v20 = vsel %vm43_vm2, 1.0, %v7272_v19 }
  0x77   :  { %6637 = vmatmul.msk.f32.vlgmr.msra.gmra.mxu0 %vm62_vm1, %v6634_v20 }
  0x7c   :  { %v42_v21 = vpop.permute.xlu0 %41 }
  0x7d   :  { %vm44_vm3 = vcmp.eq.s32.totalorder %v42_v21, %v36_v17 }
  0x7e   :  { %v6635_v22 = vsel %vm44_vm3, 1.0, %v7272_v19  ;;  %vm874_vm3 = vcmask 15360  }
  0x7f   :  { %6638 = vmatmul.msk.f32.gmra.mxu0 %vm62_vm1, %v6635_v22 }
  0xf4   :  { %v90_v28 = vpop.f32.mrf.mxu0 }
  0xf5   :  { %v96_v29 = vmul.f32 5.656854, %v90_v28 }
  0xf7   :  { %v101_v34 = vrot.slane %v96_v29, 2  ;;  %v102_v35 = vrot.slane %v96_v29, 4  ;;  %v103_v36 = vrot.slane %v96_v29, 6  ;;  %v137_v37 = vadd.f32 %v121_v27, %v96_v29 }
  0xf9   :  { %v138_v40 = vadd.f32 %v122_v30, %v101_v34  ;;  %v139_v41 = vadd.f32 %v123_v31, %v102_v35  ;;  %v140_v42 = vadd.f32 %v124_v32, %v103_v36  ;;  %155 = vst [vmem:[#allocation1] ss:$4 sm:$0xff] %v137_v37 }
  0xfb   :  { %157 = vst [vmem:[#allocation1 + $0x1] ss:$4 sm:$0xff] %v138_v40 }
  0xfc   :  { %159 = vst [vmem:[#allocation1 + $0x2] ss:$4 sm:$0xff] %v139_v41  ;;  %v93_v45 = vpop.f32.mrf.mxu0 }
  0xfd   :  { %161 = vst [vmem:[#allocation1 + $0x3] ss:$4 sm:$0xff] %v140_v42  ;;  %v97_v47 = vmul.f32 5.656854, %v93_v45 }
  0xff   :  { %v104_v50 = vrot.slane %v97_v47, 2  ;;  %v105_v51 = vrot.slane %v97_v47, 4  ;;  %v106_v52 = vrot.slane %v97_v47, 6  ;;  %v141_v53 = vadd.f32 %v125_v44, %v97_v47 }
 0x101   :  { %v142_v54 = vadd.f32 %v126_v46, %v104_v50  ;;  %v143_v55 = vadd.f32 %v127_v48, %v105_v51  ;;  %v144_v56 = vadd.f32 %v128_v49, %v106_v52  ;;  %163 = vst [vmem:[#allocation1 + $0x20] ss:$4 sm:$0xff] %v141_v53  ;;  %v390_v50 = vld [vmem:[%s9655_s3 + $0x18] sm:$0xff]  ;;  %v389_v52 = vld [vmem:[%s9655_s3 + $0x10] sm:$0xff] }
 0x102   :  { %433 = vmatpush.msra.mxu1 %v390_v50 }
 0x103   :  { %165 = vst [vmem:[#allocation1 + $0x21] ss:$4 sm:$0xff] %v142_v54 }
 0x104   :  { %v170_v57 = vld.sshfl [vmem:[#allocation1] sm:$0xff pattern:$0x73625140]  ;;  %167 = vst [vmem:[#allocation1 + $0x22] ss:$4 sm:$0xff] %v143_v55  ;;  %434 = vmatpush.msra.mxu1 %v389_v52 }
 0x105   :  { %169 = vst [vmem:[#allocation1 + $0x23] ss:$4 sm:$0xff] %v144_v56  ;;  %v175_v58 = vsel %vm9666_vm4, %v170_v57, 0.0 }
 0x106   :  { %176 = vadd.xlane.f32.xlu1 %v175_v58 }
 0x10c   :  { %v171_v59 = vld.sshfl [vmem:[#allocation1 + $0x20] sm:$0xff pattern:$0x73625140] }
 0x10d   :  { %v178_v60 = vsel %vm9666_vm4, %v171_v59, 0.0 }
 0x10e   :  { %179 = vadd.xlane.f32.xlu1 %v178_v60  ;;  %v7465_v60 = vld [vmem:[%s9660_s8] sm:$0xff] }
 0x10f   :  { %v355_v63 = vperm.slane %v7465_v60, 0  ;;  %v371_v2 = vperm.slane %v7465_v60, 1 }
 0x111   :  { %v357_v5 = vrot.slane %v355_v63, 2  ;;  %v358_v6 = vrot.slane %v355_v63, 4  ;;  %v359_v7 = vrot.slane %v355_v63, 6 }
 0x179   :  { %v177_v16 = vpop.xlane.xlu1 %176 }
 0x17a   :  { %v188_v17 = vmul.f32 %v7394_v11, %v177_v16 }
 0x17c   :  { %v195_v18 = vperm.slane %v188_v17, %v7396_v12  ;;  %v199_v19 = vperm.slane %v188_v17, %v7398_v13  ;;  %v203_v20 = vperm.slane %v188_v17, %v7400_v14  ;;  %v207_v21 = vperm.slane %v188_v17, %v7402_v15 }
 0x17e   :  { %v7409_v22 = vsub.f32 %v137_v37, %v195_v18  ;;  %v7411_v23 = vsub.f32 %v138_v40, %v199_v19  ;;  %v7413_v24 = vsub.f32 %v139_v41, %v203_v20  ;;  %v7415_v25 = vsub.f32 %v140_v42, %v207_v21 }
 0x17f   :  { %v373_v19 = vrot.slane %v371_v2, 2  ;;  %v374_v20 = vrot.slane %v371_v2, 4 }
 0x180   :  { %v240_v26 = vmul.f32 %v7409_v22, %v7409_v22  ;;  %v241_v27 = vmul.f32 %v7411_v23, %v7411_v23  ;;  %v242_v28 = vmul.f32 %v7413_v24, %v7413_v24  ;;  %v243_v29 = vmul.f32 %v7415_v25, %v7415_v25 }
 0x181   :  { %v180_v30 = vpop.xlane.xlu1 %179 }
 0x182   :  { %256 = vst [vmem:[#allocation1] ss:$4 sm:$0xff] %v240_v26  ;;  %v189_v31 = vmul.f32 %v7394_v11, %v180_v30  ;;  %v375_v30 = vrot.slane %v371_v2, 6 }
 0x183   :  { %258 = vst [vmem:[#allocation1 + $0x1] ss:$4 sm:$0xff] %v241_v27 }
 0x184   :  { %260 = vst [vmem:[#allocation1 + $0x2] ss:$4 sm:$0xff] %v242_v28  ;;  %v211_v32 = vperm.slane %v189_v31, %v7396_v12  ;;  %v215_v33 = vperm.slane %v189_v31, %v7398_v13  ;;  %v219_v34 = vperm.slane %v189_v31, %v7400_v14  ;;  %v223_v35 = vperm.slane %v189_v31, %v7402_v15 }
 0x185   :  { %262 = vst [vmem:[#allocation1 + $0x3] ss:$4 sm:$0xff] %v243_v29 }
 0x186   :  { %v7430_v36 = vsub.f32 %v141_v53, %v211_v32  ;;  %v7432_v37 = vsub.f32 %v142_v54, %v215_v33  ;;  %v7434_v38 = vsub.f32 %v143_v55, %v219_v34  ;;  %v7436_v39 = vsub.f32 %v144_v56, %v223_v35  ;;  %v388_v53 = vld [vmem:[%s9655_s3 + $0x8] sm:$0xff]  ;;  %v387_v55 = vld [vmem:[%s9655_s3] sm:$0xff] }
 0x187   :  { %435 = vmatpush.msra.mxu1 %v388_v53 }
 0x188   :  { %v244_v40 = vmul.f32 %v7430_v36, %v7430_v36  ;;  %v245_v41 = vmul.f32 %v7432_v37, %v7432_v37  ;;  %v246_v42 = vmul.f32 %v7434_v38, %v7434_v38  ;;  %v247_v43 = vmul.f32 %v7436_v39, %v7436_v39 }
 0x189   :  { %436 = vmatpush.msra.mxu1 %v387_v55 }
 0x18a   :  { %264 = vst [vmem:[#allocation1 + $0x20] ss:$4 sm:$0xff] %v244_v40 }
 0x18b   :  { %266 = vst [vmem:[#allocation1 + $0x21] ss:$4 sm:$0xff] %v245_v41 }
 0x18c   :  { %v271_v44 = vld.sshfl [vmem:[#allocation1] sm:$0xff pattern:$0x73625140]  ;;  %268 = vst [vmem:[#allocation1 + $0x22] ss:$4 sm:$0xff] %v246_v42 }
 0x18d   :  { %270 = vst [vmem:[#allocation1 + $0x23] ss:$4 sm:$0xff] %v247_v43  ;;  %v275_v45 = vsel %vm9666_vm4, %v271_v44, 0.0 }
 0x18e   :  { %276 = vadd.xlane.f32.xlu2 %v275_v45 }
 0x194   :  { %v272_v46 = vld.sshfl [vmem:[#allocation1 + $0x20] sm:$0xff pattern:$0x73625140] }
 0x195   :  { %v278_v47 = vsel %vm9666_vm4, %v272_v46, 0.0 }
 0x196   :  { %279 = vadd.xlane.f32.xlu2 %v278_v47 }
 0x201   :  { %v277_v48 = vpop.xlane.xlu2 %276 }
 0x202   :  { %v281_v49 = vmul.f32 %v277_v48, %v7394_v11 }
 0x204   :  { %v283_v51 = vadd.f32 1e-05, %v281_v49 }
 0x206   :  { %6969 = vrsqrt.f32 %v283_v51  ;;  %vm291_vm7 = vweird.f32 %v283_v51 }
 0x209   :  { %v280_v54 = vpop.xlane.xlu2 %279 }
 0x20a   :  { %v282_v56 = vmul.f32 %v280_v54, %v7394_v11 }
 0x20c   :  { %v6970_v57 = vpop.eup %6969  ;;  %v284_v58 = vadd.f32 1e-05, %v282_v56 }
 0x20d   :  { %v286_v59 = vmul.f32 %v6970_v57, %v283_v51  ;;  %vm292_vm6 = vweird.f32 %v6970_v57 }
 0x20e   :  { %6971 = vrsqrt.f32 %v284_v58  ;;  %vm293_vm8 = vmor %vm291_vm7, %vm292_vm6  ;;  %vm301_vm10 = vweird.f32 %v284_v58 }
 0x20f   :  { %v287_v61 = vmul.f32 %v6970_v57, %v286_v59 }
 0x211   :  { %v288_v62 = vmul.f32 0.5, %v287_v61 }
 0x213   :  { %v289_v0 = vsub.f32 1.5, %v288_v62 }
 0x214   :  { %v6972_v1 = vpop.eup %6971 }
 0x215   :  { %v290_v3 = vmul.f32 %v6970_v57, %v289_v0  ;;  %v296_v4 = vmul.f32 %v6972_v1, %v284_v58  ;;  %vm302_vm9 = vweird.f32 %v6972_v1 }
 0x216   :  { %vm303_vm11 = vmor %vm301_vm10, %vm302_vm9 }
 0x217   :  { %v294_v8 = vsel %vm293_vm8, %v6970_v57, %v290_v3  ;;  %v297_v9 = vmul.f32 %v6972_v1, %v296_v4 }
 0x218   :  { %v310_v10 = vperm.slane %v294_v8, %v7396_v12  ;;  %v314_v16 = vperm.slane %v294_v8, %v7398_v13  ;;  %v318_v17 = vperm.slane %v294_v8, %v7400_v14  ;;  %v322_v18 = vperm.slane %v294_v8, %v7402_v15 }
 0x219   :  { %v298_v21 = vmul.f32 0.5, %v297_v9 }
 0x21a   :  { %v347_v26 = vmul.f32 %v310_v10, %v7409_v22  ;;  %v348_v27 = vmul.f32 %v314_v16, %v7411_v23  ;;  %v349_v28 = vmul.f32 %v318_v17, %v7413_v24  ;;  %v350_v29 = vmul.f32 %v322_v18, %v7415_v25 }
 0x21b   :  { %v299_v31 = vsub.f32 1.5, %v298_v21 }
 0x21c   :  { %v363_v32 = vmul.f32 %v355_v63, %v347_v26  ;;  %v364_v33 = vmul.f32 %v357_v5, %v348_v27  ;;  %v365_v34 = vmul.f32 %v358_v6, %v349_v28  ;;  %v366_v35 = vmul.f32 %v359_v7, %v350_v29 }
 0x21d   :  { %v300_v40 = vmul.f32 %v6972_v1, %v299_v31 }
 0x21e   :  { %v379_v41 = vadd.f32 %v371_v2, %v363_v32  ;;  %v380_v42 = vadd.f32 %v373_v19, %v364_v33  ;;  %v381_v43 = vadd.f32 %v374_v20, %v365_v34  ;;  %v382_v22 = vadd.f32 %v375_v30, %v366_v35 }
 0x21f   :  { %v304_v44 = vsel %vm303_vm11, %v6972_v1, %v300_v40 }
 0x220   :  { %400 = vst [vmem:[#allocation1] ss:$4 sm:$0xff] %v379_v41  ;;  %v326_v23 = vperm.slane %v304_v44, %v7396_v12  ;;  %v330_v24 = vperm.slane %v304_v44, %v7398_v13  ;;  %v334_v25 = vperm.slane %v304_v44, %v7400_v14  ;;  %v338_v45 = vperm.slane %v304_v44, %v7402_v15 }
 0x221   :  { %402 = vst [vmem:[#allocation1 + $0x1] ss:$4 sm:$0xff] %v380_v42 }
 0x222   :  { %404 = vst [vmem:[#allocation1 + $0x2] ss:$4 sm:$0xff] %v381_v43  ;;  %v351_v46 = vmul.f32 %v326_v23, %v7430_v36  ;;  %v352_v47 = vmul.f32 %v330_v24, %v7432_v37  ;;  %v353_v48 = vmul.f32 %v334_v25, %v7434_v38  ;;  %v354_v49 = vmul.f32 %v338_v45, %v7436_v39 }
 0x223   :  { %406 = vst [vmem:[#allocation1 + $0x3] ss:$4 sm:$0xff] %v382_v22  ;;  %v391_v37 = vperm.slane %v7465_v60, 2 }
 0x224   :  { %v367_v50 = vmul.f32 %v355_v63, %v351_v46  ;;  %v368_v51 = vmul.f32 %v357_v5, %v352_v47  ;;  %v369_v12 = vmul.f32 %v358_v6, %v353_v48  ;;  %v370_v52 = vmul.f32 %v359_v7, %v354_v49 }
 0x226   :  { %v383_v13 = vadd.f32 %v371_v2, %v367_v50  ;;  %v384_v53 = vadd.f32 %v373_v19, %v368_v51  ;;  %v385_v14 = vadd.f32 %v374_v20, %v369_v12  ;;  %v386_v54 = vadd.f32 %v375_v30, %v370_v52 }
 0x228   :  { %408 = vst [vmem:[#allocation1 + $0x20] ss:$4 sm:$0xff] %v383_v13 }
 0x229   :  { %410 = vst [vmem:[#allocation1 + $0x21] ss:$4 sm:$0xff] %v384_v53 }
 0x22a   :  { %v415_v15 = vld.sshfl [vmem:[#allocation1] sm:$0xff pattern:$0x73625140]  ;;  %412 = vst [vmem:[#allocation1 + $0x22] ss:$4 sm:$0xff] %v385_v14 }
 0x22b   :  { %414 = vst [vmem:[#allocation1 + $0x23] ss:$4 sm:$0xff] %v386_v54  ;;  %6639 = vmatmul.msk.f32.vlgmr.msra.gmra.mxu1 %vm9666_vm4, %v415_v15 }
 0x232   :  { %v416_v36 = vld.sshfl [vmem:[#allocation1 + $0x20] sm:$0xff pattern:$0x73625140] }
 0x233   :  { %6640 = vmatmul.msk.f32.gmra.mxu1 %vm9666_vm4, %v416_v36 }
 0x2a8   :  { %v438_v38 = vpop.f32.mrf.mxu1 }
 0x2a9   :  { %v7488_v39 = vadd.f32 %v438_v38, %v391_v37 }
 0x2ab   :  { %452 = vst [vmem:[#allocation1] ss:$4 sm:$0xff] %v7488_v39  ;;  %v7492_v55 = vrot.slane %v7488_v39, 2  ;;  %v7497_v57 = vrot.slane %v7488_v39, 4  ;;  %v7502_v59 = vrot.slane %v7488_v39, 6 }
 0x2b0   :  { %v441_v61 = vpop.f32.mrf.mxu1 }
 0x2b1   :  { %v7506_v62 = vadd.f32 %v441_v61, %v391_v37 }
 0x2b2   :  { %v453_v56 = vld.sshfl [vmem:[#allocation1] sm:$0xff pattern:$0x73625140] }
 0x2b3   :  { %481 = vst [vmem:[#allocation1] ss:$4 sm:$0xff] %v7492_v55  ;;  %454 = vrot.lane.b32.xlu0 %v453_v56, %s7278_s27  ;;  %v7511_v0 = vrot.slane %v7506_v62, 2  ;;  %v7516_v2 = vrot.slane %v7506_v62, 4  ;;  %v7521_v4 = vrot.slane %v7506_v62, 6 }
 0x2ba   :  { %v482_v58 = vld.sshfl [vmem:[#allocation1] sm:$0xff pattern:$0x73625140] }
 0x2bb   :  { %509 = vst [vmem:[#allocation1] ss:$4 sm:$0xff] %v7497_v57  ;;  %483 = vrot.lane.b32.xlu1 %v482_v58, %s7278_s27 }
 0x2c2   :  { %v510_v60 = vld.sshfl [vmem:[#allocation1] sm:$0xff pattern:$0x73625140] }
 0x2c3   :  { %537 = vst [vmem:[#allocation1] ss:$4 sm:$0xff] %v7502_v59  ;;  %511 = vrot.lane.b32.xlu2 %v510_v60, %s7278_s27 }
 0x2ca   :  { %v538_v63 = vld.sshfl [vmem:[#allocation1] sm:$0xff pattern:$0x73625140] }
 0x2cb   :  { %565 = vst [vmem:[#allocation1] ss:$4 sm:$0xff] %v7506_v62  ;;  %539 = vrot.lane.b32.xlu0 %v538_v63, %s7278_s27 }
 0x2d2   :  { %v566_v1 = vld.sshfl [vmem:[#allocation1] sm:$0xff pattern:$0x73625140] }
 0x2d3   :  { %593 = vst [vmem:[#allocation1] ss:$4 sm:$0xff] %v7511_v0  ;;  %567 = vrot.lane.b32.xlu0 %v566_v1, %s7278_s27 }
 0x2da   :  { %v594_v3 = vld.sshfl [vmem:[#allocation1] sm:$0xff pattern:$0x73625140] }
 0x2db   :  { %621 = vst [vmem:[#allocation1] ss:$4 sm:$0xff] %v7516_v2  ;;  %595 = vrot.lane.b32.xlu1 %v594_v3, %s7278_s27 }
 0x2e2   :  { %v622_v5 = vld.sshfl [vmem:[#allocation1] sm:$0xff pattern:$0x73625140] }
 0x2e3   :  { %649 = vst [vmem:[#allocation1] ss:$4 sm:$0xff] %v7521_v4  ;;  %623 = vrot.lane.b32.xlu2 %v622_v5, %s7278_s27 }
 0x2ea   :  { %v650_v6 = vld.sshfl [vmem:[#allocation1] sm:$0xff pattern:$0x73625140] }
 0x2eb   :  { %870 = vst [vmem:[#allocation1] ss:$4 sm:$0xff] %v7488_v39  ;;  %651 = vrot.lane.b32.xlu0 %v650_v6, %s7278_s27 }
 0x2f2   :  { %v871_v7 = vld.sshfl [vmem:[#allocation1] sm:$0xff pattern:$0x73625140] }
 0x2f3   :  { %901 = vst [vmem:[#allocation1] ss:$4 sm:$0xff] %v7492_v55  ;;  %872 = vrot.lane.b32.xlu0 %v871_v7, %s7279_s28 }
 0x2fa   :  { %v7529_v8 = vld.sshfl [vmem:[#allocation1] sm:$0xff pattern:$0x73625140] }
 0x2fb   :  { %930 = vst [vmem:[#allocation1] ss:$4 sm:$0xff] %v7497_v57 }
 0x302   :  { %v931_v9 = vld.sshfl [vmem:[#allocation1] sm:$0xff pattern:$0x73625140] }
 0x303   :  { %959 = vst [vmem:[#allocation1] ss:$4 sm:$0xff] %v7502_v59  ;;  %932 = vrot.lane.b32.xlu1 %v931_v9, %s7279_s28 }
 0x30a   :  { %v960_v10 = vld.sshfl [vmem:[#allocation1] sm:$0xff pattern:$0x73625140] }
 0x30b   :  { %988 = vst [vmem:[#allocation1] ss:$4 sm:$0xff] %v7506_v62  ;;  %961 = vrot.lane.b32.xlu2 %v960_v10, %s7279_s28 }
 0x312   :  { %v7536_v16 = vld.sshfl [vmem:[#allocation1] sm:$0xff pattern:$0x73625140] }
 0x313   :  { %1017 = vst [vmem:[#allocation1] ss:$4 sm:$0xff] %v7511_v0 }
 0x31a   :  { %v7539_v17 = vld.sshfl [vmem:[#allocation1] sm:$0xff pattern:$0x73625140] }
 0x31b   :  { %1046 = vst [vmem:[#allocation1] ss:$4 sm:$0xff] %v7516_v2 }
 0x31d   :  { %v512_v18 = vpop.permute.xlu2 %511 }
 0x31e   :  { %6645 = vmatpush.xpose.msk.msra.mxu2 %vm456_vm12, %v512_v18 }
 0x321   :  { %6646 = vmatmul.msk.f32.vlgmr.msra.gmra.mxu2 %vm456_vm12, %v7497_v57 }
 0x322   :  { %v1047_v19 = vld.sshfl [vmem:[#allocation1] sm:$0xff pattern:$0x73625140] }
 0x323   :  { %1075 = vst [vmem:[#allocation1] ss:$4 sm:$0xff] %v7521_v4  ;;  %1048 = vrot.lane.b32.xlu1 %v1047_v19, %s7279_s28 }
 0x325   :  { %v455_v20 = vpop.permute.xlu0 %454 }
 0x326   :  { %6641 = vmatpush.xpose.msk.msra.mxu3 %vm456_vm12, %v455_v20 }
 0x329   :  { %6642 = vmatmul.msk.f32.vlgmr.msra.gmra.mxu3 %vm456_vm12, %v7488_v39 }
 0x32a   :  { %v1076_v21 = vld.sshfl [vmem:[#allocation1] sm:$0xff pattern:$0x73625140] }
 0x32b   :  { %1104 = vst [vmem:[#allocation1] ss:$4 sm:$0xff] %v7488_v39  ;;  %1077 = vrot.lane.b32.xlu2 %v1076_v21, %s7279_s28 }
 0x32d   :  { %v484_v26 = vpop.permute.xlu1 %483 }
 0x32e   :  { %6643 = vmatpush.xpose.msk.msrb.mxu3 %vm456_vm12, %v484_v26 }
 0x331   :  { %6644 = vmatmul.msk.f32.vlgmr.msrb.gmra.mxu3 %vm456_vm12, %v7492_v55 }
 0x332   :  { %v7555_v27 = vld.sshfl [vmem:[#allocation1] sm:$0xff pattern:$0x73625140] }
 0x333   :  { %1108 = vst [vmem:[#allocation1] ss:$4 sm:$0xff] %v7488_v39 }
 0x33a   :  { %v7558_v28 = vld.sshfl [vmem:[#allocation1] sm:$0xff pattern:$0x73625140] }
 0x33b   :  { %1136 = vst [vmem:[#allocation1] ss:$4 sm:$0xff] %v7492_v55 }
 0x33d   :  { %v624_v29 = vpop.permute.xlu2 %623  ;;  %v540_v30 = vpop.permute.xlu0 %539 }
 0x33e   :  { %6647 = vmatpush.xpose.msk.msra.mxu3 %vm456_vm12, %v540_v30  ;;  %6653 = vmatpush.xpose.msk.msrb.mxu1 %vm456_vm12, %v624_v29 }
 0x341   :  { %6648 = vmatmul.msk.f32.vlgmr.msra.gmra.mxu3 %vm456_vm12, %v7502_v59  ;;  %6654 = vmatmul.msk.f32.vlgmr.msrb.gmra.mxu1 %vm456_vm12, %v7516_v2 }
 0x342   :  { %v7567_v31 = vld.sshfl [vmem:[#allocation1] sm:$0xff pattern:$0x73625140] }
 0x343   :  { %1140 = vst [vmem:[#allocation1] ss:$4 sm:$0xff] %v7492_v55 }
 0x345   :  { %v568_v32 = vpop.permute.xlu0 %567 }
 0x346   :  { %6649 = vmatpush.xpose.msk.msrb.mxu2 %vm456_vm12, %v568_v32 }
 0x349   :  { %6650 = vmatmul.msk.f32.vlgmr.msrb.gmra.mxu2 %vm456_vm12, %v7506_v62 }
 0x34a   :  { %v7573_v33 = vld.sshfl [vmem:[#allocation1] sm:$0xff pattern:$0x73625140] }
 0x34b   :  { %1168 = vst [vmem:[#allocation1] ss:$4 sm:$0xff] %v7497_v57 }
 0x34d   :  { %v596_v34 = vpop.permute.xlu1 %595 }
 0x34e   :  { %6651 = vmatpush.xpose.msk.msrb.mxu3 %vm456_vm12, %v596_v34 }
 0x351   :  { %6652 = vmatmul.msk.f32.vlgmr.msrb.gmra.mxu3 %vm456_vm12, %v7511_v0 }
 0x352   :  { %v1169_v35 = vld.sshfl [vmem:[#allocation1] sm:$0xff pattern:$0x73625140] }
 0x353   :  { %1172 = vst [vmem:[#allocation1] ss:$4 sm:$0xff] %v7497_v57  ;;  %1170 = vrot.lane.b32.xlu2 %v1169_v35, %s7280_s29 }
 0x35a   :  { %v1173_v40 = vld.sshfl [vmem:[#allocation1] sm:$0xff pattern:$0x73625140] }
 0x35b   :  { %1200 = vst [vmem:[#allocation1] ss:$4 sm:$0xff] %v7502_v59  ;;  %1174 = vrot.lane.b32.xlu0 %v1173_v40, %s7281_s30 }
 0x35d   :  { %v652_v41 = vpop.permute.xlu0 %651 }
 0x35e   :  { %6655 = vmatpush.xpose.msk.msra.mxu2 %vm456_vm12, %v652_v41 }
 0x361   :  { %6656 = vmatmul.msk.f32.vlgmr.msra.gmra.mxu2 %vm456_vm12, %v7521_v4 }
 0x362   :  { %v1201_v42 = vld.sshfl [vmem:[#allocation1] sm:$0xff pattern:$0x73625140] }
 0x363   :  { %1204 = vst [vmem:[#allocation1] ss:$4 sm:$0xff] %v7502_v59  ;;  %1202 = vrot.lane.b32.xlu0 %v1201_v42, %s7280_s29 }
 0x365   :  { %v962_v43 = vpop.permute.xlu2 %961  ;;  %v873_v22 = vpop.permute.xlu0 %872 }
 0x366   :  { %6657 = vmatpush.msk.msra.mxu3 %vm878_vm13, %v873_v22 }
 0x368   :  { %6663 = vmatpush.msk.msrb.mxu3 %vm878_vm13, %v962_v43 }
 0x36a   :  { %v1205_v44 = vld.sshfl [vmem:[#allocation1] sm:$0xff pattern:$0x73625140] }
 0x36b   :  { %1232 = vst [vmem:[#allocation1] ss:$4 sm:$0xff] %v7506_v62  ;;  %1206 = vrot.lane.b32.xlu1 %v1205_v44, %s7281_s30 }
 0x372   :  { %v7592_v23 = vld.sshfl [vmem:[#allocation1] sm:$0xff pattern:$0x73625140] }
 0x373   :  { %1236 = vst [vmem:[#allocation1] ss:$4 sm:$0xff] %v7506_v62 }
 0x375   :  { %v933_v24 = vpop.permute.xlu1 %932 }
 0x376   :  { %6661 = vmatpush.msk.msrb.mxu2 %vm878_vm13, %v933_v24 }
 0x37a   :  { %v7596_v25 = vld.sshfl [vmem:[#allocation1] sm:$0xff pattern:$0x73625140] }
 0x37b   :  { %1264 = vst [vmem:[#allocation1] ss:$4 sm:$0xff] %v7511_v0 }
 0x382   :  { %v7599_v45 = vld.sshfl [vmem:[#allocation1] sm:$0xff pattern:$0x73625140] }
 0x383   :  { %1268 = vst [vmem:[#allocation1] ss:$4 sm:$0xff] %v7511_v0 }
 0x385   :  { %v7679_v29 = vpop.permute.xlu2 %1077 }
 0x38a   :  { %v7602_v46 = vld.sshfl [vmem:[#allocation1] sm:$0xff pattern:$0x73625140] }
 0x38b   :  { %1296 = vst [vmem:[#allocation1] ss:$4 sm:$0xff] %v7516_v2 }
 0x392   :  { %v7605_v47 = vld.sshfl [vmem:[#allocation1] sm:$0xff pattern:$0x73625140] }
 0x393   :  { %1300 = vst [vmem:[#allocation1] ss:$4 sm:$0xff] %v7516_v2 }
 0x395   :  { %v1049_v48 = vpop.permute.xlu1 %1048 }
 0x396   :  { %6669 = vmatpush.msk.msra.mxu2 %vm878_vm13, %v1049_v48 }
 0x39a   :  { %v1301_v49 = vld.sshfl [vmem:[#allocation1] sm:$0xff pattern:$0x73625140] }
 0x39b   :  { %1328 = vst [vmem:[#allocation1] ss:$4 sm:$0xff] %v7521_v4 }
 0x3a2   :  { %v7610_v50 = vld.sshfl [vmem:[#allocation1] sm:$0xff pattern:$0x73625140] }
 0x3a3   :  { %1332 = vst [vmem:[#allocation1] ss:$4 sm:$0xff] %v7521_v4 }
 0x3a4   :  { %v534_v51 = vpop.f32.mrf.mxu2 }
 0x3a5   :  { %v684_v12 = vsel %vm677_vm14, %v534_v51, -inf }
 0x3a6   :  { %685 = vmax.xlane.f32.xlu2 %v684_v12 }
 0x3aa   :  { %v7614_v52 = vld.sshfl [vmem:[#allocation1] sm:$0xff pattern:$0x73625140] }
 0x3ab   :  { %1552 = vst [vmem:[#allocation1] ss:$4 sm:$0xff] %v7488_v39 }
 0x3ac   :  { %v7617_v13 = vpop.f32.mrf.mxu3 }
 0x3ad   :  { %v678_v53 = vsel %vm677_vm14, %v7617_v13, -inf  ;;  %v7686_v34 = vpop.permute.xlu2 %1170 }
 0x3ae   :  { %679 = vmax.xlane.f32.xlu0 %v678_v53 }
 0x3b2   :  { %v7621_v14 = vld.sshfl [vmem:[#allocation1] sm:$0xff pattern:$0x73625140] }
 0x3b3   :  { %1581 = vst [vmem:[#allocation1] ss:$4 sm:$0xff] %v7492_v55 }
 0x3b4   :  { %v7624_v54 = vpop.f32.mrf.mxu3 }
 0x3b5   :  { %v681_v15 = vsel %vm677_vm14, %v7624_v54, -inf }
 0x3b6   :  { %682 = vmax.xlane.f32.xlu1 %v681_v15 }
 0x3ba   :  { %v7628_v36 = vld.sshfl [vmem:[#allocation1] sm:$0xff pattern:$0x73625140] }
 0x3bb   :  { %1610 = vst [vmem:[#allocation1] ss:$4 sm:$0xff] %v7497_v57 }
 0x3be   :  { %v7647_v1 = vpop.f32.mrf.mxu1 }
 0x3bf   :  { %v696_v6 = vsel %vm677_vm14, %v7647_v1, -inf }
 0x3c2   :  { %v7631_v37 = vld.sshfl [vmem:[#allocation1] sm:$0xff pattern:$0x73625140] }
 0x3c3   :  { %1639 = vst [vmem:[#allocation1] ss:$4 sm:$0xff] %v7502_v59 }
 0x3c4   :  { %v7634_v38 = vpop.f32.mrf.mxu3 }
 0x3c5   :  { %v687_v56 = vsel %vm677_vm14, %v7634_v38, -inf }
 0x3c6   :  { %688 = vmax.xlane.f32.xlu1 %v687_v56 }
 0x3ca   :  { %v7638_v58 = vld.sshfl [vmem:[#allocation1] sm:$0xff pattern:$0x73625140] }
 0x3cb   :  { %1668 = vst [vmem:[#allocation1] ss:$4 sm:$0xff] %v7506_v62 }
 0x3cc   :  { %v7641_v60 = vpop.f32.mrf.mxu2 }
 0x3cd   :  { %v690_v61 = vsel %vm677_vm14, %v7641_v60, -inf  ;;  %v7684_v32 = vpop.permute.xlu0 %1174 }
 0x3ce   :  { %691 = vmax.xlane.f32.xlu2 %v690_v61 }
 0x3d2   :  { %v7645_v63 = vld.sshfl [vmem:[#allocation1] sm:$0xff pattern:$0x73625140] }
 0x3d3   :  { %1697 = vst [vmem:[#allocation1] ss:$4 sm:$0xff] %v7511_v0 }
 0x3d4   :  { %v7650_v3 = vpop.f32.mrf.mxu3 }
 0x3d5   :  { %v693_v5 = vsel %vm677_vm14, %v7650_v3, -inf  ;;  %v7691_v40 = vpop.permute.xlu0 %1202 }
 0x3d6   :  { %694 = vmax.xlane.f32.xlu0 %v693_v5  ;;  %697 = vmax.xlane.f32.xlu2 %v696_v6 }
 0x3da   :  { %v7656_v7 = vld.sshfl [vmem:[#allocation1] sm:$0xff pattern:$0x73625140] }
 0x3db   :  { %1726 = vst [vmem:[#allocation1] ss:$4 sm:$0xff] %v7516_v2 }
 0x3dd   :  { %v7696_v44 = vpop.permute.xlu1 %1206 }
 0x3e2   :  { %v7659_v9 = vld.sshfl [vmem:[#allocation1] sm:$0xff pattern:$0x73625140] }
 0x3e3   :  { %1755 = vst [vmem:[#allocation1] ss:$4 sm:$0xff] %v7521_v4 }
 0x3e4   :  { %v7662_v10 = vpop.f32.mrf.mxu2 }
 0x3e5   :  { %v699_v18 = vsel %vm677_vm14, %v7662_v10, -inf }
 0x3e6   :  { %700 = vmax.xlane.f32.xlu0 %v699_v18 }
 0x3ea   :  { %v7666_v19 = vld.sshfl [vmem:[#allocation1] sm:$0xff pattern:$0x73625140] }
 0x3eb   :  { %1784 = vst [vmem:[#allocation1] ss:$4 sm:$0xff] %v7488_v39 }
 0x3f2   :  { %v7669_v20 = vld.sshfl [vmem:[#allocation1] sm:$0xff pattern:$0x73625140] }
 0x3f3   :  { %1788 = vst [vmem:[#allocation1] ss:$4 sm:$0xff] %v7488_v39 }
 0x3fa   :  { %v7672_v21 = vld.sshfl [vmem:[#allocation1] sm:$0xff pattern:$0x73625140]  ;;  %1302 = vrot.lane.b32.xlu0 %v1301_v49, %s7281_s30 }
 0x3fb   :  { %1816 = vst [vmem:[#allocation1] ss:$4 sm:$0xff] %v7492_v55 }
 0x402   :  { %v7676_v26 = vld.sshfl [vmem:[#allocation1] sm:$0xff pattern:$0x73625140] }
 0x403   :  { %1820 = vst [vmem:[#allocation1] ss:$4 sm:$0xff] %v7492_v55 }
 0x40a   :  { %v7681_v30 = vld.sshfl [vmem:[#allocation1] sm:$0xff pattern:$0x73625140] }
 0x40b   :  { %1848 = vst [vmem:[#allocation1] ss:$4 sm:$0xff] %v7497_v57 }
 0x412   :  { %v7688_v35 = vld.sshfl [vmem:[#allocation1] sm:$0xff pattern:$0x73625140] }
 0x413   :  { %1852 = vst [vmem:[#allocation1] ss:$4 sm:$0xff] %v7497_v57 }
 0x419   :  { %v686_v41 = vpop.xlane.xlu2 %685 }
 0x41a   :  { %v7693_v42 = vld.sshfl [vmem:[#allocation1] sm:$0xff pattern:$0x73625140]  ;;  %v704_v43 = vsub.f32 %v534_v51, %v686_v41 }
 0x41b   :  { %1880 = vst [vmem:[#allocation1] ss:$4 sm:$0xff] %v7502_v59 }
 0x41c   :  { %v714_v22 = vmul.f32 1.442695, %v704_v43 }
 0x41e   :  { %6973 = vpow2.f32 %v714_v22 }
 0x421   :  { %v680_v24 = vpop.xlane.xlu0 %679 }
 0x422   :  { %v7698_v48 = vld.sshfl [vmem:[#allocation1] sm:$0xff pattern:$0x73625140]  ;;  %v702_v49 = vsub.f32 %v7617_v13, %v680_v24 }
 0x423   :  { %1884 = vst [vmem:[#allocation1] ss:$4 sm:$0xff] %v7502_v59 }
 0x424   :  { %v7702_v12 = vpop.eup %6973  ;;  %v710_v53 = vmul.f32 1.442695, %v702_v49 }
 0x425   :  { %v732_v15 = vsel %vm677_vm14, %v7702_v12, 0.0 }
 0x426   :  { %6975 = vpow2.f32 %v710_v53  ;;  %733 = vadd.xlane.f32.xlu2 %v732_v15 }
 0x429   :  { %v683_v51 = vpop.xlane.xlu1 %682 }
 0x42a   :  { %v7706_v56 = vld.sshfl [vmem:[#allocation1] sm:$0xff pattern:$0x73625140]  ;;  %v703_v61 = vsub.f32 %v7624_v54, %v683_v51 }
 0x42b   :  { %1912 = vst [vmem:[#allocation1] ss:$4 sm:$0xff] %v7506_v62 }
 0x42c   :  { %v7710_v5 = vpop.eup %6975  ;;  %v712_v13 = vmul.f32 1.442695, %v703_v61 }
 0x42d   :  { %v726_v6 = vsel %vm677_vm14, %v7710_v5, 0.0 }
 0x42e   :  { %6977 = vpow2.f32 %v712_v13  ;;  %727 = vadd.xlane.f32.xlu1 %v726_v6 }
 0x432   :  { %v7714_v18 = vld.sshfl [vmem:[#allocation1] sm:$0xff pattern:$0x73625140] }
 0x433   :  { %1916 = vst [vmem:[#allocation1] ss:$4 sm:$0xff] %v7506_v62 }
 0x434   :  { %v7717_v41 = vpop.eup %6977 }
 0x435   :  { %v729_v43 = vsel %vm677_vm14, %v7717_v41, 0.0 }
 0x436   :  { %730 = vadd.xlane.f32.xlu0 %v729_v43 }
 0x439   :  { %v689_v54 = vpop.xlane.xlu1 %688 }
 0x43a   :  { %v7721_v22 = vld.sshfl [vmem:[#allocation1] sm:$0xff pattern:$0x73625140]  ;;  %v705_v24 = vsub.f32 %v7634_v38, %v689_v54 }
 0x43b   :  { %1944 = vst [vmem:[#allocation1] ss:$4 sm:$0xff] %v7511_v0 }
 0x43c   :  { %v716_v49 = vmul.f32 1.442695, %v705_v24 }
 0x43e   :  { %6979 = vpow2.f32 %v716_v49  ;;  %1298 = vrot.lane.b32.xlu2 %v7605_v47, %s7280_s29 }
 0x441   :  { %v692_v49 = vpop.xlane.xlu2 %691 }
 0x442   :  { %v7727_v53 = vld.sshfl [vmem:[#allocation1] sm:$0xff pattern:$0x73625140] }
 0x443   :  { %1948 = vst [vmem:[#allocation1] ss:$4 sm:$0xff] %v7511_v0 }
 0x444   :  { %v7730_v15 = vpop.eup %6979 }
 0x445   :  { %v735_v51 = vsel %vm677_vm14, %v7730_v15, 0.0 }
 0x446   :  { %736 = vadd.xlane.f32.xlu0 %v735_v51  ;;  %v706_v51 = vsub.f32 %v7641_v60, %v692_v49 }
 0x447   :  { %903 = vrot.lane.b32.xlu1 %v7529_v8, %s7279_s28 }
 0x449   :  { %v695_v61 = vpop.xlane.xlu0 %694 }
 0x44a   :  { %v7736_v38 = vld.sshfl [vmem:[#allocation1] sm:$0xff pattern:$0x73625140]  ;;  %v707_v13 = vsub.f32 %v7650_v3, %v695_v61 }
 0x44b   :  { %1976 = vst [vmem:[#allocation1] ss:$4 sm:$0xff] %v7516_v2 }
 0x44c   :  { %v720_v6 = vmul.f32 1.442695, %v707_v13  ;;  %v698_v13 = vpop.xlane.xlu2 %697 }
 0x44e   :  { %6981 = vpow2.f32 %v720_v6 }
 0x44f   :  { %990 = vrot.lane.b32.xlu1 %v7536_v16, %s7279_s28 }
 0x452   :  { %v7741_v47 = vld.sshfl [vmem:[#allocation1] sm:$0xff pattern:$0x73625140] }
 0x453   :  { %1980 = vst [vmem:[#allocation1] ss:$4 sm:$0xff] %v7516_v2 }
 0x454   :  { %v7755_v3 = vpop.eup %6981 }
 0x459   :  { %v701_v54 = vpop.xlane.xlu0 %700 }
 0x45a   :  { %v7745_v43 = vld.sshfl [vmem:[#allocation1] sm:$0xff pattern:$0x73625140]  ;;  %1334 = vrot.lane.b32.xlu0 %v7614_v52, %s7281_s30  ;;  %v709_v8 = vsub.f32 %v7662_v10, %v701_v54  ;;  %v741_v52 = vsel %vm677_vm14, %v7755_v3, 0.0  ;;  %v708_v54 = vsub.f32 %v7647_v1, %v698_v13 }
 0x45b   :  { %2008 = vst [vmem:[#allocation1] ss:$4 sm:$0xff] %v7521_v4 }
 0x45c   :  { %v724_v16 = vmul.f32 1.442695, %v709_v8 }
 0x45e   :  { %6983 = vpow2.f32 %v724_v16 }
 0x462   :  { %v7751_v24 = vld.sshfl [vmem:[#allocation1] sm:$0xff pattern:$0x73625140]  ;;  %1330 = vrot.lane.b32.xlu0 %v7610_v50, %s7280_s29  ;;  %v718_v50 = vmul.f32 1.442695, %v706_v51 }
 0x463   :  { %2012 = vst [vmem:[#allocation1] ss:$4 sm:$0xff] %v7521_v4 }
 0x464   :  { %v7765_v10 = vpop.eup %6983  ;;  %6985 = vpow2.f32 %v718_v50 }
 0x465   :  { %v747_v6 = vsel %vm677_vm14, %v7765_v10, 0.0 }
 0x467   :  { %742 = vadd.xlane.f32.xlu2 %v741_v52 }
 0x46a   :  { %v7761_v61 = vld.sshfl [vmem:[#allocation1] sm:$0xff pattern:$0x73625140]  ;;  %1110 = vrot.lane.b32.xlu0 %v7558_v28, %s7281_s30  ;;  %v722_v28 = vmul.f32 1.442695, %v708_v54  ;;  %v7776_v8 = vpop.eup %6985 }
 0x46b   :  { %2232 = vst [vmem:[#allocation1] ss:$4 sm:$0xff] %v7488_v39  ;;  %v738_v16 = vsel %vm677_vm14, %v7776_v8, 0.0 }
 0x46c   :  { %6987 = vpow2.f32 %v722_v28 }
 0x46f   :  { %748 = vadd.xlane.f32.xlu2 %v747_v6 }
 0x472   :  { %v7771_v60 = vld.sshfl [vmem:[#allocation1] sm:$0xff pattern:$0x73625140]  ;;  %1138 = vrot.lane.b32.xlu0 %v7567_v31, %s7280_s29  ;;  %v7785_v1 = vpop.eup %6987 }
 0x473   :  { %2261 = vst [vmem:[#allocation1] ss:$4 sm:$0xff] %v7492_v55  ;;  %v744_v31 = vsel %vm677_vm14, %v7785_v1, 0.0 }
 0x479   :  { %739 = vadd.xlane.f32.xlu1 %v738_v16 }
 0x47a   :  { %v7780_v49 = vld.sshfl [vmem:[#allocation1] sm:$0xff pattern:$0x73625140]  ;;  %1234 = vrot.lane.b32.xlu0 %v7592_v23, %s7280_s29 }
 0x47b   :  { %2290 = vst [vmem:[#allocation1] ss:$4 sm:$0xff] %v7497_v57 }
 0x481   :  { %745 = vadd.xlane.f32.xlu1 %v744_v31 }
 0x482   :  { %v7789_v52 = vld.sshfl [vmem:[#allocation1] sm:$0xff pattern:$0x73625140]  ;;  %1728 = vrot.lane.b32.xlu0 %v7659_v9, %s7282_s0 }
 0x483   :  { %2319 = vst [vmem:[#allocation1] ss:$4 sm:$0xff] %v7502_v59 }
 0x487   :  { %1019 = vrot.lane.b32.xlu2 %v7539_v17, %s7279_s28 }
 0x48a   :  { %v7796_v23 = vld.sshfl [vmem:[#allocation1] sm:$0xff pattern:$0x73625140]  ;;  %1882 = vrot.lane.b32.xlu0 %v7698_v48, %s7283_s10  ;;  %v7815_v48 = vpop.permute.xlu0 %1302 }
 0x48b   :  { %2348 = vst [vmem:[#allocation1] ss:$4 sm:$0xff] %v7506_v62 }
 0x48f   :  { %1106 = vrot.lane.b32.xlu2 %v7555_v27, %s7280_s29 }
 0x492   :  { %v7803_v51 = vld.sshfl [vmem:[#allocation1] sm:$0xff pattern:$0x73625140] }
 0x493   :  { %9669 = vst [vmem:[#allocation6_spill] sm:$0xff] %v7803_v51 }
 0x494   :  { %2377 = vst [vmem:[#allocation1] ss:$4 sm:$0xff] %v7511_v0 }
 0x497   :  { %1270 = vrot.lane.b32.xlu2 %v7602_v46, %s7281_s30 }
 0x499   :  { %v734_v9 = vpop.xlane.xlu2 %733 }
 0x49a   :  { %6989 = vrcp.f32 %v734_v9  ;;  %1142 = vrot.lane.b32.xlu1 %v7573_v33, %s7281_s30  ;;  %v791_v54 = vand.u32 2147483648, %v734_v9  ;;  %v789_v28 = vand.u32 2147483647, %v734_v9  ;;  %vm785_vm0 = vweird.f32 %v734_v9 }
 0x49b   :  { %v7808_v17 = vld.sshfl [vmem:[#allocation1] sm:$0xff pattern:$0x73625140] }
 0x49c   :  { %9670 = vst [vmem:[#allocation7_spill] sm:$0xff] %v7808_v17  ;;  %v792_v11 = vor.u32 1.1754944e-38, %v791_v54  ;;  %vm790_vm2 = vcmp.eq.f32.partialorder %v789_v28, 8.507059e+37 }
 0x49d   :  { %2406 = vst [vmem:[#allocation1] ss:$4 sm:$0xff] %v7516_v2 }
 0x49f   :  { %1641 = vrot.lane.b32.xlu2 %v7638_v58, %s7282_s0 }
 0x4a0   :  { %v6990_v27 = vpop.eup %6989 }
 0x4a1   :  { %v781_v50 = vmul.f32 %v6990_v27, %v734_v9  ;;  %v728_v13 = vpop.xlane.xlu1 %727  ;;  %vm786_vm15 = vweird.f32 %v6990_v27 }
 0x4a2   :  { %6991 = vrcp.f32 %v728_v13  ;;  %1238 = vrot.lane.b32.xlu1 %v7596_v25, %s7281_s30  ;;  %vm787_vm1 = vmor %vm785_vm0, %vm786_vm15  ;;  %vm755_vm6 = vweird.f32 %v728_v13 }
 0x4a3   :  { %v782_v46 = vsub.f32 1.0, %v781_v50 }
 0x4a4   :  { %v7817_v6 = vld.sshfl [vmem:[#allocation1] sm:$0xff pattern:$0x73625140] }
 0x4a5   :  { %2435 = vst [vmem:[#allocation1] ss:$4 sm:$0xff] %v7521_v4  ;;  %v783_v33 = vmul.f32 %v6990_v27, %v782_v46  ;;  %v761_v46 = vand.u32 2147483648, %v728_v13 }
 0x4a7   :  { %v784_v16 = vadd.f32 %v6990_v27, %v783_v33  ;;  %1854 = vrot.lane.b32.xlu2 %v7693_v42, %s7284_s11 }
 0x4a8   :  { %v6992_v58 = vpop.eup %6991 }
 0x4a9   :  { %v788_v31 = vsel %vm787_vm1, %v6990_v27, %v784_v16  ;;  %v751_v51 = vmul.f32 %v6992_v58, %v728_v13  ;;  %v731_v17 = vpop.xlane.xlu0 %730  ;;  %vm756_vm5 = vweird.f32 %v6992_v58  ;;  %v759_v27 = vand.u32 2147483647, %v728_v13 }
 0x4aa   :  { %6993 = vrcp.f32 %v731_v17  ;;  %1266 = vrot.lane.b32.xlu1 %v7599_v45, %s7280_s29  ;;  %v793_v50 = vsel %vm790_vm2, %v792_v11, %v788_v31  ;;  %vm757_vm7 = vmor %vm755_vm6, %vm756_vm5  ;;  %v762_v11 = vor.u32 1.1754944e-38, %v761_v46  ;;  %vm770_vm10 = vweird.f32 %v731_v17 }
 0x4ab   :  { %v752_v9 = vsub.f32 1.0, %v751_v51  ;;  %v794_v42 = vmul.f32 %v7702_v12, %v793_v50  ;;  %vm760_vm8 = vcmp.eq.f32.partialorder %v759_v27, 8.507059e+37 }
 0x4ac   :  { %v7824_v25 = vld.sshfl [vmem:[#allocation1] sm:$0xff pattern:$0x73625140] }
 0x4ad   :  { %2464 = vst [vmem:[#allocation1] ss:$4 sm:$0xff] %v7488_v39  ;;  %v753_v33 = vmul.f32 %v6992_v58, %v752_v9  ;;  %6662 = vmatmul.msk.f32.vlgmr.msrb.gmra.mxu2 %vm874_vm3, %v794_v42  ;;  %v774_v9 = vand.u32 2147483647, %v731_v17 }
 0x4ae   :  { %6677 = vmatpush.xpose.msk.msrb.mxu2 %vm456_vm12, %v7684_v32 }
 0x4af   :  { %v754_v54 = vadd.f32 %v6992_v58, %v753_v33  ;;  %1850 = vrot.lane.b32.xlu2 %v7688_v35, %s7283_s10  ;;  %v776_v35 = vand.u32 2147483648, %v731_v17  ;;  %vm775_vm15 = vcmp.eq.f32.partialorder %v774_v9, 8.507059e+37 }
 0x4b0   :  { %v6994_v45 = vpop.eup %6993 }
 0x4b1   :  { %v758_v51 = vsel %vm757_vm7, %v6992_v58, %v754_v54  ;;  %v766_v28 = vmul.f32 %v6994_v45, %v731_v17  ;;  %vm771_vm9 = vweird.f32 %v6994_v45 }
 0x4b2   :  { %1612 = vrot.lane.b32.xlu1 %v7631_v37, %s7282_s0  ;;  %v763_v16 = vsel %vm760_vm8, %v762_v11, %v758_v51  ;;  %vm772_vm11 = vmor %vm770_vm10, %vm771_vm9  ;;  %v777_v37 = vor.u32 1.1754944e-38, %v776_v35 }
 0x4b3   :  { %v767_v13 = vsub.f32 1.0, %v766_v28  ;;  %v764_v32 = vmul.f32 %v7710_v5, %v763_v16 }
 0x4b4   :  { %v7835_v12 = vld.sshfl [vmem:[#allocation1] sm:$0xff pattern:$0x73625140] }
 0x4b5   :  { %2468 = vst [vmem:[#allocation1] ss:$4 sm:$0xff] %v7488_v39  ;;  %v768_v31 = vmul.f32 %v6994_v45, %v767_v13  ;;  %6658 = vmatmul.msk.f32.vlgmr.msra.gmra.mxu3 %vm874_vm3, %v764_v32 }
 0x4b6   :  { %6671 = vmatpush.msk.msra.mxu3 %vm878_vm13, %v7679_v29 }
 0x4b7   :  { %v769_v58 = vadd.f32 %v6994_v45, %v768_v31 }
 0x4b9   :  { %v773_v50 = vsel %vm772_vm11, %v6994_v45, %v769_v58  ;;  %v904_v46 = vpop.permute.xlu1 %903  ;;  %v737_v42 = vpop.xlane.xlu0 %736 }
 0x4ba   :  { %6995 = vrcp.f32 %v737_v42  ;;  %1757 = vrot.lane.b32.xlu1 %v7666_v19, %s7282_s0  ;;  %6659 = vmatpush.msk.msra.mxu1 %vm878_vm13, %v904_v46  ;;  %v778_v5 = vsel %vm775_vm15, %v777_v37, %v773_v50  ;;  %v806_v11 = vand.u32 2147483648, %v737_v42  ;;  %v804_v28 = vand.u32 2147483647, %v737_v42  ;;  %v7871_v58 = vpop.permute.xlu2 %1298 }
 0x4bb   :  { %v779_v29 = vmul.f32 %v7717_v41, %v778_v5  ;;  %vm800_vm1 = vweird.f32 %v737_v42 }
 0x4bc   :  { %v7844_v33 = vld.sshfl [vmem:[#allocation1] sm:$0xff pattern:$0x73625140]  ;;  %v807_v16 = vor.u32 1.1754944e-38, %v806_v11  ;;  %vm805_vm5 = vcmp.eq.f32.partialorder %v804_v28, 8.507059e+37 }
 0x4bd   :  { %2496 = vst [vmem:[#allocation1] ss:$4 sm:$0xff] %v7492_v55  ;;  %6660 = vmatmul.msk.f32.vlgmr.msra.gmra.mxu1 %vm874_vm3, %v779_v29 }
 0x4c0   :  { %v6996_v17 = vpop.eup %6995 }
 0x4c1   :  { %v796_v27 = vmul.f32 %v6996_v17, %v737_v42  ;;  %v991_v54 = vpop.permute.xlu1 %990  ;;  %vm801_vm0 = vweird.f32 %v6996_v17 }
 0x4c2   :  { %1886 = vrot.lane.b32.xlu1 %v7706_v56, %s7284_s11  ;;  %6665 = vmatpush.msk.msrb.mxu1 %vm878_vm13, %v991_v54  ;;  %vm802_vm2 = vmor %vm800_vm1, %vm801_vm0 }
 0x4c3   :  { %v797_v19 = vsub.f32 1.0, %v796_v27 }
 0x4c4   :  { %v7852_v45 = vld.sshfl [vmem:[#allocation1] sm:$0xff pattern:$0x73625140] }
 0x4c5   :  { %2500 = vst [vmem:[#allocation1] ss:$4 sm:$0xff] %v7492_v55  ;;  %v798_v51 = vmul.f32 %v6996_v17, %v797_v19 }
 0x4c7   :  { %v799_v41 = vadd.f32 %v6996_v17, %v798_v51 }
 0x4c9   :  { %v803_v13 = vsel %vm802_vm2, %v6996_v17, %v799_v41 }
 0x4ca   :  { %1554 = vrot.lane.b32.xlu1 %v7621_v14, %s7282_s0  ;;  %v808_v56 = vsel %vm805_vm5, %v807_v16, %v803_v13 }
 0x4cb   :  { %v809_v31 = vmul.f32 %v7730_v15, %v808_v56 }
 0x4cc   :  { %v7858_v32 = vld.sshfl [vmem:[#allocation1] sm:$0xff pattern:$0x73625140]  ;;  %v7864_v35 = vpop.permute.xlu0 %1334 }
 0x4cd   :  { %2528 = vst [vmem:[#allocation1] ss:$4 sm:$0xff] %v7497_v57  ;;  %6664 = vmatmul.msk.f32.vlgmr.msrb.gmra.mxu3 %vm874_vm3, %v809_v31 }
 0x4ce   :  { %6679 = vmatpush.xpose.msk.msrb.mxu3 %vm456_vm12, %v7696_v44 }
 0x4d4   :  { %v7869_v9 = vld.sshfl [vmem:[#allocation1] sm:$0xff pattern:$0x73625140]  ;;  %v7874_v50 = vpop.permute.xlu0 %1330 }
 0x4d5   :  { %2532 = vst [vmem:[#allocation1] ss:$4 sm:$0xff] %v7497_v57 }
 0x4da   :  { %v743_v37 = vpop.xlane.xlu2 %742 }
 0x4db   :  { %6997 = vrcp.f32 %v743_v37  ;;  %v836_v17 = vand.u32 2147483648, %v743_v37  ;;  %v834_v54 = vand.u32 2147483647, %v743_v37  ;;  %vm830_vm7 = vweird.f32 %v743_v37 }
 0x4dc   :  { %v7876_v14 = vld.sshfl [vmem:[#allocation1] sm:$0xff pattern:$0x73625140]  ;;  %v1111_v15 = vpop.permute.xlu0 %1110 }
 0x4dd   :  { %2560 = vst [vmem:[#allocation1] ss:$4 sm:$0xff] %v7502_v59  ;;  %6673 = vmatpush.xpose.msk.msra.mxu1 %vm456_vm12, %v1111_v15  ;;  %v837_v51 = vor.u32 1.1754944e-38, %v836_v17  ;;  %vm835_vm9 = vcmp.eq.f32.partialorder %v834_v54, 8.507059e+37 }
 0x4e1   :  { %v6998_v46 = vpop.eup %6997 }
 0x4e2   :  { %v826_v44 = vmul.f32 %v6998_v46, %v743_v37  ;;  %v749_v5 = vpop.xlane.xlu2 %748  ;;  %vm831_vm6 = vweird.f32 %v6998_v46 }
 0x4e3   :  { %6999 = vrcp.f32 %v749_v5  ;;  %vm832_vm8 = vmor %vm830_vm7, %vm831_vm6  ;;  %v866_v37 = vand.u32 2147483648, %v749_v5  ;;  %v864_v17 = vand.u32 2147483647, %v749_v5  ;;  %vm860_vm11 = vweird.f32 %v749_v5 }
 0x4e4   :  { %v7880_v42 = vld.sshfl [vmem:[#allocation1] sm:$0xff pattern:$0x73625140]  ;;  %v827_v29 = vsub.f32 1.0, %v826_v44 }
 0x4e5   :  { %2564 = vst [vmem:[#allocation1] ss:$4 sm:$0xff] %v7502_v59  ;;  %vm865_vm0 = vcmp.eq.f32.partialorder %v864_v17, 8.507059e+37 }
 0x4e6   :  { %v828_v27 = vmul.f32 %v6998_v46, %v827_v29 }
 0x4e8   :  { %v829_v19 = vadd.f32 %v6998_v46, %v828_v27 }
 0x4e9   :  { %v7000_v11 = vpop.eup %6999 }
 0x4ea   :  { %v856_v41 = vmul.f32 %v7000_v11, %v749_v5  ;;  %v1020_v16 = vpop.permute.xlu2 %1019  ;;  %v833_v13 = vsel %vm832_vm8, %v6998_v46, %v829_v19  ;;  %vm861_vm10 = vweird.f32 %v7000_v11  ;;  %v867_v46 = vor.u32 1.1754944e-38, %v866_v37 }
 0x4eb   :  { %6667 = vmatpush.msk.msrb.mxu0 %vm878_vm13, %v1020_v16  ;;  %v838_v56 = vsel %vm835_vm9, %v837_v51, %v833_v13  ;;  %vm862_vm15 = vmor %vm860_vm11, %vm861_vm10 }
 0x4ec   :  { %v7883_v28 = vld.sshfl [vmem:[#allocation1] sm:$0xff pattern:$0x73625140]  ;;  %v857_v31 = vsub.f32 1.0, %v856_v41  ;;  %v740_v15 = vpop.xlane.xlu1 %739  ;;  %v839_v44 = vmul.f32 %v7755_v3, %v838_v56 }
 0x4ed   :  { %2592 = vst [vmem:[#allocation1] ss:$4 sm:$0xff] %v7506_v62  ;;  %7001 = vrcp.f32 %v740_v15  ;;  %v821_v5 = vand.u32 2147483648, %v740_v15  ;;  %vm815_vm2 = vweird.f32 %v740_v15 }
 0x4ee   :  { %v858_v29 = vmul.f32 %v7000_v11, %v857_v31  ;;  %6668 = vmatmul.msk.f32.vlgmr.msrb.gmra.mxu0 %vm874_vm3, %v839_v44 }
 0x4f0   :  { %v859_v27 = vadd.f32 %v7000_v11, %v858_v29 }
 0x4f2   :  { %v863_v19 = vsel %vm862_vm15, %v7000_v11, %v859_v27  ;;  %v1107_v51 = vpop.permute.xlu2 %1106  ;;  %v819_v11 = vand.u32 2147483647, %v740_v15 }
 0x4f3   :  { %v7002_v41 = vpop.eup %7001  ;;  %v868_v3 = vsel %vm865_vm0, %v867_v46, %v863_v19 }
 0x4f4   :  { %v7889_v54 = vld.sshfl [vmem:[#allocation1] sm:$0xff pattern:$0x73625140]  ;;  %v811_v16 = vmul.f32 %v7002_v41, %v740_v15  ;;  %v746_v13 = vpop.xlane.xlu1 %745  ;;  %v869_v56 = vmul.f32 %v7765_v10, %v868_v3  ;;  %vm816_vm1 = vweird.f32 %v7002_v41  ;;  %v822_v10 = vor.u32 1.1754944e-38, %v821_v5 }
 0x4f5   :  { %2596 = vst [vmem:[#allocation1] ss:$4 sm:$0xff] %v7506_v62  ;;  %7003 = vrcp.f32 %v746_v13  ;;  %vm817_vm5 = vmor %vm815_vm2, %vm816_vm1  ;;  %vm820_vm6 = vcmp.eq.f32.partialorder %v819_v11, 8.507059e+37  ;;  %v849_v15 = vand.u32 2147483647, %v746_v13  ;;  %vm845_vm8 = vweird.f32 %v746_v13 }
 0x4f6   :  { %v812_v31 = vsub.f32 1.0, %v811_v16  ;;  %6672 = vmatmul.msk.f32.vlgmr.msra.gmra.mxu3 %vm874_vm3, %v869_v56  ;;  %v851_v56 = vand.u32 2147483648, %v746_v13 }
 0x4f7   :  { %6687 = vmatpush.xpose.msk.msra.mxu3 %vm456_vm12, %v7864_v35  ;;  %vm850_vm10 = vcmp.eq.f32.partialorder %v849_v15, 8.507059e+37 }
 0x4f8   :  { %v813_v44 = vmul.f32 %v7002_v41, %v812_v31  ;;  %v852_v5 = vor.u32 1.1754944e-38, %v851_v56 }
 0x4fa   :  { %v814_v29 = vadd.f32 %v7002_v41, %v813_v44  ;;  %v1271_v17 = vpop.permute.xlu2 %1270 }
 0x4fb   :  { %v7004_v27 = vpop.eup %7003 }
 0x4fc   :  { %v7896_v37 = vld.sshfl [vmem:[#allocation1] sm:$0xff pattern:$0x73625140]  ;;  %v818_v46 = vsel %vm817_vm5, %v7002_v41, %v814_v29  ;;  %v841_v19 = vmul.f32 %v7004_v27, %v746_v13  ;;  %vm846_vm7 = vweird.f32 %v7004_v27 }
 0x4fd   :  { %9671 = vst [vmem:[#allocation8_spill] sm:$0xff] %v7896_v37  ;;  %v823_v3 = vsel %vm820_vm6, %v822_v10, %v818_v46  ;;  %vm847_vm9 = vmor %vm845_vm8, %vm846_vm7 }
 0x4fe   :  { %2624 = vst [vmem:[#allocation1] ss:$4 sm:$0xff] %v7511_v0  ;;  %v842_v16 = vsub.f32 1.0, %v841_v19  ;;  %6680 = vmatmul.msk.f32.vlgmr.msrb.gmra.mxu3 %vm456_vm12, %v7691_v40  ;;  %v824_v35 = vmul.f32 %v7776_v8, %v823_v3 }
 0x500   :  { %v843_v31 = vmul.f32 %v7004_v27, %v842_v16  ;;  %6666 = vmatmul.msk.f32.vlgmr.msrb.gmra.mxu1 %vm874_vm3, %v824_v35 }
 0x502   :  { %v844_v37 = vadd.f32 %v7004_v27, %v843_v31  ;;  %v1642_v41 = vpop.permute.xlu2 %1641 }
 0x503   :  { %6695 = vmatpush.msk.msrb.mxu3 %vm878_vm13, %v1642_v41 }
 0x504   :  { %v848_v40 = vsel %vm847_vm9, %v7004_v27, %v844_v37  ;;  %v1139_v37 = vpop.permute.xlu0 %1138 }
 0x505   :  { %v7903_v44 = vld.sshfl [vmem:[#allocation1] sm:$0xff pattern:$0x73625140]  ;;  %v853_v8 = vsel %vm850_vm10, %v852_v5, %v848_v40 }
 0x506   :  { %2628 = vst [vmem:[#allocation1] ss:$4 sm:$0xff] %v7511_v0  ;;  %6688 = vmatmul.msk.f32.vlgmr.msra.gmra.mxu3 %vm456_vm12, %v7874_v50  ;;  %v854_v11 = vmul.f32 %v7785_v1, %v853_v8 }
 0x508   :  { %6670 = vmatmul.msk.f32.vlgmr.msra.gmra.mxu2 %vm874_vm3, %v854_v11  ;;  %6674 = vmatmul.msk.f32.vlgmr.msra.gmra.mxu1 %vm456_vm12, %v1107_v51 }
 0x509   :  { %6685 = vmatpush.xpose.msk.msra.mxu2 %vm456_vm12, %v7815_v48 }
 0x50c   :  { %v1143_v29 = vpop.permute.xlu1 %1142  ;;  %v1235_v50 = vpop.permute.xlu0 %1234 }
 0x50d   :  { %v7914_v13 = vld.sshfl [vmem:[#allocation1] sm:$0xff pattern:$0x73625140]  ;;  %6675 = vmatpush.xpose.msk.msra.mxu0 %vm456_vm12, %v1143_v29 }
 0x50e   :  { %2656 = vst [vmem:[#allocation1] ss:$4 sm:$0xff] %v7516_v2 }
 0x510   :  { %6676 = vmatmul.msk.f32.vlgmr.msra.gmra.mxu0 %vm456_vm12, %v1139_v37  ;;  %6678 = vmatmul.msk.f32.vlgmr.msrb.gmra.mxu2 %vm456_vm12, %v7686_v34 }
 0x511   :  { %6683 = vmatpush.xpose.msk.msrb.mxu0 %vm456_vm12, %v1271_v17 }
 0x514   :  { %v1239_v48 = vpop.permute.xlu1 %1238  ;;  %v1729_v10 = vpop.permute.xlu0 %1728 }
 0x515   :  { %v7922_v1 = vld.sshfl [vmem:[#allocation1] sm:$0xff pattern:$0x73625140]  ;;  %6681 = vmatpush.xpose.msk.msrb.mxu1 %vm456_vm12, %v1239_v48 }
 0x516   :  { %2660 = vst [vmem:[#allocation1] ss:$4 sm:$0xff] %v7516_v2 }
 0x518   :  { %6682 = vmatmul.msk.f32.vlgmr.msrb.gmra.mxu1 %vm456_vm12, %v1235_v50  ;;  %6686 = vmatmul.msk.f32.vlgmr.msra.gmra.mxu2 %vm456_vm12, %v7871_v58 }
 0x51c   :  { %v1267_v17 = vpop.permute.xlu1 %1266 }
 0x51d   :  { %v7929_v51 = vld.sshfl [vmem:[#allocation1] sm:$0xff pattern:$0x73625140]  ;;  %6684 = vmatmul.msk.f32.vlgmr.msrb.gmra.mxu0 %vm456_vm12, %v1267_v17 }
 0x51e   :  { %2688 = vst [vmem:[#allocation1] ss:$4 sm:$0xff] %v7521_v4 }
 0x524   :  { %v1613_v27 = vpop.permute.xlu1 %1612 }
 0x525   :  { %v7933_v34 = vld.sshfl [vmem:[#allocation1] sm:$0xff pattern:$0x73625140]  ;;  %6693 = vmatpush.msk.msrb.mxu2 %vm878_vm13, %v1613_v27 }
 0x526   :  { %2692 = vst [vmem:[#allocation1] ss:$4 sm:$0xff] %v7521_v4 }
 0x527   :  { %6701 = vmatpush.msk.msra.mxu2 %vm878_vm13, %v1729_v10 }
 0x52c   :  { %v1758_v58 = vpop.permute.xlu1 %1757 }
 0x52d   :  { %v7938_v46 = vld.sshfl [vmem:[#allocation1] sm:$0xff pattern:$0x73625140]  ;;  %6703 = vmatpush.msk.msra.mxu3 %vm878_vm13, %v1758_v58 }
 0x52e   :  { %2912 = vst [vmem:[#allocation1] ss:$4 sm:$0xff] %v7488_v39 }
 0x534   :  { %v7945_v3 = vpop.permute.xlu1 %1886 }
 0x535   :  { %v7942_v19 = vld.sshfl [vmem:[#allocation1] sm:$0xff pattern:$0x73625140] }
 0x536   :  { %2941 = vst [vmem:[#allocation1] ss:$4 sm:$0xff] %v7492_v55 }
 0x538   :  { %v898_v15 = vpop.f32.mrf.mxu3 }
 0x53a   :  { %v927_v5 = vpop.f32.mrf.mxu1 }
 0x53c   :  { %v1555_v35 = vpop.permute.xlu1 %1554 }
 0x53d   :  { %v7947_v16 = vld.sshfl [vmem:[#allocation1] sm:$0xff pattern:$0x73625140]  ;;  %6689 = vmatpush.msk.msra.mxu1 %vm878_vm13, %v1555_v35 }
 0x53e   :  { %2970 = vst [vmem:[#allocation1] ss:$4 sm:$0xff] %v7497_v57 }
 0x545   :  { %v7951_v56 = vld.sshfl [vmem:[#allocation1] sm:$0xff pattern:$0x73625140] }
 0x546   :  { %2999 = vst [vmem:[#allocation1] ss:$4 sm:$0xff] %v7502_v59  ;;  %v956_v59 = vpop.f32.mrf.mxu2 }
 0x54d   :  { %v7954_v39 = vld.sshfl [vmem:[#allocation1] sm:$0xff pattern:$0x73625140] }
 0x54e   :  { %3028 = vst [vmem:[#allocation1] ss:$4 sm:$0xff] %v7506_v62 }
 0x550   :  { %v985_v40 = vpop.f32.mrf.mxu3 }
 0x555   :  { %v7957_v31 = vld.sshfl [vmem:[#allocation1] sm:$0xff pattern:$0x73625140] }
 0x556   :  { %3057 = vst [vmem:[#allocation1] ss:$4 sm:$0xff] %v7511_v0 }
 0x55d   :  { %v7960_v55 = vld.sshfl [vmem:[#allocation1] sm:$0xff pattern:$0x73625140] }
 0x55e   :  { %9672 = vst [vmem:[#allocation9_spill] sm:$0xff] %v7960_v55 }
 0x55f   :  { %3086 = vst [vmem:[#allocation1] ss:$4 sm:$0xff] %v7516_v2 }
 0x566   :  { %v7963_v57 = vld.sshfl [vmem:[#allocation1] sm:$0xff pattern:$0x73625140] }
 0x567   :  { %9673 = vst [vmem:[#allocation10_spill] sm:$0xff] %v7963_v57 }
 0x568   :  { %3115 = vst [vmem:[#allocation1] ss:$4 sm:$0xff] %v7521_v4 }
 0x56b   :  { %v1043_v62 = vpop.f32.mrf.mxu0 }
 0x56c   :  { %3162 = vst [vmem:[#allocation1 + $0x21] ss:$4 sm:$0xff] %v1043_v62 }
 0x56f   :  { %v7966_v41 = vld.sshfl [vmem:[#allocation1] sm:$0xff pattern:$0x73625140] }
 0x570   :  { %9674 = vst [vmem:[#allocation11_spill] sm:$0xff] %v7966_v41 }
 0x571   :  { %3156 = vst [vmem:[#allocation1 + $0x2] ss:$4 sm:$0xff] %v956_v59 }
 0x572   :  { %3152 = vst [vmem:[#allocation1] ss:$4 sm:$0xff] %v898_v15 }
 0x573   :  { %3154 = vst [vmem:[#allocation1 + $0x1] ss:$4 sm:$0xff] %v927_v5 }
 0x574   :  { %3158 = vst [vmem:[#allocation1 + $0x3] ss:$4 sm:$0xff] %v985_v40 }
 0x579   :  { %v1101_v0 = vpop.f32.mrf.mxu3 }
 0x57a   :  { %3166 = vst [vmem:[#allocation1 + $0x23] ss:$4 sm:$0xff] %v1101_v0  ;;  %v7985_v0 = vpop.permute.xlu0 %1882 }
 0x57d   :  { %v1014_v8 = vpop.f32.mrf.mxu1 }
 0x57e   :  { %3160 = vst [vmem:[#allocation1 + $0x20] ss:$4 sm:$0xff] %v1014_v8  ;;  %v7987_v8 = vpop.permute.xlu2 %1854 }
 0x581   :  { %v1229_v27 = vpop.f32.mrf.mxu3 }
 0x582   :  { %v1369_v62 = vsel %vm677_vm14, %v1229_v27, -inf }
 0x585   :  { %v1133_v2 = vpop.f32.mrf.mxu1 }
 0x586   :  { %v1360_v11 = vsel %vm677_vm14, %v1133_v2, -inf }
 0x587   :  { %1361 = vmax.xlane.f32.xlu0 %v1360_v11 }
 0x589   :  { %v7974_v5 = vpop.f32.mrf.mxu3 }
 0x58a   :  { %v1381_v40 = vsel %vm677_vm14, %v7974_v5, -inf }
 0x58b   :  { %v1072_v4 = vpop.f32.mrf.mxu2 }
 0x58c   :  { %3164 = vst [vmem:[#allocation1 + $0x22] ss:$4 sm:$0xff] %v1072_v4 }
 0x58d   :  { %v1165_v29 = vpop.f32.mrf.mxu0 }
 0x58e   :  { %v1363_v37 = vsel %vm677_vm14, %v1165_v29, -inf }
 0x58f   :  { %1364 = vmax.xlane.f32.xlu1 %v1363_v37 }
 0x593   :  { %v1197_v48 = vpop.f32.mrf.mxu2 }
 0x594   :  { %v1366_v59 = vsel %vm677_vm14, %v1197_v48, -inf }
 0x595   :  { %v1261_v50 = vpop.f32.mrf.mxu1 }
 0x596   :  { %v1372_v17 = vsel %vm677_vm14, %v1261_v50, -inf }
 0x597   :  { %1373 = vmax.xlane.f32.xlu2 %v1372_v17  ;;  %v7989_v17 = vpop.permute.xlu2 %1850 }
 0x59a   :  { %v1293_v10 = vpop.f32.mrf.mxu0 }
 0x59b   :  { %v1325_v58 = vpop.f32.mrf.mxu2  ;;  %v1375_v35 = vsel %vm677_vm14, %v1293_v10, -inf }
 0x59c   :  { %1376 = vmax.xlane.f32.xlu0 %v1375_v35  ;;  %v1378_v15 = vsel %vm677_vm14, %v1325_v58, -inf }
 0x59d   :  { %1379 = vmax.xlane.f32.xlu1 %v1378_v15 }
 0x59f   :  { %1367 = vmax.xlane.f32.xlu2 %v1366_v59 }
 0x5a4   :  { %1370 = vmax.xlane.f32.xlu0 %v1369_v62 }
 0x5a7   :  { %1382 = vmax.xlane.f32.xlu2 %v1381_v40 }
 0x5b6   :  { %2014 = vrot.lane.b32.xlu1 %v7761_v61, %s7284_s11 }
 0x5b8   :  { %1982 = vrot.lane.b32.xlu0 %v7745_v43, %s7284_s11 }
 0x5bf   :  { %1583 = vrot.lane.b32.xlu2 %v7628_v36, %s7282_s0 }
 0x5fa   :  { %v1362_v11 = vpop.xlane.xlu0 %1361 }
 0x5fb   :  { %v1384_v4 = vsub.f32 %v1133_v2, %v1362_v11 }
 0x5fd   :  { %v1392_v37 = vmul.f32 1.442695, %v1384_v4 }
 0x5ff   :  { %7005 = vpow2.f32 %v1392_v37 }
 0x602   :  { %v1365_v35 = vpop.xlane.xlu1 %1364 }
 0x603   :  { %v1385_v15 = vsub.f32 %v1165_v29, %v1365_v35 }
 0x605   :  { %v7991_v59 = vpop.eup %7005  ;;  %v1394_v61 = vmul.f32 1.442695, %v1385_v15 }
 0x606   :  { %v1408_v43 = vsel %vm677_vm14, %v7991_v59, 0.0 }
 0x607   :  { %7007 = vpow2.f32 %v1394_v61  ;;  %1409 = vadd.xlane.f32.xlu2 %v1408_v43 }
 0x60a   :  { %v1374_v36 = vpop.xlane.xlu2 %1373 }
 0x60b   :  { %v1388_v62 = vsub.f32 %v1261_v50, %v1374_v36 }
 0x60d   :  { %v7995_v40 = vpop.eup %7007  ;;  %v1400_v55 = vmul.f32 1.442695, %v1388_v62 }
 0x60e   :  { %v1411_v2 = vsel %vm677_vm14, %v7995_v40, 0.0 }
 0x60f   :  { %7009 = vpow2.f32 %v1400_v55  ;;  %1412 = vadd.xlane.f32.xlu0 %v1411_v2  ;;  %v1377_v11 = vpop.xlane.xlu0 %1376 }
 0x610   :  { %v1389_v29 = vsub.f32 %v1293_v10, %v1377_v11  ;;  %v1380_v37 = vpop.xlane.xlu1 %1379 }
 0x611   :  { %v1390_v61 = vsub.f32 %v1325_v58, %v1380_v37 }
 0x612   :  { %v1402_v4 = vmul.f32 1.442695, %v1389_v29  ;;  %v1368_v35 = vpop.xlane.xlu2 %1367 }
 0x613   :  { %v1386_v15 = vsub.f32 %v1197_v48, %v1368_v35  ;;  %v1404_v55 = vmul.f32 1.442695, %v1390_v61 }
 0x614   :  { %7011 = vpow2.f32 %v1402_v4 }
 0x615   :  { %v7999_v41 = vpop.eup %7009  ;;  %v1396_v43 = vmul.f32 1.442695, %v1386_v15 }
 0x616   :  { %v1420_v50 = vsel %vm677_vm14, %v7999_v41, 0.0 }
 0x617   :  { %7013 = vpow2.f32 %v1396_v43  ;;  %1421 = vadd.xlane.f32.xlu0 %v1420_v50  ;;  %v1371_v36 = vpop.xlane.xlu0 %1370 }
 0x618   :  { %v1387_v62 = vsub.f32 %v1229_v27, %v1371_v36 }
 0x61a   :  { %v1398_v2 = vmul.f32 1.442695, %v1387_v62  ;;  %v1383_v57 = vpop.xlane.xlu2 %1382  ;;  %v8003_v10 = vpop.eup %7011 }
 0x61b   :  { %v1423_v58 = vsel %vm677_vm14, %v8003_v10, 0.0 }
 0x61c   :  { %7015 = vpow2.f32 %v1398_v2 }
 0x61d   :  { %v8005_v11 = vpop.eup %7013  ;;  %7017 = vpow2.f32 %v1404_v55 }
 0x61e   :  { %v1414_v48 = vsel %vm677_vm14, %v8005_v11, 0.0 }
 0x61f   :  { %1415 = vadd.xlane.f32.xlu1 %v1414_v48  ;;  %1424 = vadd.xlane.f32.xlu0 %v1423_v58 }
 0x622   :  { %v8011_v29 = vpop.eup %7015  ;;  %v1584_v27 = vpop.permute.xlu2 %1583 }
 0x623   :  { %v8013_v4 = vpop.eup %7017  ;;  %6691 = vmatpush.msk.msra.mxu0 %vm878_vm13, %v1584_v27  ;;  %v1417_v37 = vsel %vm677_vm14, %v8011_v29, 0.0 }
 0x624   :  { %1418 = vadd.xlane.f32.xlu2 %v1417_v37  ;;  %v1426_v35 = vsel %vm677_vm14, %v8013_v4, 0.0 }
 0x627   :  { %1427 = vadd.xlane.f32.xlu0 %v1426_v35 }
 0x628   :  { %v8057_v15 = vpop.permute.xlu1 %2014 }
 0x638   :  { %1670 = vrot.lane.b32.xlu1 %v7645_v63, %s7282_s0  ;;  %v1391_v63 = vsub.f32 %v7974_v5, %v1383_v57 }
 0x63b   :  { %2010 = vrot.lane.b32.xlu0 %v7751_v24, %s7283_s10  ;;  %v1406_v24 = vmul.f32 1.442695, %v1391_v63 }
 0x63c   :  { %1978 = vrot.lane.b32.xlu2 %v7741_v47, %s7283_s10 }
 0x63d   :  { %7019 = vpow2.f32 %v1406_v24 }
 0x643   :  { %1790 = vrot.lane.b32.xlu0 %v7672_v21, %s7284_s11  ;;  %v8051_v21 = vpop.permute.xlu0 %1982 }
 0x644   :  { %1699 = vrot.lane.b32.xlu2 %v7656_v7, %s7282_s0  ;;  %v8043_v7 = vpop.eup %7019 }
 0x64b   :  { %1818 = vrot.lane.b32.xlu0 %v7676_v26, %s7283_s10 }
 0x64c   :  { %1786 = vrot.lane.b32.xlu2 %v7669_v20, %s7283_s10  ;;  %v1429_v20 = vsel %vm677_vm14, %v8043_v7, 0.0 }
 0x653   :  { %1914 = vrot.lane.b32.xlu0 %v7714_v18, %s7283_s10 }
 0x654   :  { %1950 = vrot.lane.b32.xlu2 %v7736_v38, %s7284_s11 }
 0x65b   :  { %2408 = vrot.lane.b32.xlu0 %v7817_v6, %s7285_s12 }
 0x65c   :  { %2321 = vrot.lane.b32.xlu2 %v7796_v23, %s7285_s12 }
 0x662   :  { %1430 = vadd.xlane.f32.xlu1 %v1429_v20 }
 0x664   :  { %2437 = vrot.lane.b32.xlu2 %v7824_v25, %s7285_s12 }
 0x66c   :  { %2263 = vrot.lane.b32.xlu2 %v7780_v49, %s7285_s12 }
 0x67a   :  { %v1410_v26 = vpop.xlane.xlu2 %1409 }
 0x67b   :  { %7021 = vrcp.f32 %v1410_v26  ;;  %1822 = vrot.lane.b32.xlu1 %v7681_v30, %s7284_s11  ;;  %v1443_v25 = vand.u32 2147483648, %v1410_v26  ;;  %v1441_v57 = vand.u32 2147483647, %v1410_v26  ;;  %vm1437_vm15 = vweird.f32 %v1410_v26 }
 0x67d   :  { %v1444_v30 = vor.u32 1.1754944e-38, %v1443_v25  ;;  %vm1442_vm1 = vcmp.eq.f32.partialorder %v1441_v57, 8.507059e+37 }
 0x681   :  { %v7022_v18 = vpop.eup %7021 }
 0x682   :  { %v1433_v38 = vmul.f32 %v7022_v18, %v1410_v26  ;;  %v1413_v47 = vpop.xlane.xlu0 %1412  ;;  %vm1438_vm11 = vweird.f32 %v7022_v18 }
 0x683   :  { %7023 = vrcp.f32 %v1413_v47  ;;  %1918 = vrot.lane.b32.xlu1 %v7721_v22, %s7284_s11  ;;  %vm1439_vm0 = vmor %vm1437_vm15, %vm1438_vm11  ;;  %v1458_v2 = vand.u32 2147483648, %v1413_v47  ;;  %vm1452_vm5 = vweird.f32 %v1413_v47  ;;  %v1456_v58 = vand.u32 2147483647, %v1413_v47 }
 0x684   :  { %v1434_v23 = vsub.f32 1.0, %v1433_v38 }
 0x685   :  { %v1459_v24 = vor.u32 1.1754944e-38, %v1458_v2  ;;  %vm1457_vm7 = vcmp.eq.f32.partialorder %v1456_v58, 8.507059e+37 }
 0x686   :  { %v1435_v6 = vmul.f32 %v7022_v18, %v1434_v23 }
 0x688   :  { %v1436_v49 = vadd.f32 %v7022_v18, %v1435_v6 }
 0x689   :  { %v7024_v5 = vpop.eup %7023 }
 0x68a   :  { %v1440_v61 = vsel %vm1439_vm0, %v7022_v18, %v1436_v49  ;;  %v1448_v43 = vmul.f32 %v7024_v5, %v1413_v47  ;;  %v8059_v50 = vpop.xlane.xlu0 %1421  ;;  %vm1453_vm2 = vweird.f32 %v7024_v5 }
 0x68b   :  { %7025 = vrcp.f32 %v8059_v50  ;;  %1946 = vrot.lane.b32.xlu1 %v7727_v53, %s7283_s10  ;;  %v1445_v36 = vsel %vm1442_vm1, %v1444_v30, %v1440_v61  ;;  %vm1454_vm6 = vmor %vm1452_vm5, %vm1453_vm2  ;;  %v1501_v23 = vand.u32 2147483647, %v8059_v50  ;;  %vm1497_vm8 = vweird.f32 %v8059_v50 }
 0x68c   :  { %v1449_v22 = vsub.f32 1.0, %v1448_v43  ;;  %v1446_v62 = vmul.f32 %v7991_v59, %v1445_v36  ;;  %v1503_v61 = vand.u32 2147483648, %v8059_v50 }
 0x68d   :  { %vm8087_vm10 = vcmp.eq.f32.partialorder %v1501_v23, 8.507059e+37 }
 0x68e   :  { %v1450_v55 = vmul.f32 %v7024_v5, %v1449_v22  ;;  %6690 = vmatmul.msk.f32.vlgmr.msra.gmra.mxu1 %vm874_vm3, %v1446_v62 }
 0x690   :  { %v1451_v48 = vadd.f32 %v7024_v5, %v1450_v55 }
 0x691   :  { %v8066_v27 = vpop.eup %7025 }
 0x692   :  { %v1455_v37 = vsel %vm1454_vm6, %v7024_v5, %v1451_v48  ;;  %v1416_v35 = vpop.xlane.xlu1 %1415  ;;  %v1425_v63 = vpop.xlane.xlu0 %1424  ;;  %v1493_v53 = vmul.f32 %v8066_v27, %v8059_v50  ;;  %vm1498_vm9 = vweird.f32 %v8066_v27 }
 0x693   :  { %7027 = vrcp.f32 %v1416_v35  ;;  %2292 = vrot.lane.b32.xlu1 %v7789_v52, %s7285_s12  ;;  %v1460_v59 = vsel %vm1457_vm7, %v1459_v24, %v1455_v37  ;;  %v1471_v49 = vand.u32 2147483647, %v1416_v35  ;;  %v1473_v5 = vand.u32 2147483648, %v1416_v35 }
 0x694   :  { %7029 = vrcp.f32 %v1425_v63  ;;  %v1461_v20 = vmul.f32 %v7995_v40, %v1460_v59  ;;  %v1494_v18 = vsub.f32 1.0, %v1493_v53  ;;  %v1516_v43 = vand.u32 2147483647, %v1425_v63 }
 0x695   :  { %v1518_v22 = vand.u32 2147483648, %v1425_v63  ;;  %vm1467_vm11 = vweird.f32 %v1416_v35  ;;  %vm1512_vm0 = vweird.f32 %v1425_v63  ;;  %vm8095_vm2 = vcmp.eq.f32.partialorder %v1471_v49, 8.507059e+37 }
 0x696   :  { %6692 = vmatmul.msk.f32.vlgmr.msra.gmra.mxu0 %vm874_vm3, %v1461_v20  ;;  %v1495_v40 = vmul.f32 %v8066_v27, %v1494_v18  ;;  %v1474_v53 = vor.u32 1.1754944e-38, %v1473_v5  ;;  %vm8103_vm6 = vcmp.eq.f32.partialorder %v1516_v43, 8.507059e+37 }
 0x697   :  { %v8073_v26 = vpop.xlane.xlu2 %1418  ;;  %v1519_v23 = vor.u32 1.1754944e-38, %v1518_v22 }
 0x698   :  { %7031 = vrcp.f32 %v8073_v26  ;;  %v1496_v58 = vadd.f32 %v8066_v27, %v1495_v40  ;;  %v1486_v40 = vand.u32 2147483647, %v8073_v26 }
 0x699   :  { %v7028_v38 = vpop.eup %7027 }
 0x69a   :  { %v7030_v47 = vpop.eup %7029  ;;  %v1463_v52 = vmul.f32 %v7028_v38, %v1416_v35  ;;  %v8078_v6 = vpop.xlane.xlu0 %1427  ;;  %vm1468_vm15 = vweird.f32 %v7028_v38 }
 0x69b   :  { %v1508_v25 = vmul.f32 %v7030_v47, %v1425_v63  ;;  %7033 = vrcp.f32 %v8078_v6  ;;  %2234 = vrot.lane.b32.xlu1 %v7771_v60, %s7285_s12  ;;  %vm1513_vm1 = vweird.f32 %v7030_v47  ;;  %vm8099_vm5 = vmor %vm1467_vm11, %vm1468_vm15 }
 0x69c   :  { %v1464_v57 = vsub.f32 1.0, %v1463_v52  ;;  %vm1514_vm7 = vmor %vm1512_vm0, %vm1513_vm1  ;;  %vm1487_vm1 = vcmp.eq.f32.partialorder %v1486_v40, 8.507059e+37 }
 0x69d   :  { %v1509_v30 = vsub.f32 1.0, %v1508_v25  ;;  %vm8117_vm11 = vmor %vm1497_vm8, %vm1498_vm9  ;;  %vm1482_vm8 = vweird.f32 %v8073_v26 }
 0x69e   :  { %v7032_v36 = vpop.eup %7031  ;;  %v1465_v55 = vmul.f32 %v7028_v38, %v1464_v57  ;;  %v1488_v57 = vand.u32 2147483648, %v8073_v26 }
 0x69f   :  { %v1510_v60 = vmul.f32 %v7030_v47, %v1509_v30  ;;  %v1478_v2 = vmul.f32 %v7032_v36, %v8073_v26  ;;  %v8092_v48 = vpop.permute.xlu2 %1978  ;;  %vm1483_vm15 = vweird.f32 %v7032_v36 }
 0x6a0   :  { %v1466_v37 = vadd.f32 %v7028_v38, %v1465_v55  ;;  %vm8133_vm9 = vmor %vm1482_vm8, %vm1483_vm15 }
 0x6a1   :  { %v7034_v59 = vpop.eup %7033  ;;  %v1511_v35 = vadd.f32 %v7030_v47, %v1510_v60  ;;  %v1479_v52 = vsub.f32 1.0, %v1478_v2  ;;  %v1533_v2 = vand.u32 2147483648, %v8078_v6 }
 0x6a2   :  { %v1470_v25 = vsel %vm8099_vm5, %v7028_v38, %v1466_v37  ;;  %v1523_v49 = vmul.f32 %v7034_v59, %v8078_v6  ;;  %v1500_v38 = vsel %vm8117_vm11, %v8066_v27, %v1496_v58  ;;  %v1489_v37 = vor.u32 1.1754944e-38, %v1488_v57 }
 0x6a3   :  { %v1515_v30 = vsel %vm1514_vm7, %v7030_v47, %v1511_v35  ;;  %v1480_v43 = vmul.f32 %v7032_v36, %v1479_v52  ;;  %2534 = vrot.lane.b32.xlu1 %v7876_v14, %s7286_s13  ;;  %v1475_v63 = vsel %vm8095_vm2, %v1474_v53, %v1470_v25  ;;  %v1504_v47 = vor.u32 1.1754944e-38, %v1503_v61 }
 0x6a4   :  { %v1524_v22 = vsub.f32 1.0, %v1523_v49  ;;  %v1476_v50 = vmul.f32 %v8005_v11, %v1475_v63  ;;  %v1520_v55 = vsel %vm8103_vm6, %v1519_v23, %v1515_v30  ;;  %vm1528_vm0 = vweird.f32 %v7034_v59 }
 0x6a5   :  { %v1481_v60 = vadd.f32 %v7032_v36, %v1480_v43  ;;  %v1531_v27 = vand.u32 2147483647, %v8078_v6  ;;  %v1521_v61 = vmul.f32 %v8003_v10, %v1520_v55  ;;  %v1505_v58 = vsel %vm8087_vm10, %v1504_v47, %v1500_v38 }
 0x6a6   :  { %v1525_v24 = vmul.f32 %v7034_v59, %v1524_v22  ;;  %6694 = vmatmul.msk.f32.vlgmr.msrb.gmra.mxu2 %vm874_vm3, %v1476_v50  ;;  %vm1527_vm2 = vweird.f32 %v8078_v6  ;;  %v1534_v35 = vor.u32 1.1754944e-38, %v1533_v2  ;;  %v1506_v10 = vmul.f32 %v7999_v41, %v1505_v58 }
 0x6a7   :  { %v1485_v11 = vsel %vm8133_vm9, %v7032_v36, %v1481_v60  ;;  %6709 = vmatpush.xpose.msk.msrb.mxu2 %vm456_vm12, %v7987_v8  ;;  %v1700_v26 = vpop.permute.xlu2 %1699  ;;  %vm1529_vm5 = vmor %vm1527_vm2, %vm1528_vm0  ;;  %vm1532_vm6 = vcmp.eq.f32.partialorder %v1531_v27, 8.507059e+37 }
 0x6a8   :  { %v1526_v53 = vadd.f32 %v7034_v59, %v1525_v24  ;;  %6699 = vmatpush.msk.msrb.mxu0 %vm878_vm13, %v1700_v26  ;;  %v1490_v20 = vsel %vm1487_vm1, %v1489_v37, %v1485_v11  ;;  %v8187_v24 = vld.sshfl [vmem:[#allocation1 + $0x20] sm:$0xff pattern:$0x73625140] }
 0x6a9   :  { %6700 = vmatmul.msk.f32.vlgmr.msrb.gmra.mxu0 %vm874_vm3, %v1521_v61  ;;  %v1491_v36 = vmul.f32 %v8011_v29, %v1490_v20 }
 0x6aa   :  { %v1530_v18 = vsel %vm1529_vm5, %v7034_v59, %v1526_v53  ;;  %v1671_v8 = vpop.permute.xlu1 %1670 }
 0x6ab   :  { %6696 = vmatmul.msk.f32.vlgmr.msrb.gmra.mxu3 %vm874_vm3, %v1491_v36  ;;  %6697 = vmatpush.msk.msrb.mxu1 %vm878_vm13, %v1671_v8  ;;  %v1535_v62 = vsel %vm1532_vm6, %v1534_v35, %v1530_v18 }
 0x6ac   :  { %6711 = vmatpush.xpose.msk.msrb.mxu3 %vm456_vm12, %v7945_v3  ;;  %6698 = vmatmul.msk.f32.vlgmr.msrb.gmra.mxu1 %vm874_vm3, %v1506_v10  ;;  %v1536_v6 = vmul.f32 %v8013_v4, %v1535_v62 }
 0x6ad   :  { %v2011_v23 = vpop.permute.xlu0 %2010 }
 0x6ae   :  { %6702 = vmatmul.msk.f32.vlgmr.msra.gmra.mxu2 %vm874_vm3, %v1536_v6 }
 0x6af   :  { %6717 = vmatpush.xpose.msk.msra.mxu2 %vm456_vm12, %v8051_v21  ;;  %v1787_v41 = vpop.permute.xlu2 %1786 }
 0x6b5   :  { %v1791_v29 = vpop.permute.xlu0 %1790 }
 0x6b6   :  { %6705 = vmatpush.xpose.msk.msra.mxu1 %vm456_vm12, %v1791_v29  ;;  %6710 = vmatmul.msk.f32.vlgmr.msrb.gmra.mxu2 %vm456_vm12, %v7989_v17 }
 0x6b7   :  { %v1951_v3 = vpop.permute.xlu2 %1950 }
 0x6b9   :  { %6706 = vmatmul.msk.f32.vlgmr.msra.gmra.mxu1 %vm456_vm12, %v1787_v41 }
 0x6bd   :  { %v1819_v22 = vpop.permute.xlu0 %1818 }
 0x6be   :  { %6718 = vmatmul.msk.f32.vlgmr.msra.gmra.mxu2 %vm456_vm12, %v8092_v48 }
 0x6bf   :  { %v2322_v52 = vpop.permute.xlu2 %2321 }
 0x6c7   :  { %v2438_v63 = vpop.permute.xlu2 %2437 }
 0x6cf   :  { %v2264_v50 = vpop.permute.xlu2 %2263 }
 0x6d5   :  { %v1431_v4 = vpop.xlane.xlu1 %1430 }
 0x6d6   :  { %7035 = vrcp.f32 %v1431_v4  ;;  %v1548_v21 = vand.u32 2147483648, %v1431_v4  ;;  %v1546_v49 = vand.u32 2147483647, %v1431_v4  ;;  %vm1542_vm7 = vweird.f32 %v1431_v4 }
 0x6d8   :  { %v1549_v17 = vor.u32 1.1754944e-38, %v1548_v21  ;;  %vm1547_vm15 = vcmp.eq.f32.partialorder %v1546_v49, 8.507059e+37 }
 0x6dc   :  { %v7036_v59 = vpop.eup %7035 }
 0x6dd   :  { %v1538_v25 = vmul.f32 %v7036_v59, %v1431_v4  ;;  %vm1543_vm10 = vweird.f32 %v7036_v59 }
 0x6de   :  { %vm1544_vm11 = vmor %vm1542_vm7, %vm1543_vm10 }
 0x6df   :  { %v1539_v40 = vsub.f32 1.0, %v1538_v25 }
 0x6e1   :  { %v1540_v57 = vmul.f32 %v7036_v59, %v1539_v40 }
 0x6e3   :  { %v1541_v5 = vadd.f32 %v7036_v59, %v1540_v57 }
 0x6e5   :  { %v1545_v30 = vsel %vm1544_vm11, %v7036_v59, %v1541_v5 }
 0x6e6   :  { %v1550_v43 = vsel %vm1547_vm15, %v1549_v17, %v1545_v30 }
 0x6e7   :  { %v1551_v48 = vmul.f32 %v8043_v7, %v1550_v43 }
 0x6e9   :  { %6704 = vmatmul.msk.f32.vlgmr.msra.gmra.mxu3 %vm874_vm3, %v1551_v48 }
 0x6ea   :  { %6719 = vmatpush.xpose.msk.msra.mxu3 %vm456_vm12, %v8057_v15  ;;  %v1915_v15 = vpop.permute.xlu0 %1914 }
 0x6ed   :  { %v1823_v38 = vpop.permute.xlu1 %1822 }
 0x6ee   :  { %6707 = vmatpush.xpose.msk.msra.mxu0 %vm456_vm12, %v1823_v38 }
 0x6f1   :  { %6708 = vmatmul.msk.f32.vlgmr.msra.gmra.mxu0 %vm456_vm12, %v1819_v22  ;;  %6712 = vmatmul.msk.f32.vlgmr.msrb.gmra.mxu3 %vm456_vm12, %v7985_v0  ;;  %v8184_v0 = vld.sshfl [vmem:[#allocation1] sm:$0xff pattern:$0x73625140] }
 0x6f2   :  { %6715 = vmatpush.xpose.msk.msrb.mxu0 %vm456_vm12, %v1951_v3  ;;  %6727 = vmatpush.msk.msrb.mxu3 %vm878_vm13, %v2322_v52  ;;  %v2409_v60 = vpop.permute.xlu0 %2408 }
 0x6f5   :  { %v1919_v7 = vpop.permute.xlu1 %1918 }
 0x6f6   :  { %6723 = vmatpush.msk.msra.mxu0 %vm878_vm13, %v2264_v50  ;;  %6713 = vmatpush.xpose.msk.msrb.mxu1 %vm456_vm12, %v1919_v7 }
 0x6f9   :  { %6714 = vmatmul.msk.f32.vlgmr.msrb.gmra.mxu1 %vm456_vm12, %v1915_v15  ;;  %6720 = vmatmul.msk.f32.vlgmr.msra.gmra.mxu3 %vm456_vm12, %v2011_v23 }
 0x6fa   :  { %6735 = vmatpush.msk.msra.mxu3 %vm878_vm13, %v2438_v63 }
 0x6fd   :  { %v1947_v55 = vpop.permute.xlu1 %1946 }
 0x6fe   :  { %6716 = vmatmul.msk.f32.vlgmr.msrb.gmra.mxu0 %vm456_vm12, %v1947_v55 }
 0x705   :  { %v2293_v47 = vpop.permute.xlu1 %2292 }
 0x706   :  { %6725 = vmatpush.msk.msrb.mxu2 %vm878_vm13, %v2293_v47 }
 0x708   :  { %6733 = vmatpush.msk.msra.mxu2 %vm878_vm13, %v2409_v60 }
 0x70b   :  { %v1578_v2 = vpop.f32.mrf.mxu1 }
 0x70c   :  { %3179 = vst [vmem:[#allocation1] ss:$4 sm:$0xff] %v1578_v2 }
 0x70d   :  { %v2235_v14 = vpop.permute.xlu1 %2234 }
 0x70e   :  { %6721 = vmatpush.msk.msra.mxu1 %vm878_vm13, %v2235_v14 }
 0x713   :  { %v1607_v37 = vpop.f32.mrf.mxu0 }
 0x714   :  { %3181 = vst [vmem:[#allocation1 + $0x1] ss:$4 sm:$0xff] %v1607_v37 }
 0x715   :  { %v8210_v17 = vpop.permute.xlu1 %2534 }
 0x726   :  { %v1723_v27 = vpop.f32.mrf.mxu0 }
 0x727   :  { %3189 = vst [vmem:[#allocation1 + $0x21] ss:$4 sm:$0xff] %v1723_v27 }
 0x729   :  { %v1636_v11 = vpop.f32.mrf.mxu2  ;;  %v1694_v26 = vpop.f32.mrf.mxu1 }
 0x72a   :  { %3183 = vst [vmem:[#allocation1 + $0x2] ss:$4 sm:$0xff] %v1636_v11 }
 0x72b   :  { %3187 = vst [vmem:[#allocation1 + $0x20] ss:$4 sm:$0xff] %v1694_v26 }
 0x72e   :  { %v1665_v61 = vpop.f32.mrf.mxu3 }
 0x72f   :  { %3185 = vst [vmem:[#allocation1 + $0x3] ss:$4 sm:$0xff] %v1665_v61 }
 0x731   :  { %v1752_v58 = vpop.f32.mrf.mxu2 }
 0x732   :  { %3191 = vst [vmem:[#allocation1 + $0x22] ss:$4 sm:$0xff] %v1752_v58 }
 0x736   :  { %v1813_v53 = vpop.f32.mrf.mxu1 }
 0x737   :  { %v2040_v20 = vsel %vm677_vm14, %v1813_v53, -inf }
 0x738   :  { %2041 = vmax.xlane.f32.xlu0 %v2040_v20 }
 0x739   :  { %v1877_v35 = vpop.f32.mrf.mxu2 }
 0x73a   :  { %v2046_v4 = vsel %vm677_vm14, %v1877_v35, -inf }
 0x741   :  { %v2005_v10 = vpop.f32.mrf.mxu2 }
 0x742   :  { %v2058_v6 = vsel %vm677_vm14, %v2005_v10, -inf }
 0x76c   :  { %v1781_v36 = vpop.f32.mrf.mxu3 }
 0x76d   :  { %3193 = vst [vmem:[#allocation1 + $0x23] ss:$4 sm:$0xff] %v1781_v36 }
 0x76e   :  { %v1845_v18 = vpop.f32.mrf.mxu0 }
 0x76f   :  { %v2043_v8 = vsel %vm677_vm14, %v1845_v18, -inf }
 0x770   :  { %2044 = vmax.xlane.f32.xlu1 %v2043_v8 }
 0x774   :  { %v1909_v29 = vpop.f32.mrf.mxu3 }
 0x775   :  { %v2049_v52 = vsel %vm677_vm14, %v1909_v29, -inf }
 0x776   :  { %v1941_v62 = vpop.f32.mrf.mxu1 }
 0x777   :  { %v2052_v23 = vsel %vm677_vm14, %v1941_v62, -inf }
 0x778   :  { %2059 = vmax.xlane.f32.xlu1 %v2058_v6  ;;  %2053 = vmax.xlane.f32.xlu2 %v2052_v23  ;;  %v9688_v6 = vld [vmem:[#allocation6_spill] sm:$0xff] }
 0x77b   :  { %v1973_v41 = vpop.f32.mrf.mxu0 }
 0x77c   :  { %v2055_v3 = vsel %vm677_vm14, %v1973_v41, -inf  ;;  %v8195_v59 = vpop.f32.mrf.mxu3 }
 0x77d   :  { %2056 = vmax.xlane.f32.xlu0 %v2055_v3  ;;  %v2061_v25 = vsel %vm677_vm14, %v8195_v59, -inf }
 0x780   :  { %2047 = vmax.xlane.f32.xlu2 %v2046_v4 }
 0x785   :  { %2050 = vmax.xlane.f32.xlu0 %v2049_v52 }
 0x788   :  { %2062 = vmax.xlane.f32.xlu2 %v2061_v25 }
 0x791   :  { %2530 = vrot.lane.b32.xlu1 %v7869_v9, %s7287_s14 }
 0x799   :  { %2562 = vrot.lane.b32.xlu0 %v7880_v42, %s7287_s14 }
 0x7a0   :  { %2566 = vrot.lane.b32.xlu2 %v7883_v28, %s7286_s13 }
 0x7ab   :  { %v2042_v40 = vpop.xlane.xlu0 %2041 }
 0x7ac   :  { %v2064_v21 = vsub.f32 %v1813_v53, %v2042_v40 }
 0x7ae   :  { %v2072_v57 = vmul.f32 1.442695, %v2064_v21 }
 0x7b0   :  { %7037 = vpow2.f32 %v2072_v57 }
 0x7b6   :  { %v8206_v49 = vpop.eup %7037 }
 0x7b7   :  { %v2088_v5 = vsel %vm677_vm14, %v8206_v49, 0.0 }
 0x7c9   :  { %2089 = vadd.xlane.f32.xlu2 %v2088_v5 }
 0x7e3   :  { %v2045_v30 = vpop.xlane.xlu1 %2044 }
 0x7e4   :  { %v2065_v9 = vsub.f32 %v1845_v18, %v2045_v30 }
 0x7e6   :  { %v2074_v43 = vmul.f32 1.442695, %v2065_v9 }
 0x7e8   :  { %7039 = vpow2.f32 %v2074_v43 }
 0x7eb   :  { %v2054_v42 = vpop.xlane.xlu2 %2053  ;;  %v2060_v55 = vpop.xlane.xlu1 %2059 }
 0x7ec   :  { %v2068_v63 = vsub.f32 %v1941_v62, %v2054_v42  ;;  %v2070_v14 = vsub.f32 %v2005_v10, %v2060_v55  ;;  %v9687_v62 = vld [vmem:[#allocation7_spill] sm:$0xff]  ;;  %v9689_v42 = vld [vmem:[#allocation8_spill] sm:$0xff] }
 0x7ee   :  { %v8212_v48 = vpop.eup %7039  ;;  %v2080_v28 = vmul.f32 1.442695, %v2068_v63  ;;  %v2084_v26 = vmul.f32 1.442695, %v2070_v14 }
 0x7ef   :  { %v2091_v38 = vsel %vm677_vm14, %v8212_v48, 0.0 }
 0x7f0   :  { %2092 = vadd.xlane.f32.xlu0 %v2091_v38  ;;  %v2057_v22 = vpop.xlane.xlu0 %2056  ;;  %7041 = vpow2.f32 %v2080_v28 }
 0x7f1   :  { %v2069_v50 = vsub.f32 %v1973_v41, %v2057_v22 }
 0x7f3   :  { %v2082_v7 = vmul.f32 1.442695, %v2069_v50  ;;  %v2048_v15 = vpop.xlane.xlu2 %2047 }
 0x7f4   :  { %v2066_v47 = vsub.f32 %v1877_v35, %v2048_v15 }
 0x7f5   :  { %7043 = vpow2.f32 %v2082_v7 }
 0x7f6   :  { %v2076_v60 = vmul.f32 1.442695, %v2066_v47  ;;  %v8216_v2 = vpop.eup %7041 }
 0x7f7   :  { %v2100_v37 = vsel %vm677_vm14, %v8216_v2, 0.0 }
 0x7f8   :  { %7045 = vpow2.f32 %v2076_v60  ;;  %v2051_v27 = vpop.xlane.xlu0 %2050  ;;  %2101 = vadd.xlane.f32.xlu0 %v2100_v37 }
 0x7f9   :  { %v2067_v11 = vsub.f32 %v1909_v29, %v2051_v27 }
 0x7fb   :  { %v2078_v61 = vmul.f32 1.442695, %v2067_v11  ;;  %v8220_v58 = vpop.eup %7043  ;;  %v2063_v23 = vpop.xlane.xlu2 %2062 }
 0x7fc   :  { %v2103_v35 = vsel %vm677_vm14, %v8220_v58, 0.0  ;;  %v2071_v29 = vsub.f32 %v8195_v59, %v2063_v23 }
 0x7fd   :  { %7047 = vpow2.f32 %v2078_v61 }
 0x7fe   :  { %v8222_v53 = vpop.eup %7045  ;;  %7049 = vpow2.f32 %v2084_v26 }
 0x7ff   :  { %v2094_v20 = vsel %vm677_vm14, %v8222_v53, 0.0 }
 0x800   :  { %2095 = vadd.xlane.f32.xlu1 %v2094_v20  ;;  %2104 = vadd.xlane.f32.xlu0 %v2103_v35 }
 0x803   :  { %v8228_v36 = vpop.eup %7047  ;;  %v8251_v41 = vpop.permute.xlu2 %2566 }
 0x804   :  { %v2097_v18 = vsel %vm677_vm14, %v8228_v36, 0.0  ;;  %v8232_v8 = vpop.eup %7049  ;;  %v8273_v30 = vpop.permute.xlu1 %2530 }
 0x805   :  { %2098 = vadd.xlane.f32.xlu2 %v2097_v18  ;;  %v2106_v10 = vsel %vm677_vm14, %v8232_v8, 0.0 }
 0x808   :  { %2107 = vadd.xlane.f32.xlu0 %v2106_v10 }
 0x80b   :  { %v8267_v21 = vpop.permute.xlu0 %2562 }
 0x819   :  { %2379 = vrot.lane.b32.xlu1 %v9687_v62, %s7285_s12 }
 0x81c   :  { %2470 = vrot.lane.b32.xlu0 %v7844_v33, %s7286_s13  ;;  %v2086_v33 = vmul.f32 1.442695, %v2071_v29 }
 0x81d   :  { %2350 = vrot.lane.b32.xlu2 %v9688_v6, %s7285_s12 }
 0x81e   :  { %7051 = vpow2.f32 %v2086_v33 }
 0x824   :  { %2498 = vrot.lane.b32.xlu0 %v7852_v45, %s7287_s14 }
 0x825   :  { %2502 = vrot.lane.b32.xlu2 %v7858_v32, %s7286_s13  ;;  %v8261_v32 = vpop.eup %7051 }
 0x82c   :  { %2658 = vrot.lane.b32.xlu0 %v7922_v1, %s7287_s14  ;;  %v2109_v1 = vsel %vm677_vm14, %v8261_v32, 0.0 }
 0x82d   :  { %2662 = vrot.lane.b32.xlu2 %v7929_v51, %s7286_s13 }
 0x834   :  { %2630 = vrot.lane.b32.xlu0 %v7914_v13, %s7286_s13 }
 0x835   :  { %2690 = vrot.lane.b32.xlu2 %v7933_v34, %s7287_s14 }
 0x83c   :  { %v2090_v45 = vpop.xlane.xlu2 %2089  ;;  %2972 = vrot.lane.b32.xlu0 %v7951_v56, %s7288_s15 }
 0x83d   :  { %7053 = vrcp.f32 %v2090_v45  ;;  %2594 = vrot.lane.b32.xlu2 %v7889_v54, %s7287_s14  ;;  %v2123_v34 = vand.u32 2147483648, %v2090_v45  ;;  %v2121_v59 = vand.u32 2147483647, %v2090_v45  ;;  %vm2117_vm9 = vweird.f32 %v2090_v45 }
 0x83f   :  { %v2124_v56 = vor.u32 1.1754944e-38, %v2123_v34  ;;  %vm2122_vm1 = vcmp.eq.f32.partialorder %v2121_v59, 8.507059e+37 }
 0x843   :  { %v7054_v51 = vpop.eup %7053  ;;  %2110 = vadd.xlane.f32.xlu1 %v2109_v1 }
 0x844   :  { %v2113_v13 = vmul.f32 %v7054_v51, %v2090_v45  ;;  %vm2118_vm8 = vweird.f32 %v7054_v51 }
 0x845   :  { %vm2119_vm0 = vmor %vm2117_vm9, %vm2118_vm8 }
 0x846   :  { %v2114_v3 = vsub.f32 1.0, %v2113_v13 }
 0x848   :  { %v2115_v4 = vmul.f32 %v7054_v51, %v2114_v3 }
 0x84a   :  { %v2116_v52 = vadd.f32 %v7054_v51, %v2115_v4 }
 0x84c   :  { %v2120_v25 = vsel %vm2119_vm0, %v7054_v51, %v2116_v52 }
 0x84d   :  { %v2125_v54 = vsel %vm2122_vm1, %v2124_v56, %v2120_v25 }
 0x84e   :  { %v2126_v40 = vmul.f32 %v8206_v49, %v2125_v54 }
 0x850   :  { %6722 = vmatmul.msk.f32.vlgmr.msra.gmra.mxu1 %vm874_vm3, %v2126_v40 }
 0x85c   :  { %2466 = vrot.lane.b32.xlu1 %v7835_v12, %s7287_s14 }
 0x863   :  { %v2093_v57 = vpop.xlane.xlu0 %2092 }
 0x864   :  { %7055 = vrcp.f32 %v2093_v57  ;;  %2694 = vrot.lane.b32.xlu1 %v7938_v46, %s7286_s13  ;;  %v2138_v28 = vand.u32 2147483648, %v2093_v57  ;;  %vm2132_vm5 = vweird.f32 %v2093_v57  ;;  %v2136_v12 = vand.u32 2147483647, %v2093_v57 }
 0x866   :  { %v2139_v7 = vor.u32 1.1754944e-38, %v2138_v28  ;;  %vm2137_vm10 = vcmp.eq.f32.partialorder %v2136_v12, 8.507059e+37 }
 0x86a   :  { %v7056_v5 = vpop.eup %7055 }
 0x86b   :  { %v2128_v9 = vmul.f32 %v7056_v5, %v2093_v57  ;;  %v2102_v43 = vpop.xlane.xlu0 %2101  ;;  %vm2133_vm2 = vweird.f32 %v7056_v5 }
 0x86c   :  { %2598 = vrot.lane.b32.xlu1 %v9689_v42, %s7286_s13  ;;  %7057 = vrcp.f32 %v2102_v43  ;;  %vm2134_vm6 = vmor %vm2132_vm5, %vm2133_vm2  ;;  %v2183_v27 = vand.u32 2147483648, %v2102_v43  ;;  %v2181_v26 = vand.u32 2147483647, %v2102_v43  ;;  %vm2177_vm11 = vweird.f32 %v2102_v43 }
 0x86d   :  { %v2129_v49 = vsub.f32 1.0, %v2128_v9 }
 0x86e   :  { %v2184_v10 = vor.u32 1.1754944e-38, %v2183_v27  ;;  %vm2182_vm8 = vcmp.eq.f32.partialorder %v2181_v26, 8.507059e+37 }
 0x86f   :  { %v2130_v63 = vmul.f32 %v7056_v5, %v2129_v49 }
 0x871   :  { %v2131_v38 = vadd.f32 %v7056_v5, %v2130_v63 }
 0x872   :  { %v7058_v22 = vpop.eup %7057 }
 0x873   :  { %v2135_v50 = vsel %vm2134_vm6, %v7056_v5, %v2131_v38  ;;  %v2096_v46 = vpop.xlane.xlu1 %2095  ;;  %v2173_v15 = vmul.f32 %v7058_v22, %v2102_v43  ;;  %v2105_v55 = vpop.xlane.xlu0 %2104  ;;  %vm2178_vm7 = vweird.f32 %v7058_v22 }
 0x874   :  { %7059 = vrcp.f32 %v2096_v46  ;;  %2626 = vrot.lane.b32.xlu1 %v7903_v44, %s7287_s14  ;;  %v2140_v60 = vsel %vm2137_vm10, %v2139_v7, %v2135_v50  ;;  %vm2179_vm15 = vmor %vm2177_vm11, %vm2178_vm7  ;;  %vm2147_vm9 = vweird.f32 %v2096_v46  ;;  %v2153_v1 = vand.u32 2147483648, %v2096_v46 }
 0x875   :  { %7061 = vrcp.f32 %v2105_v55  ;;  %v2174_v47 = vsub.f32 1.0, %v2173_v15  ;;  %v2141_v14 = vmul.f32 %v8212_v48, %v2140_v60  ;;  %v2151_v51 = vand.u32 2147483647, %v2096_v46 }
 0x876   :  { %v2196_v52 = vand.u32 2147483647, %v2105_v55  ;;  %v2198_v56 = vand.u32 2147483648, %v2105_v55  ;;  %vm2192_vm5 = vweird.f32 %v2105_v55 }
 0x877   :  { %v2175_v37 = vmul.f32 %v7058_v22, %v2174_v47  ;;  %6724 = vmatmul.msk.f32.vlgmr.msra.gmra.mxu0 %vm874_vm3, %v2141_v14  ;;  %vm2152_vm6 = vcmp.eq.f32.partialorder %v2151_v51, 8.507059e+37 }
 0x878   :  { %v2099_v11 = vpop.xlane.xlu2 %2098  ;;  %vm8301_vm11 = vcmp.eq.f32.partialorder %v2196_v52, 8.507059e+37  ;;  %v2199_v12 = vor.u32 1.1754944e-38, %v2198_v56 }
 0x879   :  { %7063 = vrcp.f32 %v2099_v11  ;;  %v2176_v20 = vadd.f32 %v7058_v22, %v2175_v37  ;;  %v2166_v9 = vand.u32 2147483647, %v2099_v11  ;;  %v2168_v43 = vand.u32 2147483648, %v2099_v11 }
 0x87a   :  { %v7060_v61 = vpop.eup %7059 }
 0x87b   :  { %v7062_v35 = vpop.eup %7061  ;;  %v2143_v44 = vmul.f32 %v7060_v61, %v2096_v46  ;;  %v2180_v18 = vsel %vm2179_vm15, %v7058_v22, %v2176_v20  ;;  %v8281_v6 = vpop.xlane.xlu0 %2107  ;;  %vm2148_vm0 = vweird.f32 %v7060_v61  ;;  %vm2162_vm15 = vweird.f32 %v2099_v11 }
 0x87c   :  { %v2188_v62 = vmul.f32 %v7062_v35, %v2105_v55  ;;  %7065 = vrcp.f32 %v8281_v6  ;;  %v2185_v29 = vsel %vm2182_vm8, %v2184_v10, %v2180_v18  ;;  %vm2193_vm1 = vweird.f32 %v7062_v35  ;;  %vm8286_vm2 = vmor %vm2147_vm9, %vm2148_vm0 }
 0x87d   :  { %v2144_v48 = vsub.f32 1.0, %v2143_v44  ;;  %v2186_v4 = vmul.f32 %v8216_v2, %v2185_v29  ;;  %v2154_v2 = vor.u32 1.1754944e-38, %v2153_v1  ;;  %vm8294_vm10 = vmor %vm2192_vm5, %vm2193_vm1  ;;  %vm2167_vm9 = vcmp.eq.f32.partialorder %v2166_v9, 8.507059e+37 }
 0x87e   :  { %v2189_v23 = vsub.f32 1.0, %v2188_v62  ;;  %v2169_v15 = vor.u32 1.1754944e-38, %v2168_v43  ;;  %v2211_v55 = vand.u32 2147483647, %v8281_v6  ;;  %v2213_v47 = vand.u32 2147483648, %v8281_v6 }
 0x87f   :  { %v7064_v33 = vpop.eup %7063  ;;  %v2145_v45 = vmul.f32 %v7060_v61, %v2144_v48  ;;  %vm2207_vm1 = vweird.f32 %v8281_v6 }
 0x880   :  { %v2190_v13 = vmul.f32 %v7062_v35, %v2189_v23  ;;  %v2158_v3 = vmul.f32 %v7064_v33, %v2099_v11  ;;  %v2351_v34 = vpop.permute.xlu2 %2350  ;;  %vm2163_vm7 = vweird.f32 %v7064_v33  ;;  %vm2212_vm5 = vcmp.eq.f32.partialorder %v2211_v55, 8.507059e+37 }
 0x881   :  { %v2146_v59 = vadd.f32 %v7060_v61, %v2145_v45  ;;  %6729 = vmatpush.msk.msrb.mxu1 %vm878_vm13, %v2351_v34  ;;  %vm2164_vm8 = vmor %vm2162_vm15, %vm2163_vm7 }
 0x882   :  { %v2191_v54 = vadd.f32 %v7062_v35, %v2190_v13  ;;  %v2159_v40 = vsub.f32 1.0, %v2158_v3  ;;  %6730 = vmatmul.msk.f32.vlgmr.msrb.gmra.mxu1 %vm874_vm3, %v2186_v4  ;;  %v7066_v57 = vpop.eup %7065  ;;  %v8334_v4 = vld.sshfl [vmem:[#allocation1] sm:$0xff pattern:$0x73625140] }
 0x883   :  { %v2150_v5 = vsel %vm8286_vm2, %v7060_v61, %v2146_v59  ;;  %v2203_v63 = vmul.f32 %v7066_v57, %v8281_v6  ;;  %vm2208_vm0 = vweird.f32 %v7066_v57  ;;  %v2214_v61 = vor.u32 1.1754944e-38, %v2213_v47 }
 0x884   :  { %v2160_v49 = vmul.f32 %v7064_v33, %v2159_v40  ;;  %v2195_v28 = vsel %vm8294_vm10, %v7062_v35, %v2191_v54  ;;  %v2155_v22 = vsel %vm2152_vm6, %v2154_v2, %v2150_v5  ;;  %vm2209_vm2 = vmor %vm2207_vm1, %vm2208_vm0  ;;  %v8344_v5 = vld.sshfl [vmem:[#allocation1 + $0x20] sm:$0xff pattern:$0x73625140] }
 0x885   :  { %v2204_v46 = vsub.f32 1.0, %v2203_v63  ;;  %v2156_v7 = vmul.f32 %v8222_v53, %v2155_v22  ;;  %v2200_v27 = vsel %vm8301_vm11, %v2199_v12, %v2195_v28 }
 0x886   :  { %v2161_v50 = vadd.f32 %v7064_v33, %v2160_v49  ;;  %v2201_v35 = vmul.f32 %v8220_v58, %v2200_v27 }
 0x887   :  { %v2205_v14 = vmul.f32 %v7066_v57, %v2204_v46  ;;  %6726 = vmatmul.msk.f32.vlgmr.msrb.gmra.mxu2 %vm874_vm3, %v2156_v7 }
 0x888   :  { %v2165_v60 = vsel %vm2164_vm8, %v7064_v33, %v2161_v50  ;;  %v2503_v37 = vpop.permute.xlu2 %2502  ;;  %6741 = vmatpush.xpose.msk.msrb.mxu2 %vm456_vm12, %v8210_v17 }
 0x889   :  { %v2170_v53 = vsel %vm2167_vm9, %v2169_v15, %v2165_v60  ;;  %v2206_v11 = vadd.f32 %v7066_v57, %v2205_v14 }
 0x88a   :  { %v2171_v26 = vmul.f32 %v8228_v36, %v2170_v53 }
 0x88b   :  { %v2380_v20 = vpop.permute.xlu1 %2379  ;;  %v2210_v44 = vsel %vm2209_vm2, %v7066_v57, %v2206_v11 }
 0x88c   :  { %6728 = vmatmul.msk.f32.vlgmr.msrb.gmra.mxu3 %vm874_vm3, %v2171_v26  ;;  %6731 = vmatpush.msk.msrb.mxu0 %vm878_vm13, %v2380_v20  ;;  %v2215_v17 = vsel %vm2212_vm5, %v2214_v61, %v2210_v44 }
 0x88d   :  { %6743 = vmatpush.xpose.msk.msrb.mxu3 %vm456_vm12, %v8251_v41  ;;  %6732 = vmatmul.msk.f32.vlgmr.msrb.gmra.mxu0 %vm874_vm3, %v2201_v35  ;;  %v2216_v36 = vmul.f32 %v8232_v8, %v2215_v17 }
 0x88e   :  { %6739 = vmatpush.xpose.msk.msra.mxu0 %vm456_vm12, %v2503_v37  ;;  %v2471_v18 = vpop.permute.xlu0 %2470 }
 0x88f   :  { %6734 = vmatmul.msk.f32.vlgmr.msra.gmra.mxu2 %vm874_vm3, %v2216_v36  ;;  %6737 = vmatpush.xpose.msk.msra.mxu1 %vm456_vm12, %v2471_v18 }
 0x890   :  { %v2663_v58 = vpop.permute.xlu2 %2662 }
 0x891   :  { %6749 = vmatpush.xpose.msk.msra.mxu2 %vm456_vm12, %v2663_v58 }
 0x896   :  { %v2499_v10 = vpop.permute.xlu0 %2498 }
 0x897   :  { %6740 = vmatmul.msk.f32.vlgmr.msra.gmra.mxu0 %vm456_vm12, %v2499_v10  ;;  %6742 = vmatmul.msk.f32.vlgmr.msrb.gmra.mxu2 %vm456_vm12, %v8273_v30 }
 0x898   :  { %v2691_v25 = vpop.permute.xlu2 %2690 }
 0x89e   :  { %v2659_v41 = vpop.permute.xlu0 %2658 }
 0x89f   :  { %6750 = vmatmul.msk.f32.vlgmr.msra.gmra.mxu2 %vm456_vm12, %v2659_v41 }
 0x8a6   :  { %v2631_v62 = vpop.permute.xlu0 %2630 }
 0x8a7   :  { %6747 = vmatpush.xpose.msk.msrb.mxu0 %vm456_vm12, %v2631_v62 }
 0x8ae   :  { %v2973_v8 = vpop.permute.xlu0 %2972 }
 0x8af   :  { %6757 = vmatpush.msk.msrb.mxu2 %vm878_vm13, %v2973_v8 }
 0x8b6   :  { %v2111_v6 = vpop.xlane.xlu1 %2110 }
 0x8b7   :  { %7067 = vrcp.f32 %v2111_v6  ;;  %v2228_v33 = vand.u32 2147483648, %v2111_v6  ;;  %v2226_v1 = vand.u32 2147483647, %v2111_v6  ;;  %vm2222_vm10 = vweird.f32 %v2111_v6 }
 0x8b9   :  { %v2229_v30 = vor.u32 1.1754944e-38, %v2228_v33  ;;  %vm2227_vm11 = vcmp.eq.f32.partialorder %v2226_v1, 8.507059e+37 }
 0x8bd   :  { %v7068_v48 = vpop.eup %7067 }
 0x8be   :  { %v2218_v23 = vmul.f32 %v7068_v48, %v2111_v6  ;;  %vm2223_vm6 = vweird.f32 %v7068_v48 }
 0x8bf   :  { %vm2224_vm7 = vmor %vm2222_vm10, %vm2223_vm6 }
 0x8c0   :  { %v2219_v29 = vsub.f32 1.0, %v2218_v23 }
 0x8c2   :  { %v2220_v45 = vmul.f32 %v7068_v48, %v2219_v29 }
 0x8c4   :  { %v2221_v51 = vadd.f32 %v7068_v48, %v2220_v45 }
 0x8c6   :  { %v2225_v13 = vsel %vm2224_vm7, %v7068_v48, %v2221_v51 }
 0x8c7   :  { %v2230_v3 = vsel %vm2227_vm11, %v2229_v30, %v2225_v13 }
 0x8c8   :  { %v2231_v34 = vmul.f32 %v8261_v32, %v2230_v3  ;;  %v2595_v32 = vpop.permute.xlu2 %2594 }
 0x8ca   :  { %6736 = vmatmul.msk.f32.vlgmr.msra.gmra.mxu3 %vm874_vm3, %v2231_v34 }
 0x8cd   :  { %v2258_v59 = vpop.f32.mrf.mxu1 }
 0x8ce   :  { %3210 = vst [vmem:[#allocation1] ss:$4 sm:$0xff] %v2258_v59  ;;  %v2467_v52 = vpop.permute.xlu1 %2466 }
 0x8cf   :  { %6738 = vmatmul.msk.f32.vlgmr.msra.gmra.mxu1 %vm456_vm12, %v2467_v52 }
 0x8d2   :  { %6744 = vmatmul.msk.f32.vlgmr.msrb.gmra.mxu3 %vm456_vm12, %v8267_v21 }
 0x8d6   :  { %v2695_v56 = vpop.permute.xlu1 %2694 }
 0x8d7   :  { %6751 = vmatpush.xpose.msk.msra.mxu3 %vm456_vm12, %v2695_v56 }
 0x8da   :  { %6752 = vmatmul.msk.f32.vlgmr.msra.gmra.mxu3 %vm456_vm12, %v2691_v25 }
 0x8de   :  { %v2599_v54 = vpop.permute.xlu1 %2598 }
 0x8df   :  { %6745 = vmatpush.xpose.msk.msrb.mxu1 %vm456_vm12, %v2599_v54 }
 0x8e2   :  { %6746 = vmatmul.msk.f32.vlgmr.msrb.gmra.mxu1 %vm456_vm12, %v2595_v32 }
 0x8e6   :  { %v2627_v40 = vpop.permute.xlu1 %2626 }
 0x8e7   :  { %6748 = vmatmul.msk.f32.vlgmr.msrb.gmra.mxu0 %vm456_vm12, %v2627_v40 }
 0x8f4   :  { %v2287_v57 = vpop.f32.mrf.mxu0 }
 0x8f5   :  { %3212 = vst [vmem:[#allocation1 + $0x1] ss:$4 sm:$0xff] %v2287_v57  ;;  %v9696_v57 = vld [vmem:[#allocation10_spill] sm:$0xff] }
 0x8ff   :  { %v2374_v21 = vpop.f32.mrf.mxu1 }
 0x900   :  { %3218 = vst [vmem:[#allocation1 + $0x20] ss:$4 sm:$0xff] %v2374_v21 }
 0x90a   :  { %v2403_v2 = vpop.f32.mrf.mxu0  ;;  %v2316_v9 = vpop.f32.mrf.mxu2 }
 0x90b   :  { %3220 = vst [vmem:[#allocation1 + $0x21] ss:$4 sm:$0xff] %v2403_v2 }
 0x90c   :  { %3214 = vst [vmem:[#allocation1 + $0x2] ss:$4 sm:$0xff] %v2316_v9 }
 0x90f   :  { %v2345_v43 = vpop.f32.mrf.mxu3 }
 0x910   :  { %3216 = vst [vmem:[#allocation1 + $0x3] ss:$4 sm:$0xff] %v2345_v43 }
 0x912   :  { %v2432_v42 = vpop.f32.mrf.mxu2 }
 0x913   :  { %3222 = vst [vmem:[#allocation1 + $0x22] ss:$4 sm:$0xff] %v2432_v42 }
 0x914   :  { %v2525_v49 = vpop.f32.mrf.mxu0 }
 0x915   :  { %v2723_v63 = vsel %vm677_vm14, %v2525_v49, -inf }
 0x916   :  { %2724 = vmax.xlane.f32.xlu0 %v2723_v63 }
 0x91a   :  { %v2557_v15 = vpop.f32.mrf.mxu2 }
 0x91b   :  { %v2726_v14 = vsel %vm677_vm14, %v2557_v15, -inf }
 0x922   :  { %v2685_v37 = vpop.f32.mrf.mxu2 }
 0x923   :  { %v2738_v27 = vsel %vm677_vm14, %v2685_v37, -inf }
 0x94c   :  { %v2493_v28 = vpop.f32.mrf.mxu1 }
 0x94d   :  { %v2461_v38 = vpop.f32.mrf.mxu3  ;;  %v2720_v12 = vsel %vm677_vm14, %v2493_v28, -inf }
 0x94e   :  { %3224 = vst [vmem:[#allocation1 + $0x23] ss:$4 sm:$0xff] %v2461_v38  ;;  %2721 = vmax.xlane.f32.xlu1 %v2720_v12 }
 0x955   :  { %v2589_v22 = vpop.f32.mrf.mxu3 }
 0x956   :  { %v2729_v53 = vsel %vm677_vm14, %v2589_v22, -inf }
 0x95d   :  { %v8348_v50 = vpop.f32.mrf.mxu3 }
 0x95e   :  { %v2741_v46 = vsel %vm677_vm14, %v8348_v50, -inf }
 0x95f   :  { %2742 = vmax.xlane.f32.xlu1 %v2741_v46  ;;  %v8352_v7 = vpop.f32.mrf.mxu1 }
 0x960   :  { %v2732_v55 = vsel %vm677_vm14, %v8352_v7, -inf }
 0x961   :  { %2733 = vmax.xlane.f32.xlu0 %v2732_v55 }
 0x964   :  { %v2653_v47 = vpop.f32.mrf.mxu0 }
 0x965   :  { %v2735_v60 = vsel %vm677_vm14, %v2653_v47, -inf }
 0x966   :  { %2736 = vmax.xlane.f32.xlu2 %v2735_v60 }
 0x969   :  { %2727 = vmax.xlane.f32.xlu0 %v2726_v14  ;;  %v9697_v14 = vld [vmem:[#allocation11_spill] sm:$0xff] }
 0x96e   :  { %2739 = vmax.xlane.f32.xlu2 %v2738_v27 }
 0x976   :  { %2730 = vmax.xlane.f32.xlu2 %v2729_v53  ;;  %v3226_v53 = vld.sshfl [vmem:[#allocation1 + $0x20] sm:$0xff pattern:$0x73625140] }
 0x97d   :  { %2943 = vrot.lane.b32.xlu0 %v7947_v16, %s7288_s15 }
 0x989   :  { %v2725_v11 = vpop.xlane.xlu0 %2724 }
 0x98a   :  { %v2745_v26 = vsub.f32 %v2525_v49, %v2725_v11 }
 0x98c   :  { %v2754_v61 = vmul.f32 1.442695, %v2745_v26 }
 0x98e   :  { %3001 = vrot.lane.b32.xlu2 %v7954_v39, %s7288_s15  ;;  %7069 = vpow2.f32 %v2754_v61 }
 0x994   :  { %v8364_v20 = vpop.eup %7069 }
 0x995   :  { %v2771_v35 = vsel %vm677_vm14, %v8364_v20, 0.0 }
 0x996   :  { %2772 = vadd.xlane.f32.xlu1 %v2771_v35 }
 0x9c1   :  { %v2722_v44 = vpop.xlane.xlu1 %2721 }
 0x9c2   :  { %v2744_v17 = vsub.f32 %v2493_v28, %v2722_v44 }
 0x9c4   :  { %v2752_v36 = vmul.f32 1.442695, %v2744_v17 }
 0x9c6   :  { %7071 = vpow2.f32 %v2752_v36 }
 0x9cc   :  { %v8368_v18 = vpop.eup %7071 }
 0x9cd   :  { %v2768_v16 = vsel %vm677_vm14, %v8368_v18, 0.0 }
 0x9ce   :  { %2769 = vadd.xlane.f32.xlu2 %v2768_v16 }
 0x9d2   :  { %v2743_v32 = vpop.xlane.xlu1 %2742 }
 0x9d3   :  { %v2751_v46 = vsub.f32 %v8348_v50, %v2743_v32  ;;  %v9698_v50 = vld [vmem:[#allocation9_spill] sm:$0xff] }
 0x9d4   :  { %v2734_v58 = vpop.xlane.xlu0 %2733 }
 0x9d9   :  { %v2737_v10 = vpop.xlane.xlu2 %2736 }
 0x9da   :  { %v2749_v39 = vsub.f32 %v2653_v47, %v2737_v10 }
 0x9dc   :  { %v2762_v41 = vmul.f32 1.442695, %v2749_v39  ;;  %v2728_v62 = vpop.xlane.xlu0 %2727 }
 0x9dd   :  { %v2746_v8 = vsub.f32 %v2557_v15, %v2728_v62  ;;  %v2766_v15 = vmul.f32 1.442695, %v2751_v46 }
 0x9de   :  { %7073 = vpow2.f32 %v2762_v41 }
 0x9df   :  { %v2756_v6 = vmul.f32 1.442695, %v2746_v8 }
 0x9e1   :  { %7075 = vpow2.f32 %v2756_v6  ;;  %v2740_v48 = vpop.xlane.xlu2 %2739 }
 0x9e2   :  { %v2750_v23 = vsub.f32 %v2685_v37, %v2740_v48  ;;  %v3225_v37 = vld.sshfl [vmem:[#allocation1] sm:$0xff pattern:$0x73625140] }
 0x9e4   :  { %v8372_v29 = vpop.eup %7073  ;;  %v2764_v33 = vmul.f32 1.442695, %v2750_v23 }
 0x9e5   :  { %v2783_v45 = vsel %vm677_vm14, %v8372_v29, 0.0 }
 0x9e6   :  { %7077 = vpow2.f32 %v2764_v33  ;;  %2784 = vadd.xlane.f32.xlu2 %v2783_v45 }
 0x9e7   :  { %v8376_v1 = vpop.eup %7075 }
 0x9e8   :  { %v2774_v51 = vsel %vm677_vm14, %v8376_v1, 0.0 }
 0x9e9   :  { %v2731_v30 = vpop.xlane.xlu2 %2730  ;;  %2775 = vadd.xlane.f32.xlu1 %v2774_v51 }
 0x9ea   :  { %v2747_v13 = vsub.f32 %v2589_v22, %v2731_v30 }
 0x9ec   :  { %v8380_v3 = vpop.eup %7077  ;;  %v2758_v34 = vmul.f32 1.442695, %v2747_v13 }
 0x9ed   :  { %v2786_v59 = vsel %vm677_vm14, %v8380_v3, 0.0 }
 0x9ee   :  { %7079 = vpow2.f32 %v2758_v34  ;;  %2787 = vadd.xlane.f32.xlu2 %v2786_v59 }
 0x9ef   :  { %v2944_v52 = vpop.permute.xlu0 %2943 }
 0x9f0   :  { %6755 = vmatpush.msk.msra.mxu0 %vm878_vm13, %v2944_v52 }
 0x9f1   :  { %v3002_v56 = vpop.permute.xlu2 %3001 }
 0x9f2   :  { %6759 = vmatpush.msk.msrb.mxu3 %vm878_vm13, %v3002_v56 }
 0x9f4   :  { %v8386_v25 = vpop.eup %7079 }
 0x9f5   :  { %v2777_v54 = vsel %vm677_vm14, %v8386_v25, 0.0 }
 0x9f6   :  { %2778 = vadd.xlane.f32.xlu0 %v2777_v54 }
 0xa02   :  { %2914 = vrot.lane.b32.xlu1 %v7942_v19, %s7288_s15  ;;  %v2748_v19 = vsub.f32 %v8352_v7, %v2734_v58 }
 0xa04   :  { %v2760_v22 = vmul.f32 1.442695, %v2748_v19 }
 0xa06   :  { %3030 = vrot.lane.b32.xlu2 %v7957_v31, %s7288_s15 }
 0xa09   :  { %v2773_v40 = vpop.xlane.xlu1 %2772 }
 0xa0a   :  { %3088 = vrot.lane.b32.xlu0 %v9696_v57, %s7288_s15  ;;  %7081 = vrcp.f32 %v2773_v40  ;;  %v2818_v43 = vand.u32 2147483648, %v2773_v40  ;;  %v2816_v49 = vand.u32 2147483647, %v2773_v40  ;;  %vm2812_vm8 = vweird.f32 %v2773_v40 }
 0xa0b   :  { %7083 = vpow2.f32 %v2760_v22 }
 0xa0c   :  { %v2819_v28 = vor.u32 1.1754944e-38, %v2818_v43  ;;  %vm2817_vm0 = vcmp.eq.f32.partialorder %v2816_v49, 8.507059e+37  ;;  %7085 = vpow2.f32 %v2766_v15 }
 0xa10   :  { %v7082_v21 = vpop.eup %7081 }
 0xa11   :  { %v2808_v2 = vmul.f32 %v7082_v21, %v2773_v40  ;;  %vm2813_vm15 = vweird.f32 %v7082_v21  ;;  %v8400_v55 = vpop.eup %7083 }
 0xa12   :  { %vm2814_vm9 = vmor %vm2812_vm8, %vm2813_vm15  ;;  %v2780_v47 = vsel %vm677_vm14, %v8400_v55, 0.0  ;;  %v8404_v7 = vpop.eup %7085 }
 0xa13   :  { %v2809_v9 = vsub.f32 1.0, %v2808_v2  ;;  %v2789_v60 = vsel %vm677_vm14, %v8404_v7, 0.0 }
 0xa15   :  { %v2810_v42 = vmul.f32 %v7082_v21, %v2809_v9 }
 0xa17   :  { %v2811_v63 = vadd.f32 %v7082_v21, %v2810_v42 }
 0xa19   :  { %v2815_v38 = vsel %vm2814_vm9, %v7082_v21, %v2811_v63 }
 0xa1a   :  { %v2820_v31 = vsel %vm2817_vm0, %v2819_v28, %v2815_v38 }
 0xa1b   :  { %v2821_v12 = vmul.f32 %v8364_v20, %v2820_v31 }
 0xa1d   :  { %6756 = vmatmul.msk.f32.vlgmr.msra.gmra.mxu0 %vm874_vm3, %v2821_v12 }
 0xa2c   :  { %2781 = vadd.xlane.f32.xlu1 %v2780_v47 }
 0xa34   :  { %2790 = vadd.xlane.f32.xlu0 %v2789_v60 }
 0xa41   :  { %v2770_v27 = vpop.xlane.xlu2 %2769 }
 0xa42   :  { %7087 = vrcp.f32 %v2770_v27  ;;  %v2803_v48 = vand.u32 2147483648, %v2770_v27  ;;  %vm2797_vm10 = vweird.f32 %v2770_v27  ;;  %v2801_v45 = vand.u32 2147483647, %v2770_v27 }
 0xa44   :  { %v2804_v52 = vor.u32 1.1754944e-38, %v2803_v48  ;;  %vm2802_vm15 = vcmp.eq.f32.partialorder %v2801_v45, 8.507059e+37 }
 0xa45   :  { %3117 = vrot.lane.b32.xlu1 %v9697_v14, %s7288_s15 }
 0xa48   :  { %3059 = vrot.lane.b32.xlu0 %v9698_v50, %s7288_s15  ;;  %v7088_v26 = vpop.eup %7087 }
 0xa49   :  { %v2793_v20 = vmul.f32 %v7088_v26, %v2770_v27  ;;  %vm2798_vm2 = vweird.f32 %v7088_v26 }
 0xa4a   :  { %vm2799_vm11 = vmor %vm2797_vm10, %vm2798_vm2 }
 0xa4d   :  { %3196 = vrot.lane.b32.xlu1 %v8334_v4, %s7289_s16  ;;  %v2794_v4 = vsub.f32 1.0, %v2793_v20 }
 0xa4f   :  { %v2795_v36 = vmul.f32 %v7088_v26, %v2794_v4 }
 0xa50   :  { %3227 = vrot.lane.b32.xlu0 %v3225_v37, %s7290_s17 }
 0xa51   :  { %v2796_v8 = vadd.f32 %v7088_v26, %v2795_v36 }
 0xa53   :  { %v2800_v13 = vsel %vm2799_vm11, %v7088_v26, %v2796_v8 }
 0xa54   :  { %v2805_v32 = vsel %vm2802_vm15, %v2804_v52, %v2800_v13 }
 0xa55   :  { %3198 = vrot.lane.b32.xlu1 %v8344_v5, %s7289_s16  ;;  %v2806_v42 = vmul.f32 %v8368_v18, %v2805_v32 }
 0xa58   :  { %3229 = vrot.lane.b32.xlu0 %v3226_v53, %s7290_s17 }
 0xa59   :  { %v8418_v11 = vpop.xlane.xlu2 %2784 }
 0xa5c   :  { %v2776_v61 = vpop.xlane.xlu1 %2775 }
 0xa5d   :  { %7089 = vrcp.f32 %v2776_v61  ;;  %v2833_v58 = vand.u32 2147483648, %v2776_v61  ;;  %v2831_v5 = vand.u32 2147483647, %v2776_v61  ;;  %vm2827_vm5 = vweird.f32 %v2776_v61 }
 0xa5f   :  { %v2834_v23 = vor.u32 1.1754944e-38, %v2833_v58  ;;  %vm2832_vm7 = vcmp.eq.f32.partialorder %v2831_v5, 8.507059e+37 }
 0xa61   :  { %v2788_v35 = vpop.xlane.xlu2 %2787 }
 0xa62   :  { %7091 = vrcp.f32 %v2788_v35  ;;  %v2893_v57 = vand.u32 2147483648, %v2788_v35  ;;  %vm2887_vm9 = vweird.f32 %v2788_v35  ;;  %v2891_v2 = vand.u32 2147483647, %v2788_v35 }
 0xa63   :  { %v7090_v44 = vpop.eup %7089 }
 0xa64   :  { %v2823_v17 = vmul.f32 %v7090_v44, %v2776_v61  ;;  %vm2828_vm1 = vweird.f32 %v7090_v44  ;;  %v2894_v38 = vor.u32 1.1754944e-38, %v2893_v57 }
 0xa65   :  { %vm2829_vm6 = vmor %vm2827_vm5, %vm2828_vm1  ;;  %vm2892_vm5 = vcmp.eq.f32.partialorder %v2891_v2, 8.507059e+37 }
 0xa66   :  { %v2824_v16 = vsub.f32 1.0, %v2823_v17 }
 0xa68   :  { %v7092_v10 = vpop.eup %7091  ;;  %v2825_v39 = vmul.f32 %v7090_v44, %v2824_v16 }
 0xa69   :  { %v2883_v41 = vmul.f32 %v7092_v10, %v2788_v35  ;;  %v2779_v62 = vpop.xlane.xlu0 %2778  ;;  %vm2888_vm8 = vweird.f32 %v7092_v10  ;;  %v3031_v19 = vpop.permute.xlu2 %3030 }
 0xa6a   :  { %v2826_v6 = vadd.f32 %v7090_v44, %v2825_v39  ;;  %7093 = vrcp.f32 %v2779_v62  ;;  %v2848_v9 = vand.u32 2147483648, %v2779_v62  ;;  %vm8424_vm0 = vmor %vm2887_vm9, %vm2888_vm8  ;;  %v2846_v63 = vand.u32 2147483647, %v2779_v62 }
 0xa6b   :  { %v2884_v33 = vsub.f32 1.0, %v2883_v41  ;;  %vm2842_vm2 = vweird.f32 %v2779_v62  ;;  %7095 = vrcp.f32 %v8418_v11  ;;  %v2878_v41 = vand.u32 2147483648, %v8418_v11 }
 0xa6c   :  { %v2830_v51 = vsel %vm2829_vm6, %v7090_v44, %v2826_v6  ;;  %v2849_v18 = vor.u32 1.1754944e-38, %v2848_v9  ;;  %vm2847_vm10 = vcmp.eq.f32.partialorder %v2846_v63, 8.507059e+37  ;;  %v2876_v6 = vand.u32 2147483647, %v8418_v11  ;;  %v3272_v63 = vld [vmem:[%s9656_s4] sm:$0xff] }
 0xa6d   :  { %v2835_v30 = vsel %vm2832_vm7, %v2834_v23, %v2830_v51  ;;  %v2885_v34 = vmul.f32 %v7092_v10, %v2884_v33 }
 0xa6e   :  { %v2836_v59 = vmul.f32 %v8376_v1, %v2835_v30  ;;  %v2879_v30 = vor.u32 1.1754944e-38, %v2878_v41  ;;  %v9703_v41 = vld [vmem:[#allocation5_spill] sm:$0xff] }
 0xa6f   :  { %v2886_v40 = vadd.f32 %v7092_v10, %v2885_v34 }
 0xa70   :  { %v7094_v56 = vpop.eup %7093  ;;  %6758 = vmatmul.msk.f32.vlgmr.msrb.gmra.mxu2 %vm874_vm3, %v2836_v59 }
 0xa71   :  { %v2838_v54 = vmul.f32 %v7094_v56, %v2779_v62  ;;  %vm2843_vm1 = vweird.f32 %v7094_v56  ;;  %v2890_v28 = vsel %vm8424_vm0, %v7092_v10, %v2886_v40  ;;  %v7096_v37 = vpop.eup %7095  ;;  %vm2872_vm0 = vweird.f32 %v8418_v11 }
 0xa72   :  { %vm2844_vm6 = vmor %vm2842_vm2, %vm2843_vm1  ;;  %v2895_v22 = vsel %vm2892_vm5, %v2894_v38, %v2890_v28  ;;  %v2868_v27 = vmul.f32 %v7096_v37, %v8418_v11  ;;  %vm2873_vm9 = vweird.f32 %v7096_v37 }
 0xa73   :  { %v2839_v21 = vsub.f32 1.0, %v2838_v54  ;;  %v2896_v60 = vmul.f32 %v8380_v3, %v2895_v22  ;;  %vm8444_vm1 = vmor %vm2872_vm0, %vm2873_vm9 }
 0xa74   :  { %v2915_v43 = vpop.permute.xlu1 %2914  ;;  %v2869_v61 = vsub.f32 1.0, %v2868_v27  ;;  %v3307_v27 = vld [vmem:[%s9657_s5 + $0x8] sm:$0xff] }
 0xa75   :  { %v2840_v1 = vmul.f32 %v7094_v56, %v2839_v21  ;;  %6753 = vmatpush.msk.msra.mxu1 %vm878_vm13, %v2915_v43  ;;  %v3273_v43 = vld [vmem:[%s9656_s4 + $0x8] sm:$0xff] }
 0xa76   :  { %6754 = vmatmul.msk.f32.vlgmr.msra.gmra.mxu1 %vm874_vm3, %v2806_v42  ;;  %v2870_v44 = vmul.f32 %v7096_v37, %v2869_v61 }
 0xa77   :  { %v2841_v31 = vadd.f32 %v7094_v56, %v2840_v1  ;;  %6761 = vmatpush.msk.msrb.mxu1 %vm878_vm13, %v3031_v19 }
 0xa78   :  { %v2871_v39 = vadd.f32 %v7096_v37, %v2870_v44 }
 0xa79   :  { %v2845_v12 = vsel %vm2844_vm6, %v7094_v56, %v2841_v31  ;;  %vm2877_vm6 = vcmp.eq.f32.partialorder %v2876_v6, 8.507059e+37 }
 0xa7a   :  { %v2850_v46 = vsel %vm2847_vm10, %v2849_v18, %v2845_v12  ;;  %v2875_v51 = vsel %vm8444_vm1, %v7096_v37, %v2871_v39 }
 0xa7b   :  { %v2851_v15 = vmul.f32 %v8386_v25, %v2850_v46  ;;  %v2880_v59 = vsel %vm2877_vm6, %v2879_v30, %v2875_v51  ;;  %v3309_v46 = vld [vmem:[%s9657_s5 + $0x18] sm:$0xff]  ;;  %vm9665_vm6 = vcmask 523264  }
 0xa7c   :  { %v3089_v47 = vpop.permute.xlu0 %3088  ;;  %v2881_v32 = vmul.f32 %v8372_v29, %v2880_v59  ;;  %v3275_v29 = vld [vmem:[%s9656_s4 + $0x18] sm:$0xff] }
 0xa7d   :  { %6760 = vmatmul.msk.f32.vlgmr.msrb.gmra.mxu3 %vm874_vm3, %v2851_v15  ;;  %6765 = vmatpush.msk.msra.mxu2 %vm878_vm13, %v3089_v47  ;;  %v3308_v15 = vld [vmem:[%s9657_s5 + $0x10] sm:$0xff] }
 0xa7e   :  { %6766 = vmatmul.msk.f32.vlgmr.msra.gmra.mxu2 %vm874_vm3, %v2896_v60  ;;  %3295 = vmatpush.msra.mxu1 %v3275_v29 }
 0xa9a   :  { %v2967_v14 = vpop.f32.mrf.mxu0 }
 0xa9b   :  { %3243 = vst [vmem:[#allocation1 + $0x1] ss:$4 sm:$0xff] %v2967_v14 }
 0xa9f   :  { %v2782_v50 = vpop.xlane.xlu1 %2781 }
 0xaa0   :  { %7097 = vrcp.f32 %v2782_v50  ;;  %v2863_v20 = vand.u32 2147483648, %v2782_v50  ;;  %v2861_v4 = vand.u32 2147483647, %v2782_v50  ;;  %vm2857_vm11 = vweird.f32 %v2782_v50 }
 0xaa2   :  { %v2864_v16 = vor.u32 1.1754944e-38, %v2863_v20  ;;  %vm2862_vm8 = vcmp.eq.f32.partialorder %v2861_v4, 8.507059e+37 }
 0xaa6   :  { %v7098_v53 = vpop.eup %7097 }
 0xaa7   :  { %v2853_v25 = vmul.f32 %v7098_v53, %v2782_v50  ;;  %v2791_v26 = vpop.xlane.xlu0 %2790  ;;  %vm2858_vm7 = vweird.f32 %v7098_v53 }
 0xaa8   :  { %7099 = vrcp.f32 %v2791_v26  ;;  %vm2859_vm15 = vmor %vm2857_vm11, %vm2858_vm7  ;;  %v2908_v48 = vand.u32 2147483648, %v2791_v26  ;;  %v2906_v45 = vand.u32 2147483647, %v2791_v26  ;;  %vm2902_vm5 = vweird.f32 %v2791_v26 }
 0xaa9   :  { %v2854_v3 = vsub.f32 1.0, %v2853_v25  ;;  %vm3266_vm11 = vcmask 130048  }
 0xaaa   :  { %vm2907_vm7 = vcmp.eq.f32.partialorder %v2906_v45, 8.507059e+37 }
 0xaab   :  { %v2855_v35 = vmul.f32 %v7098_v53, %v2854_v3 }
 0xaad   :  { %v2856_v17 = vadd.f32 %v7098_v53, %v2855_v35 }
 0xaae   :  { %v7100_v36 = vpop.eup %7099 }
 0xaaf   :  { %v2860_v58 = vsel %vm2859_vm15, %v7098_v53, %v2856_v17  ;;  %v2898_v10 = vmul.f32 %v7100_v36, %v2791_v26  ;;  %vm2903_vm2 = vweird.f32 %v7100_v36  ;;  %vm9667_vm15 = vcmask 195584   ;;  %v3306_v53 = vld [vmem:[%s9657_s5] sm:$0xff] }
 0xab0   :  { %v2865_v5 = vsel %vm2862_vm8, %v2864_v16, %v2860_v58  ;;  %vm2904_vm10 = vmor %vm2902_vm5, %vm2903_vm2 }
 0xab1   :  { %v2899_v62 = vsub.f32 1.0, %v2898_v10  ;;  %v2866_v8 = vmul.f32 %v8400_v55, %v2865_v5  ;;  %v2909_v55 = vor.u32 1.1754944e-38, %v2908_v48 }
 0xab3   :  { %v2900_v33 = vmul.f32 %v7100_v36, %v2899_v62  ;;  %6762 = vmatmul.msk.f32.vlgmr.msrb.gmra.mxu1 %vm874_vm3, %v2866_v8 }
 0xab5   :  { %v2901_v13 = vadd.f32 %v7100_v36, %v2900_v33 }
 0xab7   :  { %v2905_v11 = vsel %vm2904_vm10, %v7100_v36, %v2901_v13  ;;  %v3118_v34 = vpop.permute.xlu1 %3117  ;;  %v3395_v13 = vld [vmem:[%s9658_s6 + $0x18] sm:$0xff] }
 0xab8   :  { %6767 = vmatpush.msk.msra.mxu3 %vm878_vm13, %v3118_v34  ;;  %v2910_v52 = vsel %vm2907_vm7, %v2909_v55, %v2905_v11  ;;  %3415 = vmatpush.msrb.mxu2 %v3395_v13  ;;  %v3394_v55 = vld [vmem:[%s9658_s6 + $0x10] sm:$0xff]  ;;  %v3393_v11 = vld [vmem:[%s9658_s6 + $0x8] sm:$0xff]  ;;  %v3392_v34 = vld [vmem:[%s9658_s6] sm:$0xff] }
 0xab9   :  { %v2911_v56 = vmul.f32 %v8404_v7, %v2910_v52  ;;  %v3274_v7 = vld [vmem:[%s9656_s4 + $0x10] sm:$0xff] }
 0xaba   :  { %v3060_v54 = vpop.permute.xlu0 %3059  ;;  %3296 = vmatpush.msra.mxu1 %v3274_v7  ;;  %3416 = vmatpush.msrb.mxu2 %v3394_v55 }
 0xabb   :  { %6763 = vmatpush.msk.msrb.mxu0 %vm878_vm13, %v3060_v54  ;;  %6768 = vmatmul.msk.f32.vlgmr.msra.gmra.mxu3 %vm874_vm3, %v2911_v56 }
 0xabc   :  { %6764 = vmatmul.msk.f32.vlgmr.msrb.gmra.mxu0 %vm874_vm3, %v2881_v32  ;;  %3297 = vmatpush.msra.mxu1 %v3273_v43 }
 0xabd   :  { %3329 = vmatpush.msra.mxu0 %v3309_v46  ;;  %3417 = vmatpush.msrb.mxu2 %v3393_v11 }
 0xabe   :  { %3298 = vmatpush.msra.mxu1 %v3272_v63  ;;  %v3434_v63 = vld [vmem:[%s9659_s7 + $0x30] sm:$0xff] }
 0xabf   :  { %v3197_v19 = vpop.permute.xlu1 %3196  ;;  %3330 = vmatpush.msra.mxu0 %v3308_v15  ;;  %3418 = vmatpush.msrb.mxu2 %v3392_v34  ;;  %v6782_v34 = vld [vmem:[%s9655_s3 + $0x38] sm:$0xff] }
 0xac0   :  { %v3264_v31 = vsel %vm456_vm12, %v8184_v0, %v3197_v19  ;;  %3546 = vmatpush.msrb.mxu1 %v6782_v34 }
 0xac1   :  { %3331 = vmatpush.msra.mxu0 %v3307_v27 }
 0xac2   :  { %v3228_v38 = vpop.permute.xlu0 %3227 }
 0xac3   :  { %v3267_v18 = vsel %vm3266_vm11, %v3264_v31, %v3228_v38  ;;  %3332 = vmatpush.msra.mxu0 %v3306_v53  ;;  %v3432_v31 = vld [vmem:[%s9659_s7 + $0x20] sm:$0xff]  ;;  %v3430_v53 = vld [vmem:[%s9659_s7 + $0x10] sm:$0xff] }
 0xac7   :  { %v3199_v47 = vpop.permute.xlu1 %3198 }
 0xac8   :  { %v3265_v0 = vsel %vm456_vm12, %v8187_v24, %v3199_v47  ;;  %v8496_v24 = vld [vmem:[%s9660_s8] sm:$0xff] }
 0xac9   :  { %v3276_v25 = vperm.slane %v8496_v24, 3  ;;  %v3310_v35 = vperm.slane %v8496_v24, 4  ;;  %v3389_v43 = vperm.slane %v8496_v24, 6 }
 0xaca   :  { %v3230_v60 = vpop.permute.xlu0 %3229 }
 0xacb   :  { %v3268_v14 = vsel %vm3266_vm11, %v3265_v0, %v3230_v60 }
 0xaf3   :  { %v2938_v40 = vpop.f32.mrf.mxu1  ;;  %v2996_v57 = vpop.f32.mrf.mxu2 }
 0xaf4   :  { %3241 = vst [vmem:[#allocation1] ss:$4 sm:$0xff] %v2938_v40 }
 0xaf5   :  { %3245 = vst [vmem:[#allocation1 + $0x2] ss:$4 sm:$0xff] %v2996_v57 }
 0xb00   :  { %v3025_v21 = vpop.f32.mrf.mxu3 }
 0xb01   :  { %3247 = vst [vmem:[#allocation1 + $0x3] ss:$4 sm:$0xff] %v3025_v21  ;;  %v3112_v2 = vpop.f32.mrf.mxu2 }
 0xb02   :  { %3253 = vst [vmem:[#allocation1 + $0x22] ss:$4 sm:$0xff] %v3112_v2 }
 0xb08   :  { %v3256_v9 = vld.sshfl [vmem:[#allocation1] sm:$0xff pattern:$0x73625140] }
 0xb09   :  { %3258 = vrot.lane.b32.xlu2 %v3256_v9, %s7291_s18  ;;  %v3386_v9 = vperm.slane %v8496_v24, 5 }
 0xb30   :  { %v3054_v42 = vpop.f32.mrf.mxu1 }
 0xb31   :  { %3249 = vst [vmem:[#allocation1 + $0x20] ss:$4 sm:$0xff] %v3054_v42 }
 0xb39   :  { %v3083_v49 = vpop.f32.mrf.mxu0 }
 0xb3a   :  { %3251 = vst [vmem:[#allocation1 + $0x21] ss:$4 sm:$0xff] %v3083_v49 }
 0xb3e   :  { %v3141_v1 = vpop.f32.mrf.mxu3 }
 0xb3f   :  { %3255 = vst [vmem:[#allocation1 + $0x23] ss:$4 sm:$0xff] %v3141_v1  ;;  %v3435_v1 = vld [vmem:[%s9659_s7 + $0x38] sm:$0xff] }
 0xb40   :  { %3452 = vmatpush.msrb.mxu3 %v3435_v1 }
 0xb42   :  { %3453 = vmatpush.msrb.mxu3 %v3434_v63 }
 0xb46   :  { %v3257_v28 = vld.sshfl [vmem:[#allocation1 + $0x20] sm:$0xff pattern:$0x73625140] }
 0xb47   :  { %3260 = vrot.lane.b32.xlu2 %v3257_v28, %s7291_s18  ;;  %v3433_v28 = vld [vmem:[%s9659_s7 + $0x28] sm:$0xff] }
 0xb48   :  { %3454 = vmatpush.msrb.mxu3 %v3433_v28 }
 0xb4a   :  { %3455 = vmatpush.msrb.mxu3 %v3432_v31 }
 0xb63   :  { %v3259_v12 = vpop.permute.xlu2 %3258 }
 0xb64   :  { %v3270_v22 = vsel %vm9667_vm15, %v3267_v18, %v3259_v12  ;;  %v3431_v12 = vld [vmem:[%s9659_s7 + $0x18] sm:$0xff] }
 0xb65   :  { %6769 = vmatmul.msk.f32.vlgmr.msra.gmra.mxu1 %vm9666_vm4, %v3270_v22  ;;  %3456 = vmatpush.msrb.mxu3 %v3431_v12 }
 0xb67   :  { %3457 = vmatpush.msrb.mxu3 %v3430_v53 }
 0xba1   :  { %v3261_v50 = vpop.permute.xlu2 %3260 }
 0xba2   :  { %v3271_v37 = vsel %vm9667_vm15, %v3268_v14, %v3261_v50 }
 0xba3   :  { %6770 = vmatmul.msk.f32.gmra.mxu1 %vm9666_vm4, %v3271_v37 }
 0xbe2   :  { %v3300_v26 = vpop.f32.mrf.mxu1 }
 0xbe3   :  { %v3301_v61 = vadd.f32 %v3300_v26, %v3276_v25  ;;  %v3428_v26 = vld [vmem:[%s9659_s7] sm:$0xff] }
 0xbe5   :  { %6771 = vmatmul.msk.f32.vlgmr.msra.gmra.mxu0 %vm9666_vm4, %v3301_v61 }
 0xc20   :  { %v3303_v3 = vpop.f32.mrf.mxu1 }
 0xc21   :  { %v3304_v20 = vadd.f32 %v3303_v3, %v3276_v25  ;;  %v3429_v25 = vld [vmem:[%s9659_s7 + $0x8] sm:$0xff] }
 0xc22   :  { %3458 = vmatpush.msrb.mxu3 %v3429_v25 }
 0xc23   :  { %6772 = vmatmul.msk.f32.gmra.mxu0 %vm9666_vm4, %v3304_v20 }
 0xc24   :  { %3459 = vmatpush.msrb.mxu3 %v3428_v26 }
 0xc62   :  { %v3334_v4 = vpop.f32.mrf.mxu0 }
 0xc63   :  { %v3335_v44 = vadd.f32 %v3334_v4, %v3310_v35 }
 0xc65   :  { %v3340_v17 = vadd.f32 %v3335_v44, %v3301_v61  ;;  %v3396_v61 = vperm.slane %v8496_v24, 7 }
 0xc67   :  { %v3342_v36 = vsel %vm9666_vm4, %v3340_v17, 0.0 }
 0xc68   :  { %3343 = vadd.xlane.f32.xlu1 %v3342_v36  ;;  %v6965_v36 = vld [vmem:[%s9660_s8 + $0x8] ss:$0 sm:$0xff] }
 0xca0   :  { %v3337_v16 = vpop.f32.mrf.mxu0 }
 0xca1   :  { %v3338_v58 = vadd.f32 %v3337_v16, %v3310_v35 }
 0xca3   :  { %v3341_v10 = vadd.f32 %v3338_v58, %v3304_v20 }
 0xca5   :  { %v3345_v39 = vsel %vm9666_vm4, %v3341_v10, 0.0 }
 0xca6   :  { %3346 = vadd.xlane.f32.xlu0 %v3345_v39 }
 0xcdb   :  { %v3344_v5 = vpop.xlane.xlu1 %3343 }
 0xcdc   :  { %v3348_v62 = vmul.f32 %v3344_v5, %v9703_v41 }
 0xcde   :  { %v3350_v8 = vsub.f32 %v3340_v17, %v3348_v62 }
 0xce0   :  { %v3352_v6 = vmul.f32 %v3350_v8, %v3350_v8 }
 0xce2   :  { %v3354_v48 = vsel %vm9666_vm4, %v3352_v6, 0.0 }
 0xce3   :  { %3355 = vadd.xlane.f32.xlu2 %v3354_v48 }
 0xd19   :  { %v3347_v23 = vpop.xlane.xlu0 %3346 }
 0xd1a   :  { %v3349_v33 = vmul.f32 %v3347_v23, %v9703_v41 }
 0xd1c   :  { %v3351_v45 = vsub.f32 %v3341_v10, %v3349_v33 }
 0xd1e   :  { %v3353_v51 = vmul.f32 %v3351_v45, %v3351_v45 }
 0xd20   :  { %v3357_v30 = vsel %vm9666_vm4, %v3353_v51, 0.0 }
 0xd21   :  { %3358 = vadd.xlane.f32.xlu1 %v3357_v30 }
 0xd56   :  { %v3356_v59 = vpop.xlane.xlu2 %3355 }
 0xd57   :  { %v3360_v52 = vmul.f32 %v3356_v59, %v9703_v41  ;;  %v6781_v59 = vld [vmem:[%s9655_s3 + $0x30] sm:$0xff] }
 0xd58   :  { %3547 = vmatpush.msrb.mxu1 %v6781_v59 }
 0xd59   :  { %v3362_v56 = vadd.f32 1e-05, %v3360_v52  ;;  %v6780_v52 = vld [vmem:[%s9655_s3 + $0x28] sm:$0xff] }
 0xd5a   :  { %3548 = vmatpush.msrb.mxu1 %v6780_v52 }
 0xd5b   :  { %7101 = vrsqrt.f32 %v3362_v56  ;;  %vm3370_vm9 = vweird.f32 %v3362_v56 }
 0xd61   :  { %v7102_v54 = vpop.eup %7101 }
 0xd62   :  { %v3365_v32 = vmul.f32 %v7102_v54, %v3362_v56  ;;  %vm3371_vm8 = vweird.f32 %v7102_v54  ;;  %v6779_v56 = vld [vmem:[%s9655_s3 + $0x20] sm:$0xff] }
 0xd63   :  { %vm3372_vm0 = vmor %vm3370_vm9, %vm3371_vm8  ;;  %3549 = vmatpush.msrb.mxu1 %v6779_v56 }
 0xd64   :  { %v3366_v40 = vmul.f32 %v7102_v54, %v3365_v32 }
 0xd66   :  { %v3367_v57 = vmul.f32 0.5, %v3366_v40 }
 0xd68   :  { %v3368_v21 = vsub.f32 1.5, %v3367_v57 }
 0xd6a   :  { %v3369_v2 = vmul.f32 %v7102_v54, %v3368_v21 }
 0xd6c   :  { %v3373_v29 = vsel %vm3372_vm0, %v7102_v54, %v3369_v2 }
 0xd6d   :  { %v3384_v7 = vmul.f32 %v3373_v29, %v3350_v8  ;;  %v6777_v29 = vld [vmem:[%s9660_s8 + $0x10] sm:$0xff] }
 0xd6e   :  { %v3519_v63 = vperm.slane %v6777_v29, 1 }
 0xd6f   :  { %v3387_v42 = vmul.f32 %v3386_v9, %v3384_v7 }
 0xd71   :  { %v3390_v49 = vadd.f32 %v3389_v43, %v3387_v42  ;;  %v3516_v42 = vperm.slane %v6777_v29, 0 }
 0xd73   :  { %6773 = vmatmul.msk.f32.vlgmr.msrb.gmra.mxu2 %vm9666_vm4, %v3390_v49 }
 0xd94   :  { %v3359_v19 = vpop.xlane.xlu1 %3358 }
 0xd95   :  { %v3361_v38 = vmul.f32 %v3359_v19, %v9703_v41 }
 0xd97   :  { %v3363_v18 = vadd.f32 1e-05, %v3361_v38 }
 0xd99   :  { %7103 = vrsqrt.f32 %v3363_v18  ;;  %vm3380_vm2 = vweird.f32 %v3363_v18 }
 0xd9f   :  { %v7104_v22 = vpop.eup %7103 }
 0xda0   :  { %v3375_v46 = vmul.f32 %v7104_v22, %v3363_v18  ;;  %vm3381_vm1 = vweird.f32 %v7104_v22 }
 0xda1   :  { %vm3382_vm5 = vmor %vm3380_vm2, %vm3381_vm1 }
 0xda2   :  { %v3376_v15 = vmul.f32 %v7104_v22, %v3375_v46 }
 0xda4   :  { %v3377_v47 = vmul.f32 0.5, %v3376_v15 }
 0xda6   :  { %v3378_v60 = vsub.f32 1.5, %v3377_v47 }
 0xda8   :  { %v3379_v0 = vmul.f32 %v7104_v22, %v3378_v60 }
 0xdaa   :  { %v3383_v14 = vsel %vm3382_vm5, %v7104_v22, %v3379_v0 }
 0xdab   :  { %v3385_v50 = vmul.f32 %v3383_v14, %v3351_v45 }
 0xdad   :  { %v3388_v37 = vmul.f32 %v3386_v9, %v3385_v50 }
 0xdaf   :  { %v3391_v27 = vadd.f32 %v3389_v43, %v3388_v37 }
 0xdb1   :  { %6774 = vmatmul.msk.f32.gmra.mxu2 %vm9666_vm4, %v3391_v27 }
 0xdf6   :  { %v3420_v3 = vpop.f32.mrf.mxu2 }
 0xdf7   :  { %v3421_v20 = vadd.f32 %v3420_v3, %v3396_v61 }
 0xdf9   :  { %v3426_v35 = vmax.f32 %v3421_v20, 0.0 }
 0xdfb   :  { %6775 = vmatmul.msk.f32.vlgmr.msrb.gmra.mxu3 %vm9665_vm6, %v3426_v35 }
 0xe34   :  { %v3423_v4 = vpop.f32.mrf.mxu2 }
 0xe35   :  { %v3424_v44 = vadd.f32 %v3423_v4, %v3396_v61 }
 0xe37   :  { %v3427_v17 = vmax.f32 %v3424_v44, 0.0 }
 0xe39   :  { %6776 = vmatmul.msk.f32.gmra.mxu3 %vm9665_vm6, %v3427_v17 }
 0xe7e   :  { %v3461_v16 = vpop.f32.mrf.mxu3 }
 0xe7f   :  { %v3462_v58 = vadd.f32 %v6965_v36, %v3461_v16 }
 0xe81   :  { %v3467_v10 = vadd.f32 %v3462_v58, %v3390_v49 }
 0xe83   :  { %v3472_v24 = vsel %vm9666_vm4, %v3467_v10, 0.0 }
 0xe84   :  { %3473 = vadd.xlane.f32.xlu0 %v3472_v24 }
 0xebc   :  { %v3464_v39 = vpop.f32.mrf.mxu3 }
 0xebd   :  { %v3465_v5 = vadd.f32 %v6965_v36, %v3464_v39 }
 0xebf   :  { %v3468_v62 = vadd.f32 %v3465_v5, %v3391_v27  ;;  %v3527_v27 = vperm.slane %v6777_v29, 2 }
 0xec1   :  { %v3475_v8 = vsel %vm9666_vm4, %v3468_v62, 0.0 }
 0xec2   :  { %3476 = vadd.xlane.f32.xlu2 %v3475_v8 }
 0xef7   :  { %v3474_v6 = vpop.xlane.xlu0 %3473 }
 0xef8   :  { %v3478_v48 = vmul.f32 %v3474_v6, %v9703_v41 }
 0xefa   :  { %v3480_v23 = vsub.f32 %v3467_v10, %v3478_v48 }
 0xefc   :  { %v3482_v33 = vmul.f32 %v3480_v23, %v3480_v23 }
 0xefe   :  { %v3484_v45 = vsel %vm9666_vm4, %v3482_v33, 0.0 }
 0xeff   :  { %3485 = vadd.xlane.f32.xlu1 %v3484_v45 }
 0xf35   :  { %v3477_v51 = vpop.xlane.xlu2 %3476 }
 0xf36   :  { %v3479_v30 = vmul.f32 %v3477_v51, %v9703_v41 }
 0xf38   :  { %v3481_v13 = vsub.f32 %v3468_v62, %v3479_v30 }
 0xf3a   :  { %v3483_v55 = vmul.f32 %v3481_v13, %v3481_v13 }
 0xf3c   :  { %v3487_v11 = vsel %vm9666_vm4, %v3483_v55, 0.0 }
 0xf3d   :  { %3488 = vadd.xlane.f32.xlu0 %v3487_v11 }
 0xf72   :  { %v3486_v54 = vpop.xlane.xlu1 %3485 }
 0xf73   :  { %v3490_v32 = vmul.f32 %v3486_v54, %v9703_v41 }
 0xf75   :  { %v3492_v40 = vadd.f32 1e-05, %v3490_v32 }
 0xf77   :  { %7105 = vrsqrt.f32 %v3492_v40  ;;  %vm3500_vm7 = vweird.f32 %v3492_v40 }
 0xf7d   :  { %v7106_v57 = vpop.eup %7105 }
 0xf7e   :  { %v3495_v21 = vmul.f32 %v7106_v57, %v3492_v40  ;;  %vm3501_vm10 = vweird.f32 %v7106_v57 }
 0xf7f   :  { %vm3502_vm8 = vmor %vm3500_vm7, %vm3501_vm10 }
 0xf80   :  { %v3496_v2 = vmul.f32 %v7106_v57, %v3495_v21 }
 0xf82   :  { %v3497_v9 = vmul.f32 0.5, %v3496_v2 }
 0xf84   :  { %v3498_v7 = vsub.f32 1.5, %v3497_v9 }
 0xf86   :  { %v3499_v43 = vmul.f32 %v7106_v57, %v3498_v7 }
 0xf88   :  { %v3503_v49 = vsel %vm3502_vm8, %v7106_v57, %v3499_v43 }
 0xf89   :  { %v3514_v1 = vmul.f32 %v3503_v49, %v3480_v23 }
 0xf8b   :  { %v3517_v28 = vmul.f32 %v3516_v42, %v3514_v1 }
 0xf8d   :  { %v3520_v19 = vadd.f32 %v3519_v63, %v3517_v28 }
 0xf8f   :  { %6783 = vmatmul.msk.f32.vlgmr.msrb.gmra.mxu1 %vm9666_vm4, %v3520_v19 }
 0xfb0   :  { %v3489_v38 = vpop.xlane.xlu0 %3488 }
 0xfb1   :  { %v3491_v31 = vmul.f32 %v3489_v38, %v9703_v41 }
 0xfb3   :  { %v3493_v18 = vadd.f32 1e-05, %v3491_v31 }
 0xfb5   :  { %7107 = vrsqrt.f32 %v3493_v18  ;;  %vm3510_vm0 = vweird.f32 %v3493_v18 }
 0xfbb   :  { %v7108_v12 = vpop.eup %7107 }
 0xfbc   :  { %v3505_v22 = vmul.f32 %v7108_v12, %v3493_v18  ;;  %vm3511_vm9 = vweird.f32 %v7108_v12 }
 0xfbd   :  { %vm3512_vm1 = vmor %vm3510_vm0, %vm3511_vm9 }
 0xfbe   :  { %v3506_v46 = vmul.f32 %v7108_v12, %v3505_v22 }
 0xfc0   :  { %v3507_v15 = vmul.f32 0.5, %v3506_v46 }
 0xfc2   :  { %v3508_v47 = vsub.f32 1.5, %v3507_v15 }
 0xfc4   :  { %v3509_v60 = vmul.f32 %v7108_v12, %v3508_v47 }
 0xfc6   :  { %v3513_v0 = vsel %vm3512_vm1, %v7108_v12, %v3509_v60 }
 0xfc7   :  { %v3515_v14 = vmul.f32 %v3513_v0, %v3481_v13 }
 0xfc9   :  { %v3518_v50 = vmul.f32 %v3516_v42, %v3515_v14 }
 0xfcb   :  { %v3521_v37 = vadd.f32 %v3519_v63, %v3518_v50 }
 0xfcd   :  { %6784 = vmatmul.msk.f32.gmra.mxu1 %vm9666_vm4, %v3521_v37 }
0x100c   :  { %v3551_v53 = vpop.f32.mrf.mxu1 }
0x100d   :  { %v8581_v25 = vadd.f32 %v3551_v53, %v3527_v27 }
0x100f   :  { %3565 = vst [vmem:[#allocation1] ss:$4 sm:$0xff] %v8581_v25  ;;  %v8585_v26 = vrot.slane %v8581_v25, 2  ;;  %v8590_v3 = vrot.slane %v8581_v25, 4  ;;  %v8595_v35 = vrot.slane %v8581_v25, 6 }
0x1016   :  { %v3566_v61 = vld.sshfl [vmem:[#allocation1] sm:$0xff pattern:$0x73625140] }
0x1017   :  { %3567 = vrot.lane.b32.xlu0 %v3566_v61, %s7278_s27  ;;  %3593 = vst [vmem:[#allocation1] ss:$4 sm:$0xff] %v8585_v26 }
0x101e   :  { %v3594_v20 = vld.sshfl [vmem:[#allocation1] sm:$0xff pattern:$0x73625140] }
0x101f   :  { %3595 = vrot.lane.b32.xlu2 %v3594_v20, %s7278_s27  ;;  %3621 = vst [vmem:[#allocation1] ss:$4 sm:$0xff] %v8590_v3 }
0x1026   :  { %v3622_v4 = vld.sshfl [vmem:[#allocation1] sm:$0xff pattern:$0x73625140] }
0x1027   :  { %3649 = vst [vmem:[#allocation1] ss:$4 sm:$0xff] %v8595_v35 }
0x102e   :  { %v3650_v44 = vld.sshfl [vmem:[#allocation1] sm:$0xff pattern:$0x73625140] }
0x102f   :  { %3651 = vrot.lane.b32.xlu1 %v3650_v44, %s7278_s27 }
0x1037   :  { %3623 = vrot.lane.b32.xlu1 %v3622_v4, %s7278_s27 }
0x104a   :  { %v3554_v17 = vpop.f32.mrf.mxu1 }
0x104b   :  { %v8600_v36 = vadd.f32 %v3554_v17, %v3527_v27 }
0x104d   :  { %3677 = vst [vmem:[#allocation1] ss:$4 sm:$0xff] %v8600_v36  ;;  %v8604_v16 = vrot.slane %v8600_v36, 2  ;;  %v8609_v10 = vrot.slane %v8600_v36, 4  ;;  %v8614_v39 = vrot.slane %v8600_v36, 6 }
0x1054   :  { %v3678_v58 = vld.sshfl [vmem:[#allocation1] sm:$0xff pattern:$0x73625140] }
0x1055   :  { %3679 = vrot.lane.b32.xlu2 %v3678_v58, %s7278_s27  ;;  %3705 = vst [vmem:[#allocation1] ss:$4 sm:$0xff] %v8604_v16 }
0x105c   :  { %v3706_v24 = vld.sshfl [vmem:[#allocation1] sm:$0xff pattern:$0x73625140] }
0x105d   :  { %3707 = vrot.lane.b32.xlu2 %v3706_v24, %s7278_s27  ;;  %3733 = vst [vmem:[#allocation1] ss:$4 sm:$0xff] %v8609_v10 }
0x1064   :  { %v3734_v5 = vld.sshfl [vmem:[#allocation1] sm:$0xff pattern:$0x73625140] }
0x1065   :  { %3761 = vst [vmem:[#allocation1] ss:$4 sm:$0xff] %v8614_v39 }
0x106c   :  { %v3762_v62 = vld.sshfl [vmem:[#allocation1] sm:$0xff pattern:$0x73625140] }
0x106d   :  { %3763 = vrot.lane.b32.xlu0 %v3762_v62, %s7278_s27  ;;  %3981 = vst [vmem:[#allocation1] ss:$4 sm:$0xff] %v8581_v25 }
0x1074   :  { %v3982_v8 = vld.sshfl [vmem:[#allocation1] sm:$0xff pattern:$0x73625140] }
0x1075   :  { %3735 = vrot.lane.b32.xlu0 %v3734_v5, %s7278_s27  ;;  %3983 = vrot.lane.b32.xlu1 %v3982_v8, %s7279_s28  ;;  %4010 = vst [vmem:[#allocation1] ss:$4 sm:$0xff] %v8585_v26 }
0x1079   :  { %v3596_v6 = vpop.permute.xlu2 %3595 }
0x107a   :  { %6787 = vmatpush.xpose.msk.msra.mxu2 %vm456_vm12, %v3596_v6 }
0x107c   :  { %v8623_v48 = vld.sshfl [vmem:[#allocation1] sm:$0xff pattern:$0x73625140] }
0x107d   :  { %6788 = vmatmul.msk.f32.vlgmr.msra.gmra.mxu2 %vm456_vm12, %v8585_v26  ;;  %4039 = vst [vmem:[#allocation1] ss:$4 sm:$0xff] %v8590_v3 }
0x1084   :  { %v8628_v23 = vld.sshfl [vmem:[#allocation1] sm:$0xff pattern:$0x73625140] }
0x1085   :  { %4068 = vst [vmem:[#allocation1] ss:$4 sm:$0xff] %v8595_v35 }
0x1089   :  { %v3568_v33 = vpop.permute.xlu0 %3567 }
0x108a   :  { %6785 = vmatpush.xpose.msk.msrb.mxu0 %vm456_vm12, %v3568_v33 }
0x108c   :  { %v4069_v45 = vld.sshfl [vmem:[#allocation1] sm:$0xff pattern:$0x73625140] }
0x108d   :  { %4070 = vrot.lane.b32.xlu2 %v4069_v45, %s7279_s28  ;;  %4097 = vst [vmem:[#allocation1] ss:$4 sm:$0xff] %v8600_v36  ;;  %6786 = vmatmul.msk.f32.vlgmr.msrb.gmra.mxu0 %vm456_vm12, %v8581_v25 }
0x1094   :  { %v4098_v51 = vld.sshfl [vmem:[#allocation1] sm:$0xff pattern:$0x73625140] }
0x1095   :  { %4099 = vrot.lane.b32.xlu0 %v4098_v51, %s7279_s28  ;;  %4126 = vst [vmem:[#allocation1] ss:$4 sm:$0xff] %v8604_v16 }
0x109c   :  { %v8638_v30 = vld.sshfl [vmem:[#allocation1] sm:$0xff pattern:$0x73625140] }
0x109d   :  { %4155 = vst [vmem:[#allocation1] ss:$4 sm:$0xff] %v8609_v10 }
0x10a1   :  { %v3652_v13 = vpop.permute.xlu1 %3651 }
0x10a2   :  { %6791 = vmatpush.xpose.msk.msrb.mxu2 %vm456_vm12, %v3652_v13 }
0x10a4   :  { %v8642_v55 = vld.sshfl [vmem:[#allocation1] sm:$0xff pattern:$0x73625140] }
0x10a5   :  { %6792 = vmatmul.msk.f32.vlgmr.msrb.gmra.mxu2 %vm456_vm12, %v8595_v35  ;;  %4184 = vst [vmem:[#allocation1] ss:$4 sm:$0xff] %v8614_v39 }
0x10a9   :  { %v3624_v11 = vpop.permute.xlu1 %3623 }
0x10aa   :  { %6789 = vmatpush.xpose.msk.msra.mxu0 %vm456_vm12, %v3624_v11 }
0x10ac   :  { %v4185_v34 = vld.sshfl [vmem:[#allocation1] sm:$0xff pattern:$0x73625140] }
0x10ad   :  { %4186 = vrot.lane.b32.xlu2 %v4185_v34, %s7279_s28  ;;  %4213 = vst [vmem:[#allocation1] ss:$4 sm:$0xff] %v8581_v25  ;;  %6790 = vmatmul.msk.f32.vlgmr.msra.gmra.mxu0 %vm456_vm12, %v8590_v3 }
0x10af   :  { %v3680_v59 = vpop.permute.xlu2 %3679 }
0x10b0   :  { %6793 = vmatpush.xpose.msk.msra.mxu3 %vm456_vm12, %v3680_v59 }
0x10b3   :  { %6794 = vmatmul.msk.f32.vlgmr.msra.gmra.mxu3 %vm456_vm12, %v8600_v36 }
0x10b4   :  { %v4214_v52 = vld.sshfl [vmem:[#allocation1] sm:$0xff pattern:$0x73625140] }
0x10b5   :  { %4215 = vrot.lane.b32.xlu0 %v4214_v52, %s7280_s29  ;;  %4217 = vst [vmem:[#allocation1] ss:$4 sm:$0xff] %v8581_v25 }
0x10b7   :  { %v3708_v56 = vpop.permute.xlu2 %3707 }
0x10b8   :  { %6795 = vmatpush.xpose.msk.msra.mxu1 %vm456_vm12, %v3708_v56 }
0x10bb   :  { %6796 = vmatmul.msk.f32.vlgmr.msra.gmra.mxu1 %vm456_vm12, %v8604_v16 }
0x10bc   :  { %v4218_v54 = vld.sshfl [vmem:[#allocation1] sm:$0xff pattern:$0x73625140] }
0x10bd   :  { %4219 = vrot.lane.b32.xlu0 %v4218_v54, %s7281_s30  ;;  %4245 = vst [vmem:[#allocation1] ss:$4 sm:$0xff] %v8585_v26 }
0x10c4   :  { %v8662_v32 = vld.sshfl [vmem:[#allocation1] sm:$0xff pattern:$0x73625140] }
0x10c5   :  { %4249 = vst [vmem:[#allocation1] ss:$4 sm:$0xff] %v8585_v26 }
0x10cc   :  { %v8665_v40 = vld.sshfl [vmem:[#allocation1] sm:$0xff pattern:$0x73625140] }
0x10cd   :  { %4277 = vst [vmem:[#allocation1] ss:$4 sm:$0xff] %v8590_v3 }
0x10d4   :  { %v8668_v57 = vld.sshfl [vmem:[#allocation1] sm:$0xff pattern:$0x73625140] }
0x10d5   :  { %4281 = vst [vmem:[#allocation1] ss:$4 sm:$0xff] %v8590_v3 }
0x10dc   :  { %v8671_v21 = vld.sshfl [vmem:[#allocation1] sm:$0xff pattern:$0x73625140] }
0x10dd   :  { %4309 = vst [vmem:[#allocation1] ss:$4 sm:$0xff] %v8595_v35 }
0x10df   :  { %v3764_v2 = vpop.permute.xlu0 %3763 }
0x10e0   :  { %6799 = vmatpush.xpose.msk.msra.mxu2 %vm456_vm12, %v3764_v2 }
0x10e3   :  { %6800 = vmatmul.msk.f32.vlgmr.msra.gmra.mxu2 %vm456_vm12, %v8614_v39 }
0x10e4   :  { %v4310_v9 = vld.sshfl [vmem:[#allocation1] sm:$0xff pattern:$0x73625140] }
0x10e5   :  { %4311 = vrot.lane.b32.xlu0 %v4310_v9, %s7280_s29  ;;  %4313 = vst [vmem:[#allocation1] ss:$4 sm:$0xff] %v8595_v35 }
0x10e7   :  { %v3984_v29 = vpop.permute.xlu1 %3983  ;;  %v4071_v7 = vpop.permute.xlu2 %4070 }
0x10e8   :  { %v3736_v43 = vpop.permute.xlu0 %3735  ;;  %6801 = vmatpush.msk.msrb.mxu3 %vm878_vm13, %v3984_v29  ;;  %6807 = vmatpush.msk.msrb.mxu2 %vm878_vm13, %v4071_v7 }
0x10e9   :  { %6797 = vmatpush.xpose.msk.msrb.mxu0 %vm456_vm12, %v3736_v43 }
0x10ec   :  { %6798 = vmatmul.msk.f32.vlgmr.msrb.gmra.mxu0 %vm456_vm12, %v8609_v10  ;;  %v4314_v42 = vld.sshfl [vmem:[#allocation1] sm:$0xff pattern:$0x73625140] }
0x10ed   :  { %4315 = vrot.lane.b32.xlu0 %v4314_v42, %s7281_s30  ;;  %4341 = vst [vmem:[#allocation1] ss:$4 sm:$0xff] %v8600_v36 }
0x10f4   :  { %v8686_v49 = vld.sshfl [vmem:[#allocation1] sm:$0xff pattern:$0x73625140] }
0x10f5   :  { %4345 = vst [vmem:[#allocation1] ss:$4 sm:$0xff] %v8600_v36 }
0x10fc   :  { %v4346_v1 = vld.sshfl [vmem:[#allocation1] sm:$0xff pattern:$0x73625140] }
0x10fd   :  { %4347 = vrot.lane.b32.xlu1 %v4346_v1, %s7281_s30  ;;  %4373 = vst [vmem:[#allocation1] ss:$4 sm:$0xff] %v8604_v16 }
0x1100   :  { %v8691_v63 = vpop.f32.mrf.mxu2 }
0x1101   :  { %v3792_v28 = vsel %vm677_vm14, %v8691_v63, -inf }
0x1102   :  { %3793 = vmax.xlane.f32.xlu2 %v3792_v28 }
0x1104   :  { %v8695_v19 = vld.sshfl [vmem:[#allocation1] sm:$0xff pattern:$0x73625140] }
0x1105   :  { %4377 = vst [vmem:[#allocation1] ss:$4 sm:$0xff] %v8604_v16 }
0x1107   :  { %v4187_v38 = vpop.permute.xlu2 %4186  ;;  %v4100_v31 = vpop.permute.xlu0 %4099 }
0x1108   :  { %6809 = vmatpush.msk.msra.mxu3 %vm878_vm13, %v4100_v31  ;;  %6815 = vmatpush.msk.msra.mxu2 %vm878_vm13, %v4187_v38 }
0x110a   :  { %v3590_v46 = vpop.f32.mrf.mxu0 }
0x110b   :  { %v3789_v47 = vsel %vm677_vm14, %v3590_v46, -inf }
0x110c   :  { %v8700_v18 = vld.sshfl [vmem:[#allocation1] sm:$0xff pattern:$0x73625140] }
0x110d   :  { %4405 = vst [vmem:[#allocation1] ss:$4 sm:$0xff] %v8609_v10 }
0x1114   :  { %v8703_v12 = vld.sshfl [vmem:[#allocation1] sm:$0xff pattern:$0x73625140] }
0x1115   :  { %4409 = vst [vmem:[#allocation1] ss:$4 sm:$0xff] %v8609_v10 }
0x111c   :  { %v8706_v22 = vld.sshfl [vmem:[#allocation1] sm:$0xff pattern:$0x73625140] }
0x111d   :  { %4437 = vst [vmem:[#allocation1] ss:$4 sm:$0xff] %v8614_v39 }
0x1124   :  { %v8709_v15 = vld.sshfl [vmem:[#allocation1] sm:$0xff pattern:$0x73625140] }
0x1125   :  { %4441 = vst [vmem:[#allocation1] ss:$4 sm:$0xff] %v8614_v39 }
0x1127   :  { %3790 = vmax.xlane.f32.xlu1 %v3789_v47  ;;  %v8787_v43 = vpop.permute.xlu0 %4215 }
0x1128   :  { %v3674_v60 = vpop.f32.mrf.mxu2 }
0x1129   :  { %v3798_v0 = vsel %vm677_vm14, %v3674_v60, -inf }
0x112a   :  { %3799 = vmax.xlane.f32.xlu2 %v3798_v0  ;;  %v8732_v4 = vpop.f32.mrf.mxu0 }
0x112b   :  { %v3795_v17 = vsel %vm677_vm14, %v8732_v4, -inf }
0x112c   :  { %v4442_v14 = vld.sshfl [vmem:[#allocation1] sm:$0xff pattern:$0x73625140] }
0x112d   :  { %4443 = vrot.lane.b32.xlu0 %v4442_v14, %s7281_s30  ;;  %4661 = vst [vmem:[#allocation1] ss:$4 sm:$0xff] %v8581_v25 }
0x1134   :  { %v8716_v50 = vld.sshfl [vmem:[#allocation1] sm:$0xff pattern:$0x73625140] }
0x1135   :  { %4690 = vst [vmem:[#allocation1] ss:$4 sm:$0xff] %v8585_v26 }
0x1136   :  { %v8739_v58 = vpop.f32.mrf.mxu3 }
0x1137   :  { %v3801_v5 = vsel %vm677_vm14, %v8739_v58, -inf }
0x1138   :  { %v8719_v37 = vpop.f32.mrf.mxu1 }
0x1139   :  { %v3804_v27 = vsel %vm677_vm14, %v8719_v37, -inf }
0x113a   :  { %3805 = vmax.xlane.f32.xlu1 %v3804_v27 }
0x113c   :  { %v8723_v53 = vld.sshfl [vmem:[#allocation1] sm:$0xff pattern:$0x73625140] }
0x113d   :  { %4719 = vst [vmem:[#allocation1] ss:$4 sm:$0xff] %v8590_v3 }
0x1144   :  { %v8726_v61 = vld.sshfl [vmem:[#allocation1] sm:$0xff pattern:$0x73625140] }
0x1145   :  { %4748 = vst [vmem:[#allocation1] ss:$4 sm:$0xff] %v8595_v35 }
0x114c   :  { %v8729_v20 = vld.sshfl [vmem:[#allocation1] sm:$0xff pattern:$0x73625140] }
0x114d   :  { %4777 = vst [vmem:[#allocation1] ss:$4 sm:$0xff] %v8600_v36 }
0x1154   :  { %v8734_v44 = vld.sshfl [vmem:[#allocation1] sm:$0xff pattern:$0x73625140] }
0x1155   :  { %4806 = vst [vmem:[#allocation1] ss:$4 sm:$0xff] %v8604_v16 }
0x1157   :  { %3796 = vmax.xlane.f32.xlu0 %v3795_v17 }
0x115c   :  { %v8741_v24 = vld.sshfl [vmem:[#allocation1] sm:$0xff pattern:$0x73625140] }
0x115d   :  { %4835 = vst [vmem:[#allocation1] ss:$4 sm:$0xff] %v8609_v10 }
0x115f   :  { %3802 = vmax.xlane.f32.xlu0 %v3801_v5 }
0x1164   :  { %v8746_v62 = vld.sshfl [vmem:[#allocation1] sm:$0xff pattern:$0x73625140] }
0x1165   :  { %4864 = vst [vmem:[#allocation1] ss:$4 sm:$0xff] %v8614_v39 }
0x1166   :  { %v8749_v8 = vpop.f32.mrf.mxu2 }
0x1167   :  { %v3810_v6 = vsel %vm677_vm14, %v8749_v8, -inf }
0x1168   :  { %3811 = vmax.xlane.f32.xlu1 %v3810_v6 }
0x1169   :  { %v8753_v33 = vpop.f32.mrf.mxu0 }
0x116a   :  { %v3807_v45 = vsel %vm677_vm14, %v8753_v33, -inf }
0x116b   :  { %3808 = vmax.xlane.f32.xlu2 %v3807_v45 }
0x116c   :  { %v8757_v51 = vld.sshfl [vmem:[#allocation1] sm:$0xff pattern:$0x73625140] }
0x116d   :  { %4893 = vst [vmem:[#allocation1] ss:$4 sm:$0xff] %v8581_v25 }
0x1173   :  { %4041 = vrot.lane.b32.xlu0 %v8628_v23, %s7279_s28  ;;  %v8778_v23 = vpop.permute.xlu1 %4347 }
0x1174   :  { %v8762_v13 = vld.sshfl [vmem:[#allocation1] sm:$0xff pattern:$0x73625140] }
0x1175   :  { %4897 = vst [vmem:[#allocation1] ss:$4 sm:$0xff] %v8581_v25  ;;  %v3794_v56 = vpop.xlane.xlu2 %3793 }
0x117b   :  { %4343 = vrot.lane.b32.xlu0 %v8686_v49, %s7280_s29 }
0x117c   :  { %v8767_v11 = vld.sshfl [vmem:[#allocation1] sm:$0xff pattern:$0x73625140] }
0x117d   :  { %4925 = vst [vmem:[#allocation1] ss:$4 sm:$0xff] %v8585_v26 }
0x1183   :  { %4012 = vrot.lane.b32.xlu2 %v8623_v48, %s7279_s28  ;;  %v3814_v48 = vsub.f32 %v8691_v63, %v3794_v56 }
0x1184   :  { %v8772_v34 = vld.sshfl [vmem:[#allocation1] sm:$0xff pattern:$0x73625140] }
0x1185   :  { %4929 = vst [vmem:[#allocation1] ss:$4 sm:$0xff] %v8585_v26  ;;  %v3823_v1 = vmul.f32 1.442695, %v3814_v48 }
0x118c   :  { %v8775_v59 = vld.sshfl [vmem:[#allocation1] sm:$0xff pattern:$0x73625140] }
0x118d   :  { %4957 = vst [vmem:[#allocation1] ss:$4 sm:$0xff] %v8590_v3 }
0x1194   :  { %v8780_v52 = vld.sshfl [vmem:[#allocation1] sm:$0xff pattern:$0x73625140] }
0x1195   :  { %4961 = vst [vmem:[#allocation1] ss:$4 sm:$0xff] %v8590_v3 }
0x119a   :  { %v3791_v54 = vpop.xlane.xlu1 %3790 }
0x119b   :  { %v3813_v2 = vsub.f32 %v3590_v46, %v3791_v54  ;;  %v8798_v46 = vpop.permute.xlu0 %4219 }
0x119c   :  { %v8783_v9 = vld.sshfl [vmem:[#allocation1] sm:$0xff pattern:$0x73625140] }
0x119d   :  { %v3821_v29 = vmul.f32 1.442695, %v3813_v2  ;;  %v3800_v7 = vpop.xlane.xlu2 %3799  ;;  %4989 = vst [vmem:[#allocation1] ss:$4 sm:$0xff] %v8595_v35 }
0x119e   :  { %v3816_v42 = vsub.f32 %v3674_v60, %v3800_v7 }
0x119f   :  { %7109 = vpow2.f32 %v3821_v29 }
0x11a0   :  { %v3827_v49 = vmul.f32 1.442695, %v3816_v42 }
0x11a2   :  { %7111 = vpow2.f32 %v3827_v49 }
0x11a3   :  { %7113 = vpow2.f32 %v3823_v1  ;;  %v8809_v27 = vpop.permute.xlu0 %4311 }
0x11a4   :  { %v8789_v28 = vld.sshfl [vmem:[#allocation1] sm:$0xff pattern:$0x73625140] }
0x11a5   :  { %v8791_v38 = vpop.eup %7109  ;;  %4993 = vst [vmem:[#allocation1] ss:$4 sm:$0xff] %v8595_v35 }
0x11a6   :  { %v3837_v63 = vsel %vm677_vm14, %v8791_v38, 0.0 }
0x11a7   :  { %3838 = vadd.xlane.f32.xlu0 %v3837_v63 }
0x11a8   :  { %v8796_v31 = vpop.eup %7111 }
0x11a9   :  { %v3846_v47 = vsel %vm677_vm14, %v8796_v31, 0.0  ;;  %v8802_v60 = vpop.eup %7113 }
0x11aa   :  { %3847 = vadd.xlane.f32.xlu1 %v3846_v47  ;;  %v3840_v14 = vsel %vm677_vm14, %v8802_v60, 0.0 }
0x11ab   :  { %v8814_v5 = vpop.permute.xlu0 %4315 }
0x11ac   :  { %v8804_v0 = vld.sshfl [vmem:[#allocation1] sm:$0xff pattern:$0x73625140] }
0x11ad   :  { %5021 = vst [vmem:[#allocation1] ss:$4 sm:$0xff] %v8600_v36  ;;  %v3806_v42 = vpop.xlane.xlu1 %3805 }
0x11ae   :  { %v3818_v47 = vsub.f32 %v8719_v37, %v3806_v42 }
0x11af   :  { %3841 = vadd.xlane.f32.xlu0 %v3840_v14 }
0x11b3   :  { %v8819_v45 = vpop.permute.xlu0 %4443 }
0x11b4   :  { %v8811_v17 = vld.sshfl [vmem:[#allocation1] sm:$0xff pattern:$0x73625140] }
0x11b5   :  { %5025 = vst [vmem:[#allocation1] ss:$4 sm:$0xff] %v8600_v36 }
0x11bc   :  { %v8816_v6 = vld.sshfl [vmem:[#allocation1] sm:$0xff pattern:$0x73625140] }
0x11bd   :  { %5053 = vst [vmem:[#allocation1] ss:$4 sm:$0xff] %v8604_v16 }
0x11c3   :  { %4439 = vrot.lane.b32.xlu1 %v8709_v15, %s7280_s29 }
0x11c4   :  { %v8823_v56 = vld.sshfl [vmem:[#allocation1] sm:$0xff pattern:$0x73625140] }
0x11c5   :  { %5057 = vst [vmem:[#allocation1] ss:$4 sm:$0xff] %v8604_v16 }
0x11ca   :  { %v3797_v54 = vpop.xlane.xlu0 %3796 }
0x11cb   :  { %v3815_v2 = vsub.f32 %v8732_v4, %v3797_v54 }
0x11cc   :  { %v8827_v48 = vld.sshfl [vmem:[#allocation1] sm:$0xff pattern:$0x73625140] }
0x11cd   :  { %v3825_v29 = vmul.f32 1.442695, %v3815_v2  ;;  %5085 = vst [vmem:[#allocation1] ss:$4 sm:$0xff] %v8609_v10 }
0x11cf   :  { %7115 = vpow2.f32 %v3825_v29  ;;  %v3831_v29 = vmul.f32 1.442695, %v3818_v47 }
0x11d2   :  { %v3803_v7 = vpop.xlane.xlu0 %3802 }
0x11d3   :  { %v3817_v49 = vsub.f32 %v8739_v58, %v3803_v7 }
0x11d4   :  { %v8831_v1 = vld.sshfl [vmem:[#allocation1] sm:$0xff pattern:$0x73625140] }
0x11d5   :  { %v8833_v15 = vpop.eup %7115  ;;  %v3829_v63 = vmul.f32 1.442695, %v3817_v49  ;;  %5089 = vst [vmem:[#allocation1] ss:$4 sm:$0xff] %v8609_v10 }
0x11d6   :  { %v3843_v4 = vsel %vm677_vm14, %v8833_v15, 0.0 }
0x11d7   :  { %7117 = vpow2.f32 %v3829_v63  ;;  %3844 = vadd.xlane.f32.xlu0 %v3843_v4 }
0x11db   :  { %v3812_v14 = vpop.xlane.xlu1 %3811 }
0x11dc   :  { %v3820_v54 = vsub.f32 %v8749_v8, %v3812_v14  ;;  %v8840_v2 = vld.sshfl [vmem:[#allocation1] sm:$0xff pattern:$0x73625140] }
0x11dd   :  { %v8842_v58 = vpop.eup %7117  ;;  %5117 = vst [vmem:[#allocation1] ss:$4 sm:$0xff] %v8614_v39 }
0x11de   :  { %v3835_v7 = vmul.f32 1.442695, %v3820_v54  ;;  %v3809_v49 = vpop.xlane.xlu2 %3808  ;;  %v3849_v41 = vsel %vm677_vm14, %v8842_v58, 0.0 }
0x11df   :  { %v3819_v63 = vsub.f32 %v8753_v33, %v3809_v49  ;;  %3850 = vadd.xlane.f32.xlu2 %v3849_v41 }
0x11e0   :  { %7119 = vpow2.f32 %v3835_v7 }
0x11e1   :  { %v3833_v37 = vmul.f32 1.442695, %v3819_v63  ;;  %7121 = vpow2.f32 %v3831_v29 }
0x11e3   :  { %7123 = vpow2.f32 %v3833_v37 }
0x11e4   :  { %v8848_v8 = vld.sshfl [vmem:[#allocation1] sm:$0xff pattern:$0x73625140] }
0x11e5   :  { %v4042_v42 = vpop.permute.xlu0 %4041  ;;  %5121 = vst [vmem:[#allocation1] ss:$4 sm:$0xff] %v8614_v39 }
0x11e6   :  { %v8851_v4 = vpop.eup %7119  ;;  %v4013_v47 = vpop.permute.xlu2 %4012  ;;  %6805 = vmatpush.msk.msra.mxu0 %vm878_vm13, %v4042_v42 }
0x11e7   :  { %6803 = vmatpush.msk.msrb.mxu1 %vm878_vm13, %v4013_v47  ;;  %v3858_v33 = vsel %vm677_vm14, %v8851_v4, 0.0  ;;  %v8857_v41 = vpop.eup %7121 }
0x11e8   :  { %3859 = vadd.xlane.f32.xlu0 %v3858_v33  ;;  %v3852_v29 = vsel %vm677_vm14, %v8857_v41, 0.0 }
0x11e9   :  { %v8859_v14 = vpop.eup %7123 }
0x11ea   :  { %v3855_v54 = vsel %vm677_vm14, %v8859_v14, 0.0 }
0x11eb   :  { %3856 = vadd.xlane.f32.xlu2 %v3855_v54 }
0x11ec   :  { %v8865_v7 = vld.sshfl [vmem:[#allocation1] sm:$0xff pattern:$0x73625140] }
0x11ed   :  { %3853 = vadd.xlane.f32.xlu1 %v3852_v29  ;;  %5341 = vst [vmem:[#allocation1] ss:$4 sm:$0xff] %v8581_v25 }
0x11f4   :  { %v8868_v49 = vld.sshfl [vmem:[#allocation1] sm:$0xff pattern:$0x73625140] }
0x11f5   :  { %9704 = vst [vmem:[#allocation7_spill] sm:$0xff] %v8868_v49 }
0x11f6   :  { %5370 = vst [vmem:[#allocation1] ss:$4 sm:$0xff] %v8585_v26 }
0x11fc   :  { %4128 = vrot.lane.b32.xlu0 %v8638_v30, %s7279_s28 }
0x11fd   :  { %v8873_v63 = vld.sshfl [vmem:[#allocation1] sm:$0xff pattern:$0x73625140] }
0x11fe   :  { %5399 = vst [vmem:[#allocation1] ss:$4 sm:$0xff] %v8590_v3 }
0x1203   :  { %4157 = vrot.lane.b32.xlu2 %v8642_v55, %s7279_s28  ;;  %v8894_v55 = vpop.permute.xlu0 %4343 }
0x1204   :  { %4283 = vrot.lane.b32.xlu0 %v8671_v21, %s7281_s30 }
0x1205   :  { %v8880_v37 = vld.sshfl [vmem:[#allocation1] sm:$0xff pattern:$0x73625140] }
0x1206   :  { %9705 = vst [vmem:[#allocation6_spill] sm:$0xff] %v8880_v37  ;;  %4251 = vrot.lane.b32.xlu1 %v8665_v40, %s7281_s30 }
0x1207   :  { %5428 = vst [vmem:[#allocation1] ss:$4 sm:$0xff] %v8595_v35 }
0x120b   :  { %4247 = vrot.lane.b32.xlu2 %v8662_v32, %s7280_s29 }
0x120c   :  { %4379 = vrot.lane.b32.xlu0 %v8700_v18, %s7281_s30 }
0x120e   :  { %v8889_v30 = vld.sshfl [vmem:[#allocation1] sm:$0xff pattern:$0x73625140]  ;;  %4279 = vrot.lane.b32.xlu1 %v8668_v57, %s7280_s29 }
0x120f   :  { %5457 = vst [vmem:[#allocation1] ss:$4 sm:$0xff] %v8600_v36 }
0x1213   :  { %4411 = vrot.lane.b32.xlu2 %v8706_v22, %s7281_s30 }
0x1214   :  { %4407 = vrot.lane.b32.xlu0 %v8703_v12, %s7280_s29 }
0x1216   :  { %v8900_v40 = vld.sshfl [vmem:[#allocation1] sm:$0xff pattern:$0x73625140]  ;;  %4375 = vrot.lane.b32.xlu1 %v8695_v19, %s7280_s29 }
0x1217   :  { %9706 = vst [vmem:[#allocation8_spill] sm:$0xff] %v8900_v40 }
0x1218   :  { %5486 = vst [vmem:[#allocation1] ss:$4 sm:$0xff] %v8604_v16 }
0x121a   :  { %v3839_v32 = vpop.xlane.xlu0 %3838 }
0x121b   :  { %4750 = vrot.lane.b32.xlu2 %v8729_v20, %s7282_s0  ;;  %7125 = vrcp.f32 %v3839_v32  ;;  %v3872_v42 = vand.u32 2147483648, %v3839_v32  ;;  %vm3866_vm5 = vweird.f32 %v3839_v32 }
0x121c   :  { %4663 = vrot.lane.b32.xlu0 %v8716_v50, %s7282_s0 }
0x121d   :  { %v3848_v21 = vpop.xlane.xlu1 %3847 }
0x121e   :  { %7127 = vrcp.f32 %v3848_v21  ;;  %4866 = vrot.lane.b32.xlu1 %v8757_v51, %s7282_s0  ;;  %v3870_v51 = vand.u32 2147483647, %v3839_v32  ;;  %v3917_v29 = vand.u32 2147483648, %v3848_v21  ;;  %vm3911_vm9 = vweird.f32 %v3848_v21 }
0x121f   :  { %v8909_v57 = vld.sshfl [vmem:[#allocation1] sm:$0xff pattern:$0x73625140] }
0x1220   :  { %9707 = vst [vmem:[#allocation10_spill] sm:$0xff] %v8909_v57  ;;  %v3873_v57 = vor.u32 1.1754944e-38, %v3872_v42  ;;  %vm3871_vm8 = vcmp.eq.f32.partialorder %v3870_v51, 8.507059e+37 }
0x1221   :  { %5515 = vst [vmem:[#allocation1] ss:$4 sm:$0xff] %v8609_v10  ;;  %v7126_v18 = vpop.eup %7125 }
0x1222   :  { %v3862_v12 = vmul.f32 %v7126_v18, %v3839_v32  ;;  %v3842_v19 = vpop.xlane.xlu0 %3841  ;;  %vm3867_vm2 = vweird.f32 %v7126_v18 }
0x1223   :  { %4899 = vrot.lane.b32.xlu2 %v8767_v11, %s7284_s11  ;;  %7129 = vrcp.f32 %v3842_v19  ;;  %vm3868_vm10 = vmor %vm3866_vm5, %vm3867_vm2  ;;  %vm3881_vm5 = vweird.f32 %v3842_v19 }
0x1224   :  { %v7128_v22 = vpop.eup %7127  ;;  %v3863_v20 = vsub.f32 1.0, %v3862_v12  ;;  %4779 = vrot.lane.b32.xlu0 %v8734_v44, %s7282_s0 }
0x1225   :  { %v3907_v47 = vmul.f32 %v7128_v22, %v3848_v21  ;;  %vm3912_vm7 = vweird.f32 %v7128_v22 }
0x1226   :  { %v3864_v33 = vmul.f32 %v7126_v18, %v3863_v20  ;;  %5027 = vrot.lane.b32.xlu1 %v8816_v6, %s7284_s11  ;;  %vm3913_vm0 = vmor %vm3911_vm9, %vm3912_vm7  ;;  %v3918_v6 = vor.u32 1.1754944e-38, %v3917_v29 }
0x1227   :  { %v3908_v54 = vsub.f32 1.0, %v3907_v47 }
0x1228   :  { %v8918_v50 = vld.sshfl [vmem:[#allocation1] sm:$0xff pattern:$0x73625140]  ;;  %v3865_v11 = vadd.f32 %v7126_v18, %v3864_v33 }
0x1229   :  { %9708 = vst [vmem:[#allocation11_spill] sm:$0xff] %v8918_v50  ;;  %v7130_v12 = vpop.eup %7129  ;;  %v3909_v44 = vmul.f32 %v7128_v22, %v3908_v54  ;;  %v3915_v50 = vand.u32 2147483647, %v3848_v21  ;;  %v3885_v21 = vand.u32 2147483647, %v3842_v19 }
0x122a   :  { %5544 = vst [vmem:[#allocation1] ss:$4 sm:$0xff] %v8614_v39  ;;  %v3869_v37 = vsel %vm3868_vm10, %v7126_v18, %v3865_v11  ;;  %v3877_v40 = vmul.f32 %v7130_v12, %v3842_v19  ;;  %v3887_v18 = vand.u32 2147483648, %v3842_v19  ;;  %vm3882_vm2 = vweird.f32 %v7130_v12 }
0x122b   :  { %v3874_v49 = vsel %vm3871_vm8, %v3873_v57, %v3869_v37  ;;  %v3910_v20 = vadd.f32 %v7128_v22, %v3909_v44  ;;  %4895 = vrot.lane.b32.xlu2 %v8762_v13, %s7283_s10  ;;  %vm3916_vm1 = vcmp.eq.f32.partialorder %v3915_v50, 8.507059e+37  ;;  %vm3883_vm10 = vmor %vm3881_vm5, %vm3882_vm2  ;;  %vm3886_vm7 = vcmp.eq.f32.partialorder %v3885_v21, 8.507059e+37 }
0x122c   :  { %v3878_v47 = vsub.f32 1.0, %v3877_v40  ;;  %4995 = vrot.lane.b32.xlu0 %v8804_v0, %s7284_s11  ;;  %v3875_v32 = vmul.f32 %v8791_v38, %v3874_v49  ;;  %v3888_v38 = vor.u32 1.1754944e-38, %v3887_v18 }
0x122d   :  { %v3914_v33 = vsel %vm3913_vm0, %v7128_v22, %v3910_v20 }
0x122e   :  { %v3919_v37 = vsel %vm3916_vm1, %v3918_v6, %v3914_v33  ;;  %v3879_v57 = vmul.f32 %v7130_v12, %v3878_v47  ;;  %6802 = vmatmul.msk.f32.vlgmr.msrb.gmra.mxu3 %vm874_vm3, %v3875_v32 }
0x122f   :  { %6817 = vmatpush.xpose.msk.msrb.mxu3 %vm456_vm12, %v8798_v46  ;;  %v3920_v13 = vmul.f32 %v8796_v31, %v3919_v37 }
0x1230   :  { %v3880_v0 = vadd.f32 %v7130_v12, %v3879_v57 }
0x1231   :  { %v8928_v42 = vld.sshfl [vmem:[#allocation1] sm:$0xff pattern:$0x73625140]  ;;  %6808 = vmatmul.msk.f32.vlgmr.msrb.gmra.mxu2 %vm874_vm3, %v3920_v13 }
0x1232   :  { %5573 = vst [vmem:[#allocation1] ss:$4 sm:$0xff] %v8581_v25  ;;  %v3884_v49 = vsel %vm3883_vm10, %v7130_v12, %v3880_v0  ;;  %6823 = vmatpush.xpose.msk.msrb.mxu2 %vm456_vm12, %v8814_v5 }
0x1233   :  { %v3889_v40 = vsel %vm3886_vm7, %v3888_v38, %v3884_v49  ;;  %4692 = vrot.lane.b32.xlu2 %v8723_v53, %s7282_s0 }
0x1234   :  { %4991 = vrot.lane.b32.xlu0 %v8789_v28, %s7283_s10  ;;  %v3890_v31 = vmul.f32 %v8802_v60, %v3889_v40 }
0x1235   :  { %v8961_v12 = vpop.permute.xlu1 %4439 }
0x1236   :  { %6804 = vmatmul.msk.f32.vlgmr.msrb.gmra.mxu1 %vm874_vm3, %v3890_v31 }
0x1239   :  { %v8943_v46 = vld.sshfl [vmem:[#allocation1] sm:$0xff pattern:$0x73625140] }
0x123a   :  { %5577 = vst [vmem:[#allocation1] ss:$4 sm:$0xff] %v8581_v25 }
0x123c   :  { %4721 = vrot.lane.b32.xlu0 %v8726_v61, %s7282_s0 }
0x1241   :  { %v8949_v19 = vld.sshfl [vmem:[#allocation1] sm:$0xff pattern:$0x73625140] }
0x1242   :  { %5605 = vst [vmem:[#allocation1] ss:$4 sm:$0xff] %v8585_v26 }
0x1249   :  { %v8952_v5 = vld.sshfl [vmem:[#allocation1] sm:$0xff pattern:$0x73625140] }
0x124a   :  { %5609 = vst [vmem:[#allocation1] ss:$4 sm:$0xff] %v8585_v26  ;;  %v3845_v53 = vpop.xlane.xlu0 %3844 }
0x124b   :  { %7131 = vrcp.f32 %v3845_v53  ;;  %v3902_v54 = vand.u32 2147483648, %v3845_v53  ;;  %v3900_v29 = vand.u32 2147483647, %v3845_v53  ;;  %vm3896_vm9 = vweird.f32 %v3845_v53 }
0x124d   :  { %v3903_v6 = vor.u32 1.1754944e-38, %v3902_v54  ;;  %vm3901_vm1 = vcmp.eq.f32.partialorder %v3900_v29, 8.507059e+37 }
0x1251   :  { %v8955_v28 = vld.sshfl [vmem:[#allocation1] sm:$0xff pattern:$0x73625140]  ;;  %v7132_v60 = vpop.eup %7131 }
0x1252   :  { %5637 = vst [vmem:[#allocation1] ss:$4 sm:$0xff] %v8590_v3  ;;  %v3892_v22 = vmul.f32 %v7132_v60, %v3845_v53  ;;  %v3851_v50 = vpop.xlane.xlu2 %3850  ;;  %vm3897_vm8 = vweird.f32 %v7132_v60 }
0x1253   :  { %7133 = vrcp.f32 %v3851_v50  ;;  %vm3898_vm0 = vmor %vm3896_vm9, %vm3897_vm8  ;;  %v3932_v21 = vand.u32 2147483648, %v3851_v50  ;;  %v3930_v38 = vand.u32 2147483647, %v3851_v50  ;;  %vm3926_vm5 = vweird.f32 %v3851_v50 }
0x1254   :  { %v3893_v51 = vsub.f32 1.0, %v3892_v22 }
0x1255   :  { %v3933_v53 = vor.u32 1.1754944e-38, %v3932_v21  ;;  %vm3931_vm7 = vcmp.eq.f32.partialorder %v3930_v38, 8.507059e+37 }
0x1256   :  { %v3894_v11 = vmul.f32 %v7132_v60, %v3893_v51 }
0x1258   :  { %v3895_v44 = vadd.f32 %v7132_v60, %v3894_v11 }
0x1259   :  { %v8958_v61 = vld.sshfl [vmem:[#allocation1] sm:$0xff pattern:$0x73625140]  ;;  %v7134_v20 = vpop.eup %7133 }
0x125a   :  { %5641 = vst [vmem:[#allocation1] ss:$4 sm:$0xff] %v8590_v3  ;;  %v3899_v47 = vsel %vm3898_vm0, %v7132_v60, %v3895_v44  ;;  %v3922_v32 = vmul.f32 %v7134_v20, %v3851_v50  ;;  %vm3927_vm2 = vweird.f32 %v7134_v20 }
0x125b   :  { %v3904_v33 = vsel %vm3901_vm1, %v3903_v6, %v3899_v47  ;;  %v3860_v18 = vpop.xlane.xlu0 %3859  ;;  %vm3928_vm10 = vmor %vm3926_vm5, %vm3927_vm2 }
0x125c   :  { %v3923_v37 = vsub.f32 1.0, %v3922_v32  ;;  %7135 = vrcp.f32 %v3860_v18  ;;  %v3905_v13 = vmul.f32 %v8833_v15, %v3904_v33  ;;  %v3975_v6 = vand.u32 2147483647, %v3860_v18 }
0x125d   :  { %v3977_v47 = vand.u32 2147483648, %v3860_v18  ;;  %vm3971_vm9 = vweird.f32 %v3860_v18 }
0x125e   :  { %v3924_v0 = vmul.f32 %v7134_v20, %v3923_v37  ;;  %v3857_v49 = vpop.xlane.xlu2 %3856  ;;  %6806 = vmatmul.msk.f32.vlgmr.msra.gmra.mxu0 %vm874_vm3, %v3905_v13  ;;  %vm3976_vm0 = vcmp.eq.f32.partialorder %v3975_v6, 8.507059e+37 }
0x125f   :  { %7137 = vrcp.f32 %v3857_v49  ;;  %v3978_v13 = vor.u32 1.1754944e-38, %v3977_v47  ;;  %vm3956_vm5 = vweird.f32 %v3857_v49 }
0x1260   :  { %v3925_v40 = vadd.f32 %v7134_v20, %v3924_v0  ;;  %v8968_v31 = vpop.xlane.xlu1 %3853  ;;  %v3962_v0 = vand.u32 2147483648, %v3857_v49 }
0x1261   :  { %v8963_v57 = vld.sshfl [vmem:[#allocation1] sm:$0xff pattern:$0x73625140]  ;;  %7139 = vrcp.f32 %v8968_v31 }
0x1262   :  { %5669 = vst [vmem:[#allocation1] ss:$4 sm:$0xff] %v8595_v35  ;;  %v7136_v60 = vpop.eup %7135  ;;  %v3929_v22 = vsel %vm3928_vm10, %v7134_v20, %v3925_v40  ;;  %v3960_v40 = vand.u32 2147483647, %v3857_v49  ;;  %v3963_v6 = vor.u32 1.1754944e-38, %v3962_v0 }
0x1263   :  { %v3934_v15 = vsel %vm3931_vm7, %v3933_v53, %v3929_v22  ;;  %v3967_v51 = vmul.f32 %v7136_v60, %v3860_v18  ;;  %vm3972_vm8 = vweird.f32 %v7136_v60 }
0x1264   :  { %v3935_v54 = vmul.f32 %v8842_v58, %v3934_v15  ;;  %vm3973_vm1 = vmor %vm3971_vm9, %vm3972_vm8  ;;  %v3945_v15 = vand.u32 2147483647, %v8968_v31  ;;  %vm3961_vm8 = vcmp.eq.f32.partialorder %v3960_v40, 8.507059e+37  ;;  %vm3941_vm9 = vweird.f32 %v8968_v31 }
0x1265   :  { %v7138_v29 = vpop.eup %7137  ;;  %v3968_v44 = vsub.f32 1.0, %v3967_v51  ;;  %v3947_v51 = vand.u32 2147483648, %v8968_v31 }
0x1266   :  { %v3952_v50 = vmul.f32 %v7138_v29, %v3857_v49  ;;  %v4158_v32 = vpop.permute.xlu2 %4157  ;;  %6810 = vmatmul.msk.f32.vlgmr.msra.gmra.mxu3 %vm874_vm3, %v3935_v54  ;;  %vm3957_vm2 = vweird.f32 %v7138_v29 }
0x1267   :  { %v7140_v33 = vpop.eup %7139  ;;  %v3969_v37 = vmul.f32 %v7136_v60, %v3968_v44  ;;  %6813 = vmatpush.msk.msrb.mxu0 %vm878_vm13, %v4158_v32  ;;  %6825 = vmatpush.xpose.msk.msra.mxu3 %vm456_vm12, %v8778_v23  ;;  %vm3958_vm7 = vmor %vm3956_vm5, %vm3957_vm2 }
0x1268   :  { %v3953_v58 = vsub.f32 1.0, %v3952_v50  ;;  %v3937_v20 = vmul.f32 %v7140_v33, %v8968_v31  ;;  %vm3942_vm10 = vweird.f32 %v7140_v33 }
0x1269   :  { %v8972_v11 = vld.sshfl [vmem:[#allocation1] sm:$0xff pattern:$0x73625140]  ;;  %v3970_v21 = vadd.f32 %v7136_v60, %v3969_v37 }
0x126a   :  { %5673 = vst [vmem:[#allocation1] ss:$4 sm:$0xff] %v8595_v35  ;;  %v3954_v38 = vmul.f32 %v7138_v29, %v3953_v58  ;;  %v3938_v53 = vsub.f32 1.0, %v3937_v20  ;;  %v3948_v58 = vor.u32 1.1754944e-38, %v3947_v51 }
0x126b   :  { %v3974_v22 = vsel %vm3973_vm1, %v7136_v60, %v3970_v21  ;;  %vm3946_vm1 = vcmp.eq.f32.partialorder %v3945_v15, 8.507059e+37 }
0x126c   :  { %v3979_v23 = vsel %vm3976_vm0, %v3978_v13, %v3974_v22  ;;  %v3955_v18 = vadd.f32 %v7138_v29, %v3954_v38  ;;  %v3939_v54 = vmul.f32 %v7140_v33, %v3938_v53  ;;  %vm3943_vm0 = vmor %vm3941_vm9, %vm3942_vm10 }
0x126d   :  { %v3980_v47 = vmul.f32 %v8851_v4, %v3979_v23 }
0x126e   :  { %v3959_v50 = vsel %vm3958_vm7, %v7138_v29, %v3955_v18  ;;  %v3940_v60 = vadd.f32 %v7140_v33, %v3939_v54  ;;  %v4248_v49 = vpop.permute.xlu2 %4247  ;;  %6818 = vmatmul.msk.f32.vlgmr.msrb.gmra.mxu3 %vm456_vm12, %v8787_v43  ;;  %v4129_v32 = vpop.permute.xlu0 %4128 }
0x126f   :  { %v3964_v37 = vsel %vm3961_vm8, %v3963_v6, %v3959_v50  ;;  %6811 = vmatpush.msk.msra.mxu1 %vm878_vm13, %v4129_v32  ;;  %6816 = vmatmul.msk.f32.vlgmr.msra.gmra.mxu2 %vm874_vm3, %v3980_v47 }
0x1270   :  { %v3944_v4 = vsel %vm3943_vm0, %v7140_v33, %v3940_v60  ;;  %6831 = vmatpush.xpose.msk.msra.mxu2 %vm456_vm12, %v8819_v45  ;;  %v3965_v29 = vmul.f32 %v8859_v14, %v3964_v37 }
0x1271   :  { %v8982_v44 = vld.sshfl [vmem:[#allocation1] sm:$0xff pattern:$0x73625140]  ;;  %v3949_v31 = vsel %vm3946_vm1, %v3948_v58, %v3944_v4 }
0x1272   :  { %5701 = vst [vmem:[#allocation1] ss:$4 sm:$0xff] %v8600_v36  ;;  %6814 = vmatmul.msk.f32.vlgmr.msrb.gmra.mxu0 %vm874_vm3, %v3965_v29  ;;  %v3950_v43 = vmul.f32 %v8857_v41, %v3949_v31 }
0x1274   :  { %6812 = vmatmul.msk.f32.vlgmr.msra.gmra.mxu1 %vm874_vm3, %v3950_v43 }
0x1276   :  { %v4412_v21 = vpop.permute.xlu2 %4411  ;;  %6826 = vmatmul.msk.f32.vlgmr.msra.gmra.mxu3 %vm456_vm12, %v8894_v55  ;;  %v4284_v33 = vpop.permute.xlu0 %4283 }
0x1277   :  { %6821 = vmatpush.xpose.msk.msra.mxu0 %vm456_vm12, %v4284_v33  ;;  %6824 = vmatmul.msk.f32.vlgmr.msrb.gmra.mxu2 %vm456_vm12, %v8809_v27 }
0x1278   :  { %v4252_v45 = vpop.permute.xlu1 %4251 }
0x1279   :  { %v8997_v20 = vld.sshfl [vmem:[#allocation1] sm:$0xff pattern:$0x73625140]  ;;  %6819 = vmatpush.xpose.msk.msrb.mxu1 %vm456_vm12, %v4252_v45 }
0x127a   :  { %5705 = vst [vmem:[#allocation1] ss:$4 sm:$0xff] %v8600_v36 }
0x127b   :  { %6829 = vmatpush.xpose.msk.msrb.mxu0 %vm456_vm12, %v4412_v21 }
0x127c   :  { %6820 = vmatmul.msk.f32.vlgmr.msrb.gmra.mxu1 %vm456_vm12, %v4248_v49 }
0x127e   :  { %v4751_v14 = vpop.permute.xlu2 %4750  ;;  %v4380_v13 = vpop.permute.xlu0 %4379 }
0x127f   :  { %6839 = vmatpush.msk.msrb.mxu2 %vm878_vm13, %v4751_v14  ;;  %6827 = vmatpush.xpose.msk.msra.mxu1 %vm456_vm12, %v4380_v13 }
0x1280   :  { %6832 = vmatmul.msk.f32.vlgmr.msra.gmra.mxu2 %vm456_vm12, %v8961_v12  ;;  %v4280_v27 = vpop.permute.xlu1 %4279 }
0x1281   :  { %v9008_v41 = vld.sshfl [vmem:[#allocation1] sm:$0xff pattern:$0x73625140]  ;;  %6822 = vmatmul.msk.f32.vlgmr.msra.gmra.mxu0 %vm456_vm12, %v4280_v27 }
0x1282   :  { %5733 = vst [vmem:[#allocation1] ss:$4 sm:$0xff] %v8604_v16 }
0x1286   :  { %v9019_v0 = vpop.permute.xlu2 %4899  ;;  %v4408_v38 = vpop.permute.xlu0 %4407 }
0x1288   :  { %v4376_v40 = vpop.permute.xlu1 %4375 }
0x1289   :  { %v9016_v55 = vld.sshfl [vmem:[#allocation1] sm:$0xff pattern:$0x73625140]  ;;  %6828 = vmatmul.msk.f32.vlgmr.msra.gmra.mxu1 %vm456_vm12, %v4376_v40  ;;  %6830 = vmatmul.msk.f32.vlgmr.msrb.gmra.mxu0 %vm456_vm12, %v4408_v38 }
0x128a   :  { %5737 = vst [vmem:[#allocation1] ss:$4 sm:$0xff] %v8604_v16 }
0x128e   :  { %v9026_v12 = vpop.permute.xlu2 %4895  ;;  %v4664_v22 = vpop.permute.xlu0 %4663 }
0x128f   :  { %6833 = vmatpush.msk.msrb.mxu3 %vm878_vm13, %v4664_v22 }
0x1290   :  { %v4867_v15 = vpop.permute.xlu1 %4866 }
0x1291   :  { %v9023_v53 = vld.sshfl [vmem:[#allocation1] sm:$0xff pattern:$0x73625140]  ;;  %6847 = vmatpush.msk.msra.mxu2 %vm878_vm13, %v4867_v15 }
0x1292   :  { %5765 = vst [vmem:[#allocation1] ss:$4 sm:$0xff] %v8609_v10 }
0x1296   :  { %v4693_v23 = vpop.permute.xlu2 %4692  ;;  %v4780_v18 = vpop.permute.xlu0 %4779 }
0x1297   :  { %6835 = vmatpush.msk.msrb.mxu1 %vm878_vm13, %v4693_v23  ;;  %6841 = vmatpush.msk.msra.mxu3 %vm878_vm13, %v4780_v18 }
0x1299   :  { %v9030_v51 = vld.sshfl [vmem:[#allocation1] sm:$0xff pattern:$0x73625140] }
0x129a   :  { %5769 = vst [vmem:[#allocation1] ss:$4 sm:$0xff] %v8609_v10 }
0x129e   :  { %v9038_v6 = vpop.permute.xlu0 %4995 }
0x12a1   :  { %v9035_v54 = vld.sshfl [vmem:[#allocation1] sm:$0xff pattern:$0x73625140] }
0x12a2   :  { %5797 = vst [vmem:[#allocation1] ss:$4 sm:$0xff] %v8614_v39 }
0x12a6   :  { %v9043_v50 = vpop.permute.xlu0 %4991 }
0x12a9   :  { %v9040_v47 = vld.sshfl [vmem:[#allocation1] sm:$0xff pattern:$0x73625140] }
0x12aa   :  { %5801 = vst [vmem:[#allocation1] ss:$4 sm:$0xff] %v8614_v39 }
0x12ae   :  { %v4722_v49 = vpop.permute.xlu0 %4721 }
0x12af   :  { %6837 = vmatpush.msk.msra.mxu0 %vm878_vm13, %v4722_v49 }
0x12b1   :  { %v9045_v60 = vld.sshfl [vmem:[#allocation1] sm:$0xff pattern:$0x73625140] }
0x12b2   :  { %6021 = vst [vmem:[#allocation1] ss:$4 sm:$0xff] %v8581_v25 }
0x12b3   :  { %v4036_v43 = vpop.f32.mrf.mxu1 }
0x12b4   :  { %v4094_v21 = vpop.f32.mrf.mxu2 }
0x12b9   :  { %v9049_v32 = vld.sshfl [vmem:[#allocation1] sm:$0xff pattern:$0x73625140] }
0x12ba   :  { %6050 = vst [vmem:[#allocation1] ss:$4 sm:$0xff] %v8585_v26  ;;  %v4007_v26 = vpop.f32.mrf.mxu3 }
0x12c1   :  { %v9052_v37 = vld.sshfl [vmem:[#allocation1] sm:$0xff pattern:$0x73625140] }
0x12c2   :  { %6079 = vst [vmem:[#allocation1] ss:$4 sm:$0xff] %v8590_v3 }
0x12c9   :  { %v9055_v58 = vld.sshfl [vmem:[#allocation1] sm:$0xff pattern:$0x73625140] }
0x12ca   :  { %6108 = vst [vmem:[#allocation1] ss:$4 sm:$0xff] %v8595_v35 }
0x12d1   :  { %v9058_v4 = vld.sshfl [vmem:[#allocation1] sm:$0xff pattern:$0x73625140] }
0x12d2   :  { %6137 = vst [vmem:[#allocation1] ss:$4 sm:$0xff] %v8600_v36 }
0x12d9   :  { %v9061_v25 = vld.sshfl [vmem:[#allocation1] sm:$0xff pattern:$0x73625140] }
0x12da   :  { %6166 = vst [vmem:[#allocation1] ss:$4 sm:$0xff] %v8604_v16 }
0x12db   :  { %v4065_v3 = vpop.f32.mrf.mxu0 }
0x12e1   :  { %v9064_v29 = vld.sshfl [vmem:[#allocation1] sm:$0xff pattern:$0x73625140] }
0x12e2   :  { %6195 = vst [vmem:[#allocation1] ss:$4 sm:$0xff] %v8609_v10 }
0x12e9   :  { %v9067_v31 = vld.sshfl [vmem:[#allocation1] sm:$0xff pattern:$0x73625140]  ;;  %v4123_v35 = vpop.f32.mrf.mxu3 }
0x12ea   :  { %6224 = vst [vmem:[#allocation1] ss:$4 sm:$0xff] %v8614_v39 }
0x12eb   :  { %6269 = vst [vmem:[#allocation1 + $0x20] ss:$4 sm:$0xff] %v4123_v35 }
0x12ef   :  { %v4181_v36 = vpop.f32.mrf.mxu0 }
0x12f0   :  { %6273 = vst [vmem:[#allocation1 + $0x22] ss:$4 sm:$0xff] %v4181_v36 }
0x12f1   :  { %v9070_v33 = vld.sshfl [vmem:[#allocation1] sm:$0xff pattern:$0x73625140]  ;;  %v4152_v16 = vpop.f32.mrf.mxu1  ;;  %v4242_v45 = vpop.f32.mrf.mxu3 }
0x12f2   :  { %6261 = vst [vmem:[#allocation1] ss:$4 sm:$0xff] %v4007_v26  ;;  %v4210_v10 = vpop.f32.mrf.mxu2  ;;  %v4469_v14 = vsel %vm677_vm14, %v4242_v45, -inf }
0x12f3   :  { %6263 = vst [vmem:[#allocation1 + $0x1] ss:$4 sm:$0xff] %v4036_v43  ;;  %4470 = vmax.xlane.f32.xlu2 %v4469_v14 }
0x12f4   :  { %6265 = vst [vmem:[#allocation1 + $0x2] ss:$4 sm:$0xff] %v4065_v3 }
0x12f5   :  { %6267 = vst [vmem:[#allocation1 + $0x3] ss:$4 sm:$0xff] %v4094_v21  ;;  %v9086_v21 = vpop.permute.xlu1 %5027 }
0x12f6   :  { %6271 = vst [vmem:[#allocation1 + $0x21] ss:$4 sm:$0xff] %v4152_v16 }
0x12f7   :  { %6275 = vst [vmem:[#allocation1 + $0x23] ss:$4 sm:$0xff] %v4210_v10 }
0x12f9   :  { %v4274_v39 = vpop.f32.mrf.mxu1  ;;  %v4370_v22 = vpop.f32.mrf.mxu3 }
0x12fa   :  { %v4472_v13 = vsel %vm677_vm14, %v4274_v39, -inf  ;;  %v4338_v40 = vpop.f32.mrf.mxu2  ;;  %v4481_v18 = vsel %vm677_vm14, %v4370_v22, -inf }
0x12fb   :  { %4473 = vmax.xlane.f32.xlu1 %v4472_v13  ;;  %v4478_v35 = vsel %vm677_vm14, %v4338_v40, -inf }
0x12fe   :  { %v4306_v27 = vpop.f32.mrf.mxu0 }
0x12ff   :  { %v4475_v38 = vsel %vm677_vm14, %v4306_v27, -inf }
0x1300   :  { %4476 = vmax.xlane.f32.xlu0 %v4475_v38 }
0x1303   :  { %v4466_v3 = vpop.f32.mrf.mxu2 }
0x1304   :  { %v4490_v43 = vsel %vm677_vm14, %v4466_v3, -inf }
0x1306   :  { %v4402_v15 = vpop.f32.mrf.mxu1  ;;  %v4434_v23 = vpop.f32.mrf.mxu0 }
0x1307   :  { %v4484_v49 = vsel %vm677_vm14, %v4402_v15, -inf  ;;  %v4487_v26 = vsel %vm677_vm14, %v4434_v23, -inf }
0x1308   :  { %4482 = vmax.xlane.f32.xlu0 %v4481_v18  ;;  %4485 = vmax.xlane.f32.xlu2 %v4484_v49 }
0x1309   :  { %4488 = vmax.xlane.f32.xlu1 %v4487_v26 }
0x1310   :  { %4491 = vmax.xlane.f32.xlu2 %v4490_v43 }
0x1311   :  { %4479 = vmax.xlane.f32.xlu1 %v4478_v35 }
0x131c   :  { %5023 = vrot.lane.b32.xlu0 %v8811_v17, %s7283_s10 }
0x1328   :  { %5123 = vrot.lane.b32.xlu2 %v8865_v7, %s7284_s11 }
0x132a   :  { %5119 = vrot.lane.b32.xlu1 %v8848_v8, %s7283_s10 }
0x1366   :  { %v4471_v36 = vpop.xlane.xlu2 %4470 }
0x1367   :  { %v4493_v16 = vsub.f32 %v4242_v45, %v4471_v36 }
0x1369   :  { %v4501_v10 = vmul.f32 1.442695, %v4493_v16 }
0x136b   :  { %7141 = vpow2.f32 %v4501_v10 }
0x136e   :  { %v4474_v14 = vpop.xlane.xlu1 %4473 }
0x136f   :  { %v4494_v13 = vsub.f32 %v4274_v39, %v4474_v14 }
0x1371   :  { %v9088_v38 = vpop.eup %7141  ;;  %v4503_v18 = vmul.f32 1.442695, %v4494_v13 }
0x1372   :  { %v4517_v17 = vsel %vm677_vm14, %v9088_v38, 0.0 }
0x1373   :  { %7143 = vpow2.f32 %v4503_v18  ;;  %4518 = vadd.xlane.f32.xlu0 %v4517_v17  ;;  %v4477_v7 = vpop.xlane.xlu0 %4476 }
0x1374   :  { %v4495_v49 = vsub.f32 %v4306_v27, %v4477_v7 }
0x1376   :  { %v4505_v26 = vmul.f32 1.442695, %v4495_v49 }
0x1378   :  { %7145 = vpow2.f32 %v4505_v26 }
0x1379   :  { %v9092_v8 = vpop.eup %7143 }
0x137a   :  { %v4520_v45 = vsel %vm677_vm14, %v9092_v8, 0.0 }
0x137b   :  { %4521 = vadd.xlane.f32.xlu2 %v4520_v45  ;;  %v4486_v43 = vpop.xlane.xlu2 %4485  ;;  %v4483_v39 = vpop.xlane.xlu0 %4482 }
0x137c   :  { %v4498_v35 = vsub.f32 %v4402_v15, %v4486_v43  ;;  %v4489_v36 = vpop.xlane.xlu1 %4488  ;;  %v4497_v14 = vsub.f32 %v4370_v22, %v4483_v39 }
0x137d   :  { %v4499_v45 = vsub.f32 %v4434_v23, %v4489_v36 }
0x137e   :  { %v9096_v16 = vpop.eup %7145  ;;  %v4511_v10 = vmul.f32 1.442695, %v4498_v35  ;;  %v4509_v27 = vmul.f32 1.442695, %v4497_v14 }
0x137f   :  { %v4523_v13 = vsel %vm677_vm14, %v9096_v16, 0.0  ;;  %v4513_v22 = vmul.f32 1.442695, %v4499_v45 }
0x1380   :  { %7147 = vpow2.f32 %v4511_v10  ;;  %4524 = vadd.xlane.f32.xlu1 %v4523_v13 }
0x1381   :  { %7149 = vpow2.f32 %v4509_v27 }
0x1383   :  { %v4492_v18 = vpop.xlane.xlu2 %4491 }
0x1384   :  { %v4500_v17 = vsub.f32 %v4466_v3, %v4492_v18  ;;  %v4480_v7 = vpop.xlane.xlu1 %4479 }
0x1385   :  { %v4496_v49 = vsub.f32 %v4338_v40, %v4480_v7 }
0x1386   :  { %v9100_v26 = vpop.eup %7147  ;;  %v4515_v15 = vmul.f32 1.442695, %v4500_v17 }
0x1387   :  { %v4507_v43 = vmul.f32 1.442695, %v4496_v49  ;;  %v4532_v35 = vsel %vm677_vm14, %v9100_v26, 0.0  ;;  %v9104_v39 = vpop.eup %7149 }
0x1388   :  { %7151 = vpow2.f32 %v4515_v15  ;;  %4533 = vadd.xlane.f32.xlu1 %v4532_v35  ;;  %v4529_v23 = vsel %vm677_vm14, %v9104_v39, 0.0 }
0x1389   :  { %7153 = vpow2.f32 %v4507_v43 }
0x138a   :  { %7155 = vpow2.f32 %v4513_v22 }
0x138e   :  { %v9106_v10 = vpop.eup %7151 }
0x138f   :  { %v9108_v3 = vpop.eup %7153  ;;  %v4538_v40 = vsel %vm677_vm14, %v9106_v10, 0.0 }
0x1390   :  { %4539 = vadd.xlane.f32.xlu0 %v4538_v40  ;;  %v4526_v36 = vsel %vm677_vm14, %v9108_v3, 0.0  ;;  %4530 = vadd.xlane.f32.xlu1 %v4529_v23  ;;  %v9116_v14 = vpop.eup %7155 }
0x1391   :  { %4527 = vadd.xlane.f32.xlu2 %v4526_v36  ;;  %v4535_v13 = vsel %vm677_vm14, %v9116_v14, 0.0 }
0x1398   :  { %4536 = vadd.xlane.f32.xlu1 %v4535_v13 }
0x13a4   :  { %4837 = vrot.lane.b32.xlu0 %v8746_v62, %s7282_s0  ;;  %v9710_v62 = vld [vmem:[#allocation8_spill] sm:$0xff] }
0x13a9   :  { %4808 = vrot.lane.b32.xlu2 %v8741_v24, %s7282_s0  ;;  %v9709_v24 = vld [vmem:[#allocation7_spill] sm:$0xff] }
0x13ac   :  { %4927 = vrot.lane.b32.xlu0 %v8772_v34, %s7283_s10  ;;  %v9711_v34 = vld [vmem:[#allocation6_spill] sm:$0xff] }
0x13b1   :  { %4963 = vrot.lane.b32.xlu2 %v8783_v9, %s7284_s11  ;;  %4931 = vrot.lane.b32.xlu1 %v8775_v59, %s7284_s11  ;;  %v9712_v59 = vld [vmem:[#allocation11_spill] sm:$0xff]  ;;  %v9166_v9 = vpop.permute.xlu2 %5123 }
0x13b4   :  { %5091 = vrot.lane.b32.xlu0 %v8840_v2, %s7284_s11 }
0x13b9   :  { %5059 = vrot.lane.b32.xlu2 %v8827_v48, %s7284_s11  ;;  %4959 = vrot.lane.b32.xlu1 %v8780_v52, %s7283_s10  ;;  %v9162_v52 = vpop.permute.xlu0 %5023  ;;  %v9713_v48 = vld [vmem:[#allocation10_spill] sm:$0xff] }
0x13bc   :  { %5430 = vrot.lane.b32.xlu0 %v8889_v30, %s7285_s12 }
0x13c1   :  { %5087 = vrot.lane.b32.xlu2 %v8831_v1, %s7283_s10  ;;  %5055 = vrot.lane.b32.xlu1 %v8823_v56, %s7283_s10  ;;  %v9170_v1 = vpop.permute.xlu1 %5119 }
0x13c4   :  { %5372 = vrot.lane.b32.xlu0 %v8873_v63, %s7285_s12 }
0x13c9   :  { %5343 = vrot.lane.b32.xlu2 %v9709_v24, %s7285_s12  ;;  %5459 = vrot.lane.b32.xlu1 %v9710_v62, %s7285_s12 }
0x13cc   :  { %5579 = vrot.lane.b32.xlu0 %v8949_v19, %s7286_s13 }
0x13d1   :  { %5546 = vrot.lane.b32.xlu2 %v8928_v42, %s7285_s12  ;;  %5671 = vrot.lane.b32.xlu1 %v8972_v11, %s7287_s14 }
0x13d4   :  { %5575 = vrot.lane.b32.xlu0 %v8943_v46, %s7287_s14 }
0x13d9   :  { %5401 = vrot.lane.b32.xlu2 %v9711_v34, %s7285_s12  ;;  %5707 = vrot.lane.b32.xlu1 %v9008_v41, %s7286_s13 }
0x13dc   :  { %5517 = vrot.lane.b32.xlu0 %v9712_v59, %s7285_s12 }
0x13e1   :  { %5675 = vrot.lane.b32.xlu2 %v8982_v44, %s7286_s13 }
0x13e6   :  { %v4519_v56 = vpop.xlane.xlu0 %4518 }
0x13e7   :  { %7157 = vrcp.f32 %v4519_v56  ;;  %v4552_v46 = vand.u32 2147483648, %v4519_v56  ;;  %v4550_v11 = vand.u32 2147483647, %v4519_v56  ;;  %vm4546_vm5 = vweird.f32 %v4519_v56 }
0x13e9   :  { %5488 = vrot.lane.b32.xlu2 %v9713_v48, %s7285_s12  ;;  %v4553_v18 = vor.u32 1.1754944e-38, %v4552_v46  ;;  %vm4551_vm7 = vcmp.eq.f32.partialorder %v4550_v11, 8.507059e+37 }
0x13ed   :  { %v7158_v2 = vpop.eup %7157 }
0x13ee   :  { %v4542_v63 = vmul.f32 %v7158_v2, %v4519_v56  ;;  %v4522_v30 = vpop.xlane.xlu2 %4521  ;;  %vm4547_vm2 = vweird.f32 %v7158_v2 }
0x13ef   :  { %7159 = vrcp.f32 %v4522_v30  ;;  %vm4548_vm10 = vmor %vm4546_vm5, %vm4547_vm2  ;;  %v4567_v43 = vand.u32 2147483648, %v4522_v30  ;;  %v4565_v22 = vand.u32 2147483647, %v4522_v30  ;;  %vm4561_vm9 = vweird.f32 %v4522_v30 }
0x13f0   :  { %v4543_v42 = vsub.f32 1.0, %v4542_v63 }
0x13f1   :  { %5803 = vrot.lane.b32.xlu2 %v9045_v60, %s7286_s13  ;;  %v4568_v13 = vor.u32 1.1754944e-38, %v4567_v43  ;;  %vm4566_vm1 = vcmp.eq.f32.partialorder %v4565_v22, 8.507059e+37 }
0x13f2   :  { %v4544_v19 = vmul.f32 %v7158_v2, %v4543_v42 }
0x13f3   :  { %v4525_v44 = vpop.xlane.xlu1 %4524 }
0x13f4   :  { %v4545_v41 = vadd.f32 %v7158_v2, %v4544_v19  ;;  %7161 = vrcp.f32 %v4525_v44  ;;  %v4582_v62 = vand.u32 2147483648, %v4525_v44  ;;  %v4580_v56 = vand.u32 2147483647, %v4525_v44 }
0x13f5   :  { %v7160_v27 = vpop.eup %7159  ;;  %vm4576_vm5 = vweird.f32 %v4525_v44 }
0x13f6   :  { %v4549_v17 = vsel %vm4548_vm10, %v7158_v2, %v4545_v41  ;;  %v4557_v7 = vmul.f32 %v7160_v27, %v4522_v30  ;;  %vm4562_vm8 = vweird.f32 %v7160_v27 }
0x13f7   :  { %v4554_v49 = vsel %vm4551_vm7, %v4553_v18, %v4549_v17  ;;  %vm4563_vm0 = vmor %vm4561_vm9, %vm4562_vm8  ;;  %vm4581_vm7 = vcmp.eq.f32.partialorder %v4580_v56, 8.507059e+37 }
0x13f8   :  { %v4555_v45 = vmul.f32 %v9088_v38, %v4554_v49  ;;  %v4558_v15 = vsub.f32 1.0, %v4557_v7 }
0x13fa   :  { %v7162_v35 = vpop.eup %7161  ;;  %v4559_v60 = vmul.f32 %v7160_v27, %v4558_v15  ;;  %6834 = vmatmul.msk.f32.vlgmr.msrb.gmra.mxu3 %vm874_vm3, %v4555_v45 }
0x13fb   :  { %v4572_v40 = vmul.f32 %v7162_v35, %v4525_v44  ;;  %6849 = vmatpush.xpose.msk.msrb.mxu3 %vm456_vm12, %v9019_v0  ;;  %v4534_v23 = vpop.xlane.xlu1 %4533  ;;  %vm4577_vm2 = vweird.f32 %v7162_v35  ;;  %v4583_v0 = vor.u32 1.1754944e-38, %v4582_v62 }
0x13fc   :  { %v4560_v36 = vadd.f32 %v7160_v27, %v4559_v60  ;;  %7163 = vrcp.f32 %v4534_v23  ;;  %vm4578_vm10 = vmor %vm4576_vm5, %vm4577_vm2  ;;  %v4625_v17 = vand.u32 2147483647, %v4534_v23  ;;  %vm4621_vm9 = vweird.f32 %v4534_v23 }
0x13fd   :  { %v4573_v24 = vsub.f32 1.0, %v4572_v40 }
0x13fe   :  { %v4564_v38 = vsel %vm4563_vm0, %v7160_v27, %v4560_v36 }
0x13ff   :  { %v4569_v34 = vsel %vm4566_vm1, %v4568_v13, %v4564_v38  ;;  %v4574_v59 = vmul.f32 %v7162_v35, %v4573_v24  ;;  %vm4626_vm1 = vcmp.eq.f32.partialorder %v4625_v17, 8.507059e+37 }
0x1400   :  { %v4570_v48 = vmul.f32 %v9092_v8, %v4569_v34  ;;  %v4627_v8 = vand.u32 2147483648, %v4534_v23 }
0x1401   :  { %v4575_v2 = vadd.f32 %v7162_v35, %v4574_v59 }
0x1402   :  { %v7164_v63 = vpop.eup %7163  ;;  %6836 = vmatmul.msk.f32.vlgmr.msrb.gmra.mxu1 %vm874_vm3, %v4570_v48  ;;  %v4628_v45 = vor.u32 1.1754944e-38, %v4627_v8 }
0x1403   :  { %v4579_v30 = vsel %vm4578_vm10, %v7162_v35, %v4575_v2  ;;  %v4617_v42 = vmul.f32 %v7164_v63, %v4534_v23  ;;  %v4531_v46 = vpop.xlane.xlu1 %4530  ;;  %v9180_v41 = vpop.xlane.xlu0 %4539  ;;  %vm4622_vm8 = vweird.f32 %v7164_v63 }
0x1404   :  { %v4584_v19 = vsel %vm4581_vm7, %v4583_v0, %v4579_v30  ;;  %v4528_v11 = vpop.xlane.xlu2 %4527  ;;  %7165 = vrcp.f32 %v4531_v46  ;;  %vm4623_vm0 = vmor %vm4621_vm9, %vm4622_vm8  ;;  %v4610_v38 = vand.u32 2147483647, %v4531_v46  ;;  %v4612_v62 = vand.u32 2147483648, %v4531_v46 }
0x1405   :  { %v4585_v27 = vmul.f32 %v9096_v16, %v4584_v19  ;;  %v4618_v18 = vsub.f32 1.0, %v4617_v42  ;;  %7167 = vrcp.f32 %v4528_v11  ;;  %v4595_v59 = vand.u32 2147483647, %v4528_v11 }
0x1406   :  { %7169 = vrcp.f32 %v9180_v41  ;;  %v4597_v56 = vand.u32 2147483648, %v4528_v11  ;;  %vm4591_vm10 = vweird.f32 %v4528_v11  ;;  %vm4606_vm7 = vweird.f32 %v4531_v46 }
0x1407   :  { %v4619_v44 = vmul.f32 %v7164_v63, %v4618_v18  ;;  %6838 = vmatmul.msk.f32.vlgmr.msra.gmra.mxu0 %vm874_vm3, %v4585_v27  ;;  %vm4611_vm9 = vcmp.eq.f32.partialorder %v4610_v38, 8.507059e+37  ;;  %v4613_v42 = vor.u32 1.1754944e-38, %v4612_v62 }
0x1408   :  { %v4598_v27 = vor.u32 1.1754944e-38, %v4597_v56 }
0x1409   :  { %v4620_v7 = vadd.f32 %v7164_v63, %v4619_v44 }
0x140a   :  { %v7166_v49 = vpop.eup %7165 }
0x140b   :  { %v7168_v15 = vpop.eup %7167  ;;  %v4624_v43 = vsel %vm4623_vm0, %v7164_v63, %v4620_v7  ;;  %v4602_v35 = vmul.f32 %v7166_v49, %v4531_v46  ;;  %v9185_v16 = vpop.xlane.xlu1 %4536  ;;  %vm4607_vm2 = vweird.f32 %v7166_v49 }
0x140c   :  { %v4629_v60 = vsel %vm4626_vm1, %v4628_v45, %v4624_v43  ;;  %v4587_v22 = vmul.f32 %v7168_v15, %v4528_v11  ;;  %v4809_v40 = vpop.permute.xlu2 %4808  ;;  %7171 = vrcp.f32 %v9185_v16  ;;  %v9188_v36 = vpop.eup %7169  ;;  %vm4592_vm5 = vweird.f32 %v7168_v15  ;;  %vm4608_vm8 = vmor %vm4606_vm7, %vm4607_vm2 }
0x140d   :  { %v4630_v13 = vmul.f32 %v9100_v26, %v4629_v60  ;;  %v4603_v24 = vsub.f32 1.0, %v4602_v35  ;;  %6843 = vmatpush.msk.msra.mxu1 %vm878_vm13, %v4809_v40  ;;  %v4647_v34 = vmul.f32 %v9188_v36, %v9180_v41  ;;  %vm4593_vm0 = vmor %vm4591_vm10, %vm4592_vm5  ;;  %vm4596_vm1 = vcmp.eq.f32.partialorder %v4595_v59, 8.507059e+37 }
0x140e   :  { %v4588_v23 = vsub.f32 1.0, %v4587_v22  ;;  %vm4652_vm6 = vweird.f32 %v9188_v36  ;;  %v4657_v43 = vand.u32 2147483648, %v9180_v41  ;;  %vm4651_vm2 = vweird.f32 %v9180_v41 }
0x140f   :  { %v4604_v48 = vmul.f32 %v7166_v49, %v4603_v24  ;;  %6844 = vmatmul.msk.f32.vlgmr.msra.gmra.mxu1 %vm874_vm3, %v4630_v13  ;;  %v4648_v63 = vsub.f32 1.0, %v4647_v34  ;;  %vm9205_vm5 = vmor %vm4651_vm2, %vm4652_vm6  ;;  %vm4636_vm6 = vweird.f32 %v9185_v16 }
0x1410   :  { %v4589_v2 = vmul.f32 %v7168_v15, %v4588_v23 }
0x1411   :  { %v4605_v26 = vadd.f32 %v7166_v49, %v4604_v48  ;;  %v4649_v19 = vmul.f32 %v9188_v36, %v4648_v63 }
0x1412   :  { %v7172_v0 = vpop.eup %7171  ;;  %v4590_v30 = vadd.f32 %v7168_v15, %v4589_v2 }
0x1413   :  { %v4609_v18 = vsel %vm4608_vm8, %v7166_v49, %v4605_v26  ;;  %v4632_v8 = vmul.f32 %v7172_v0, %v9185_v16  ;;  %v4650_v7 = vadd.f32 %v9188_v36, %v4649_v19  ;;  %v4655_v49 = vand.u32 2147483647, %v9180_v41 }
0x1414   :  { %v4594_v44 = vsel %vm4593_vm0, %v7168_v15, %v4590_v30  ;;  %v4614_v17 = vsel %vm4611_vm9, %v4613_v42, %v4609_v18  ;;  %v4964_v46 = vpop.permute.xlu2 %4963  ;;  %v4642_v15 = vand.u32 2147483648, %v9185_v16  ;;  %vm4637_vm10 = vweird.f32 %v7172_v0 }
0x1415   :  { %v4599_v11 = vsel %vm4596_vm1, %v4598_v27, %v4594_v44  ;;  %v4615_v45 = vmul.f32 %v9104_v39, %v4614_v17  ;;  %v4633_v35 = vsub.f32 1.0, %v4632_v8  ;;  %v4640_v39 = vand.u32 2147483647, %v9185_v16  ;;  %vm4638_vm8 = vmor %vm4636_vm6, %vm4637_vm10  ;;  %v9257_v27 = vld.sshfl [vmem:[#allocation1] sm:$0xff pattern:$0x73625140] }
0x1416   :  { %v4600_v60 = vmul.f32 %v9108_v3, %v4599_v11  ;;  %v4838_v22 = vpop.permute.xlu0 %4837  ;;  %v4654_v3 = vsel %vm9205_vm5, %v9188_v36, %v4650_v7  ;;  %v4658_v41 = vor.u32 1.1754944e-38, %v4657_v43  ;;  %vm4656_vm7 = vcmp.eq.f32.partialorder %v4655_v49, 8.507059e+37  ;;  %v9259_v44 = vld.sshfl [vmem:[#allocation1 + $0x20] sm:$0xff pattern:$0x73625140] }
0x1417   :  { %v4634_v13 = vmul.f32 %v7172_v0, %v4633_v35  ;;  %6842 = vmatmul.msk.f32.vlgmr.msra.gmra.mxu3 %vm874_vm3, %v4615_v45  ;;  %6845 = vmatpush.msk.msrb.mxu0 %vm878_vm13, %v4838_v22  ;;  %v4643_v23 = vor.u32 1.1754944e-38, %v4642_v15  ;;  %vm4641_vm9 = vcmp.eq.f32.partialorder %v4640_v39, 8.507059e+37 }
0x1418   :  { %6840 = vmatmul.msk.f32.vlgmr.msrb.gmra.mxu2 %vm874_vm3, %v4600_v60  ;;  %6857 = vmatpush.xpose.msk.msra.mxu3 %vm456_vm12, %v9086_v21  ;;  %v4659_v38 = vsel %vm4656_vm7, %v4658_v41, %v4654_v3 }
0x1419   :  { %v4635_v24 = vadd.f32 %v7172_v0, %v4634_v13  ;;  %6855 = vmatpush.xpose.msk.msrb.mxu2 %vm456_vm12, %v9038_v6  ;;  %6853 = vmatpush.xpose.msk.msra.mxu0 %vm456_vm12, %v4964_v46  ;;  %v4660_v21 = vmul.f32 %v9106_v10, %v4659_v38 }
0x141b   :  { %v4639_v62 = vsel %vm4638_vm8, %v7172_v0, %v4635_v24 }
0x141c   :  { %v4644_v36 = vsel %vm4641_vm9, %v4643_v23, %v4639_v62  ;;  %v5060_v34 = vpop.permute.xlu2 %5059 }
0x141d   :  { %v4645_v59 = vmul.f32 %v9116_v14, %v4644_v36 }
0x141e   :  { %v4928_v56 = vpop.permute.xlu0 %4927 }
0x141f   :  { %6846 = vmatmul.msk.f32.vlgmr.msrb.gmra.mxu0 %vm874_vm3, %v4645_v59  ;;  %6850 = vmatmul.msk.f32.vlgmr.msrb.gmra.mxu3 %vm456_vm12, %v9026_v12 }
0x1420   :  { %6848 = vmatmul.msk.f32.vlgmr.msra.gmra.mxu2 %vm874_vm3, %v4660_v21 }
0x1421   :  { %6863 = vmatpush.xpose.msk.msra.mxu2 %vm456_vm12, %v9166_v9 }
0x1423   :  { %v4932_v6 = vpop.permute.xlu1 %4931 }
0x1424   :  { %v5088_v16 = vpop.permute.xlu2 %5087  ;;  %6851 = vmatpush.xpose.msk.msrb.mxu1 %vm456_vm12, %v4932_v6 }
0x1426   :  { %v5092_v14 = vpop.permute.xlu0 %5091 }
0x1427   :  { %6852 = vmatmul.msk.f32.vlgmr.msrb.gmra.mxu1 %vm456_vm12, %v4928_v56  ;;  %6858 = vmatmul.msk.f32.vlgmr.msra.gmra.mxu3 %vm456_vm12, %v9162_v52 }
0x1428   :  { %6859 = vmatpush.xpose.msk.msra.mxu1 %vm456_vm12, %v5060_v34  ;;  %6856 = vmatmul.msk.f32.vlgmr.msrb.gmra.mxu2 %vm456_vm12, %v9043_v50 }
0x1429   :  { %6861 = vmatpush.xpose.msk.msrb.mxu0 %vm456_vm12, %v5092_v14 }
0x142b   :  { %v4960_v12 = vpop.permute.xlu1 %4959 }
0x142c   :  { %v5344_v10 = vpop.permute.xlu2 %5343  ;;  %6854 = vmatmul.msk.f32.vlgmr.msra.gmra.mxu0 %vm456_vm12, %v4960_v12 }
0x142d   :  { %6865 = vmatpush.msk.msrb.mxu3 %vm878_vm13, %v5344_v10 }
0x142e   :  { %v5431_v9 = vpop.permute.xlu0 %5430 }
0x142f   :  { %6871 = vmatpush.msk.msrb.mxu2 %vm878_vm13, %v5431_v9 }
0x1430   :  { %6864 = vmatmul.msk.f32.vlgmr.msra.gmra.mxu2 %vm456_vm12, %v9170_v1 }
0x1433   :  { %v5056_v48 = vpop.permute.xlu1 %5055 }
0x1434   :  { %v5547_v2 = vpop.permute.xlu2 %5546  ;;  %6860 = vmatmul.msk.f32.vlgmr.msra.gmra.mxu1 %vm456_vm12, %v5056_v48  ;;  %6862 = vmatmul.msk.f32.vlgmr.msrb.gmra.mxu0 %vm456_vm12, %v5088_v16 }
0x1435   :  { %6879 = vmatpush.msk.msra.mxu2 %vm878_vm13, %v5547_v2 }
0x1436   :  { %v5373_v50 = vpop.permute.xlu0 %5372 }
0x1437   :  { %6867 = vmatpush.msk.msrb.mxu1 %vm878_vm13, %v5373_v50 }
0x143b   :  { %v5460_v52 = vpop.permute.xlu1 %5459 }
0x143c   :  { %v5402_v63 = vpop.permute.xlu2 %5401  ;;  %6873 = vmatpush.msk.msra.mxu3 %vm878_vm13, %v5460_v52 }
0x143d   :  { %6869 = vmatpush.msk.msra.mxu0 %vm878_vm13, %v5402_v63 }
0x143e   :  { %v9249_v26 = vpop.permute.xlu0 %5579 }
0x1443   :  { %v9275_v34 = vpop.permute.xlu1 %5671 }
0x1444   :  { %v9251_v1 = vpop.permute.xlu2 %5675 }
0x1446   :  { %v9253_v0 = vpop.permute.xlu0 %5575 }
0x144b   :  { %v9277_v59 = vpop.permute.xlu1 %5707 }
0x144c   :  { %v5489_v30 = vpop.permute.xlu2 %5488 }
0x144d   :  { %6875 = vmatpush.msk.msra.mxu1 %vm878_vm13, %v5489_v30 }
0x144e   :  { %v5518_v42 = vpop.permute.xlu0 %5517 }
0x144f   :  { %6877 = vmatpush.msk.msrb.mxu0 %vm878_vm13, %v5518_v42 }
0x1454   :  { %v9279_v21 = vpop.permute.xlu2 %5803 }
0x147d   :  { %v4687_v19 = vpop.f32.mrf.mxu3 }
0x147e   :  { %6288 = vst [vmem:[#allocation1] ss:$4 sm:$0xff] %v4687_v19 }
0x147f   :  { %v4716_v18 = vpop.f32.mrf.mxu1 }
0x1480   :  { %6290 = vst [vmem:[#allocation1 + $0x1] ss:$4 sm:$0xff] %v4716_v18 }
0x1484   :  { %v4745_v8 = vpop.f32.mrf.mxu0 }
0x1485   :  { %6292 = vst [vmem:[#allocation1 + $0x2] ss:$4 sm:$0xff] %v4745_v8 }
0x148c   :  { %v4832_v17 = vpop.f32.mrf.mxu1 }
0x148d   :  { %6298 = vst [vmem:[#allocation1 + $0x21] ss:$4 sm:$0xff] %v4832_v17 }
0x149a   :  { %v4803_v7 = vpop.f32.mrf.mxu3 }
0x149b   :  { %v4774_v46 = vpop.f32.mrf.mxu2  ;;  %6296 = vst [vmem:[#allocation1 + $0x20] ss:$4 sm:$0xff] %v4803_v7 }
0x149c   :  { %v4861_v11 = vpop.f32.mrf.mxu0  ;;  %6294 = vst [vmem:[#allocation1 + $0x3] ss:$4 sm:$0xff] %v4774_v46 }
0x149d   :  { %6300 = vst [vmem:[#allocation1 + $0x22] ss:$4 sm:$0xff] %v4861_v11 }
0x14a2   :  { %v4922_v35 = vpop.f32.mrf.mxu3 }
0x14a3   :  { %v4890_v45 = vpop.f32.mrf.mxu2  ;;  %v5149_v23 = vsel %vm677_vm14, %v4922_v35, -inf }
0x14a4   :  { %6302 = vst [vmem:[#allocation1 + $0x23] ss:$4 sm:$0xff] %v4890_v45  ;;  %v4954_v43 = vpop.f32.mrf.mxu1 }
0x14a5   :  { %v5152_v60 = vsel %vm677_vm14, %v4954_v43, -inf }
0x14a6   :  { %5153 = vmax.xlane.f32.xlu1 %v5152_v60 }
0x14a9   :  { %v4986_v49 = vpop.f32.mrf.mxu0 }
0x14aa   :  { %v5155_v15 = vsel %vm677_vm14, %v4986_v49, -inf  ;;  %v5050_v22 = vpop.f32.mrf.mxu3 }
0x14ab   :  { %5156 = vmax.xlane.f32.xlu2 %v5155_v15  ;;  %v5161_v39 = vsel %vm677_vm14, %v5050_v22, -inf  ;;  %v5018_v24 = vpop.f32.mrf.mxu2 }
0x14ac   :  { %v5158_v38 = vsel %vm677_vm14, %v5018_v24, -inf }
0x14b1   :  { %v5082_v40 = vpop.f32.mrf.mxu1  ;;  %v5114_v13 = vpop.f32.mrf.mxu0 }
0x14b2   :  { %v5164_v3 = vsel %vm677_vm14, %v5082_v40, -inf  ;;  %v5167_v41 = vsel %vm677_vm14, %v5114_v13, -inf }
0x14b3   :  { %5162 = vmax.xlane.f32.xlu2 %v5161_v39  ;;  %5165 = vmax.xlane.f32.xlu0 %v5164_v3  ;;  %v5146_v62 = vpop.f32.mrf.mxu2 }
0x14b4   :  { %5168 = vmax.xlane.f32.xlu1 %v5167_v41  ;;  %v5170_v36 = vsel %vm677_vm14, %v5146_v62, -inf }
0x14bb   :  { %5150 = vmax.xlane.f32.xlu0 %v5149_v23 }
0x14bc   :  { %5159 = vmax.xlane.f32.xlu1 %v5158_v38 }
0x14c3   :  { %5171 = vmax.xlane.f32.xlu0 %v5170_v36 }
0x14cb   :  { %5611 = vrot.lane.b32.xlu2 %v8955_v28, %s7286_s13 }
0x14d5   :  { %5799 = vrot.lane.b32.xlu1 %v9040_v47, %s7287_s14 }
0x14d7   :  { %5703 = vrot.lane.b32.xlu0 %v8997_v20, %s7287_s14 }
0x1519   :  { %v5154_v56 = vpop.xlane.xlu1 %5153 }
0x151a   :  { %v5174_v6 = vsub.f32 %v4954_v43, %v5154_v56 }
0x151c   :  { %v5183_v16 = vmul.f32 1.442695, %v5174_v6 }
0x151e   :  { %7173 = vpow2.f32 %v5183_v16  ;;  %v5157_v14 = vpop.xlane.xlu2 %5156 }
0x151f   :  { %v5175_v12 = vsub.f32 %v4986_v49, %v5157_v14 }
0x1521   :  { %v5185_v10 = vmul.f32 1.442695, %v5175_v12 }
0x1523   :  { %7175 = vpow2.f32 %v5185_v10 }
0x1524   :  { %v9281_v28 = vpop.eup %7173 }
0x1525   :  { %v5200_v47 = vsel %vm677_vm14, %v9281_v28, 0.0 }
0x1526   :  { %5201 = vadd.xlane.f32.xlu0 %v5200_v47  ;;  %v5166_v20 = vpop.xlane.xlu0 %5165  ;;  %v5163_v19 = vpop.xlane.xlu2 %5162 }
0x1527   :  { %v5169_v9 = vpop.xlane.xlu1 %5168  ;;  %v5178_v48 = vsub.f32 %v5082_v40, %v5166_v20  ;;  %v5177_v46 = vsub.f32 %v5050_v22, %v5163_v19 }
0x1528   :  { %v5179_v52 = vsub.f32 %v5114_v13, %v5169_v9 }
0x1529   :  { %v9285_v2 = vpop.eup %7175  ;;  %v5191_v50 = vmul.f32 1.442695, %v5178_v48  ;;  %v5189_v60 = vmul.f32 1.442695, %v5177_v46 }
0x152a   :  { %v5203_v63 = vsel %vm677_vm14, %v9285_v2, 0.0  ;;  %v5193_v30 = vmul.f32 1.442695, %v5179_v52 }
0x152b   :  { %5204 = vadd.xlane.f32.xlu1 %v5203_v63  ;;  %7177 = vpow2.f32 %v5191_v50 }
0x152c   :  { %7179 = vpow2.f32 %v5193_v30 }
0x152e   :  { %v5151_v42 = vpop.xlane.xlu0 %5150 }
0x152f   :  { %v5160_v18 = vpop.xlane.xlu1 %5159  ;;  %v5173_v8 = vsub.f32 %v4922_v35, %v5151_v42 }
0x1530   :  { %v5176_v17 = vsub.f32 %v5018_v24, %v5160_v18 }
0x1531   :  { %v5181_v7 = vmul.f32 1.442695, %v5173_v8  ;;  %v9289_v45 = vpop.eup %7177 }
0x1532   :  { %v5187_v11 = vmul.f32 1.442695, %v5176_v17  ;;  %v5212_v43 = vsel %vm677_vm14, %v9289_v45, 0.0  ;;  %v9293_v40 = vpop.eup %7179 }
0x1533   :  { %7181 = vpow2.f32 %v5181_v7  ;;  %5213 = vadd.xlane.f32.xlu1 %v5212_v43  ;;  %v5215_v41 = vsel %vm677_vm14, %v9293_v40, 0.0 }
0x1534   :  { %7183 = vpow2.f32 %v5187_v11 }
0x1535   :  { %7185 = vpow2.f32 %v5189_v60 }
0x1536   :  { %v5172_v49 = vpop.xlane.xlu0 %5171 }
0x1537   :  { %v5180_v15 = vsub.f32 %v5146_v62, %v5172_v49 }
0x1539   :  { %v9295_v13 = vpop.eup %7181  ;;  %v5195_v35 = vmul.f32 1.442695, %v5180_v15 }
0x153a   :  { %v9297_v39 = vpop.eup %7183  ;;  %v5197_v22 = vsel %vm677_vm14, %v9295_v13, 0.0 }
0x153b   :  { %7187 = vpow2.f32 %v5195_v35  ;;  %v5206_v3 = vsel %vm677_vm14, %v9297_v39, 0.0  ;;  %5198 = vadd.xlane.f32.xlu2 %v5197_v22  ;;  %5216 = vadd.xlane.f32.xlu1 %v5215_v41  ;;  %v9305_v24 = vpop.eup %7185 }
0x153c   :  { %5207 = vadd.xlane.f32.xlu0 %v5206_v3  ;;  %v5209_v62 = vsel %vm677_vm14, %v9305_v24, 0.0 }
0x1541   :  { %v9307_v23 = vpop.eup %7187 }
0x1542   :  { %v5218_v38 = vsel %vm677_vm14, %v9307_v23, 0.0 }
0x1543   :  { %5219 = vadd.xlane.f32.xlu2 %v5218_v38  ;;  %5210 = vadd.xlane.f32.xlu1 %v5209_v62 }
0x1550   :  { %5643 = vrot.lane.b32.xlu0 %v8963_v57, %s7286_s13  ;;  %v9331_v57 = vpop.permute.xlu0 %5703 }
0x1558   :  { %5739 = vrot.lane.b32.xlu0 %v9023_v53, %s7286_s13 }
0x155b   :  { %5639 = vrot.lane.b32.xlu2 %v8958_v61, %s7287_s14  ;;  %v9333_v61 = vpop.permute.xlu1 %5799 }
0x155c   :  { %5607 = vrot.lane.b32.xlu1 %v8952_v5, %s7287_s14 }
0x1560   :  { %5767 = vrot.lane.b32.xlu0 %v9030_v51, %s7287_s14 }
0x1563   :  { %5735 = vrot.lane.b32.xlu2 %v9016_v55, %s7287_s14 }
0x1564   :  { %5771 = vrot.lane.b32.xlu1 %v9035_v54, %s7286_s13 }
0x1568   :  { %6110 = vrot.lane.b32.xlu0 %v9058_v4, %s7288_s15  ;;  %v5612_v4 = vpop.permute.xlu2 %5611 }
0x156b   :  { %6023 = vrot.lane.b32.xlu2 %v9049_v32, %s7288_s15 }
0x1599   :  { %v5202_v5 = vpop.xlane.xlu0 %5201 }
0x159a   :  { %7189 = vrcp.f32 %v5202_v5  ;;  %v5247_v56 = vand.u32 2147483648, %v5202_v5  ;;  %v5245_v16 = vand.u32 2147483647, %v5202_v5  ;;  %vm5241_vm1 = vweird.f32 %v5202_v5 }
0x159c   :  { %v5248_v32 = vor.u32 1.1754944e-38, %v5247_v56  ;;  %vm5246_vm5 = vcmp.eq.f32.partialorder %v5245_v16, 8.507059e+37 }
0x159e   :  { %v5205_v53 = vpop.xlane.xlu1 %5204 }
0x159f   :  { %7191 = vrcp.f32 %v5205_v53  ;;  %v5262_v9 = vand.u32 2147483648, %v5205_v53  ;;  %v5260_v52 = vand.u32 2147483647, %v5205_v53  ;;  %vm5256_vm6 = vweird.f32 %v5205_v53 }
0x15a0   :  { %v7190_v51 = vpop.eup %7189 }
0x15a1   :  { %v5237_v36 = vmul.f32 %v7190_v51, %v5202_v5  ;;  %vm5242_vm0 = vweird.f32 %v7190_v51  ;;  %v5263_v42 = vor.u32 1.1754944e-38, %v5262_v9  ;;  %vm5261_vm8 = vcmp.eq.f32.partialorder %v5260_v52, 8.507059e+37 }
0x15a2   :  { %vm5243_vm2 = vmor %vm5241_vm1, %vm5242_vm0 }
0x15a3   :  { %v5238_v55 = vsub.f32 1.0, %v5237_v36 }
0x15a5   :  { %v7192_v6 = vpop.eup %7191  ;;  %v5239_v54 = vmul.f32 %v7190_v51, %v5238_v55 }
0x15a6   :  { %v5252_v14 = vmul.f32 %v7192_v6, %v5205_v53  ;;  %v5214_v47 = vpop.xlane.xlu1 %5213  ;;  %vm5257_vm10 = vweird.f32 %v7192_v6 }
0x15a7   :  { %v5240_v12 = vadd.f32 %v7190_v51, %v5239_v54  ;;  %7193 = vrcp.f32 %v5214_v47  ;;  %vm5258_vm7 = vmor %vm5256_vm6, %vm5257_vm10  ;;  %v5305_v60 = vand.u32 2147483647, %v5214_v47  ;;  %v5307_v49 = vand.u32 2147483648, %v5214_v47 }
0x15a8   :  { %v5253_v10 = vsub.f32 1.0, %v5252_v14  ;;  %vm5301_vm0 = vweird.f32 %v5214_v47 }
0x15a9   :  { %v5244_v20 = vsel %vm5243_vm2, %v7190_v51, %v5240_v12  ;;  %vm9343_vm1 = vcmp.eq.f32.partialorder %v5305_v60, 8.507059e+37 }
0x15aa   :  { %v5249_v48 = vsel %vm5246_vm5, %v5248_v32, %v5244_v20  ;;  %v5254_v50 = vmul.f32 %v7192_v6, %v5253_v10 }
0x15ab   :  { %v5250_v63 = vmul.f32 %v9281_v28, %v5249_v48 }
0x15ac   :  { %v5255_v30 = vadd.f32 %v7192_v6, %v5254_v50 }
0x15ad   :  { %6868 = vmatmul.msk.f32.vlgmr.msrb.gmra.mxu1 %vm874_vm3, %v5250_v63  ;;  %v7194_v8 = vpop.eup %7193 }
0x15ae   :  { %v5259_v19 = vsel %vm5258_vm7, %v7192_v6, %v5255_v30  ;;  %6883 = vmatpush.xpose.msk.msrb.mxu1 %vm456_vm12, %v5612_v4  ;;  %v5199_v18 = vpop.xlane.xlu2 %5198  ;;  %v5297_v11 = vmul.f32 %v7194_v8, %v5214_v47  ;;  %v5217_v28 = vpop.xlane.xlu1 %5216  ;;  %vm5302_vm9 = vweird.f32 %v7194_v8 }
0x15af   :  { %v5264_v17 = vsel %vm5261_vm8, %v5263_v42, %v5259_v19  ;;  %7195 = vrcp.f32 %v5199_v18  ;;  %v9338_v7 = vpop.xlane.xlu0 %5207  ;;  %vm5303_vm2 = vmor %vm5301_vm0, %vm5302_vm9  ;;  %vm5226_vm5 = vweird.f32 %v5199_v18  ;;  %v5230_v5 = vand.u32 2147483647, %v5199_v18 }
0x15b0   :  { %v5265_v46 = vmul.f32 %v9285_v2, %v5264_v17  ;;  %7197 = vrcp.f32 %v5217_v28  ;;  %v5298_v43 = vsub.f32 1.0, %v5297_v11  ;;  %v5308_v2 = vor.u32 1.1754944e-38, %v5307_v49 }
0x15b1   :  { %7199 = vrcp.f32 %v9338_v7  ;;  %v5232_v53 = vand.u32 2147483648, %v5199_v18  ;;  %v5320_v56 = vand.u32 2147483647, %v5217_v28  ;;  %v5322_v4 = vand.u32 2147483648, %v5217_v28 }
0x15b2   :  { %6870 = vmatmul.msk.f32.vlgmr.msra.gmra.mxu0 %vm874_vm3, %v5265_v46  ;;  %v5299_v15 = vmul.f32 %v7194_v8, %v5298_v43  ;;  %vm5316_vm6 = vweird.f32 %v5217_v28  ;;  %vm9357_vm7 = vcmp.eq.f32.partialorder %v5230_v5, 8.507059e+37  ;;  %v5275_v9 = vand.u32 2147483647, %v9338_v7 }
0x15b3   :  { %v5277_v52 = vand.u32 2147483648, %v9338_v7  ;;  %vm9364_vm9 = vcmp.eq.f32.partialorder %v5320_v56, 8.507059e+37  ;;  %v5233_v30 = vor.u32 1.1754944e-38, %v5232_v53  ;;  %vm5271_vm4 = vweird.f32 %v9338_v7 }
0x15b4   :  { %v5300_v22 = vadd.f32 %v7194_v8, %v5299_v15  ;;  %vm5276_vm15 = vcmp.eq.f32.partialorder %v5275_v9, 8.507059e+37 }
0x15b5   :  { %v7196_v35 = vpop.eup %7195  ;;  %v5278_v15 = vor.u32 1.1754944e-38, %v5277_v52 }
0x15b6   :  { %v5222_v41 = vmul.f32 %v7196_v35, %v5199_v18  ;;  %v9347_v38 = vpop.xlane.xlu2 %5219  ;;  %v7198_v62 = vpop.eup %7197  ;;  %v5304_v36 = vsel %vm5303_vm2, %v7194_v8, %v5300_v22  ;;  %vm5227_vm10 = vweird.f32 %v7196_v35  ;;  %v5323_v8 = vor.u32 1.1754944e-38, %v5322_v4 }
0x15b7   :  { %7201 = vrcp.f32 %v9347_v38  ;;  %v7200_v51 = vpop.eup %7199  ;;  %v5312_v55 = vmul.f32 %v7198_v62, %v5217_v28  ;;  %v9350_v54 = vpop.xlane.xlu1 %5210  ;;  %v5309_v16 = vsel %vm9343_vm1, %v5308_v2, %v5304_v36  ;;  %vm5317_vm8 = vweird.f32 %v7198_v62  ;;  %vm5228_vm0 = vmor %vm5226_vm5, %vm5227_vm10 }
0x15b8   :  { %v5223_v6 = vsub.f32 1.0, %v5222_v41  ;;  %v5267_v14 = vmul.f32 %v7200_v51, %v9338_v7  ;;  %7203 = vrcp.f32 %v9350_v54  ;;  %v5310_v12 = vmul.f32 %v9289_v45, %v5309_v16  ;;  %vm5318_vm2 = vmor %vm5316_vm6, %vm5317_vm8 }
0x15b9   :  { %v5313_v32 = vsub.f32 1.0, %v5312_v55  ;;  %vm5272_vm1 = vweird.f32 %v7200_v51  ;;  %v5335_v41 = vand.u32 2147483647, %v9347_v38  ;;  %v5292_v55 = vand.u32 2147483648, %v9350_v54 }
0x15ba   :  { %v5224_v10 = vmul.f32 %v7196_v35, %v5223_v6  ;;  %v5268_v20 = vsub.f32 1.0, %v5267_v14  ;;  %6876 = vmatmul.msk.f32.vlgmr.msra.gmra.mxu1 %vm874_vm3, %v5310_v12  ;;  %vm5273_vm5 = vmor %vm5271_vm4, %vm5272_vm1  ;;  %vm5286_vm6 = vweird.f32 %v9350_v54 }
0x15bb   :  { %v5314_v48 = vmul.f32 %v7198_v62, %v5313_v32 }
0x15bc   :  { %v5225_v50 = vadd.f32 %v7196_v35, %v5224_v10  ;;  %v5269_v42 = vmul.f32 %v7200_v51, %v5268_v20 }
0x15bd   :  { %v7202_v63 = vpop.eup %7201  ;;  %v5315_v19 = vadd.f32 %v7198_v62, %v5314_v48  ;;  %v9421_v48 = vld.sshfl [vmem:[#allocation1 + $0x20] sm:$0xff pattern:$0x73625140] }
0x15be   :  { %v5229_v17 = vsel %vm5228_vm0, %v7196_v35, %v5225_v50  ;;  %v5327_v46 = vmul.f32 %v7202_v63, %v9347_v38  ;;  %v7204_v11 = vpop.eup %7203  ;;  %v5270_v60 = vadd.f32 %v7200_v51, %v5269_v42  ;;  %v5640_v22 = vpop.permute.xlu2 %5639  ;;  %vm5332_vm4 = vweird.f32 %v7202_v63 }
0x15bf   :  { %v5234_v43 = vsel %vm9357_vm7, %v5233_v30, %v5229_v17  ;;  %v5319_v18 = vsel %vm5318_vm2, %v7198_v62, %v5315_v19  ;;  %v5282_v35 = vmul.f32 %v7204_v11, %v9350_v54  ;;  %v5337_v62 = vand.u32 2147483648, %v9347_v38 }
0x15c0   :  { %v5235_v49 = vmul.f32 %v9295_v13, %v5234_v43  ;;  %v5324_v3 = vsel %vm9364_vm9, %v5323_v8, %v5319_v18  ;;  %v5274_v28 = vsel %vm5273_vm5, %v7200_v51, %v5270_v60  ;;  %v5328_v2 = vsub.f32 1.0, %v5327_v46 }
0x15c1   :  { %v5325_v5 = vmul.f32 %v9293_v40, %v5324_v3  ;;  %v5279_v53 = vsel %vm5276_vm15, %v5278_v15, %v5274_v28  ;;  %v5283_v7 = vsub.f32 1.0, %v5282_v35  ;;  %vm5287_vm10 = vweird.f32 %v7204_v11 }
0x15c2   :  { %v5644_v36 = vpop.permute.xlu0 %5643  ;;  %6866 = vmatmul.msk.f32.vlgmr.msrb.gmra.mxu3 %vm874_vm3, %v5235_v49  ;;  %v5280_v13 = vmul.f32 %v9297_v39, %v5279_v53  ;;  %v5329_v56 = vmul.f32 %v7202_v63, %v5328_v2  ;;  %v5290_v40 = vand.u32 2147483647, %v9350_v54  ;;  %vm5331_vm15 = vweird.f32 %v9347_v38  ;;  %vm5288_vm8 = vmor %vm5286_vm6, %vm5287_vm10 }
0x15c3   :  { %6881 = vmatpush.xpose.msk.msrb.mxu3 %vm456_vm12, %v9249_v26  ;;  %6885 = vmatpush.xpose.msk.msra.mxu0 %vm456_vm12, %v5644_v36  ;;  %v5284_v51 = vmul.f32 %v7204_v11, %v5283_v7  ;;  %vm5333_vm7 = vmor %vm5331_vm15, %vm5332_vm4  ;;  %v5338_v16 = vor.u32 1.1754944e-38, %v5337_v62  ;;  %v5293_v26 = vor.u32 1.1754944e-38, %v5292_v55  ;;  %vm5336_vm9 = vcmp.eq.f32.partialorder %v5335_v41, 8.507059e+37 }
0x15c4   :  { %6878 = vmatmul.msk.f32.vlgmr.msrb.gmra.mxu0 %vm874_vm3, %v5325_v5  ;;  %v5330_v6 = vadd.f32 %v7202_v63, %v5329_v56  ;;  %6872 = vmatmul.msk.f32.vlgmr.msrb.gmra.mxu2 %vm874_vm3, %v5280_v13  ;;  %vm5291_vm0 = vcmp.eq.f32.partialorder %v5290_v40, 8.507059e+37 }
0x15c5   :  { %v5285_v39 = vadd.f32 %v7204_v11, %v5284_v51  ;;  %6887 = vmatpush.xpose.msk.msrb.mxu2 %vm456_vm12, %v9251_v1 }
0x15c6   :  { %v5334_v4 = vsel %vm5333_vm7, %v7202_v63, %v5330_v6  ;;  %v5736_v47 = vpop.permute.xlu2 %5735 }
0x15c7   :  { %v5289_v14 = vsel %vm5288_vm8, %v7204_v11, %v5285_v39  ;;  %v5339_v12 = vsel %vm5336_vm9, %v5338_v16, %v5334_v4 }
0x15c8   :  { %v5294_v32 = vsel %vm5291_vm0, %v5293_v26, %v5289_v14  ;;  %v5340_v38 = vmul.f32 %v9307_v23, %v5339_v12 }
0x15c9   :  { %v5295_v10 = vmul.f32 %v9305_v24, %v5294_v32 }
0x15ca   :  { %v5740_v20 = vpop.permute.xlu0 %5739 }
0x15cb   :  { %6891 = vmatpush.xpose.msk.msra.mxu1 %vm456_vm12, %v5740_v20  ;;  %6874 = vmatmul.msk.f32.vlgmr.msra.gmra.mxu3 %vm874_vm3, %v5295_v10 }
0x15cc   :  { %6886 = vmatmul.msk.f32.vlgmr.msra.gmra.mxu0 %vm456_vm12, %v5640_v22  ;;  %6880 = vmatmul.msk.f32.vlgmr.msra.gmra.mxu2 %vm874_vm3, %v5340_v38 }
0x15cd   :  { %6889 = vmatpush.xpose.msk.msra.mxu3 %vm456_vm12, %v9277_v59  ;;  %6895 = vmatpush.xpose.msk.msra.mxu2 %vm456_vm12, %v9279_v21 }
0x15ce   :  { %v5608_v1 = vpop.permute.xlu1 %5607  ;;  %v6024_v23 = vpop.permute.xlu2 %6023 }
0x15cf   :  { %6884 = vmatmul.msk.f32.vlgmr.msrb.gmra.mxu1 %vm456_vm12, %v5608_v1 }
0x15d2   :  { %v5768_v24 = vpop.permute.xlu0 %5767 }
0x15d3   :  { %6882 = vmatmul.msk.f32.vlgmr.msrb.gmra.mxu3 %vm456_vm12, %v9253_v0 }
0x15d4   :  { %6888 = vmatmul.msk.f32.vlgmr.msrb.gmra.mxu2 %vm456_vm12, %v9275_v34  ;;  %6897 = vmatpush.msk.msrb.mxu3 %vm878_vm13, %v6024_v23  ;;  %v9419_v34 = vld.sshfl [vmem:[#allocation1] sm:$0xff pattern:$0x73625140] }
0x15d6   :  { %v5772_v54 = vpop.permute.xlu1 %5771 }
0x15d7   :  { %6892 = vmatmul.msk.f32.vlgmr.msra.gmra.mxu1 %vm456_vm12, %v5736_v47  ;;  %6893 = vmatpush.xpose.msk.msrb.mxu0 %vm456_vm12, %v5772_v54 }
0x15da   :  { %v6111_v59 = vpop.permute.xlu0 %6110  ;;  %6894 = vmatmul.msk.f32.vlgmr.msrb.gmra.mxu0 %vm456_vm12, %v5768_v24 }
0x15db   :  { %6903 = vmatpush.msk.msrb.mxu2 %vm878_vm13, %v6111_v59  ;;  %6890 = vmatmul.msk.f32.vlgmr.msra.gmra.mxu3 %vm456_vm12, %v9331_v57 }
0x15dc   :  { %6896 = vmatmul.msk.f32.vlgmr.msra.gmra.mxu2 %vm456_vm12, %v9333_v61 }
0x162a   :  { %v5396_v0 = vpop.f32.mrf.mxu1 }
0x162b   :  { %6321 = vst [vmem:[#allocation1 + $0x1] ss:$4 sm:$0xff] %v5396_v0 }
0x162f   :  { %v5425_v21 = vpop.f32.mrf.mxu0 }
0x1630   :  { %6323 = vst [vmem:[#allocation1 + $0x2] ss:$4 sm:$0xff] %v5425_v21 }
0x1637   :  { %v5512_v9 = vpop.f32.mrf.mxu1 }
0x1638   :  { %6329 = vst [vmem:[#allocation1 + $0x21] ss:$4 sm:$0xff] %v5512_v9 }
0x1641   :  { %v5541_v50 = vpop.f32.mrf.mxu0 }
0x1642   :  { %6331 = vst [vmem:[#allocation1 + $0x22] ss:$4 sm:$0xff] %v5541_v50 }
0x1645   :  { %v5367_v52 = vpop.f32.mrf.mxu3 }
0x1646   :  { %6319 = vst [vmem:[#allocation1] ss:$4 sm:$0xff] %v5367_v52 }
0x1647   :  { %v5454_v57 = vpop.f32.mrf.mxu2 }
0x1648   :  { %6325 = vst [vmem:[#allocation1 + $0x3] ss:$4 sm:$0xff] %v5454_v57 }
0x1649   :  { %v5666_v63 = vpop.f32.mrf.mxu0 }
0x164a   :  { %v5835_v45 = vsel %vm677_vm14, %v5666_v63, -inf }
0x164b   :  { %5836 = vmax.xlane.f32.xlu1 %v5835_v45 }
0x164c   :  { %v5634_v61 = vpop.f32.mrf.mxu1 }
0x164d   :  { %v5832_v42 = vsel %vm677_vm14, %v5634_v61, -inf }
0x164e   :  { %v5483_v30 = vpop.f32.mrf.mxu3  ;;  %5833 = vmax.xlane.f32.xlu0 %v5832_v42 }
0x164f   :  { %v5570_v19 = vpop.f32.mrf.mxu2  ;;  %6327 = vst [vmem:[#allocation1 + $0x20] ss:$4 sm:$0xff] %v5483_v30  ;;  %v6334_v42 = vld.sshfl [vmem:[#allocation1] sm:$0xff pattern:$0x73625140] }
0x1650   :  { %6333 = vst [vmem:[#allocation1 + $0x23] ss:$4 sm:$0xff] %v5570_v19 }
0x1654   :  { %v5762_v8 = vpop.f32.mrf.mxu1 }
0x1655   :  { %v5844_v46 = vsel %vm677_vm14, %v5762_v8, -inf }
0x1656   :  { %v5602_v17 = vpop.f32.mrf.mxu3  ;;  %5845 = vmax.xlane.f32.xlu1 %v5844_v46 }
0x1657   :  { %v9426_v11 = vpop.f32.mrf.mxu2  ;;  %v5794_v43 = vpop.f32.mrf.mxu0  ;;  %v5829_v49 = vsel %vm677_vm14, %v5602_v17, -inf  ;;  %v6335_v19 = vld.sshfl [vmem:[#allocation1 + $0x20] sm:$0xff pattern:$0x73625140] }
0x1658   :  { %v5847_v60 = vsel %vm677_vm14, %v5794_v43, -inf  ;;  %v5838_v3 = vsel %vm677_vm14, %v9426_v11, -inf }
0x1659   :  { %5848 = vmax.xlane.f32.xlu2 %v5847_v60 }
0x165e   :  { %v5730_v18 = vpop.f32.mrf.mxu3  ;;  %5830 = vmax.xlane.f32.xlu1 %v5829_v49 }
0x165f   :  { %v5826_v15 = vpop.f32.mrf.mxu2  ;;  %v5841_v22 = vsel %vm677_vm14, %v5730_v18, -inf }
0x1660   :  { %v5850_v35 = vsel %vm677_vm14, %v5826_v15, -inf }
0x1661   :  { %5851 = vmax.xlane.f32.xlu0 %v5850_v35  ;;  %5842 = vmax.xlane.f32.xlu2 %v5841_v22 }
0x1669   :  { %5839 = vmax.xlane.f32.xlu2 %v5838_v3 }
0x1675   :  { %6081 = vrot.lane.b32.xlu0 %v9055_v58, %s7288_s15 }
0x1677   :  { %6052 = vrot.lane.b32.xlu1 %v9052_v37, %s7288_s15 }
0x1681   :  { %6139 = vrot.lane.b32.xlu2 %v9061_v25, %s7288_s15 }
0x16be   :  { %v5837_v28 = vpop.xlane.xlu1 %5836 }
0x16bf   :  { %v5855_v2 = vsub.f32 %v5666_v63, %v5837_v28 }
0x16c1   :  { %v5865_v41 = vmul.f32 1.442695, %v5855_v2  ;;  %v5834_v5 = vpop.xlane.xlu0 %5833 }
0x16c2   :  { %v5854_v53 = vsub.f32 %v5634_v61, %v5834_v5 }
0x16c3   :  { %7205 = vpow2.f32 %v5865_v41 }
0x16c4   :  { %v5863_v7 = vmul.f32 1.442695, %v5854_v53 }
0x16c6   :  { %7207 = vpow2.f32 %v5863_v7 }
0x16c9   :  { %v9440_v62 = vpop.eup %7205  ;;  %v5846_v58 = vpop.xlane.xlu1 %5845 }
0x16ca   :  { %v5883_v36 = vsel %vm677_vm14, %v9440_v62, 0.0  ;;  %v5858_v13 = vsub.f32 %v5762_v8, %v5846_v58 }
0x16cb   :  { %5884 = vadd.xlane.f32.xlu0 %v5883_v36 }
0x16cc   :  { %v9444_v37 = vpop.eup %7207  ;;  %v5871_v55 = vmul.f32 1.442695, %v5858_v13  ;;  %v5849_v25 = vpop.xlane.xlu2 %5848 }
0x16cd   :  { %v5859_v56 = vsub.f32 %v5794_v43, %v5849_v25  ;;  %v5880_v51 = vsel %vm677_vm14, %v9444_v37, 0.0 }
0x16ce   :  { %7209 = vpow2.f32 %v5871_v55  ;;  %5881 = vadd.xlane.f32.xlu2 %v5880_v51 }
0x16cf   :  { %v5873_v40 = vmul.f32 1.442695, %v5859_v56 }
0x16d1   :  { %7211 = vpow2.f32 %v5873_v40  ;;  %v5831_v6 = vpop.xlane.xlu1 %5830 }
0x16d2   :  { %v5853_v39 = vsub.f32 %v5602_v17, %v5831_v6 }
0x16d4   :  { %v5852_v16 = vpop.xlane.xlu0 %5851  ;;  %v9448_v26 = vpop.eup %7209  ;;  %v5861_v4 = vmul.f32 1.442695, %v5853_v39 }
0x16d5   :  { %v5860_v14 = vsub.f32 %v5826_v15, %v5852_v16  ;;  %v5843_v12 = vpop.xlane.xlu2 %5842  ;;  %v5892_v38 = vsel %vm677_vm14, %v9448_v26, 0.0 }
0x16d6   :  { %v5857_v32 = vsub.f32 %v5730_v18, %v5843_v12  ;;  %7213 = vpow2.f32 %v5861_v4  ;;  %5893 = vadd.xlane.f32.xlu0 %v5892_v38 }
0x16d7   :  { %v5875_v10 = vmul.f32 1.442695, %v5860_v14  ;;  %v9452_v47 = vpop.eup %7211 }
0x16d8   :  { %v5869_v20 = vmul.f32 1.442695, %v5857_v32  ;;  %v5895_v1 = vsel %vm677_vm14, %v9452_v47, 0.0 }
0x16d9   :  { %7215 = vpow2.f32 %v5875_v10  ;;  %5896 = vadd.xlane.f32.xlu1 %v5895_v1 }
0x16da   :  { %7217 = vpow2.f32 %v5869_v20 }
0x16dc   :  { %v9456_v24 = vpop.eup %7213 }
0x16dd   :  { %v5840_v23 = vpop.xlane.xlu2 %5839  ;;  %v5877_v59 = vsel %vm677_vm14, %v9456_v24, 0.0 }
0x16de   :  { %v5856_v54 = vsub.f32 %v9426_v11, %v5840_v23  ;;  %5878 = vadd.xlane.f32.xlu0 %v5877_v59 }
0x16df   :  { %v9461_v0 = vpop.eup %7215 }
0x16e0   :  { %v9463_v21 = vpop.eup %7217  ;;  %v5867_v9 = vmul.f32 1.442695, %v5856_v54  ;;  %v5898_v50 = vsel %vm677_vm14, %v9461_v0, 0.0 }
0x16e1   :  { %5899 = vadd.xlane.f32.xlu2 %v5898_v50  ;;  %v5889_v52 = vsel %vm677_vm14, %v9463_v21, 0.0 }
0x16e2   :  { %7219 = vpow2.f32 %v5867_v9  ;;  %5890 = vadd.xlane.f32.xlu1 %v5889_v52 }
0x16e5   :  { %v6140_v57 = vpop.permute.xlu2 %6139 }
0x16e6   :  { %6905 = vmatpush.msk.msra.mxu3 %vm878_vm13, %v6140_v57 }
0x16e7   :  { %v6082_v63 = vpop.permute.xlu0 %6081 }
0x16e8   :  { %v9470_v45 = vpop.eup %7219  ;;  %6901 = vmatpush.msk.msra.mxu0 %vm878_vm13, %v6082_v63 }
0x16e9   :  { %v5886_v61 = vsel %vm677_vm14, %v9470_v45, 0.0  ;;  %v6053_v30 = vpop.permute.xlu1 %6052 }
0x16ea   :  { %5887 = vadd.xlane.f32.xlu1 %v5886_v61  ;;  %6899 = vmatpush.msk.msrb.mxu1 %vm878_vm13, %v6053_v30 }
0x16f2   :  { %6226 = vrot.lane.b32.xlu0 %v9070_v33, %s7288_s15 }
0x16f9   :  { %6168 = vrot.lane.b32.xlu2 %v9064_v29, %s7288_s15 }
0x16fa   :  { %6305 = vrot.lane.b32.xlu0 %v9419_v34, %s7289_s16 }
0x1701   :  { %6336 = vrot.lane.b32.xlu2 %v6334_v42, %s7290_s17 }
0x1702   :  { %6307 = vrot.lane.b32.xlu0 %v9421_v48, %s7289_s16 }
0x1703   :  { %6197 = vrot.lane.b32.xlu1 %v9067_v31, %s7288_s15 }
0x1709   :  { %6338 = vrot.lane.b32.xlu2 %v6335_v19, %s7290_s17 }
0x173e   :  { %v5885_v8 = vpop.xlane.xlu0 %5884 }
0x173f   :  { %7221 = vrcp.f32 %v5885_v8  ;;  %v5942_v34 = vand.u32 2147483648, %v5885_v8  ;;  %v5940_v60 = vand.u32 2147483647, %v5885_v8  ;;  %vm5936_vm1 = vweird.f32 %v5885_v8 }
0x1741   :  { %v5882_v33 = vpop.xlane.xlu2 %5881  ;;  %v5943_v31 = vor.u32 1.1754944e-38, %v5942_v34  ;;  %vm5941_vm5 = vcmp.eq.f32.partialorder %v5940_v60, 8.507059e+37 }
0x1742   :  { %7223 = vrcp.f32 %v5882_v33  ;;  %v5927_v22 = vand.u32 2147483648, %v5882_v33  ;;  %v5925_v41 = vand.u32 2147483647, %v5882_v33  ;;  %vm5921_vm10 = vweird.f32 %v5882_v33 }
0x1744   :  { %v5928_v36 = vor.u32 1.1754944e-38, %v5927_v22  ;;  %vm5926_vm6 = vcmp.eq.f32.partialorder %v5925_v41, 8.507059e+37 }
0x1745   :  { %v7222_v29 = vpop.eup %7221 }
0x1746   :  { %v5932_v17 = vmul.f32 %v7222_v29, %v5885_v8  ;;  %vm5937_vm14 = vweird.f32 %v7222_v29 }
0x1747   :  { %vm5938_vm2 = vmor %vm5936_vm1, %vm5937_vm14 }
0x1748   :  { %v5933_v46 = vsub.f32 1.0, %v5932_v17  ;;  %v7224_v11 = vpop.eup %7223 }
0x1749   :  { %v5917_v18 = vmul.f32 %v7224_v11, %v5882_v33  ;;  %v5894_v48 = vpop.xlane.xlu0 %5893  ;;  %vm5922_vm4 = vweird.f32 %v7224_v11 }
0x174a   :  { %v5934_v43 = vmul.f32 %v7222_v29, %v5933_v46  ;;  %7225 = vrcp.f32 %v5894_v48  ;;  %vm5923_vm15 = vmor %vm5921_vm10, %vm5922_vm4  ;;  %v5987_v6 = vand.u32 2147483648, %v5894_v48  ;;  %v5985_v16 = vand.u32 2147483647, %v5894_v48 }
0x174b   :  { %v5918_v15 = vsub.f32 1.0, %v5917_v18  ;;  %vm5981_vm8 = vweird.f32 %v5894_v48 }
0x174c   :  { %v5935_v49 = vadd.f32 %v7222_v29, %v5934_v43  ;;  %v9488_v3 = vpop.xlane.xlu1 %5896  ;;  %v5988_v12 = vor.u32 1.1754944e-38, %v5987_v6  ;;  %vm5986_vm0 = vcmp.eq.f32.partialorder %v5985_v16, 8.507059e+37 }
0x174d   :  { %v5919_v2 = vmul.f32 %v7224_v11, %v5918_v15 }
0x174e   :  { %v5939_v35 = vsel %vm5938_vm2, %v7222_v29, %v5935_v49 }
0x174f   :  { %v5944_v28 = vsel %vm5941_vm5, %v5943_v31, %v5939_v35  ;;  %v5920_v53 = vadd.f32 %v7224_v11, %v5919_v2 }
0x1750   :  { %v5945_v5 = vmul.f32 %v9440_v62, %v5944_v28  ;;  %v7226_v7 = vpop.eup %7225 }
0x1751   :  { %v5924_v58 = vsel %vm5923_vm15, %v7224_v11, %v5920_v53  ;;  %v5977_v13 = vmul.f32 %v7226_v7, %v5894_v48  ;;  %v5879_v55 = vpop.xlane.xlu0 %5878  ;;  %vm5982_vm7 = vweird.f32 %v7226_v7 }
0x1752   :  { %6902 = vmatmul.msk.f32.vlgmr.msra.gmra.mxu0 %vm874_vm3, %v5945_v5  ;;  %v5929_v25 = vsel %vm5926_vm6, %v5928_v36, %v5924_v58  ;;  %7227 = vrcp.f32 %v5879_v55  ;;  %vm5983_vm9 = vmor %vm5981_vm8, %vm5982_vm7  ;;  %v5910_v59 = vand.u32 2147483647, %v5879_v55  ;;  %v5912_v9 = vand.u32 2147483648, %v5879_v55 }
0x1753   :  { %v5930_v56 = vmul.f32 %v9444_v37, %v5929_v25  ;;  %v5978_v51 = vsub.f32 1.0, %v5977_v13  ;;  %7229 = vrcp.f32 %v9488_v3  ;;  %vm5906_vm1 = vweird.f32 %v5879_v55 }
0x1754   :  { %v9493_v40 = vpop.xlane.xlu2 %5899  ;;  %vm5911_vm5 = vcmp.eq.f32.partialorder %v5910_v59, 8.507059e+37  ;;  %v5913_v42 = vor.u32 1.1754944e-38, %v5912_v9  ;;  %v6000_v13 = vand.u32 2147483647, %v9488_v3 }
0x1755   :  { %v5891_v62 = vpop.xlane.xlu1 %5890  ;;  %v5979_v39 = vmul.f32 %v7226_v7, %v5978_v51  ;;  %6900 = vmatmul.msk.f32.vlgmr.msrb.gmra.mxu1 %vm874_vm3, %v5930_v56 }
0x1756   :  { %7231 = vrcp.f32 %v5891_v62  ;;  %v5972_v46 = vand.u32 2147483648, %v5891_v62  ;;  %vm5966_vm10 = vweird.f32 %v5891_v62  ;;  %v5970_v43 = vand.u32 2147483647, %v5891_v62 }
0x1757   :  { %v5980_v4 = vadd.f32 %v7226_v7, %v5979_v39  ;;  %7233 = vrcp.f32 %v9493_v40  ;;  %v6015_v39 = vand.u32 2147483647, %v9493_v40 }
0x1758   :  { %v7228_v14 = vpop.eup %7227  ;;  %v5973_v35 = vor.u32 1.1754944e-38, %v5972_v46  ;;  %vm5971_vm6 = vcmp.eq.f32.partialorder %v5970_v43, 8.507059e+37 }
0x1759   :  { %v5984_v37 = vsel %vm5983_vm9, %v7226_v7, %v5980_v4  ;;  %v5902_v32 = vmul.f32 %v7228_v14, %v5879_v55  ;;  %v9498_v10 = vpop.eup %7229  ;;  %vm5907_vm14 = vweird.f32 %v7228_v14  ;;  %v6002_v7 = vand.u32 2147483648, %v9488_v3 }
0x175a   :  { %v5989_v38 = vsel %vm5986_vm0, %v5988_v12, %v5984_v37  ;;  %v5992_v61 = vmul.f32 %v9498_v10, %v9488_v3  ;;  %vm5908_vm2 = vmor %vm5906_vm1, %vm5907_vm14  ;;  %vm5997_vm8 = vweird.f32 %v9498_v10  ;;  %vm5996_vm0 = vweird.f32 %v9488_v3 }
0x175b   :  { %v5990_v20 = vmul.f32 %v9448_v26, %v5989_v38  ;;  %v5903_v1 = vsub.f32 1.0, %v5902_v32  ;;  %vm9520_vm1 = vmor %vm5996_vm0, %vm5997_vm8  ;;  %v6017_v3 = vand.u32 2147483648, %v9493_v40 }
0x175c   :  { %v6169_v23 = vpop.permute.xlu2 %6168  ;;  %v7232_v54 = vpop.eup %7231  ;;  %v5993_v29 = vsub.f32 1.0, %v5992_v61  ;;  %v6922_v61 = vld [vmem:[%s9657_s5 + $0x38] sm:$0xff] }
0x175d   :  { %6907 = vmatpush.msk.msra.mxu1 %vm878_vm13, %v6169_v23  ;;  %v5888_v50 = vpop.xlane.xlu1 %5887  ;;  %v5904_v52 = vmul.f32 %v7228_v14, %v5903_v1  ;;  %v5962_v57 = vmul.f32 %v7232_v54, %v5891_v62  ;;  %v9503_v63 = vpop.eup %7233  ;;  %vm5967_vm4 = vweird.f32 %v7232_v54  ;;  %v6003_v62 = vor.u32 1.1754944e-38, %v6002_v7  ;;  %v6915_v1 = vld [vmem:[%s9656_s4 + $0x30] sm:$0xff] }
0x175e   :  { %6908 = vmatmul.msk.f32.vlgmr.msra.gmra.mxu1 %vm874_vm3, %v5990_v20  ;;  %7235 = vrcp.f32 %v5888_v50  ;;  %v6007_v8 = vmul.f32 %v9503_v63, %v9493_v40  ;;  %vm5968_vm15 = vmor %vm5966_vm10, %vm5967_vm4  ;;  %v5994_v15 = vmul.f32 %v9498_v10, %v5993_v29  ;;  %v5955_v5 = vand.u32 2147483647, %v5888_v50 }
0x175f   :  { %v5905_v26 = vadd.f32 %v7228_v14, %v5904_v52  ;;  %v5963_v30 = vsub.f32 1.0, %v5962_v57  ;;  %vm5951_vm9 = vweird.f32 %v5888_v50  ;;  %vm6011_vm4 = vweird.f32 %v9493_v40  ;;  %6438 = vmatpush.msrb.mxu1 %v6922_v61 }
0x1760   :  { %v6008_v48 = vsub.f32 1.0, %v6007_v8  ;;  %v5995_v53 = vadd.f32 %v9498_v10, %v5994_v15  ;;  %vm6001_vm10 = vcmp.eq.f32.partialorder %v6000_v13, 8.507059e+37  ;;  %v6018_v12 = vor.u32 1.1754944e-38, %v6017_v3  ;;  %v9732_v13 = vld [vmem:[#allocation5_spill] sm:$0xff] }
0x1761   :  { %v5909_v19 = vsel %vm5908_vm2, %v7228_v14, %v5905_v26  ;;  %v5964_v33 = vmul.f32 %v7232_v54, %v5963_v30  ;;  %vm6012_vm2 = vweird.f32 %v9503_v63  ;;  %v6921_v26 = vld [vmem:[%s9657_s5 + $0x30] sm:$0xff] }
0x1762   :  { %v5914_v17 = vsel %vm5911_vm5, %v5913_v42, %v5909_v19  ;;  %v6009_v2 = vmul.f32 %v9503_v63, %v6008_v48  ;;  %vm5956_vm5 = vcmp.eq.f32.partialorder %v5955_v5, 8.507059e+37  ;;  %6439 = vmatpush.msrb.mxu1 %v6921_v26 }
0x1763   :  { %v5915_v34 = vmul.f32 %v9456_v24, %v5914_v17  ;;  %v5965_v11 = vadd.f32 %v7232_v54, %v5964_v33  ;;  %v5957_v24 = vand.u32 2147483648, %v5888_v50 }
0x1764   :  { %v7236_v60 = vpop.eup %7235  ;;  %v6227_v18 = vpop.permute.xlu0 %6226  ;;  %v6010_v56 = vadd.f32 %v9503_v63, %v6009_v2 }
0x1765   :  { %v5969_v49 = vsel %vm5968_vm15, %v7232_v54, %v5965_v11  ;;  %v5947_v31 = vmul.f32 %v7236_v60, %v5888_v50  ;;  %6898 = vmatmul.msk.f32.vlgmr.msrb.gmra.mxu3 %vm874_vm3, %v5915_v34  ;;  %6911 = vmatpush.msk.msra.mxu2 %vm878_vm13, %v6227_v18  ;;  %vm5952_vm7 = vweird.f32 %v7236_v60  ;;  %v5958_v55 = vor.u32 1.1754944e-38, %v5957_v24  ;;  %vm6013_vm15 = vmor %vm6011_vm4, %vm6012_vm2  ;;  %v6337_v42 = vpop.permute.xlu2 %6336  ;;  %v6919_v18 = vld [vmem:[%s9657_s5 + $0x20] sm:$0xff] }
0x1766   :  { %v5974_v28 = vsel %vm5971_vm6, %v5973_v35, %v5969_v49  ;;  %vm5953_vm14 = vmor %vm5951_vm9, %vm5952_vm7  ;;  %v6014_v14 = vsel %vm6013_vm15, %v9503_v63, %v6010_v56  ;;  %vm6016_vm6 = vcmp.eq.f32.partialorder %v6015_v39, 8.507059e+37  ;;  %v6913_v63 = vld [vmem:[%s9656_s4 + $0x20] sm:$0xff] }
0x1767   :  { %v5948_v22 = vsub.f32 1.0, %v5947_v31  ;;  %v5975_v36 = vmul.f32 %v9463_v21, %v5974_v28  ;;  %v5999_v21 = vsel %vm9520_vm1, %v9498_v10, %v5995_v53  ;;  %v6019_v32 = vsel %vm6016_vm6, %v6018_v12, %v6014_v14  ;;  %v6926_v14 = vld [vmem:[%s9658_s6 + $0x28] sm:$0xff]  ;;  %v6925_v12 = vld [vmem:[%s9658_s6 + $0x20] sm:$0xff] }
0x1768   :  { %v6004_v4 = vsel %vm6001_vm10, %v6003_v62, %v5999_v21  ;;  %v6020_v40 = vmul.f32 %v9461_v0, %v6019_v32  ;;  %v6914_v0 = vld [vmem:[%s9656_s4 + $0x28] sm:$0xff] }
0x1769   :  { %v5949_v41 = vmul.f32 %v7236_v60, %v5948_v22  ;;  %v6005_v37 = vmul.f32 %v9452_v47, %v6004_v4  ;;  %v6916_v47 = vld [vmem:[%s9656_s4 + $0x38] sm:$0xff]  ;;  %v6927_v4 = vld [vmem:[%s9658_s6 + $0x30] sm:$0xff] }
0x176a   :  { %6403 = vmatpush.msrb.mxu3 %v6916_v47 }
0x176b   :  { %v5950_v58 = vadd.f32 %v7236_v60, %v5949_v41 }
0x176c   :  { %6404 = vmatpush.msrb.mxu3 %v6915_v1  ;;  %v6306_v30 = vpop.permute.xlu0 %6305  ;;  %v6935_v1 = vld [vmem:[%s9659_s7 + $0x60] sm:$0xff] }
0x176d   :  { %v5954_v51 = vsel %vm5953_vm14, %v7236_v60, %v5950_v58  ;;  %6906 = vmatmul.msk.f32.vlgmr.msra.gmra.mxu3 %vm874_vm3, %v5975_v36  ;;  %v6373_v19 = vsel %vm456_vm12, %v9257_v27, %v6306_v30  ;;  %v6339_v34 = vpop.permute.xlu2 %6338  ;;  %v6920_v27 = vld [vmem:[%s9657_s5 + $0x28] sm:$0xff]  ;;  %s6625_s5 = sshll.u32 %s9661_s9, 4  ;;  %s6626_s5 = int_to_ptr.hbm [resolvable:$true] %s6625_s5 }
0x176e   :  { %v5959_v6 = vsel %vm5956_vm5, %v5958_v55, %v5954_v51  ;;  %6405 = vmatpush.msrb.mxu3 %v6914_v0  ;;  %v6375_v33 = vsel %vm3266_vm11, %v6373_v19, %v6337_v42  ;;  %6440 = vmatpush.msrb.mxu1 %v6920_v27 }
0x176f   :  { %v5960_v16 = vmul.f32 %v9470_v45, %v5959_v6 }
0x1770   :  { %6406 = vmatpush.msrb.mxu3 %v6913_v63  ;;  %6441 = vmatpush.msrb.mxu1 %v6919_v18  ;;  %v6933_v18 = vld [vmem:[%s9659_s7 + $0x50] sm:$0xff] }
0x1771   :  { %6904 = vmatmul.msk.f32.vlgmr.msrb.gmra.mxu2 %vm874_vm3, %v5960_v16  ;;  %v6928_v16 = vld [vmem:[%s9658_s6 + $0x38] sm:$0xff] }
0x1774   :  { %v6308_v17 = vpop.permute.xlu0 %6307 }
0x1775   :  { %v6198_v38 = vpop.permute.xlu1 %6197  ;;  %v6374_v46 = vsel %vm456_vm12, %v9259_v44, %v6308_v17  ;;  %v9580_v44 = vld [vmem:[%s9660_s8 + $0x10] sm:$0xff] }
0x1776   :  { %6909 = vmatpush.msk.msrb.mxu0 %vm878_vm13, %v6198_v38  ;;  %vm9724_vm13 = vcmask 195584   ;;  %v6376_v43 = vsel %vm3266_vm11, %v6374_v46, %v6339_v34  ;;  %v6384_v48 = vperm.slane %v9580_v44, 3  ;;  %v6419_v22 = vperm.slane %v9580_v44, 4 }
0x1777   :  { %6910 = vmatmul.msk.f32.vlgmr.msrb.gmra.mxu0 %vm874_vm3, %v6005_v37  ;;  %vm9726_vm7 = vmmov %vm9724_vm13  ;;  %v6495_v26 = vperm.slane %v9580_v44, 5  ;;  %v6498_v19 = vperm.slane %v9580_v44, 6 }
0x1778   :  { %6525 = vmatpush.msra.mxu0 %v6928_v16 }
0x1779   :  { %6912 = vmatmul.msk.f32.vlgmr.msra.gmra.mxu2 %vm874_vm3, %v6020_v40  ;;  %vm9725_vm3 = vcmask 261120   ;;  %v6938_v40 = vld [vmem:[%s9659_s7 + $0x78] sm:$0xff] }
0x177a   :  { %vm9727_vm8 = vmmov %vm9725_vm3  ;;  %6526 = vmatpush.msra.mxu0 %v6927_v4  ;;  %6562 = vmatpush.msrb.mxu2 %v6938_v40 }
0x177b   :  { %vm9728_vm12 = vmmov %vm9725_vm3 }
0x177c   :  { %vm9729_vm11 = vmmov %vm9725_vm3  ;;  %6527 = vmatpush.msra.mxu0 %v6926_v14 }
0x177d   :  { %vm9730_vm9 = vmmov %vm9725_vm3 }
0x177e   :  { %vm9731_vm0 = vmmov %vm9725_vm3  ;;  %6528 = vmatpush.msra.mxu0 %v6925_v12 }
0x177f   :  { %vm9733_vm14 = vmmov %vm9731_vm0 }
0x1780   :  { %vm9734_vm1 = vmmov %vm9731_vm0 }
0x17cf   :  { %v6105_v45 = vpop.f32.mrf.mxu0 }
0x17d0   :  { %6354 = vst [vmem:[#allocation1 + $0x2] ss:$4 sm:$0xff] %v6105_v45  ;;  %v6937_v45 = vld [vmem:[%s9659_s7 + $0x70] sm:$0xff] }
0x17d1   :  { %6563 = vmatpush.msrb.mxu2 %v6937_v45 }
0x17d2   :  { %v6076_v10 = vpop.f32.mrf.mxu1 }
0x17d3   :  { %6352 = vst [vmem:[#allocation1 + $0x1] ss:$4 sm:$0xff] %v6076_v10  ;;  %v6936_v10 = vld [vmem:[%s9659_s7 + $0x68] sm:$0xff] }
0x17d4   :  { %6564 = vmatpush.msrb.mxu2 %v6936_v10 }
0x17d6   :  { %6565 = vmatpush.msrb.mxu2 %v6935_v1 }
0x17db   :  { %v6192_v20 = vpop.f32.mrf.mxu1 }
0x17dc   :  { %6360 = vst [vmem:[#allocation1 + $0x21] ss:$4 sm:$0xff] %v6192_v20 }
0x17e8   :  { %v6047_v23 = vpop.f32.mrf.mxu3 }
0x17e9   :  { %6350 = vst [vmem:[#allocation1] ss:$4 sm:$0xff] %v6047_v23 }
0x17f0   :  { %v6163_v54 = vpop.f32.mrf.mxu3 }
0x17f1   :  { %6358 = vst [vmem:[#allocation1 + $0x20] ss:$4 sm:$0xff] %v6163_v54  ;;  %v6934_v54 = vld [vmem:[%s9659_s7 + $0x58] sm:$0xff] }
0x17f2   :  { %6566 = vmatpush.msrb.mxu2 %v6934_v54 }
0x17f4   :  { %v6221_v59 = vpop.f32.mrf.mxu0  ;;  %v6134_v9 = vpop.f32.mrf.mxu2  ;;  %6567 = vmatpush.msrb.mxu2 %v6933_v18 }
0x17f5   :  { %6362 = vst [vmem:[#allocation1 + $0x22] ss:$4 sm:$0xff] %v6221_v59 }
0x17f6   :  { %6356 = vst [vmem:[#allocation1 + $0x3] ss:$4 sm:$0xff] %v6134_v9 }
0x17fc   :  { %v6250_v50 = vpop.f32.mrf.mxu2 }
0x17fd   :  { %v6365_v52 = vld.sshfl [vmem:[#allocation1] sm:$0xff pattern:$0x73625140]  ;;  %6364 = vst [vmem:[#allocation1 + $0x23] ss:$4 sm:$0xff] %v6250_v50 }
0x17fe   :  { %6367 = vrot.lane.b32.xlu1 %v6365_v52, %s7291_s18 }
0x1804   :  { %v6366_v57 = vld.sshfl [vmem:[#allocation1 + $0x20] sm:$0xff pattern:$0x73625140] }
0x1806   :  { %6369 = vrot.lane.b32.xlu1 %v6366_v57, %s7291_s18 }
0x1870   :  { %v6368_v8 = vpop.permute.xlu1 %6367 }
0x1871   :  { %v6377_v29 = vsel %vm9724_vm13, %v6375_v33, %v6368_v8  ;;  %vm9735_vm13 = vmmov %vm9731_vm0 }
0x1872   :  { %6917 = vmatmul.msk.f32.vlgmr.msrb.gmra.mxu3 %vm9725_vm3, %v6377_v29  ;;  %vm9736_vm3 = vmmov %vm9731_vm0 }
0x1878   :  { %v6370_v11 = vpop.permute.xlu1 %6369 }
0x1879   :  { %v6378_v60 = vsel %vm9726_vm7, %v6376_v43, %v6370_v11  ;;  %vm9737_vm7 = vcmask 523264  }
0x187a   :  { %6918 = vmatmul.msk.f32.gmra.mxu3 %vm9727_vm8, %v6378_v60  ;;  %vm9738_vm8 = vmmov %vm9737_vm7 }
0x18f5   :  { %v6408_v49 = vpop.f32.mrf.mxu3 }
0x18f6   :  { %v6409_v31 = vadd.f32 %v6408_v49, %v6384_v48  ;;  %v6931_v49 = vld [vmem:[%s9659_s7 + $0x40] sm:$0xff] }
0x18f8   :  { %6923 = vmatmul.msk.f32.vlgmr.msrb.gmra.mxu1 %vm9728_vm12, %v6409_v31  ;;  %vm6593_vm12 = vcmask 254976  }
0x18fd   :  { %v6411_v15 = vpop.f32.mrf.mxu3 }
0x18fe   :  { %v6412_v35 = vadd.f32 %v6411_v15, %v6384_v48  ;;  %v6932_v48 = vld [vmem:[%s9659_s7 + $0x48] sm:$0xff]  ;;  %s7293_s7 = smov [#allocation2]  }
0x18ff   :  { %6568 = vmatpush.msrb.mxu2 %v6932_v48 }
0x1900   :  { %6924 = vmatmul.msk.f32.gmra.mxu1 %vm9729_vm11, %v6412_v35 }
0x1901   :  { %6569 = vmatpush.msrb.mxu2 %v6931_v49 }
0x1975   :  { %v6443_v28 = vpop.f32.mrf.mxu1 }
0x1976   :  { %v6444_v24 = vadd.f32 %v6443_v28, %v6419_v22 }
0x1978   :  { %v6449_v2 = vadd.f32 %v6444_v24, %v6409_v31  ;;  %v6506_v31 = vperm.slane %v9580_v44, 7 }
0x197a   :  { %v6451_v41 = vsel %vm9730_vm9, %v6449_v2, 0.0 }
0x197b   :  { %6452 = vadd.xlane.f32.xlu0 %v6451_v41  ;;  %v7292_v41 = vmov 8.0  }
0x197d   :  { %v6446_v5 = vpop.f32.mrf.mxu1 }
0x197e   :  { %v6447_v53 = vadd.f32 %v6446_v5, %v6419_v22  ;;  %v6966_v5 = vld [vmem:[%s9660_s8 + $0x18] ss:$0 sm:$0xff]  ;;  %s6623_s8 = sshll.u32 %s7293_s7, 4  ;;  %s6624_s8 = int_to_ptr.vmem [resolvable:$true] %s6623_s8 }
0x1980   :  { %v6450_v7 = vadd.f32 %v6447_v53, %v6412_v35 }
0x1982   :  { %v6454_v36 = vsel %vm9731_vm0, %v6450_v7, 0.0 }
0x1983   :  { %6455 = vadd.xlane.f32.xlu2 %v6454_v36 }
0x19ee   :  { %v6453_v58 = vpop.xlane.xlu0 %6452 }
0x19ef   :  { %v6457_v55 = vmul.f32 %v6453_v58, %v9732_v13 }
0x19f1   :  { %v6459_v25 = vsub.f32 %v6449_v2, %v6457_v55 }
0x19f3   :  { %v6461_v56 = vmul.f32 %v6459_v25, %v6459_v25 }
0x19f5   :  { %v6463_v51 = vsel %vm9733_vm14, %v6461_v56, 0.0 }
0x19f6   :  { %v6456_v21 = vpop.xlane.xlu2 %6455  ;;  %6464 = vadd.xlane.f32.xlu1 %v6463_v51 }
0x19f7   :  { %v6458_v3 = vmul.f32 %v6456_v21, %v9732_v13 }
0x19f9   :  { %v6460_v6 = vsub.f32 %v6450_v7, %v6458_v3 }
0x19fb   :  { %v6462_v62 = vmul.f32 %v6460_v6, %v6460_v6 }
0x19fd   :  { %v6466_v39 = vsel %vm9734_vm1, %v6462_v62, 0.0 }
0x19fe   :  { %6467 = vadd.xlane.f32.xlu0 %v6466_v39 }
0x1a69   :  { %v6465_v37 = vpop.xlane.xlu1 %6464 }
0x1a6a   :  { %v6469_v32 = vmul.f32 %v6465_v37, %v9732_v13 }
0x1a6c   :  { %v6471_v38 = vadd.f32 1e-05, %v6469_v32 }
0x1a6e   :  { %7237 = vrsqrt.f32 %v6471_v38  ;;  %vm6479_vm5 = vweird.f32 %v6471_v38 }
0x1a71   :  { %v6468_v20 = vpop.xlane.xlu0 %6467 }
0x1a72   :  { %v6470_v47 = vmul.f32 %v6468_v20, %v9732_v13 }
0x1a74   :  { %v7238_v0 = vpop.eup %7237  ;;  %v6472_v23 = vadd.f32 1e-05, %v6470_v47 }
0x1a75   :  { %v6474_v59 = vmul.f32 %v7238_v0, %v6471_v38  ;;  %vm6480_vm2 = vweird.f32 %v7238_v0 }
0x1a76   :  { %7239 = vrsqrt.f32 %v6472_v23  ;;  %vm6481_vm4 = vmor %vm6479_vm5, %vm6480_vm2  ;;  %vm6489_vm15 = vweird.f32 %v6472_v23 }
0x1a77   :  { %v6475_v9 = vmul.f32 %v7238_v0, %v6474_v59  ;;  %7241 = vrcp.f32 %v7292_v41 }
0x1a79   :  { %v6476_v50 = vmul.f32 0.5, %v6475_v9 }
0x1a7b   :  { %v6477_v52 = vsub.f32 1.5, %v6476_v50 }
0x1a7c   :  { %v7240_v57 = vpop.eup %7239 }
0x1a7d   :  { %v6478_v63 = vmul.f32 %v7238_v0, %v6477_v52  ;;  %v6484_v61 = vmul.f32 %v7240_v57, %v6472_v23  ;;  %vm6490_vm10 = vweird.f32 %v7240_v57  ;;  %v7242_v53 = vpop.eup %7241 }
0x1a7e   :  { %vm6491_vm6 = vmor %vm6489_vm15, %vm6490_vm10  ;;  %v6610_v58 = vmul.f32 8.0, %v7242_v53  ;;  %vm6614_vm11 = vweird.f32 %v7242_v53 }
0x1a7f   :  { %v6482_v30 = vsel %vm6481_vm4, %v7238_v0, %v6478_v63  ;;  %v6485_v42 = vmul.f32 %v7240_v57, %v6484_v61 }
0x1a80   :  { %v6493_v8 = vmul.f32 %v6482_v30, %v6459_v25  ;;  %v6611_v21 = vsub.f32 1.0, %v6610_v58 }
0x1a81   :  { %v6486_v33 = vmul.f32 0.5, %v6485_v42 }
0x1a82   :  { %v6496_v29 = vmul.f32 %v6495_v26, %v6493_v8  ;;  %v6612_v12 = vmul.f32 %v7242_v53, %v6611_v21 }
0x1a83   :  { %v6487_v17 = vsub.f32 1.5, %v6486_v33 }
0x1a84   :  { %v6499_v46 = vadd.f32 %v6498_v19, %v6496_v29  ;;  %v6613_v47 = vadd.f32 %v7242_v53, %v6612_v12 }
0x1a85   :  { %v6488_v34 = vmul.f32 %v7240_v57, %v6487_v17 }
0x1a86   :  { %6929 = vmatmul.msk.f32.vlgmr.msra.gmra.mxu0 %vm9735_vm13, %v6499_v46  ;;  %v6615_v59 = vsel %vm6614_vm11, %v7242_v53, %v6613_v47 }
0x1a87   :  { %v6492_v11 = vsel %vm6491_vm6, %v7240_v57, %v6488_v34 }
0x1a88   :  { %v6494_v43 = vmul.f32 %v6492_v11, %v6460_v6 }
0x1a8a   :  { %v6497_v60 = vmul.f32 %v6495_v26, %v6494_v43 }
0x1a8c   :  { %v6500_v27 = vadd.f32 %v6498_v19, %v6497_v60 }
0x1a8e   :  { %6930 = vmatmul.msk.f32.gmra.mxu0 %vm9736_vm3, %v6500_v27 }
0x1b03   :  { %v6530_v15 = vpop.f32.mrf.mxu0 }
0x1b04   :  { %v6531_v35 = vadd.f32 %v6530_v15, %v6506_v31 }
0x1b06   :  { %v6536_v22 = vmax.f32 %v6531_v35, 0.0 }
0x1b08   :  { %6939 = vmatmul.msk.f32.vlgmr.msrb.gmra.mxu2 %vm9737_vm7, %v6536_v22 }
0x1b0b   :  { %v6533_v28 = vpop.f32.mrf.mxu0 }
0x1b0c   :  { %v6534_v24 = vadd.f32 %v6533_v28, %v6506_v31 }
0x1b0e   :  { %v6537_v2 = vmax.f32 %v6534_v24, 0.0 }
0x1b10   :  { %6940 = vmatmul.msk.f32.gmra.mxu2 %vm9738_vm8, %v6537_v2 }
0x1b8b   :  { %v6571_v7 = vpop.f32.mrf.mxu2 }
0x1b8c   :  { %v6572_v36 = vadd.f32 %v6966_v5, %v6571_v7 }
0x1b8e   :  { %v6577_v44 = vadd.f32 %v6572_v36, %v6499_v46 }
0x1b90   :  { %v6581_v13 = vrot.slane %v6577_v44, 2  ;;  %v6582_v55 = vrot.slane %v6577_v44, 4  ;;  %v6583_v25 = vrot.slane %v6577_v44, 6  ;;  %v6594_v56 = vsel %vm6593_vm12, %v6577_v44, 0.0 }
0x1b92   :  { %v6595_v51 = vsel %vm6593_vm12, %v6581_v13, 0.0  ;;  %v6597_v62 = vsel %vm6593_vm12, %v6582_v55, 0.0  ;;  %v6599_v4 = vsel %vm6593_vm12, %v6583_v25, 0.0 }
0x1b93   :  { %v6596_v3 = vadd.f32 %v6595_v51, %v6594_v56  ;;  %v6574_v6 = vpop.f32.mrf.mxu2 }
0x1b94   :  { %v6575_v39 = vadd.f32 %v6966_v5, %v6574_v6 }
0x1b95   :  { %v6598_v16 = vadd.f32 %v6597_v62, %v6596_v3 }
0x1b96   :  { %v6578_v14 = vadd.f32 %v6575_v39, %v6500_v27 }
0x1b97   :  { %v6600_v37 = vadd.f32 %v6599_v4, %v6598_v16 }
0x1b98   :  { %v6584_v32 = vrot.slane %v6578_v14, 2  ;;  %v6585_v38 = vrot.slane %v6578_v14, 4  ;;  %v6601_v40 = vsel %vm6593_vm12, %v6578_v14, 0.0  ;;  %v6586_v10 = vrot.slane %v6578_v14, 6 }
0x1b99   :  { %v6602_v45 = vadd.f32 %v6601_v40, %v6600_v37 }
0x1b9a   :  { %v6603_v20 = vsel %vm6593_vm12, %v6584_v32, 0.0  ;;  %v6605_v0 = vsel %vm6593_vm12, %v6585_v38, 0.0  ;;  %v6607_v54 = vsel %vm6593_vm12, %v6586_v10, 0.0 }
0x1b9b   :  { %v6604_v1 = vadd.f32 %v6603_v20, %v6602_v45 }
0x1b9d   :  { %v6606_v23 = vadd.f32 %v6605_v0, %v6604_v1 }
0x1b9f   :  { %v6608_v9 = vadd.f32 %v6607_v54, %v6606_v23 }
0x1ba1   :  { %v6616_v50 = vmul.f32 %v6615_v59, %v6608_v9 }
0x1ba3   :  { %6617 = vst.msk [vmem:[#allocation2] sm:$0x3] %vm6593_vm12, %v6616_v50 }
0x1ba4   :  { %6628 = dma.vmem_to_hbm [thread:$0]  %s6624_s8, 32, %s6626_s5, [#allocation3]  }
0x1ba5   :  { %7269 = dma.done.wait [#allocation3], 32  }
0x1ba6   :  { %7270 = vsyncadd [#allocation3], 4294967264 }
0x1ba7   :  { %6633 = vsyncpa [#allocation3], 1 }

</bundles_post_ra>
